<compile_context>
chip_gen: v5e
topology: v5e:2x2
jax: 0.10.0
libtpu: 0.0.40
codegen_flags: <defaults>
</compile_context>

<pallas_src>
import functools
import math

import jax
import jax.numpy as jnp
from jax.experimental import pallas as pl
from jax.experimental.pallas import tpu as pltpu

# ----------------------------------------------------------------------------
# Small test configuration (consistent with the module's forward semantics)
# ----------------------------------------------------------------------------
B = 2            # batch
CHANS = 8        # EEG channels (PyTorch default 122, scaled down)
T = 40           # raw time samples
P1, P2 = 2, 5    # pooling factors -> sequence length SEQ = T // (P1 * P2)
SEQ = T // (P1 * P2)
F1, D = 8, 8                 # size1, size2
F2 = F1 * D                  # feature_dim = 64
D_MODEL = F2
NHEAD = max(1, D_MODEL // 8)
HEAD_DIM = D_MODEL // NHEAD
FF = 4 * D_MODEL
NLAYERS = 2
CLS = 39
CLS_PAD = 128                # pad MLP head output to 128 lanes (lane-dense store)
K1_STD, K2_STD = 9, 5        # feel1 / feel2 (standard branch; scaled from 125 / 25)
K1_3B, K2_3B = 6, 4          # feel1 / feel2 (3-band branch;  scaled from 20 / 10)
LN_EPS = 1e-5
BN_EPS = 1e-5
VMEM_LIMIT = 32 * 1024 * 1024


def _const_spec(a):
    """Full-array block replicated to every grid step (weights / constants)."""
    nd = a.ndim
    return pl.BlockSpec(tuple(a.shape), lambda i, _nd=nd: (0,) * _nd)


def _elu(v):
    # exp only on the clamped-negative side (no inf on the discarded branch).
    return jnp.where(v > 0, v, jnp.exp(jnp.minimum(v, 0.0)) - 1.0)


def _ln(x, g, b):
    mu = jnp.mean(x, axis=-1, keepdims=True)
    xc = x - mu
    var = jnp.mean(xc * xc, axis=-1, keepdims=True)
    return xc * jax.lax.rsqrt(var + LN_EPS) * g + b


# ----------------------------------------------------------------------------
# Fused CNN kernel (one per extractor branch, grid over batch)
# ----------------------------------------------------------------------------
def _cnn_kernel(x_ref, w1_ref, wdw_ref, bdw_ref, pool1_ref, wsep_ref,
                wpw_ref, bpw_ref, pool2_ref, o_ref, *,
                cin, chans, k1, k2, t, t1, seq, fdim, lane_off):
    xb = x_ref[...]             # (Cin*C, T + k1 - 1)  time on lanes
    w1 = w1_ref[...]            # (F1*Cin*k1, 1)       temporal-conv taps
    wdw = wdw_ref[...]          # (F1*D, C)   bf16     BN1*BN2-scaled depthwise spatial
    bdw = bdw_ref[...]          # (F1*D, 1)            folded bias
    pool1 = pool1_ref[...]      # (T, T1 + k2 - 1)     avg-pool + zero-pad columns
    wsep = wsep_ref[...]        # (F1*D, k2)           separable depthwise temporal conv
    wpw = wpw_ref[...]          # (F2, F1*D)  bf16     pointwise conv, BN3 scale folded
    bpw = bpw_ref[...]          # (F2, 1)
    pool2 = pool2_ref[...]      # (T1, SEQ)

    dmul = fdim // F1
    # shifted time windows, computed once and reused by every F1 temporal filter
    shifts = [xb[ci * chans:(ci + 1) * chans, i:i + t]
              for ci in range(cin) for i in range(k1)]

    z_blocks = []
    for f in range(F1):
        # temporal conv for filter f: Cin*k1 scalar-broadcast FMAs over (C, T)
        y_f = jnp.zeros((chans, t), jnp.float32)
        base = f * cin * k1
        for j in range(cin * k1):
            y_f = y_f + shifts[j] * w1[base + j:base + j + 1, :]
        # grouped depthwise spatial conv (+ folded BN1/BN2 scale): (D, C) @ (C, T)
        dwg = wdw[f * dmul:(f + 1) * dmul, :]
        z_blocks.append(jnp.dot(dwg, y_f.astype(jnp.bfloat16),
                                preferred_element_type=jnp.float32))
    z = jnp.concatenate(z_blocks, axis=0) + bdw                       # (F1*D, T)
    z = _elu(z)
    # avg-pool P1 as a matmul; result already zero-padded for the k2 conv
    z1 = jnp.dot(z, pool1, preferred_element_type=jnp.float32)        # (F1*D, T1+k2-1)
    # separable depthwise temporal conv (k2 shifted FMAs)
    acc = jnp.zeros((fdim, t1), jnp.float32)
    for i in range(k2):
        acc = acc + z1[:, i:i + t1] * wsep[:, i:i + 1]
    # pointwise conv + folded BN3 + ELU
    o3 = jnp.dot(wpw, acc.astype(jnp.bfloat16),
                 preferred_element_type=jnp.float32) + bpw            # (F2, T1)
    o3 = _elu(o3)
    # avg-pool P2 + transpose in one dot_general -> (SEQ, F2), features on lanes
    pooled = jax.lax.dot_general(pool2, o3, (((0,), (1,)), ((), ())),
                                 preferred_element_type=jnp.float32)  # (SEQ, F2)
    # lane-dense 128-wide store: this branch's features occupy its own lane half
    pad = jnp.zeros((seq, F2), jnp.float32)
    out = (jnp.concatenate([pooled, pad], axis=1) if lane_off == 0
           else jnp.concatenate([pad, pooled], axis=1))
    o_ref[...] = out                                                  # (SEQ, 2*F2)


def _bn_affine(bn):
    inv = 1.0 / jnp.sqrt(bn["var"] + BN_EPS)
    return bn["gamma"] * inv, bn["beta"] - bn["mean"] * bn["gamma"] * inv


def _fold_cnn_params(p, cin, k1, k2):
    """Fold BN affines into conv weights; no kron / block-diag expansions."""
    sc1, sh1 = _bn_affine(p["bn1"])          # (F1,)
    sc2, sh2 = _bn_affine(p["bn2"])          # (F1*D,)
    sc3, sh3 = _bn_affine(p["bn3"])          # (F2,)

    f_of = jnp.repeat(jnp.arange(F1), D)                         # out-feature -> F1 group
    w1col = p["conv1_w"].reshape(-1, 1)                          # (F1*Cin*k1, 1)
    wdw = (p["dw_w"] * (sc1[f_of] * sc2)[:, None]).astype(jnp.bfloat16)   # (F1*D, C)
    bdw = (sh1[f_of] * jnp.sum(p["dw_w"], axis=1) * sc2 + sh2)[:, None]   # (F1*D, 1)

    t1 = T // P1
    padl = (k2 - 1) // 2
    pool1 = (1.0 / P1) * jax.nn.one_hot(padl + jnp.arange(T) // P1,
                                        t1 + k2 - 1, dtype=jnp.float32)
    pool2 = (1.0 / P2) * jax.nn.one_hot(jnp.arange(t1) // P2, SEQ, dtype=jnp.float32)

    wpw = (p["pw_w"] * sc3[None, :]).T.astype(jnp.bfloat16)      # (F2, F1*D)
    bpw = sh3[:, None]                                           # (F2, 1)
    return dict(w1col=w1col, wdw=wdw, bdw=bdw, pool1=pool1, wsep=p["sep_dw_w"],
                wpw=wpw, bpw=bpw, pool2=pool2)


def cnn_branch(x4d, folded, k1, k2, lane_off):
    # x4d: (B, Cin, Chans, T) -> lane-dense slab (B, SEQ, 2*F2), this branch's
    # features in lanes [lane_off : lane_off + F2], zeros elsewhere.
    b, cin, c, t = x4d.shape
    t1 = t // P1
    xp = jnp.pad(x4d, ((0, 0), (0, 0), (0, 0), ((k1 - 1) // 2, k1 // 2)))
    xpad = xp.reshape(b, cin * c, t + k1 - 1)
    kern = functools.partial(_cnn_kernel, cin=cin, chans=c, k1=k1, k2=k2,
                             t=t, t1=t1, seq=t1 // P2, fdim=F1 * D,
                             lane_off=lane_off)
    in_specs = [
        pl.BlockSpec((None, cin * c, t + k1 - 1), lambda i: (i, 0, 0)),
        _const_spec(folded["w1col"]), _const_spec(folded["wdw"]),
        _const_spec(folded["bdw"]), _const_spec(folded["pool1"]),
        _const_spec(folded["wsep"]), _const_spec(folded["wpw"]),
        _const_spec(folded["bpw"]), _const_spec(folded["pool2"]),
    ]
    return pl.pallas_call(
        kern,
        grid=(b,),
        in_specs=in_specs,
        out_specs=pl.BlockSpec((None, SEQ, 2 * F2), lambda i: (i, 0, 0)),
        out_shape=jax.ShapeDtypeStruct((b, SEQ, 2 * F2), jnp.float32),
        compiler_params=pltpu.CompilerParams(
            dimension_semantics=("parallel",), vmem_limit_bytes=VMEM_LIMIT),
    )(xpad, folded["w1col"], folded["wdw"], folded["bdw"], folded["pool1"],
      folded["wsep"], folded["wpw"], folded["bpw"], folded["pool2"])


# ----------------------------------------------------------------------------
# Fused transformer (+ pos-enc + pooling + MLP head) kernel, grid over batch
# ----------------------------------------------------------------------------
def _transformer_head_kernel(z_ref, pe_ref, mask_ref, hs_ref,
                             wqkv_ref, bqkv_ref, wo_ref, bo_ref,
                             g1_ref, be1_ref, w1f_ref, b1f_ref,
                             w2f_ref, b2f_ref, g2_ref, be2_ref,
                             wm1_ref, bm1_ref, wm2_ref, bm2_ref, o_ref,
                             *, nlayers, seq, dmodel, nhead):
    dh = dmodel // nhead
    scale = 1.0 / math.sqrt(dh)

    mask = mask_ref[...]                                   # (1, S)  1 = valid
    key_bias = (1.0 - mask) * (-1e9)                       # f32, applied post-matmul
    pe = pe_ref[...]                                       # (S, D)
    hs = hs_ref[...]                                       # (H*S, D) head lane masks
    slab = z_ref[...]                                      # (S, 2*D)

    feats = []
    for br in range(2):                                    # 0 = std, 1 = 3-band
        x = slab[:, br * dmodel:(br + 1) * dmodel] + pe    # (S, D) f32
        for l in range(nlayers):
            idx = br * nlayers + l
            qkv = jnp.dot(x.astype(jnp.bfloat16), wqkv_ref[idx],
                          preferred_element_type=jnp.float32) + bqkv_ref[idx]
            q = qkv[:, 0 * dmodel:1 * dmodel]
            k = qkv[:, 1 * dmodel:2 * dmodel]
            v = qkv[:, 2 * dmodel:3 * dmodel]

            # collapse all heads into one score matmul: stack lane-masked q blocks
            # along sublanes -> (H*S, D); contraction over D only sees each head's
            # own lanes, so row block h holds that head's (S, S) scores.
            q_stack = jnp.tile(q, (nhead, 1)) * hs                     # (H*S, D)
            s = jax.lax.dot_general(q_stack.astype(jnp.bfloat16),
                                    k.astype(jnp.bfloat16),
                                    (((1,), (1,)), ((), ())),
                                    preferred_element_type=jnp.float32)  # (H*S, S)
            s = s * scale + key_bias
            m = jnp.max(s, axis=-1, keepdims=True)
            p = jnp.exp(s - m)
            p = p * pl.reciprocal(jnp.sum(p, axis=-1, keepdims=True), approx=True)
            pv = jnp.dot(p.astype(jnp.bfloat16), v.astype(jnp.bfloat16),
                         preferred_element_type=jnp.float32)            # (H*S, D)
            # recombine heads: lane-mask each head's block and sum (cheap VPU adds)
            attn = jnp.zeros((seq, dmodel), jnp.float32)
            for h in range(nhead):
                attn = attn + pv[h * seq:(h + 1) * seq, :] * hs[h * seq:h * seq + 1, :]

            attn = jnp.dot(attn.astype(jnp.bfloat16), wo_ref[idx],
                           preferred_element_type=jnp.float32) + bo_ref[idx]
            x = _ln(x + attn, g1_ref[idx], be1_ref[idx])
            hmid = jnp.dot(x.astype(jnp.bfloat16), w1f_ref[idx],
                           preferred_element_type=jnp.float32) + b1f_ref[idx]
            hmid = jnp.maximum(hmid, 0.0)
            hout = jnp.dot(hmid.astype(jnp.bfloat16), w2f_ref[idx],
                           preferred_element_type=jnp.float32) + b2f_ref[idx]
            x = _ln(x + hout, g2_ref[idx], be2_ref[idx])

        # masked mean pooling (clamped denominator)
        num = jnp.dot(mask, x, preferred_element_type=jnp.float32)      # (1, D)
        den = jnp.maximum(jnp.sum(mask, axis=-1, keepdims=True), 1e-6)
        feats.append(num * pl.reciprocal(den, approx=True))

    # fuse branch features (1, 2D) and run the MLP head (CLS padded to 128 lanes)
    fused = jnp.concatenate(feats, axis=1)                              # (1, 2*D)
    hid = jnp.dot(fused.astype(jnp.bfloat16), wm1_ref[...],
                  preferred_element_type=jnp.float32) + bm1_ref[...]
    hid = jnp.maximum(hid, 0.0)
    out = jnp.dot(hid.astype(jnp.bfloat16), wm2_ref[...],
                  preferred_element_type=jnp.float32) + bm2_ref[...]
    o_ref[...] = out                                                    # (1, CLS_PAD)


def _stack_layer_params(params):
    """Stack per-(branch, layer) transformer weights along one leading axis."""
    def stack(name, is_vec, dtype):
        arrs = [params[k]["layers"][l][name]
                for k in ("std", "b3") for l in range(NLAYERS)]
        out = jnp.stack(arrs, axis=0)                    # (2*NLAYERS, ...)
        if is_vec:
            out = out.reshape(2 * NLAYERS, 1, -1)
        return out.astype(dtype)
    bf, f32 = jnp.bfloat16, jnp.float32
    return {
        "wqkv": stack("in_proj_w", False, bf), "bqkv": stack("in_proj_b", True, f32),
        "wo": stack("out_proj_w", False, bf), "bo": stack("out_proj_b", True, f32),
        "g1": stack("ln1_g", True, f32), "be1": stack("ln1_b", True, f32),
        "w1f": stack("ff1_w", False, bf), "b1f": stack("ff1_b", True, f32),
        "w2f": stack("ff2_w", False, bf), "b2f": stack("ff2_b", True, f32),
        "g2": stack("ln2_g", True, f32), "be2": stack("ln2_b", True, f32),
    }


def transformer_head(z_slab, mask, params, pe):
    stk = _stack_layer_params(params)
    wm1 = params["mlp_w1"].astype(jnp.bfloat16)
    bm1 = params["mlp_b1"].reshape(1, -1)
    wm2p = jnp.pad(params["mlp_w2"], ((0, 0), (0, CLS_PAD - CLS))).astype(jnp.bfloat16)
    bm2p = jnp.pad(params["mlp_b2"], (0, CLS_PAD - CLS)).reshape(1, CLS_PAD)
    mask3 = mask.reshape(B, 1, SEQ)
    # head-selection lane masks, one row per (head, query) sublane position
    lane = jnp.arange(D_MODEL)[None, :]
    hm = (lane // HEAD_DIM == jnp.arange(NHEAD)[:, None]).astype(jnp.float32)  # (H, D)
    hs = jnp.repeat(hm, SEQ, axis=0)                                           # (H*S, D)

    kern = functools.partial(_transformer_head_kernel, nlayers=NLAYERS,
                             seq=SEQ, dmodel=D_MODEL, nhead=NHEAD)
    in_specs = [
        pl.BlockSpec((None, SEQ, 2 * F2), lambda i: (i, 0, 0)),
        _const_spec(pe),
        pl.BlockSpec((None, 1, SEQ), lambda i: (i, 0, 0)),
        _const_spec(hs),
        _const_spec(stk["wqkv"]), _const_spec(stk["bqkv"]),
        _const_spec(stk["wo"]), _const_spec(stk["bo"]),
        _const_spec(stk["g1"]), _const_spec(stk["be1"]),
        _const_spec(stk["w1f"]), _const_spec(stk["b1f"]),
        _const_spec(stk["w2f"]), _const_spec(stk["b2f"]),
        _const_spec(stk["g2"]), _const_spec(stk["be2"]),
        _const_spec(wm1), _const_spec(bm1), _const_spec(wm2p), _const_spec(bm2p),
    ]
    out = pl.pallas_call(
        kern,
        grid=(B,),
        in_specs=in_specs,
        out_specs=pl.BlockSpec((None, 1, CLS_PAD), lambda i: (i, 0, 0)),
        out_shape=jax.ShapeDtypeStruct((B, 1, CLS_PAD), jnp.float32),
        compiler_params=pltpu.CompilerParams(
            dimension_semantics=("parallel",), vmem_limit_bytes=VMEM_LIMIT),
    )(z_slab, pe, mask3, hs,
      stk["wqkv"], stk["bqkv"], stk["wo"], stk["bo"],
      stk["g1"], stk["be1"], stk["w1f"], stk["b1f"],
      stk["w2f"], stk["b2f"], stk["g2"], stk["be2"],
      wm1, bm1, wm2p, bm2p)
    return out.reshape(B, CLS_PAD)[:, :CLS]


# ----------------------------------------------------------------------------
# Wrapper glue (wavelet stand-in, pos-enc, full forward)
# ----------------------------------------------------------------------------
# TODO(synk): exact WaveletTransform3Channel definition unavailable; approximated by
# three fixed depthwise FIR band filters (low / mid / high) along time.
_WAVELET_FILTERS = [
    [0.25, 0.25, 0.25, 0.25],
    [0.50, 0.50, -0.50, -0.50],
    [0.50, -0.50, 0.00, 0.00],
]


def wavelet3(x):
    # x: (B, Chans, T) -> (B, 3, Chans, T); 'same' zero-padded FIR filters.
    # Tiny elementwise shifted-sum; XLA fuses it (no Pallas launch needed).
    kw = len(_WAVELET_FILTERS[0])
    t = x.shape[-1]
    xp = jnp.pad(x, ((0, 0), (0, 0), ((kw - 1) // 2, kw // 2)))
    bands = []
    for j in range(3):
        acc = jnp.zeros_like(x)
        for i in range(kw):
            acc = acc + xp[:, :, i:i + t] * _WAVELET_FILTERS[j][i]
        bands.append(acc)
    return jnp.stack(bands, axis=1)


def _sinusoidal_pe(max_len, d):
    pos = jnp.arange(max_len, dtype=jnp.float32)[:, None]
    div = jnp.exp(jnp.arange(0, d, 2, dtype=jnp.float32) * (-math.log(10000.0) / d))
    pe = jnp.zeros((max_len, d), jnp.float32)
    pe = pe.at[:, 0::2].set(jnp.sin(pos * div))
    pe = pe.at[:, 1::2].set(jnp.cos(pos * div))
    return pe


def fused_eeg_forward(x, mask, params, pe):
    x_std = x[:, None]                                 # (B, 1, Chans, T)
    x_3b = wavelet3(x)                                 # (B, 3, Chans, T)
    z_std = cnn_branch(x_std, _fold_cnn_params(params["std"], 1, K1_STD, K2_STD),
                       K1_STD, K2_STD, lane_off=0)     # (B, SEQ, 128), lanes 0:64
    z_3b = cnn_branch(x_3b, _fold_cnn_params(params["b3"], 3, K1_3B, K2_3B),
                      K1_3B, K2_3B, lane_off=F2)       # (B, SEQ, 128), lanes 64:128
    z = z_std + z_3b                                   # single lane-dense slab
    return transformer_head(z, mask, params, pe)       # (B, CLS)


# ----------------------------------------------------------------------------
# Deterministic parameter initialization (synthetic, no checkpoint load)
# ----------------------------------------------------------------------------
def _bn_init(key, c):
    k1, k2, k3 = jax.random.split(key, 3)
    return {
        "gamma": 1.0 + 0.1 * jax.random.normal(k1, (c,), jnp.float32),
        "beta": 0.1 * jax.random.normal(k2, (c,), jnp.float32),
        "mean": 0.1 * jax.random.normal(k3, (c,), jnp.float32),
        "var": jnp.ones((c,), jnp.float32),
    }


def _init_extractor(key, cin, k1, k2):
    keys = iter(jax.random.split(key, 32))
    nrm = lambda shape, s=0.1: s * jax.random.normal(next(keys), shape, jnp.float32)
    p = {
        "conv1_w": nrm((F1, cin, k1)),
        "bn1": _bn_init(next(keys), F1),
        "dw_w": nrm((F1 * D, CHANS)),
        "bn2": _bn_init(next(keys), F1 * D),
        "sep_dw_w": nrm((F1 * D, k2)),
        "pw_w": nrm((F1 * D, F2)),
        "bn3": _bn_init(next(keys), F2),
        "layers": [],
    }
    for _ in range(NLAYERS):
        p["layers"].append({
            "in_proj_w": nrm((D_MODEL, 3 * D_MODEL)),
            "in_proj_b": nrm((3 * D_MODEL,), 0.02),
            "out_proj_w": nrm((D_MODEL, D_MODEL)),
            "out_proj_b": nrm((D_MODEL,), 0.02),
            "ff1_w": nrm((D_MODEL, FF)),
            "ff1_b": nrm((FF,), 0.02),
            "ff2_w": nrm((FF, D_MODEL)),
            "ff2_b": nrm((D_MODEL,), 0.02),
            "ln1_g": jnp.ones((D_MODEL,), jnp.float32),
            "ln1_b": jnp.zeros((D_MODEL,), jnp.float32),
            "ln2_g": jnp.ones((D_MODEL,), jnp.float32),
            "ln2_b": jnp.zeros((D_MODEL,), jnp.float32),
        })
    return p


def init_params(key):
    k_std, k_3b, k1, k2, k3, k4 = jax.random.split(key, 6)
    return {
        "std": _init_extractor(k_std, 1, K1_STD, K2_STD),
        "b3": _init_extractor(k_3b, 3, K1_3B, K2_3B),
        "mlp_w1": 0.1 * jax.random.normal(k1, (2 * D_MODEL, 128), jnp.float32),
        "mlp_b1": 0.02 * jax.random.normal(k2, (128,), jnp.float32),
        "mlp_w2": 0.1 * jax.random.normal(k3, (128, CLS), jnp.float32),
        "mlp_b2": 0.02 * jax.random.normal(k4, (CLS,), jnp.float32),
    }


if __name__ == "__main__":
    key = jax.random.PRNGKey(0)
    k_x, k_p = jax.random.split(key)
    x = jax.random.normal(k_x, (B, CHANS, T), jnp.float32)
    mask = jnp.array([[1.0, 1.0, 1.0, 1.0],
                      [1.0, 1.0, 1.0, 0.0]], jnp.float32)   # (B, SEQ) 1 = valid
    params = init_params(k_p)
    pe = _sinusoidal_pe(SEQ, D_MODEL)

    out = jax.jit(fused_eeg_forward)(x, mask, params, pe)
    out = jax.block_until_ready(out)

    assert out.shape == (B, CLS), out.shape
    assert bool(jnp.all(jnp.isfinite(out)))
    print("KERNEL_OK")
</pallas_src>

<mosaic_0001>
module attributes {stable_mosaic.version = 11 : i64} {
  func.func @_cnn_kernel(%arg0: i32, %arg1: memref<1x24x45xf32, #tpu.memory_space<vmem>>, %arg2: memref<144x1xf32, #tpu.memory_space<vmem>>, %arg3: memref<64x8xbf16, #tpu.memory_space<vmem>>, %arg4: memref<64x1xf32, #tpu.memory_space<vmem>>, %arg5: memref<40x23xf32, #tpu.memory_space<vmem>>, %arg6: memref<64x4xf32, #tpu.memory_space<vmem>>, %arg7: memref<64x64xbf16, #tpu.memory_space<vmem>>, %arg8: memref<64x1xf32, #tpu.memory_space<vmem>>, %arg9: memref<20x4xf32, #tpu.memory_space<vmem>>, %arg10: memref<1x4x128xf32, #tpu.memory_space<vmem>>) attributes {dimension_semantics = [#tpu.dimension_semantics<parallel>], iteration_bounds = array<i64: 2>, scalar_prefetch = 0 : i64, scratch_operands = 0 : i64, tpu.core_type = #tpu.core_type<tc>, window_params = [{transform_indices = @transform_0, window_bounds = array<i64: 1, 24, 45>}, {pipeline_mode = #tpu.pipeline_mode<synchronous>, transform_indices = @transform_1, window_bounds = array<i64: 144, 1>}, {pipeline_mode = #tpu.pipeline_mode<synchronous>, transform_indices = @transform_2, window_bounds = array<i64: 64, 8>}, {pipeline_mode = #tpu.pipeline_mode<synchronous>, transform_indices = @transform_3, window_bounds = array<i64: 64, 1>}, {pipeline_mode = #tpu.pipeline_mode<synchronous>, transform_indices = @transform_4, window_bounds = array<i64: 40, 23>}, {pipeline_mode = #tpu.pipeline_mode<synchronous>, transform_indices = @transform_5, window_bounds = array<i64: 64, 4>}, {pipeline_mode = #tpu.pipeline_mode<synchronous>, transform_indices = @transform_6, window_bounds = array<i64: 64, 64>}, {pipeline_mode = #tpu.pipeline_mode<synchronous>, transform_indices = @transform_7, window_bounds = array<i64: 64, 1>}, {pipeline_mode = #tpu.pipeline_mode<synchronous>, transform_indices = @transform_8, window_bounds = array<i64: 20, 4>}, {transform_indices = @transform_9, window_bounds = array<i64: 1, 4, 128>}]} {
    %c0 = arith.constant 0 : index
    %c0_0 = arith.constant 0 : index
    %c0_1 = arith.constant 0 : index
    %0 = vector.load %arg1[%c0, %c0_0, %c0_1] : memref<1x24x45xf32, #tpu.memory_space<vmem>>, vector<1x24x45xf32>
    %1 = vector.shape_cast %0 : vector<1x24x45xf32> to vector<24x45xf32>
    %c0_2 = arith.constant 0 : index
    %c0_3 = arith.constant 0 : index
    %2 = vector.load %arg2[%c0_2, %c0_3] : memref<144x1xf32, #tpu.memory_space<vmem>>, vector<144x1xf32>
    %c0_4 = arith.constant 0 : index
    %c0_5 = arith.constant 0 : index
    %3 = vector.load %arg3[%c0_4, %c0_5] : memref<64x8xbf16, #tpu.memory_space<vmem>>, vector<64x8xbf16>
    %c0_6 = arith.constant 0 : index
    %c0_7 = arith.constant 0 : index
    %4 = vector.load %arg4[%c0_6, %c0_7] : memref<64x1xf32, #tpu.memory_space<vmem>>, vector<64x1xf32>
    %c0_8 = arith.constant 0 : index
    %c0_9 = arith.constant 0 : index
    %5 = vector.load %arg5[%c0_8, %c0_9] : memref<40x23xf32, #tpu.memory_space<vmem>>, vector<40x23xf32>
    %c0_10 = arith.constant 0 : index
    %c0_11 = arith.constant 0 : index
    %6 = vector.load %arg6[%c0_10, %c0_11] : memref<64x4xf32, #tpu.memory_space<vmem>>, vector<64x4xf32>
    %c0_12 = arith.constant 0 : index
    %c0_13 = arith.constant 0 : index
    %7 = vector.load %arg7[%c0_12, %c0_13] : memref<64x64xbf16, #tpu.memory_space<vmem>>, vector<64x64xbf16>
    %c0_14 = arith.constant 0 : index
    %c0_15 = arith.constant 0 : index
    %8 = vector.load %arg8[%c0_14, %c0_15] : memref<64x1xf32, #tpu.memory_space<vmem>>, vector<64x1xf32>
    %c0_16 = arith.constant 0 : index
    %c0_17 = arith.constant 0 : index
    %9 = vector.load %arg9[%c0_16, %c0_17] : memref<20x4xf32, #tpu.memory_space<vmem>>, vector<20x4xf32>
    %10 = vector.extract_strided_slice %1 {offsets = [0, 0], sizes = [8, 40], strides = [1, 1]} : vector<24x45xf32> to vector<8x40xf32>
    %11 = vector.extract_strided_slice %1 {offsets = [0, 1], sizes = [8, 40], strides = [1, 1]} : vector<24x45xf32> to vector<8x40xf32>
    %12 = vector.extract_strided_slice %1 {offsets = [0, 2], sizes = [8, 40], strides = [1, 1]} : vector<24x45xf32> to vector<8x40xf32>
    %13 = vector.extract_strided_slice %1 {offsets = [0, 3], sizes = [8, 40], strides = [1, 1]} : vector<24x45xf32> to vector<8x40xf32>
    %14 = vector.extract_strided_slice %1 {offsets = [0, 4], sizes = [8, 40], strides = [1, 1]} : vector<24x45xf32> to vector<8x40xf32>
    %15 = vector.extract_strided_slice %1 {offsets = [0, 5], sizes = [8, 40], strides = [1, 1]} : vector<24x45xf32> to vector<8x40xf32>
    %16 = vector.extract_strided_slice %1 {offsets = [8, 0], sizes = [8, 40], strides = [1, 1]} : vector<24x45xf32> to vector<8x40xf32>
    %17 = vector.extract_strided_slice %1 {offsets = [8, 1], sizes = [8, 40], strides = [1, 1]} : vector<24x45xf32> to vector<8x40xf32>
    %18 = vector.extract_strided_slice %1 {offsets = [8, 2], sizes = [8, 40], strides = [1, 1]} : vector<24x45xf32> to vector<8x40xf32>
    %19 = vector.extract_strided_slice %1 {offsets = [8, 3], sizes = [8, 40], strides = [1, 1]} : vector<24x45xf32> to vector<8x40xf32>
    %20 = vector.extract_strided_slice %1 {offsets = [8, 4], sizes = [8, 40], strides = [1, 1]} : vector<24x45xf32> to vector<8x40xf32>
    %21 = vector.extract_strided_slice %1 {offsets = [8, 5], sizes = [8, 40], strides = [1, 1]} : vector<24x45xf32> to vector<8x40xf32>
    %22 = vector.extract_strided_slice %1 {offsets = [16, 0], sizes = [8, 40], strides = [1, 1]} : vector<24x45xf32> to vector<8x40xf32>
    %23 = vector.extract_strided_slice %1 {offsets = [16, 1], sizes = [8, 40], strides = [1, 1]} : vector<24x45xf32> to vector<8x40xf32>
    %24 = vector.extract_strided_slice %1 {offsets = [16, 2], sizes = [8, 40], strides = [1, 1]} : vector<24x45xf32> to vector<8x40xf32>
    %25 = vector.extract_strided_slice %1 {offsets = [16, 3], sizes = [8, 40], strides = [1, 1]} : vector<24x45xf32> to vector<8x40xf32>
    %26 = vector.extract_strided_slice %1 {offsets = [16, 4], sizes = [8, 40], strides = [1, 1]} : vector<24x45xf32> to vector<8x40xf32>
    %27 = vector.extract_strided_slice %1 {offsets = [16, 5], sizes = [8, 40], strides = [1, 1]} : vector<24x45xf32> to vector<8x40xf32>
    %cst = arith.constant 0.000000e+00 : f32
    %28 = vector.broadcast %cst : f32 to vector<8x40xf32>
    %29 = vector.extract_strided_slice %2 {offsets = [0, 0], sizes = [1, 1], strides = [1, 1]} : vector<144x1xf32> to vector<1x1xf32>
    %30 = vector.broadcast %29 : vector<1x1xf32> to vector<8x40xf32>
    %31 = arith.mulf %10, %30 : vector<8x40xf32>
    %32 = arith.addf %28, %31 : vector<8x40xf32>
    %33 = vector.extract_strided_slice %2 {offsets = [1, 0], sizes = [1, 1], strides = [1, 1]} : vector<144x1xf32> to vector<1x1xf32>
    %34 = vector.broadcast %33 : vector<1x1xf32> to vector<8x40xf32>
    %35 = arith.mulf %11, %34 : vector<8x40xf32>
    %36 = arith.addf %32, %35 : vector<8x40xf32>
    %37 = vector.extract_strided_slice %2 {offsets = [2, 0], sizes = [1, 1], strides = [1, 1]} : vector<144x1xf32> to vector<1x1xf32>
    %38 = vector.broadcast %37 : vector<1x1xf32> to vector<8x40xf32>
    %39 = arith.mulf %12, %38 : vector<8x40xf32>
    %40 = arith.addf %36, %39 : vector<8x40xf32>
    %41 = vector.extract_strided_slice %2 {offsets = [3, 0], sizes = [1, 1], strides = [1, 1]} : vector<144x1xf32> to vector<1x1xf32>
    %42 = vector.broadcast %41 : vector<1x1xf32> to vector<8x40xf32>
    %43 = arith.mulf %13, %42 : vector<8x40xf32>
    %44 = arith.addf %40, %43 : vector<8x40xf32>
    %45 = vector.extract_strided_slice %2 {offsets = [4, 0], sizes = [1, 1], strides = [1, 1]} : vector<144x1xf32> to vector<1x1xf32>
    %46 = vector.broadcast %45 : vector<1x1xf32> to vector<8x40xf32>
    %47 = arith.mulf %14, %46 : vector<8x40xf32>
    %48 = arith.addf %44, %47 : vector<8x40xf32>
    %49 = vector.extract_strided_slice %2 {offsets = [5, 0], sizes = [1, 1], strides = [1, 1]} : vector<144x1xf32> to vector<1x1xf32>
    %50 = vector.broadcast %49 : vector<1x1xf32> to vector<8x40xf32>
    %51 = arith.mulf %15, %50 : vector<8x40xf32>
    %52 = arith.addf %48, %51 : vector<8x40xf32>
    %53 = vector.extract_strided_slice %2 {offsets = [6, 0], sizes = [1, 1], strides = [1, 1]} : vector<144x1xf32> to vector<1x1xf32>
    %54 = vector.broadcast %53 : vector<1x1xf32> to vector<8x40xf32>
    %55 = arith.mulf %16, %54 : vector<8x40xf32>
    %56 = arith.addf %52, %55 : vector<8x40xf32>
    %57 = vector.extract_strided_slice %2 {offsets = [7, 0], sizes = [1, 1], strides = [1, 1]} : vector<144x1xf32> to vector<1x1xf32>
    %58 = vector.broadcast %57 : vector<1x1xf32> to vector<8x40xf32>
    %59 = arith.mulf %17, %58 : vector<8x40xf32>
    %60 = arith.addf %56, %59 : vector<8x40xf32>
    %61 = vector.extract_strided_slice %2 {offsets = [8, 0], sizes = [1, 1], strides = [1, 1]} : vector<144x1xf32> to vector<1x1xf32>
    %62 = vector.broadcast %61 : vector<1x1xf32> to vector<8x40xf32>
    %63 = arith.mulf %18, %62 : vector<8x40xf32>
    %64 = arith.addf %60, %63 : vector<8x40xf32>
    %65 = vector.extract_strided_slice %2 {offsets = [9, 0], sizes = [1, 1], strides = [1, 1]} : vector<144x1xf32> to vector<1x1xf32>
    %66 = vector.broadcast %65 : vector<1x1xf32> to vector<8x40xf32>
    %67 = arith.mulf %19, %66 : vector<8x40xf32>
    %68 = arith.addf %64, %67 : vector<8x40xf32>
    %69 = vector.extract_strided_slice %2 {offsets = [10, 0], sizes = [1, 1], strides = [1, 1]} : vector<144x1xf32> to vector<1x1xf32>
    %70 = vector.broadcast %69 : vector<1x1xf32> to vector<8x40xf32>
    %71 = arith.mulf %20, %70 : vector<8x40xf32>
    %72 = arith.addf %68, %71 : vector<8x40xf32>
    %73 = vector.extract_strided_slice %2 {offsets = [11, 0], sizes = [1, 1], strides = [1, 1]} : vector<144x1xf32> to vector<1x1xf32>
    %74 = vector.broadcast %73 : vector<1x1xf32> to vector<8x40xf32>
    %75 = arith.mulf %21, %74 : vector<8x40xf32>
    %76 = arith.addf %72, %75 : vector<8x40xf32>
    %77 = vector.extract_strided_slice %2 {offsets = [12, 0], sizes = [1, 1], strides = [1, 1]} : vector<144x1xf32> to vector<1x1xf32>
    %78 = vector.broadcast %77 : vector<1x1xf32> to vector<8x40xf32>
    %79 = arith.mulf %22, %78 : vector<8x40xf32>
    %80 = arith.addf %76, %79 : vector<8x40xf32>
    %81 = vector.extract_strided_slice %2 {offsets = [13, 0], sizes = [1, 1], strides = [1, 1]} : vector<144x1xf32> to vector<1x1xf32>
    %82 = vector.broadcast %81 : vector<1x1xf32> to vector<8x40xf32>
    %83 = arith.mulf %23, %82 : vector<8x40xf32>
    %84 = arith.addf %80, %83 : vector<8x40xf32>
    %85 = vector.extract_strided_slice %2 {offsets = [14, 0], sizes = [1, 1], strides = [1, 1]} : vector<144x1xf32> to vector<1x1xf32>
    %86 = vector.broadcast %85 : vector<1x1xf32> to vector<8x40xf32>
    %87 = arith.mulf %24, %86 : vector<8x40xf32>
    %88 = arith.addf %84, %87 : vector<8x40xf32>
    %89 = vector.extract_strided_slice %2 {offsets = [15, 0], sizes = [1, 1], strides = [1, 1]} : vector<144x1xf32> to vector<1x1xf32>
    %90 = vector.broadcast %89 : vector<1x1xf32> to vector<8x40xf32>
    %91 = arith.mulf %25, %90 : vector<8x40xf32>
    %92 = arith.addf %88, %91 : vector<8x40xf32>
    %93 = vector.extract_strided_slice %2 {offsets = [16, 0], sizes = [1, 1], strides = [1, 1]} : vector<144x1xf32> to vector<1x1xf32>
    %94 = vector.broadcast %93 : vector<1x1xf32> to vector<8x40xf32>
    %95 = arith.mulf %26, %94 : vector<8x40xf32>
    %96 = arith.addf %92, %95 : vector<8x40xf32>
    %97 = vector.extract_strided_slice %2 {offsets = [17, 0], sizes = [1, 1], strides = [1, 1]} : vector<144x1xf32> to vector<1x1xf32>
    %98 = vector.broadcast %97 : vector<1x1xf32> to vector<8x40xf32>
    %99 = arith.mulf %27, %98 : vector<8x40xf32>
    %100 = arith.addf %96, %99 : vector<8x40xf32>
    %101 = vector.extract_strided_slice %3 {offsets = [0, 0], sizes = [8, 8], strides = [1, 1]} : vector<64x8xbf16> to vector<8x8xbf16>
    %102 = arith.truncf %100 : vector<8x40xf32> to vector<8x40xbf16>
    %cst_18 = arith.constant dense<0.000000e+00> : vector<8x40xf32>
    %103 = tpu.matmul %101, %102, %cst_18 {dimension_numbers = #tpu.dot_dimension_numbers<[1], [0], [0], [1], [0, 0, 1, 1], [], []>} : vector<8x8xbf16>, vector<8x40xbf16>, vector<8x40xf32> -> vector<8x40xf32>
    %cst_19 = arith.constant 0.000000e+00 : f32
    %104 = vector.broadcast %cst_19 : f32 to vector<8x40xf32>
    %105 = vector.extract_strided_slice %2 {offsets = [18, 0], sizes = [1, 1], strides = [1, 1]} : vector<144x1xf32> to vector<1x1xf32>
    %106 = vector.broadcast %105 : vector<1x1xf32> to vector<8x40xf32>
    %107 = arith.mulf %10, %106 : vector<8x40xf32>
    %108 = arith.addf %104, %107 : vector<8x40xf32>
    %109 = vector.extract_strided_slice %2 {offsets = [19, 0], sizes = [1, 1], strides = [1, 1]} : vector<144x1xf32> to vector<1x1xf32>
    %110 = vector.broadcast %109 : vector<1x1xf32> to vector<8x40xf32>
    %111 = arith.mulf %11, %110 : vector<8x40xf32>
    %112 = arith.addf %108, %111 : vector<8x40xf32>
    %113 = vector.extract_strided_slice %2 {offsets = [20, 0], sizes = [1, 1], strides = [1, 1]} : vector<144x1xf32> to vector<1x1xf32>
    %114 = vector.broadcast %113 : vector<1x1xf32> to vector<8x40xf32>
    %115 = arith.mulf %12, %114 : vector<8x40xf32>
    %116 = arith.addf %112, %115 : vector<8x40xf32>
    %117 = vector.extract_strided_slice %2 {offsets = [21, 0], sizes = [1, 1], strides = [1, 1]} : vector<144x1xf32> to vector<1x1xf32>
    %118 = vector.broadcast %117 : vector<1x1xf32> to vector<8x40xf32>
    %119 = arith.mulf %13, %118 : vector<8x40xf32>
    %120 = arith.addf %116, %119 : vector<8x40xf32>
    %121 = vector.extract_strided_slice %2 {offsets = [22, 0], sizes = [1, 1], strides = [1, 1]} : vector<144x1xf32> to vector<1x1xf32>
    %122 = vector.broadcast %121 : vector<1x1xf32> to vector<8x40xf32>
    %123 = arith.mulf %14, %122 : vector<8x40xf32>
    %124 = arith.addf %120, %123 : vector<8x40xf32>
    %125 = vector.extract_strided_slice %2 {offsets = [23, 0], sizes = [1, 1], strides = [1, 1]} : vector<144x1xf32> to vector<1x1xf32>
    %126 = vector.broadcast %125 : vector<1x1xf32> to vector<8x40xf32>
    %127 = arith.mulf %15, %126 : vector<8x40xf32>
    %128 = arith.addf %124, %127 : vector<8x40xf32>
    %129 = vector.extract_strided_slice %2 {offsets = [24, 0], sizes = [1, 1], strides = [1, 1]} : vector<144x1xf32> to vector<1x1xf32>
    %130 = vector.broadcast %129 : vector<1x1xf32> to vector<8x40xf32>
    %131 = arith.mulf %16, %130 : vector<8x40xf32>
    %132 = arith.addf %128, %131 : vector<8x40xf32>
    %133 = vector.extract_strided_slice %2 {offsets = [25, 0], sizes = [1, 1], strides = [1, 1]} : vector<144x1xf32> to vector<1x1xf32>
    %134 = vector.broadcast %133 : vector<1x1xf32> to vector<8x40xf32>
    %135 = arith.mulf %17, %134 : vector<8x40xf32>
    %136 = arith.addf %132, %135 : vector<8x40xf32>
    %137 = vector.extract_strided_slice %2 {offsets = [26, 0], sizes = [1, 1], strides = [1, 1]} : vector<144x1xf32> to vector<1x1xf32>
    %138 = vector.broadcast %137 : vector<1x1xf32> to vector<8x40xf32>
    %139 = arith.mulf %18, %138 : vector<8x40xf32>
    %140 = arith.addf %136, %139 : vector<8x40xf32>
    %141 = vector.extract_strided_slice %2 {offsets = [27, 0], sizes = [1, 1], strides = [1, 1]} : vector<144x1xf32> to vector<1x1xf32>
    %142 = vector.broadcast %141 : vector<1x1xf32> to vector<8x40xf32>
    %143 = arith.mulf %19, %142 : vector<8x40xf32>
    %144 = arith.addf %140, %143 : vector<8x40xf32>
    %145 = vector.extract_strided_slice %2 {offsets = [28, 0], sizes = [1, 1], strides = [1, 1]} : vector<144x1xf32> to vector<1x1xf32>
    %146 = vector.broadcast %145 : vector<1x1xf32> to vector<8x40xf32>
    %147 = arith.mulf %20, %146 : vector<8x40xf32>
    %148 = arith.addf %144, %147 : vector<8x40xf32>
    %149 = vector.extract_strided_slice %2 {offsets = [29, 0], sizes = [1, 1], strides = [1, 1]} : vector<144x1xf32> to vector<1x1xf32>
    %150 = vector.broadcast %149 : vector<1x1xf32> to vector<8x40xf32>
    %151 = arith.mulf %21, %150 : vector<8x40xf32>
    %152 = arith.addf %148, %151 : vector<8x40xf32>
    %153 = vector.extract_strided_slice %2 {offsets = [30, 0], sizes = [1, 1], strides = [1, 1]} : vector<144x1xf32> to vector<1x1xf32>
    %154 = vector.broadcast %153 : vector<1x1xf32> to vector<8x40xf32>
    %155 = arith.mulf %22, %154 : vector<8x40xf32>
    %156 = arith.addf %152, %155 : vector<8x40xf32>
    %157 = vector.extract_strided_slice %2 {offsets = [31, 0], sizes = [1, 1], strides = [1, 1]} : vector<144x1xf32> to vector<1x1xf32>
    %158 = vector.broadcast %157 : vector<1x1xf32> to vector<8x40xf32>
    %159 = arith.mulf %23, %158 : vector<8x40xf32>
    %160 = arith.addf %156, %159 : vector<8x40xf32>
    %161 = vector.extract_strided_slice %2 {offsets = [32, 0], sizes = [1, 1], strides = [1, 1]} : vector<144x1xf32> to vector<1x1xf32>
    %162 = vector.broadcast %161 : vector<1x1xf32> to vector<8x40xf32>
    %163 = arith.mulf %24, %162 : vector<8x40xf32>
    %164 = arith.addf %160, %163 : vector<8x40xf32>
    %165 = vector.extract_strided_slice %2 {offsets = [33, 0], sizes = [1, 1], strides = [1, 1]} : vector<144x1xf32> to vector<1x1xf32>
    %166 = vector.broadcast %165 : vector<1x1xf32> to vector<8x40xf32>
    %167 = arith.mulf %25, %166 : vector<8x40xf32>
    %168 = arith.addf %164, %167 : vector<8x40xf32>
    %169 = vector.extract_strided_slice %2 {offsets = [34, 0], sizes = [1, 1], strides = [1, 1]} : vector<144x1xf32> to vector<1x1xf32>
    %170 = vector.broadcast %169 : vector<1x1xf32> to vector<8x40xf32>
    %171 = arith.mulf %26, %170 : vector<8x40xf32>
    %172 = arith.addf %168, %171 : vector<8x40xf32>
    %173 = vector.extract_strided_slice %2 {offsets = [35, 0], sizes = [1, 1], strides = [1, 1]} : vector<144x1xf32> to vector<1x1xf32>
    %174 = vector.broadcast %173 : vector<1x1xf32> to vector<8x40xf32>
    %175 = arith.mulf %27, %174 : vector<8x40xf32>
    %176 = arith.addf %172, %175 : vector<8x40xf32>
    %177 = vector.extract_strided_slice %3 {offsets = [8, 0], sizes = [8, 8], strides = [1, 1]} : vector<64x8xbf16> to vector<8x8xbf16>
    %178 = arith.truncf %176 : vector<8x40xf32> to vector<8x40xbf16>
    %cst_20 = arith.constant dense<0.000000e+00> : vector<8x40xf32>
    %179 = tpu.matmul %177, %178, %cst_20 {dimension_numbers = #tpu.dot_dimension_numbers<[1], [0], [0], [1], [0, 0, 1, 1], [], []>} : vector<8x8xbf16>, vector<8x40xbf16>, vector<8x40xf32> -> vector<8x40xf32>
    %cst_21 = arith.constant 0.000000e+00 : f32
    %180 = vector.broadcast %cst_21 : f32 to vector<8x40xf32>
    %181 = vector.extract_strided_slice %2 {offsets = [36, 0], sizes = [1, 1], strides = [1, 1]} : vector<144x1xf32> to vector<1x1xf32>
    %182 = vector.broadcast %181 : vector<1x1xf32> to vector<8x40xf32>
    %183 = arith.mulf %10, %182 : vector<8x40xf32>
    %184 = arith.addf %180, %183 : vector<8x40xf32>
    %185 = vector.extract_strided_slice %2 {offsets = [37, 0], sizes = [1, 1], strides = [1, 1]} : vector<144x1xf32> to vector<1x1xf32>
    %186 = vector.broadcast %185 : vector<1x1xf32> to vector<8x40xf32>
    %187 = arith.mulf %11, %186 : vector<8x40xf32>
    %188 = arith.addf %184, %187 : vector<8x40xf32>
    %189 = vector.extract_strided_slice %2 {offsets = [38, 0], sizes = [1, 1], strides = [1, 1]} : vector<144x1xf32> to vector<1x1xf32>
    %190 = vector.broadcast %189 : vector<1x1xf32> to vector<8x40xf32>
    %191 = arith.mulf %12, %190 : vector<8x40xf32>
    %192 = arith.addf %188, %191 : vector<8x40xf32>
    %193 = vector.extract_strided_slice %2 {offsets = [39, 0], sizes = [1, 1], strides = [1, 1]} : vector<144x1xf32> to vector<1x1xf32>
    %194 = vector.broadcast %193 : vector<1x1xf32> to vector<8x40xf32>
    %195 = arith.mulf %13, %194 : vector<8x40xf32>
    %196 = arith.addf %192, %195 : vector<8x40xf32>
    %197 = vector.extract_strided_slice %2 {offsets = [40, 0], sizes = [1, 1], strides = [1, 1]} : vector<144x1xf32> to vector<1x1xf32>
    %198 = vector.broadcast %197 : vector<1x1xf32> to vector<8x40xf32>
    %199 = arith.mulf %14, %198 : vector<8x40xf32>
    %200 = arith.addf %196, %199 : vector<8x40xf32>
    %201 = vector.extract_strided_slice %2 {offsets = [41, 0], sizes = [1, 1], strides = [1, 1]} : vector<144x1xf32> to vector<1x1xf32>
    %202 = vector.broadcast %201 : vector<1x1xf32> to vector<8x40xf32>
    %203 = arith.mulf %15, %202 : vector<8x40xf32>
    %204 = arith.addf %200, %203 : vector<8x40xf32>
    %205 = vector.extract_strided_slice %2 {offsets = [42, 0], sizes = [1, 1], strides = [1, 1]} : vector<144x1xf32> to vector<1x1xf32>
    %206 = vector.broadcast %205 : vector<1x1xf32> to vector<8x40xf32>
    %207 = arith.mulf %16, %206 : vector<8x40xf32>
    %208 = arith.addf %204, %207 : vector<8x40xf32>
    %209 = vector.extract_strided_slice %2 {offsets = [43, 0], sizes = [1, 1], strides = [1, 1]} : vector<144x1xf32> to vector<1x1xf32>
    %210 = vector.broadcast %209 : vector<1x1xf32> to vector<8x40xf32>
    %211 = arith.mulf %17, %210 : vector<8x40xf32>
    %212 = arith.addf %208, %211 : vector<8x40xf32>
    %213 = vector.extract_strided_slice %2 {offsets = [44, 0], sizes = [1, 1], strides = [1, 1]} : vector<144x1xf32> to vector<1x1xf32>
    %214 = vector.broadcast %213 : vector<1x1xf32> to vector<8x40xf32>
    %215 = arith.mulf %18, %214 : vector<8x40xf32>
    %216 = arith.addf %212, %215 : vector<8x40xf32>
    %217 = vector.extract_strided_slice %2 {offsets = [45, 0], sizes = [1, 1], strides = [1, 1]} : vector<144x1xf32> to vector<1x1xf32>
    %218 = vector.broadcast %217 : vector<1x1xf32> to vector<8x40xf32>
    %219 = arith.mulf %19, %218 : vector<8x40xf32>
    %220 = arith.addf %216, %219 : vector<8x40xf32>
    %221 = vector.extract_strided_slice %2 {offsets = [46, 0], sizes = [1, 1], strides = [1, 1]} : vector<144x1xf32> to vector<1x1xf32>
    %222 = vector.broadcast %221 : vector<1x1xf32> to vector<8x40xf32>
    %223 = arith.mulf %20, %222 : vector<8x40xf32>
    %224 = arith.addf %220, %223 : vector<8x40xf32>
    %225 = vector.extract_strided_slice %2 {offsets = [47, 0], sizes = [1, 1], strides = [1, 1]} : vector<144x1xf32> to vector<1x1xf32>
    %226 = vector.broadcast %225 : vector<1x1xf32> to vector<8x40xf32>
    %227 = arith.mulf %21, %226 : vector<8x40xf32>
    %228 = arith.addf %224, %227 : vector<8x40xf32>
    %229 = vector.extract_strided_slice %2 {offsets = [48, 0], sizes = [1, 1], strides = [1, 1]} : vector<144x1xf32> to vector<1x1xf32>
    %230 = vector.broadcast %229 : vector<1x1xf32> to vector<8x40xf32>
    %231 = arith.mulf %22, %230 : vector<8x40xf32>
    %232 = arith.addf %228, %231 : vector<8x40xf32>
    %233 = vector.extract_strided_slice %2 {offsets = [49, 0], sizes = [1, 1], strides = [1, 1]} : vector<144x1xf32> to vector<1x1xf32>
    %234 = vector.broadcast %233 : vector<1x1xf32> to vector<8x40xf32>
    %235 = arith.mulf %23, %234 : vector<8x40xf32>
    %236 = arith.addf %232, %235 : vector<8x40xf32>
    %237 = vector.extract_strided_slice %2 {offsets = [50, 0], sizes = [1, 1], strides = [1, 1]} : vector<144x1xf32> to vector<1x1xf32>
    %238 = vector.broadcast %237 : vector<1x1xf32> to vector<8x40xf32>
    %239 = arith.mulf %24, %238 : vector<8x40xf32>
    %240 = arith.addf %236, %239 : vector<8x40xf32>
    %241 = vector.extract_strided_slice %2 {offsets = [51, 0], sizes = [1, 1], strides = [1, 1]} : vector<144x1xf32> to vector<1x1xf32>
    %242 = vector.broadcast %241 : vector<1x1xf32> to vector<8x40xf32>
    %243 = arith.mulf %25, %242 : vector<8x40xf32>
    %244 = arith.addf %240, %243 : vector<8x40xf32>
    %245 = vector.extract_strided_slice %2 {offsets = [52, 0], sizes = [1, 1], strides = [1, 1]} : vector<144x1xf32> to vector<1x1xf32>
    %246 = vector.broadcast %245 : vector<1x1xf32> to vector<8x40xf32>
    %247 = arith.mulf %26, %246 : vector<8x40xf32>
    %248 = arith.addf %244, %247 : vector<8x40xf32>
    %249 = vector.extract_strided_slice %2 {offsets = [53, 0], sizes = [1, 1], strides = [1, 1]} : vector<144x1xf32> to vector<1x1xf32>
    %250 = vector.broadcast %249 : vector<1x1xf32> to vector<8x40xf32>
    %251 = arith.mulf %27, %250 : vector<8x40xf32>
    %252 = arith.addf %248, %251 : vector<8x40xf32>
    %253 = vector.extract_strided_slice %3 {offsets = [16, 0], sizes = [8, 8], strides = [1, 1]} : vector<64x8xbf16> to vector<8x8xbf16>
    %254 = arith.truncf %252 : vector<8x40xf32> to vector<8x40xbf16>
    %cst_22 = arith.constant dense<0.000000e+00> : vector<8x40xf32>
    %255 = tpu.matmul %253, %254, %cst_22 {dimension_numbers = #tpu.dot_dimension_numbers<[1], [0], [0], [1], [0, 0, 1, 1], [], []>} : vector<8x8xbf16>, vector<8x40xbf16>, vector<8x40xf32> -> vector<8x40xf32>
    %cst_23 = arith.constant 0.000000e+00 : f32
    %256 = vector.broadcast %cst_23 : f32 to vector<8x40xf32>
    %257 = vector.extract_strided_slice %2 {offsets = [54, 0], sizes = [1, 1], strides = [1, 1]} : vector<144x1xf32> to vector<1x1xf32>
    %258 = vector.broadcast %257 : vector<1x1xf32> to vector<8x40xf32>
    %259 = arith.mulf %10, %258 : vector<8x40xf32>
    %260 = arith.addf %256, %259 : vector<8x40xf32>
    %261 = vector.extract_strided_slice %2 {offsets = [55, 0], sizes = [1, 1], strides = [1, 1]} : vector<144x1xf32> to vector<1x1xf32>
    %262 = vector.broadcast %261 : vector<1x1xf32> to vector<8x40xf32>
    %263 = arith.mulf %11, %262 : vector<8x40xf32>
    %264 = arith.addf %260, %263 : vector<8x40xf32>
    %265 = vector.extract_strided_slice %2 {offsets = [56, 0], sizes = [1, 1], strides = [1, 1]} : vector<144x1xf32> to vector<1x1xf32>
    %266 = vector.broadcast %265 : vector<1x1xf32> to vector<8x40xf32>
    %267 = arith.mulf %12, %266 : vector<8x40xf32>
    %268 = arith.addf %264, %267 : vector<8x40xf32>
    %269 = vector.extract_strided_slice %2 {offsets = [57, 0], sizes = [1, 1], strides = [1, 1]} : vector<144x1xf32> to vector<1x1xf32>
    %270 = vector.broadcast %269 : vector<1x1xf32> to vector<8x40xf32>
    %271 = arith.mulf %13, %270 : vector<8x40xf32>
    %272 = arith.addf %268, %271 : vector<8x40xf32>
    %273 = vector.extract_strided_slice %2 {offsets = [58, 0], sizes = [1, 1], strides = [1, 1]} : vector<144x1xf32> to vector<1x1xf32>
    %274 = vector.broadcast %273 : vector<1x1xf32> to vector<8x40xf32>
    %275 = arith.mulf %14, %274 : vector<8x40xf32>
    %276 = arith.addf %272, %275 : vector<8x40xf32>
    %277 = vector.extract_strided_slice %2 {offsets = [59, 0], sizes = [1, 1], strides = [1, 1]} : vector<144x1xf32> to vector<1x1xf32>
    %278 = vector.broadcast %277 : vector<1x1xf32> to vector<8x40xf32>
    %279 = arith.mulf %15, %278 : vector<8x40xf32>
    %280 = arith.addf %276, %279 : vector<8x40xf32>
    %281 = vector.extract_strided_slice %2 {offsets = [60, 0], sizes = [1, 1], strides = [1, 1]} : vector<144x1xf32> to vector<1x1xf32>
    %282 = vector.broadcast %281 : vector<1x1xf32> to vector<8x40xf32>
    %283 = arith.mulf %16, %282 : vector<8x40xf32>
    %284 = arith.addf %280, %283 : vector<8x40xf32>
    %285 = vector.extract_strided_slice %2 {offsets = [61, 0], sizes = [1, 1], strides = [1, 1]} : vector<144x1xf32> to vector<1x1xf32>
    %286 = vector.broadcast %285 : vector<1x1xf32> to vector<8x40xf32>
    %287 = arith.mulf %17, %286 : vector<8x40xf32>
    %288 = arith.addf %284, %287 : vector<8x40xf32>
    %289 = vector.extract_strided_slice %2 {offsets = [62, 0], sizes = [1, 1], strides = [1, 1]} : vector<144x1xf32> to vector<1x1xf32>
    %290 = vector.broadcast %289 : vector<1x1xf32> to vector<8x40xf32>
    %291 = arith.mulf %18, %290 : vector<8x40xf32>
    %292 = arith.addf %288, %291 : vector<8x40xf32>
    %293 = vector.extract_strided_slice %2 {offsets = [63, 0], sizes = [1, 1], strides = [1, 1]} : vector<144x1xf32> to vector<1x1xf32>
    %294 = vector.broadcast %293 : vector<1x1xf32> to vector<8x40xf32>
    %295 = arith.mulf %19, %294 : vector<8x40xf32>
    %296 = arith.addf %292, %295 : vector<8x40xf32>
    %297 = vector.extract_strided_slice %2 {offsets = [64, 0], sizes = [1, 1], strides = [1, 1]} : vector<144x1xf32> to vector<1x1xf32>
    %298 = vector.broadcast %297 : vector<1x1xf32> to vector<8x40xf32>
    %299 = arith.mulf %20, %298 : vector<8x40xf32>
    %300 = arith.addf %296, %299 : vector<8x40xf32>
    %301 = vector.extract_strided_slice %2 {offsets = [65, 0], sizes = [1, 1], strides = [1, 1]} : vector<144x1xf32> to vector<1x1xf32>
    %302 = vector.broadcast %301 : vector<1x1xf32> to vector<8x40xf32>
    %303 = arith.mulf %21, %302 : vector<8x40xf32>
    %304 = arith.addf %300, %303 : vector<8x40xf32>
    %305 = vector.extract_strided_slice %2 {offsets = [66, 0], sizes = [1, 1], strides = [1, 1]} : vector<144x1xf32> to vector<1x1xf32>
    %306 = vector.broadcast %305 : vector<1x1xf32> to vector<8x40xf32>
    %307 = arith.mulf %22, %306 : vector<8x40xf32>
    %308 = arith.addf %304, %307 : vector<8x40xf32>
    %309 = vector.extract_strided_slice %2 {offsets = [67, 0], sizes = [1, 1], strides = [1, 1]} : vector<144x1xf32> to vector<1x1xf32>
    %310 = vector.broadcast %309 : vector<1x1xf32> to vector<8x40xf32>
    %311 = arith.mulf %23, %310 : vector<8x40xf32>
    %312 = arith.addf %308, %311 : vector<8x40xf32>
    %313 = vector.extract_strided_slice %2 {offsets = [68, 0], sizes = [1, 1], strides = [1, 1]} : vector<144x1xf32> to vector<1x1xf32>
    %314 = vector.broadcast %313 : vector<1x1xf32> to vector<8x40xf32>
    %315 = arith.mulf %24, %314 : vector<8x40xf32>
    %316 = arith.addf %312, %315 : vector<8x40xf32>
    %317 = vector.extract_strided_slice %2 {offsets = [69, 0], sizes = [1, 1], strides = [1, 1]} : vector<144x1xf32> to vector<1x1xf32>
    %318 = vector.broadcast %317 : vector<1x1xf32> to vector<8x40xf32>
    %319 = arith.mulf %25, %318 : vector<8x40xf32>
    %320 = arith.addf %316, %319 : vector<8x40xf32>
    %321 = vector.extract_strided_slice %2 {offsets = [70, 0], sizes = [1, 1], strides = [1, 1]} : vector<144x1xf32> to vector<1x1xf32>
    %322 = vector.broadcast %321 : vector<1x1xf32> to vector<8x40xf32>
    %323 = arith.mulf %26, %322 : vector<8x40xf32>
    %324 = arith.addf %320, %323 : vector<8x40xf32>
    %325 = vector.extract_strided_slice %2 {offsets = [71, 0], sizes = [1, 1], strides = [1, 1]} : vector<144x1xf32> to vector<1x1xf32>
    %326 = vector.broadcast %325 : vector<1x1xf32> to vector<8x40xf32>
    %327 = arith.mulf %27, %326 : vector<8x40xf32>
    %328 = arith.addf %324, %327 : vector<8x40xf32>
    %329 = vector.extract_strided_slice %3 {offsets = [24, 0], sizes = [8, 8], strides = [1, 1]} : vector<64x8xbf16> to vector<8x8xbf16>
    %330 = arith.truncf %328 : vector<8x40xf32> to vector<8x40xbf16>
    %cst_24 = arith.constant dense<0.000000e+00> : vector<8x40xf32>
    %331 = tpu.matmul %329, %330, %cst_24 {dimension_numbers = #tpu.dot_dimension_numbers<[1], [0], [0], [1], [0, 0, 1, 1], [], []>} : vector<8x8xbf16>, vector<8x40xbf16>, vector<8x40xf32> -> vector<8x40xf32>
    %cst_25 = arith.constant 0.000000e+00 : f32
    %332 = vector.broadcast %cst_25 : f32 to vector<8x40xf32>
    %333 = vector.extract_strided_slice %2 {offsets = [72, 0], sizes = [1, 1], strides = [1, 1]} : vector<144x1xf32> to vector<1x1xf32>
    %334 = vector.broadcast %333 : vector<1x1xf32> to vector<8x40xf32>
    %335 = arith.mulf %10, %334 : vector<8x40xf32>
    %336 = arith.addf %332, %335 : vector<8x40xf32>
    %337 = vector.extract_strided_slice %2 {offsets = [73, 0], sizes = [1, 1], strides = [1, 1]} : vector<144x1xf32> to vector<1x1xf32>
    %338 = vector.broadcast %337 : vector<1x1xf32> to vector<8x40xf32>
    %339 = arith.mulf %11, %338 : vector<8x40xf32>
    %340 = arith.addf %336, %339 : vector<8x40xf32>
    %341 = vector.extract_strided_slice %2 {offsets = [74, 0], sizes = [1, 1], strides = [1, 1]} : vector<144x1xf32> to vector<1x1xf32>
    %342 = vector.broadcast %341 : vector<1x1xf32> to vector<8x40xf32>
    %343 = arith.mulf %12, %342 : vector<8x40xf32>
    %344 = arith.addf %340, %343 : vector<8x40xf32>
    %345 = vector.extract_strided_slice %2 {offsets = [75, 0], sizes = [1, 1], strides = [1, 1]} : vector<144x1xf32> to vector<1x1xf32>
    %346 = vector.broadcast %345 : vector<1x1xf32> to vector<8x40xf32>
    %347 = arith.mulf %13, %346 : vector<8x40xf32>
    %348 = arith.addf %344, %347 : vector<8x40xf32>
    %349 = vector.extract_strided_slice %2 {offsets = [76, 0], sizes = [1, 1], strides = [1, 1]} : vector<144x1xf32> to vector<1x1xf32>
    %350 = vector.broadcast %349 : vector<1x1xf32> to vector<8x40xf32>
    %351 = arith.mulf %14, %350 : vector<8x40xf32>
    %352 = arith.addf %348, %351 : vector<8x40xf32>
    %353 = vector.extract_strided_slice %2 {offsets = [77, 0], sizes = [1, 1], strides = [1, 1]} : vector<144x1xf32> to vector<1x1xf32>
    %354 = vector.broadcast %353 : vector<1x1xf32> to vector<8x40xf32>
    %355 = arith.mulf %15, %354 : vector<8x40xf32>
    %356 = arith.addf %352, %355 : vector<8x40xf32>
    %357 = vector.extract_strided_slice %2 {offsets = [78, 0], sizes = [1, 1], strides = [1, 1]} : vector<144x1xf32> to vector<1x1xf32>
    %358 = vector.broadcast %357 : vector<1x1xf32> to vector<8x40xf32>
    %359 = arith.mulf %16, %358 : vector<8x40xf32>
    %360 = arith.addf %356, %359 : vector<8x40xf32>
    %361 = vector.extract_strided_slice %2 {offsets = [79, 0], sizes = [1, 1], strides = [1, 1]} : vector<144x1xf32> to vector<1x1xf32>
    %362 = vector.broadcast %361 : vector<1x1xf32> to vector<8x40xf32>
    %363 = arith.mulf %17, %362 : vector<8x40xf32>
    %364 = arith.addf %360, %363 : vector<8x40xf32>
    %365 = vector.extract_strided_slice %2 {offsets = [80, 0], sizes = [1, 1], strides = [1, 1]} : vector<144x1xf32> to vector<1x1xf32>
    %366 = vector.broadcast %365 : vector<1x1xf32> to vector<8x40xf32>
    %367 = arith.mulf %18, %366 : vector<8x40xf32>
    %368 = arith.addf %364, %367 : vector<8x40xf32>
    %369 = vector.extract_strided_slice %2 {offsets = [81, 0], sizes = [1, 1], strides = [1, 1]} : vector<144x1xf32> to vector<1x1xf32>
    %370 = vector.broadcast %369 : vector<1x1xf32> to vector<8x40xf32>
    %371 = arith.mulf %19, %370 : vector<8x40xf32>
    %372 = arith.addf %368, %371 : vector<8x40xf32>
    %373 = vector.extract_strided_slice %2 {offsets = [82, 0], sizes = [1, 1], strides = [1, 1]} : vector<144x1xf32> to vector<1x1xf32>
    %374 = vector.broadcast %373 : vector<1x1xf32> to vector<8x40xf32>
    %375 = arith.mulf %20, %374 : vector<8x40xf32>
    %376 = arith.addf %372, %375 : vector<8x40xf32>
    %377 = vector.extract_strided_slice %2 {offsets = [83, 0], sizes = [1, 1], strides = [1, 1]} : vector<144x1xf32> to vector<1x1xf32>
    %378 = vector.broadcast %377 : vector<1x1xf32> to vector<8x40xf32>
    %379 = arith.mulf %21, %378 : vector<8x40xf32>
    %380 = arith.addf %376, %379 : vector<8x40xf32>
    %381 = vector.extract_strided_slice %2 {offsets = [84, 0], sizes = [1, 1], strides = [1, 1]} : vector<144x1xf32> to vector<1x1xf32>
    %382 = vector.broadcast %381 : vector<1x1xf32> to vector<8x40xf32>
    %383 = arith.mulf %22, %382 : vector<8x40xf32>
    %384 = arith.addf %380, %383 : vector<8x40xf32>
    %385 = vector.extract_strided_slice %2 {offsets = [85, 0], sizes = [1, 1], strides = [1, 1]} : vector<144x1xf32> to vector<1x1xf32>
    %386 = vector.broadcast %385 : vector<1x1xf32> to vector<8x40xf32>
    %387 = arith.mulf %23, %386 : vector<8x40xf32>
    %388 = arith.addf %384, %387 : vector<8x40xf32>
    %389 = vector.extract_strided_slice %2 {offsets = [86, 0], sizes = [1, 1], strides = [1, 1]} : vector<144x1xf32> to vector<1x1xf32>
    %390 = vector.broadcast %389 : vector<1x1xf32> to vector<8x40xf32>
    %391 = arith.mulf %24, %390 : vector<8x40xf32>
    %392 = arith.addf %388, %391 : vector<8x40xf32>
    %393 = vector.extract_strided_slice %2 {offsets = [87, 0], sizes = [1, 1], strides = [1, 1]} : vector<144x1xf32> to vector<1x1xf32>
    %394 = vector.broadcast %393 : vector<1x1xf32> to vector<8x40xf32>
    %395 = arith.mulf %25, %394 : vector<8x40xf32>
    %396 = arith.addf %392, %395 : vector<8x40xf32>
    %397 = vector.extract_strided_slice %2 {offsets = [88, 0], sizes = [1, 1], strides = [1, 1]} : vector<144x1xf32> to vector<1x1xf32>
    %398 = vector.broadcast %397 : vector<1x1xf32> to vector<8x40xf32>
    %399 = arith.mulf %26, %398 : vector<8x40xf32>
    %400 = arith.addf %396, %399 : vector<8x40xf32>
    %401 = vector.extract_strided_slice %2 {offsets = [89, 0], sizes = [1, 1], strides = [1, 1]} : vector<144x1xf32> to vector<1x1xf32>
    %402 = vector.broadcast %401 : vector<1x1xf32> to vector<8x40xf32>
    %403 = arith.mulf %27, %402 : vector<8x40xf32>
    %404 = arith.addf %400, %403 : vector<8x40xf32>
    %405 = vector.extract_strided_slice %3 {offsets = [32, 0], sizes = [8, 8], strides = [1, 1]} : vector<64x8xbf16> to vector<8x8xbf16>
    %406 = arith.truncf %404 : vector<8x40xf32> to vector<8x40xbf16>
    %cst_26 = arith.constant dense<0.000000e+00> : vector<8x40xf32>
    %407 = tpu.matmul %405, %406, %cst_26 {dimension_numbers = #tpu.dot_dimension_numbers<[1], [0], [0], [1], [0, 0, 1, 1], [], []>} : vector<8x8xbf16>, vector<8x40xbf16>, vector<8x40xf32> -> vector<8x40xf32>
    %cst_27 = arith.constant 0.000000e+00 : f32
    %408 = vector.broadcast %cst_27 : f32 to vector<8x40xf32>
    %409 = vector.extract_strided_slice %2 {offsets = [90, 0], sizes = [1, 1], strides = [1, 1]} : vector<144x1xf32> to vector<1x1xf32>
    %410 = vector.broadcast %409 : vector<1x1xf32> to vector<8x40xf32>
    %411 = arith.mulf %10, %410 : vector<8x40xf32>
    %412 = arith.addf %408, %411 : vector<8x40xf32>
    %413 = vector.extract_strided_slice %2 {offsets = [91, 0], sizes = [1, 1], strides = [1, 1]} : vector<144x1xf32> to vector<1x1xf32>
    %414 = vector.broadcast %413 : vector<1x1xf32> to vector<8x40xf32>
    %415 = arith.mulf %11, %414 : vector<8x40xf32>
    %416 = arith.addf %412, %415 : vector<8x40xf32>
    %417 = vector.extract_strided_slice %2 {offsets = [92, 0], sizes = [1, 1], strides = [1, 1]} : vector<144x1xf32> to vector<1x1xf32>
    %418 = vector.broadcast %417 : vector<1x1xf32> to vector<8x40xf32>
    %419 = arith.mulf %12, %418 : vector<8x40xf32>
    %420 = arith.addf %416, %419 : vector<8x40xf32>
    %421 = vector.extract_strided_slice %2 {offsets = [93, 0], sizes = [1, 1], strides = [1, 1]} : vector<144x1xf32> to vector<1x1xf32>
    %422 = vector.broadcast %421 : vector<1x1xf32> to vector<8x40xf32>
    %423 = arith.mulf %13, %422 : vector<8x40xf32>
    %424 = arith.addf %420, %423 : vector<8x40xf32>
    %425 = vector.extract_strided_slice %2 {offsets = [94, 0], sizes = [1, 1], strides = [1, 1]} : vector<144x1xf32> to vector<1x1xf32>
    %426 = vector.broadcast %425 : vector<1x1xf32> to vector<8x40xf32>
    %427 = arith.mulf %14, %426 : vector<8x40xf32>
    %428 = arith.addf %424, %427 : vector<8x40xf32>
    %429 = vector.extract_strided_slice %2 {offsets = [95, 0], sizes = [1, 1], strides = [1, 1]} : vector<144x1xf32> to vector<1x1xf32>
    %430 = vector.broadcast %429 : vector<1x1xf32> to vector<8x40xf32>
    %431 = arith.mulf %15, %430 : vector<8x40xf32>
    %432 = arith.addf %428, %431 : vector<8x40xf32>
    %433 = vector.extract_strided_slice %2 {offsets = [96, 0], sizes = [1, 1], strides = [1, 1]} : vector<144x1xf32> to vector<1x1xf32>
    %434 = vector.broadcast %433 : vector<1x1xf32> to vector<8x40xf32>
    %435 = arith.mulf %16, %434 : vector<8x40xf32>
    %436 = arith.addf %432, %435 : vector<8x40xf32>
    %437 = vector.extract_strided_slice %2 {offsets = [97, 0], sizes = [1, 1], strides = [1, 1]} : vector<144x1xf32> to vector<1x1xf32>
    %438 = vector.broadcast %437 : vector<1x1xf32> to vector<8x40xf32>
    %439 = arith.mulf %17, %438 : vector<8x40xf32>
    %440 = arith.addf %436, %439 : vector<8x40xf32>
    %441 = vector.extract_strided_slice %2 {offsets = [98, 0], sizes = [1, 1], strides = [1, 1]} : vector<144x1xf32> to vector<1x1xf32>
    %442 = vector.broadcast %441 : vector<1x1xf32> to vector<8x40xf32>
    %443 = arith.mulf %18, %442 : vector<8x40xf32>
    %444 = arith.addf %440, %443 : vector<8x40xf32>
    %445 = vector.extract_strided_slice %2 {offsets = [99, 0], sizes = [1, 1], strides = [1, 1]} : vector<144x1xf32> to vector<1x1xf32>
    %446 = vector.broadcast %445 : vector<1x1xf32> to vector<8x40xf32>
    %447 = arith.mulf %19, %446 : vector<8x40xf32>
    %448 = arith.addf %444, %447 : vector<8x40xf32>
    %449 = vector.extract_strided_slice %2 {offsets = [100, 0], sizes = [1, 1], strides = [1, 1]} : vector<144x1xf32> to vector<1x1xf32>
    %450 = vector.broadcast %449 : vector<1x1xf32> to vector<8x40xf32>
    %451 = arith.mulf %20, %450 : vector<8x40xf32>
    %452 = arith.addf %448, %451 : vector<8x40xf32>
    %453 = vector.extract_strided_slice %2 {offsets = [101, 0], sizes = [1, 1], strides = [1, 1]} : vector<144x1xf32> to vector<1x1xf32>
    %454 = vector.broadcast %453 : vector<1x1xf32> to vector<8x40xf32>
    %455 = arith.mulf %21, %454 : vector<8x40xf32>
    %456 = arith.addf %452, %455 : vector<8x40xf32>
    %457 = vector.extract_strided_slice %2 {offsets = [102, 0], sizes = [1, 1], strides = [1, 1]} : vector<144x1xf32> to vector<1x1xf32>
    %458 = vector.broadcast %457 : vector<1x1xf32> to vector<8x40xf32>
    %459 = arith.mulf %22, %458 : vector<8x40xf32>
    %460 = arith.addf %456, %459 : vector<8x40xf32>
    %461 = vector.extract_strided_slice %2 {offsets = [103, 0], sizes = [1, 1], strides = [1, 1]} : vector<144x1xf32> to vector<1x1xf32>
    %462 = vector.broadcast %461 : vector<1x1xf32> to vector<8x40xf32>
    %463 = arith.mulf %23, %462 : vector<8x40xf32>
    %464 = arith.addf %460, %463 : vector<8x40xf32>
    %465 = vector.extract_strided_slice %2 {offsets = [104, 0], sizes = [1, 1], strides = [1, 1]} : vector<144x1xf32> to vector<1x1xf32>
    %466 = vector.broadcast %465 : vector<1x1xf32> to vector<8x40xf32>
    %467 = arith.mulf %24, %466 : vector<8x40xf32>
    %468 = arith.addf %464, %467 : vector<8x40xf32>
    %469 = vector.extract_strided_slice %2 {offsets = [105, 0], sizes = [1, 1], strides = [1, 1]} : vector<144x1xf32> to vector<1x1xf32>
    %470 = vector.broadcast %469 : vector<1x1xf32> to vector<8x40xf32>
    %471 = arith.mulf %25, %470 : vector<8x40xf32>
    %472 = arith.addf %468, %471 : vector<8x40xf32>
    %473 = vector.extract_strided_slice %2 {offsets = [106, 0], sizes = [1, 1], strides = [1, 1]} : vector<144x1xf32> to vector<1x1xf32>
    %474 = vector.broadcast %473 : vector<1x1xf32> to vector<8x40xf32>
    %475 = arith.mulf %26, %474 : vector<8x40xf32>
    %476 = arith.addf %472, %475 : vector<8x40xf32>
    %477 = vector.extract_strided_slice %2 {offsets = [107, 0], sizes = [1, 1], strides = [1, 1]} : vector<144x1xf32> to vector<1x1xf32>
    %478 = vector.broadcast %477 : vector<1x1xf32> to vector<8x40xf32>
    %479 = arith.mulf %27, %478 : vector<8x40xf32>
    %480 = arith.addf %476, %479 : vector<8x40xf32>
    %481 = vector.extract_strided_slice %3 {offsets = [40, 0], sizes = [8, 8], strides = [1, 1]} : vector<64x8xbf16> to vector<8x8xbf16>
    %482 = arith.truncf %480 : vector<8x40xf32> to vector<8x40xbf16>
    %cst_28 = arith.constant dense<0.000000e+00> : vector<8x40xf32>
    %483 = tpu.matmul %481, %482, %cst_28 {dimension_numbers = #tpu.dot_dimension_numbers<[1], [0], [0], [1], [0, 0, 1, 1], [], []>} : vector<8x8xbf16>, vector<8x40xbf16>, vector<8x40xf32> -> vector<8x40xf32>
    %cst_29 = arith.constant 0.000000e+00 : f32
    %484 = vector.broadcast %cst_29 : f32 to vector<8x40xf32>
    %485 = vector.extract_strided_slice %2 {offsets = [108, 0], sizes = [1, 1], strides = [1, 1]} : vector<144x1xf32> to vector<1x1xf32>
    %486 = vector.broadcast %485 : vector<1x1xf32> to vector<8x40xf32>
    %487 = arith.mulf %10, %486 : vector<8x40xf32>
    %488 = arith.addf %484, %487 : vector<8x40xf32>
    %489 = vector.extract_strided_slice %2 {offsets = [109, 0], sizes = [1, 1], strides = [1, 1]} : vector<144x1xf32> to vector<1x1xf32>
    %490 = vector.broadcast %489 : vector<1x1xf32> to vector<8x40xf32>
    %491 = arith.mulf %11, %490 : vector<8x40xf32>
    %492 = arith.addf %488, %491 : vector<8x40xf32>
    %493 = vector.extract_strided_slice %2 {offsets = [110, 0], sizes = [1, 1], strides = [1, 1]} : vector<144x1xf32> to vector<1x1xf32>
    %494 = vector.broadcast %493 : vector<1x1xf32> to vector<8x40xf32>
    %495 = arith.mulf %12, %494 : vector<8x40xf32>
    %496 = arith.addf %492, %495 : vector<8x40xf32>
    %497 = vector.extract_strided_slice %2 {offsets = [111, 0], sizes = [1, 1], strides = [1, 1]} : vector<144x1xf32> to vector<1x1xf32>
    %498 = vector.broadcast %497 : vector<1x1xf32> to vector<8x40xf32>
    %499 = arith.mulf %13, %498 : vector<8x40xf32>
    %500 = arith.addf %496, %499 : vector<8x40xf32>
    %501 = vector.extract_strided_slice %2 {offsets = [112, 0], sizes = [1, 1], strides = [1, 1]} : vector<144x1xf32> to vector<1x1xf32>
    %502 = vector.broadcast %501 : vector<1x1xf32> to vector<8x40xf32>
    %503 = arith.mulf %14, %502 : vector<8x40xf32>
    %504 = arith.addf %500, %503 : vector<8x40xf32>
    %505 = vector.extract_strided_slice %2 {offsets = [113, 0], sizes = [1, 1], strides = [1, 1]} : vector<144x1xf32> to vector<1x1xf32>
    %506 = vector.broadcast %505 : vector<1x1xf32> to vector<8x40xf32>
    %507 = arith.mulf %15, %506 : vector<8x40xf32>
    %508 = arith.addf %504, %507 : vector<8x40xf32>
    %509 = vector.extract_strided_slice %2 {offsets = [114, 0], sizes = [1, 1], strides = [1, 1]} : vector<144x1xf32> to vector<1x1xf32>
    %510 = vector.broadcast %509 : vector<1x1xf32> to vector<8x40xf32>
    %511 = arith.mulf %16, %510 : vector<8x40xf32>
    %512 = arith.addf %508, %511 : vector<8x40xf32>
    %513 = vector.extract_strided_slice %2 {offsets = [115, 0], sizes = [1, 1], strides = [1, 1]} : vector<144x1xf32> to vector<1x1xf32>
    %514 = vector.broadcast %513 : vector<1x1xf32> to vector<8x40xf32>
    %515 = arith.mulf %17, %514 : vector<8x40xf32>
    %516 = arith.addf %512, %515 : vector<8x40xf32>
    %517 = vector.extract_strided_slice %2 {offsets = [116, 0], sizes = [1, 1], strides = [1, 1]} : vector<144x1xf32> to vector<1x1xf32>
    %518 = vector.broadcast %517 : vector<1x1xf32> to vector<8x40xf32>
    %519 = arith.mulf %18, %518 : vector<8x40xf32>
    %520 = arith.addf %516, %519 : vector<8x40xf32>
    %521 = vector.extract_strided_slice %2 {offsets = [117, 0], sizes = [1, 1], strides = [1, 1]} : vector<144x1xf32> to vector<1x1xf32>
    %522 = vector.broadcast %521 : vector<1x1xf32> to vector<8x40xf32>
    %523 = arith.mulf %19, %522 : vector<8x40xf32>
    %524 = arith.addf %520, %523 : vector<8x40xf32>
    %525 = vector.extract_strided_slice %2 {offsets = [118, 0], sizes = [1, 1], strides = [1, 1]} : vector<144x1xf32> to vector<1x1xf32>
    %526 = vector.broadcast %525 : vector<1x1xf32> to vector<8x40xf32>
    %527 = arith.mulf %20, %526 : vector<8x40xf32>
    %528 = arith.addf %524, %527 : vector<8x40xf32>
    %529 = vector.extract_strided_slice %2 {offsets = [119, 0], sizes = [1, 1], strides = [1, 1]} : vector<144x1xf32> to vector<1x1xf32>
    %530 = vector.broadcast %529 : vector<1x1xf32> to vector<8x40xf32>
    %531 = arith.mulf %21, %530 : vector<8x40xf32>
    %532 = arith.addf %528, %531 : vector<8x40xf32>
    %533 = vector.extract_strided_slice %2 {offsets = [120, 0], sizes = [1, 1], strides = [1, 1]} : vector<144x1xf32> to vector<1x1xf32>
    %534 = vector.broadcast %533 : vector<1x1xf32> to vector<8x40xf32>
    %535 = arith.mulf %22, %534 : vector<8x40xf32>
    %536 = arith.addf %532, %535 : vector<8x40xf32>
    %537 = vector.extract_strided_slice %2 {offsets = [121, 0], sizes = [1, 1], strides = [1, 1]} : vector<144x1xf32> to vector<1x1xf32>
    %538 = vector.broadcast %537 : vector<1x1xf32> to vector<8x40xf32>
    %539 = arith.mulf %23, %538 : vector<8x40xf32>
    %540 = arith.addf %536, %539 : vector<8x40xf32>
    %541 = vector.extract_strided_slice %2 {offsets = [122, 0], sizes = [1, 1], strides = [1, 1]} : vector<144x1xf32> to vector<1x1xf32>
    %542 = vector.broadcast %541 : vector<1x1xf32> to vector<8x40xf32>
    %543 = arith.mulf %24, %542 : vector<8x40xf32>
    %544 = arith.addf %540, %543 : vector<8x40xf32>
    %545 = vector.extract_strided_slice %2 {offsets = [123, 0], sizes = [1, 1], strides = [1, 1]} : vector<144x1xf32> to vector<1x1xf32>
    %546 = vector.broadcast %545 : vector<1x1xf32> to vector<8x40xf32>
    %547 = arith.mulf %25, %546 : vector<8x40xf32>
    %548 = arith.addf %544, %547 : vector<8x40xf32>
    %549 = vector.extract_strided_slice %2 {offsets = [124, 0], sizes = [1, 1], strides = [1, 1]} : vector<144x1xf32> to vector<1x1xf32>
    %550 = vector.broadcast %549 : vector<1x1xf32> to vector<8x40xf32>
    %551 = arith.mulf %26, %550 : vector<8x40xf32>
    %552 = arith.addf %548, %551 : vector<8x40xf32>
    %553 = vector.extract_strided_slice %2 {offsets = [125, 0], sizes = [1, 1], strides = [1, 1]} : vector<144x1xf32> to vector<1x1xf32>
    %554 = vector.broadcast %553 : vector<1x1xf32> to vector<8x40xf32>
    %555 = arith.mulf %27, %554 : vector<8x40xf32>
    %556 = arith.addf %552, %555 : vector<8x40xf32>
    %557 = vector.extract_strided_slice %3 {offsets = [48, 0], sizes = [8, 8], strides = [1, 1]} : vector<64x8xbf16> to vector<8x8xbf16>
    %558 = arith.truncf %556 : vector<8x40xf32> to vector<8x40xbf16>
    %cst_30 = arith.constant dense<0.000000e+00> : vector<8x40xf32>
    %559 = tpu.matmul %557, %558, %cst_30 {dimension_numbers = #tpu.dot_dimension_numbers<[1], [0], [0], [1], [0, 0, 1, 1], [], []>} : vector<8x8xbf16>, vector<8x40xbf16>, vector<8x40xf32> -> vector<8x40xf32>
    %cst_31 = arith.constant 0.000000e+00 : f32
    %560 = vector.broadcast %cst_31 : f32 to vector<8x40xf32>
    %561 = vector.extract_strided_slice %2 {offsets = [126, 0], sizes = [1, 1], strides = [1, 1]} : vector<144x1xf32> to vector<1x1xf32>
    %562 = vector.broadcast %561 : vector<1x1xf32> to vector<8x40xf32>
    %563 = arith.mulf %10, %562 : vector<8x40xf32>
    %564 = arith.addf %560, %563 : vector<8x40xf32>
    %565 = vector.extract_strided_slice %2 {offsets = [127, 0], sizes = [1, 1], strides = [1, 1]} : vector<144x1xf32> to vector<1x1xf32>
    %566 = vector.broadcast %565 : vector<1x1xf32> to vector<8x40xf32>
    %567 = arith.mulf %11, %566 : vector<8x40xf32>
    %568 = arith.addf %564, %567 : vector<8x40xf32>
    %569 = vector.extract_strided_slice %2 {offsets = [128, 0], sizes = [1, 1], strides = [1, 1]} : vector<144x1xf32> to vector<1x1xf32>
    %570 = vector.broadcast %569 : vector<1x1xf32> to vector<8x40xf32>
    %571 = arith.mulf %12, %570 : vector<8x40xf32>
    %572 = arith.addf %568, %571 : vector<8x40xf32>
    %573 = vector.extract_strided_slice %2 {offsets = [129, 0], sizes = [1, 1], strides = [1, 1]} : vector<144x1xf32> to vector<1x1xf32>
    %574 = vector.broadcast %573 : vector<1x1xf32> to vector<8x40xf32>
    %575 = arith.mulf %13, %574 : vector<8x40xf32>
    %576 = arith.addf %572, %575 : vector<8x40xf32>
    %577 = vector.extract_strided_slice %2 {offsets = [130, 0], sizes = [1, 1], strides = [1, 1]} : vector<144x1xf32> to vector<1x1xf32>
    %578 = vector.broadcast %577 : vector<1x1xf32> to vector<8x40xf32>
    %579 = arith.mulf %14, %578 : vector<8x40xf32>
    %580 = arith.addf %576, %579 : vector<8x40xf32>
    %581 = vector.extract_strided_slice %2 {offsets = [131, 0], sizes = [1, 1], strides = [1, 1]} : vector<144x1xf32> to vector<1x1xf32>
    %582 = vector.broadcast %581 : vector<1x1xf32> to vector<8x40xf32>
    %583 = arith.mulf %15, %582 : vector<8x40xf32>
    %584 = arith.addf %580, %583 : vector<8x40xf32>
    %585 = vector.extract_strided_slice %2 {offsets = [132, 0], sizes = [1, 1], strides = [1, 1]} : vector<144x1xf32> to vector<1x1xf32>
    %586 = vector.broadcast %585 : vector<1x1xf32> to vector<8x40xf32>
    %587 = arith.mulf %16, %586 : vector<8x40xf32>
    %588 = arith.addf %584, %587 : vector<8x40xf32>
    %589 = vector.extract_strided_slice %2 {offsets = [133, 0], sizes = [1, 1], strides = [1, 1]} : vector<144x1xf32> to vector<1x1xf32>
    %590 = vector.broadcast %589 : vector<1x1xf32> to vector<8x40xf32>
    %591 = arith.mulf %17, %590 : vector<8x40xf32>
    %592 = arith.addf %588, %591 : vector<8x40xf32>
    %593 = vector.extract_strided_slice %2 {offsets = [134, 0], sizes = [1, 1], strides = [1, 1]} : vector<144x1xf32> to vector<1x1xf32>
    %594 = vector.broadcast %593 : vector<1x1xf32> to vector<8x40xf32>
    %595 = arith.mulf %18, %594 : vector<8x40xf32>
    %596 = arith.addf %592, %595 : vector<8x40xf32>
    %597 = vector.extract_strided_slice %2 {offsets = [135, 0], sizes = [1, 1], strides = [1, 1]} : vector<144x1xf32> to vector<1x1xf32>
    %598 = vector.broadcast %597 : vector<1x1xf32> to vector<8x40xf32>
    %599 = arith.mulf %19, %598 : vector<8x40xf32>
    %600 = arith.addf %596, %599 : vector<8x40xf32>
    %601 = vector.extract_strided_slice %2 {offsets = [136, 0], sizes = [1, 1], strides = [1, 1]} : vector<144x1xf32> to vector<1x1xf32>
    %602 = vector.broadcast %601 : vector<1x1xf32> to vector<8x40xf32>
    %603 = arith.mulf %20, %602 : vector<8x40xf32>
    %604 = arith.addf %600, %603 : vector<8x40xf32>
    %605 = vector.extract_strided_slice %2 {offsets = [137, 0], sizes = [1, 1], strides = [1, 1]} : vector<144x1xf32> to vector<1x1xf32>
    %606 = vector.broadcast %605 : vector<1x1xf32> to vector<8x40xf32>
    %607 = arith.mulf %21, %606 : vector<8x40xf32>
    %608 = arith.addf %604, %607 : vector<8x40xf32>
    %609 = vector.extract_strided_slice %2 {offsets = [138, 0], sizes = [1, 1], strides = [1, 1]} : vector<144x1xf32> to vector<1x1xf32>
    %610 = vector.broadcast %609 : vector<1x1xf32> to vector<8x40xf32>
    %611 = arith.mulf %22, %610 : vector<8x40xf32>
    %612 = arith.addf %608, %611 : vector<8x40xf32>
    %613 = vector.extract_strided_slice %2 {offsets = [139, 0], sizes = [1, 1], strides = [1, 1]} : vector<144x1xf32> to vector<1x1xf32>
    %614 = vector.broadcast %613 : vector<1x1xf32> to vector<8x40xf32>
    %615 = arith.mulf %23, %614 : vector<8x40xf32>
    %616 = arith.addf %612, %615 : vector<8x40xf32>
    %617 = vector.extract_strided_slice %2 {offsets = [140, 0], sizes = [1, 1], strides = [1, 1]} : vector<144x1xf32> to vector<1x1xf32>
    %618 = vector.broadcast %617 : vector<1x1xf32> to vector<8x40xf32>
    %619 = arith.mulf %24, %618 : vector<8x40xf32>
    %620 = arith.addf %616, %619 : vector<8x40xf32>
    %621 = vector.extract_strided_slice %2 {offsets = [141, 0], sizes = [1, 1], strides = [1, 1]} : vector<144x1xf32> to vector<1x1xf32>
    %622 = vector.broadcast %621 : vector<1x1xf32> to vector<8x40xf32>
    %623 = arith.mulf %25, %622 : vector<8x40xf32>
    %624 = arith.addf %620, %623 : vector<8x40xf32>
    %625 = vector.extract_strided_slice %2 {offsets = [142, 0], sizes = [1, 1], strides = [1, 1]} : vector<144x1xf32> to vector<1x1xf32>
    %626 = vector.broadcast %625 : vector<1x1xf32> to vector<8x40xf32>
    %627 = arith.mulf %26, %626 : vector<8x40xf32>
    %628 = arith.addf %624, %627 : vector<8x40xf32>
    %629 = vector.extract_strided_slice %2 {offsets = [143, 0], sizes = [1, 1], strides = [1, 1]} : vector<144x1xf32> to vector<1x1xf32>
    %630 = vector.broadcast %629 : vector<1x1xf32> to vector<8x40xf32>
    %631 = arith.mulf %27, %630 : vector<8x40xf32>
    %632 = arith.addf %628, %631 : vector<8x40xf32>
    %633 = vector.extract_strided_slice %3 {offsets = [56, 0], sizes = [8, 8], strides = [1, 1]} : vector<64x8xbf16> to vector<8x8xbf16>
    %634 = arith.truncf %632 : vector<8x40xf32> to vector<8x40xbf16>
    %cst_32 = arith.constant dense<0.000000e+00> : vector<8x40xf32>
    %635 = tpu.matmul %633, %634, %cst_32 {dimension_numbers = #tpu.dot_dimension_numbers<[1], [0], [0], [1], [0, 0, 1, 1], [], []>} : vector<8x8xbf16>, vector<8x40xbf16>, vector<8x40xf32> -> vector<8x40xf32>
    %636 = tpu.concatenate %103, %179, %255, %331, %407, %483, %559, %635 in 0 : vector<8x40xf32>, vector<8x40xf32>, vector<8x40xf32>, vector<8x40xf32>, vector<8x40xf32>, vector<8x40xf32>, vector<8x40xf32>, vector<8x40xf32> -> vector<64x40xf32>
    %637 = vector.broadcast %4 : vector<64x1xf32> to vector<64x40xf32>
    %638 = arith.addf %636, %637 : vector<64x40xf32>
    %cst_33 = arith.constant 0.000000e+00 : f32
    %639 = vector.broadcast %cst_33 : f32 to vector<64x40xf32>
    %640 = arith.cmpf ogt, %638, %639 : vector<64x40xf32>
    %cst_34 = arith.constant 0.000000e+00 : f32
    %641 = vector.broadcast %cst_34 : f32 to vector<64x40xf32>
    %642 = arith.minimumf %638, %641 : vector<64x40xf32>
    %643 = math.exp %642 : vector<64x40xf32>
    %cst_35 = arith.constant 1.000000e+00 : f32
    %644 = vector.broadcast %cst_35 : f32 to vector<64x40xf32>
    %645 = arith.subf %643, %644 : vector<64x40xf32>
    %646 = arith.select %640, %638, %645 : vector<64x40xi1>, vector<64x40xf32>
    %cst_36 = arith.constant dense<0.000000e+00> : vector<64x23xf32>
    %647 = tpu.matmul %646, %5, %cst_36 {dimension_numbers = #tpu.dot_dimension_numbers<[1], [0], [0], [1], [0, 0, 1, 1], [], []>} : vector<64x40xf32>, vector<40x23xf32>, vector<64x23xf32> -> vector<64x23xf32>
    %cst_37 = arith.constant 0.000000e+00 : f32
    %648 = vector.broadcast %cst_37 : f32 to vector<64x20xf32>
    %649 = vector.extract_strided_slice %647 {offsets = [0, 0], sizes = [64, 20], strides = [1, 1]} : vector<64x23xf32> to vector<64x20xf32>
    %650 = vector.extract_strided_slice %6 {offsets = [0, 0], sizes = [64, 1], strides = [1, 1]} : vector<64x4xf32> to vector<64x1xf32>
    %651 = vector.broadcast %650 : vector<64x1xf32> to vector<64x20xf32>
    %652 = arith.mulf %649, %651 : vector<64x20xf32>
    %653 = arith.addf %648, %652 : vector<64x20xf32>
    %654 = vector.extract_strided_slice %647 {offsets = [0, 1], sizes = [64, 20], strides = [1, 1]} : vector<64x23xf32> to vector<64x20xf32>
    %655 = vector.extract_strided_slice %6 {offsets = [0, 1], sizes = [64, 1], strides = [1, 1]} : vector<64x4xf32> to vector<64x1xf32>
    %656 = vector.broadcast %655 : vector<64x1xf32> to vector<64x20xf32>
    %657 = arith.mulf %654, %656 : vector<64x20xf32>
    %658 = arith.addf %653, %657 : vector<64x20xf32>
    %659 = vector.extract_strided_slice %647 {offsets = [0, 2], sizes = [64, 20], strides = [1, 1]} : vector<64x23xf32> to vector<64x20xf32>
    %660 = vector.extract_strided_slice %6 {offsets = [0, 2], sizes = [64, 1], strides = [1, 1]} : vector<64x4xf32> to vector<64x1xf32>
    %661 = vector.broadcast %660 : vector<64x1xf32> to vector<64x20xf32>
    %662 = arith.mulf %659, %661 : vector<64x20xf32>
    %663 = arith.addf %658, %662 : vector<64x20xf32>
    %664 = vector.extract_strided_slice %647 {offsets = [0, 3], sizes = [64, 20], strides = [1, 1]} : vector<64x23xf32> to vector<64x20xf32>
    %665 = vector.extract_strided_slice %6 {offsets = [0, 3], sizes = [64, 1], strides = [1, 1]} : vector<64x4xf32> to vector<64x1xf32>
    %666 = vector.broadcast %665 : vector<64x1xf32> to vector<64x20xf32>
    %667 = arith.mulf %664, %666 : vector<64x20xf32>
    %668 = arith.addf %663, %667 : vector<64x20xf32>
    %669 = arith.truncf %668 : vector<64x20xf32> to vector<64x20xbf16>
    %cst_38 = arith.constant dense<0.000000e+00> : vector<64x20xf32>
    %670 = tpu.matmul %7, %669, %cst_38 {dimension_numbers = #tpu.dot_dimension_numbers<[1], [0], [0], [1], [0, 0, 1, 1], [], []>} : vector<64x64xbf16>, vector<64x20xbf16>, vector<64x20xf32> -> vector<64x20xf32>
    %671 = vector.broadcast %8 : vector<64x1xf32> to vector<64x20xf32>
    %672 = arith.addf %670, %671 : vector<64x20xf32>
    %cst_39 = arith.constant 0.000000e+00 : f32
    %673 = vector.broadcast %cst_39 : f32 to vector<64x20xf32>
    %674 = arith.cmpf ogt, %672, %673 : vector<64x20xf32>
    %cst_40 = arith.constant 0.000000e+00 : f32
    %675 = vector.broadcast %cst_40 : f32 to vector<64x20xf32>
    %676 = arith.minimumf %672, %675 : vector<64x20xf32>
    %677 = math.exp %676 : vector<64x20xf32>
    %cst_41 = arith.constant 1.000000e+00 : f32
    %678 = vector.broadcast %cst_41 : f32 to vector<64x20xf32>
    %679 = arith.subf %677, %678 : vector<64x20xf32>
    %680 = arith.select %674, %672, %679 : vector<64x20xi1>, vector<64x20xf32>
    %cst_42 = arith.constant dense<0.000000e+00> : vector<4x64xf32>
    %681 = tpu.matmul %9, %680, %cst_42 {dimension_numbers = #tpu.dot_dimension_numbers<[0], [1], [1], [0], [0, 1, 1, 0], [], []>} : vector<20x4xf32>, vector<64x20xf32>, vector<4x64xf32> -> vector<4x64xf32>
    %cst_43 = arith.constant 0.000000e+00 : f32
    %682 = vector.broadcast %cst_43 : f32 to vector<4x64xf32>
    %683 = tpu.concatenate %682, %681 in 1 : vector<4x64xf32>, vector<4x64xf32> -> vector<4x128xf32>
    %c0_44 = arith.constant 0 : index
    %c0_45 = arith.constant 0 : index
    %c0_46 = arith.constant 0 : index
    %684 = vector.load %arg10[%c0_44, %c0_45, %c0_46] : memref<1x4x128xf32, #tpu.memory_space<vmem>>, vector<1x4x128xf32>
    %685 = vector.shape_cast %684 : vector<1x4x128xf32> to vector<4x128xf32>
    %686 = vector.shape_cast %683 : vector<4x128xf32> to vector<1x4x128xf32>
    tpu.vector_store %arg10[%c0_44, %c0_45, %c0_46], %686 {strides = array<i32>} : memref<1x4x128xf32, #tpu.memory_space<vmem>>, vector<1x4x128xf32>,
    return
  }
  func.func @transform_0(%arg0: i32) -> (i32, i32, i32) {
    %c0_i32 = arith.constant 0 : i32
    %c0_i32_0 = arith.constant 0 : i32
    %c0_i32_1 = arith.constant 0 : i32
    return %arg0, %c0_i32, %c0_i32_0 : i32, i32, i32
  }
  func.func @transform_1(%arg0: i32) -> (i32, i32) {
    %c0_i32 = arith.constant 0 : i32
    %c0_i32_0 = arith.constant 0 : i32
    %c0_i32_1 = arith.constant 0 : i32
    return %c0_i32, %c0_i32_0 : i32, i32
  }
  func.func @transform_2(%arg0: i32) -> (i32, i32) {
    %c0_i32 = arith.constant 0 : i32
    %c0_i32_0 = arith.constant 0 : i32
    %c0_i32_1 = arith.constant 0 : i32
    return %c0_i32, %c0_i32_0 : i32, i32
  }
  func.func @transform_3(%arg0: i32) -> (i32, i32) {
    %c0_i32 = arith.constant 0 : i32
    %c0_i32_0 = arith.constant 0 : i32
    %c0_i32_1 = arith.constant 0 : i32
    return %c0_i32, %c0_i32_0 : i32, i32
  }
  func.func @transform_4(%arg0: i32) -> (i32, i32) {
    %c0_i32 = arith.constant 0 : i32
    %c0_i32_0 = arith.constant 0 : i32
    %c0_i32_1 = arith.constant 0 : i32
    return %c0_i32, %c0_i32_0 : i32, i32
  }
  func.func @transform_5(%arg0: i32) -> (i32, i32) {
    %c0_i32 = arith.constant 0 : i32
    %c0_i32_0 = arith.constant 0 : i32
    %c0_i32_1 = arith.constant 0 : i32
    return %c0_i32, %c0_i32_0 : i32, i32
  }
  func.func @transform_6(%arg0: i32) -> (i32, i32) {
    %c0_i32 = arith.constant 0 : i32
    %c0_i32_0 = arith.constant 0 : i32
    %c0_i32_1 = arith.constant 0 : i32
    return %c0_i32, %c0_i32_0 : i32, i32
  }
  func.func @transform_7(%arg0: i32) -> (i32, i32) {
    %c0_i32 = arith.constant 0 : i32
    %c0_i32_0 = arith.constant 0 : i32
    %c0_i32_1 = arith.constant 0 : i32
    return %c0_i32, %c0_i32_0 : i32, i32
  }
  func.func @transform_8(%arg0: i32) -> (i32, i32) {
    %c0_i32 = arith.constant 0 : i32
    %c0_i32_0 = arith.constant 0 : i32
    %c0_i32_1 = arith.constant 0 : i32
    return %c0_i32, %c0_i32_0 : i32, i32
  }
  func.func @transform_9(%arg0: i32) -> (i32, i32, i32) {
    %c0_i32 = arith.constant 0 : i32
    %c0_i32_0 = arith.constant 0 : i32
    %c0_i32_1 = arith.constant 0 : i32
    return %arg0, %c0_i32, %c0_i32_0 : i32, i32, i32
  }
}

module attributes {stable_mosaic.version = 11 : i64} {
  func.func @_cnn_kernel(%arg0: i32, %arg1: memref<1x8x48xf32, #tpu.memory_space<vmem>>, %arg2: memref<72x1xf32, #tpu.memory_space<vmem>>, %arg3: memref<64x8xbf16, #tpu.memory_space<vmem>>, %arg4: memref<64x1xf32, #tpu.memory_space<vmem>>, %arg5: memref<40x24xf32, #tpu.memory_space<vmem>>, %arg6: memref<64x5xf32, #tpu.memory_space<vmem>>, %arg7: memref<64x64xbf16, #tpu.memory_space<vmem>>, %arg8: memref<64x1xf32, #tpu.memory_space<vmem>>, %arg9: memref<20x4xf32, #tpu.memory_space<vmem>>, %arg10: memref<1x4x128xf32, #tpu.memory_space<vmem>>) attributes {dimension_semantics = [#tpu.dimension_semantics<parallel>], iteration_bounds = array<i64: 2>, scalar_prefetch = 0 : i64, scratch_operands = 0 : i64, tpu.core_type = #tpu.core_type<tc>, window_params = [{transform_indices = @transform_0, window_bounds = array<i64: 1, 8, 48>}, {pipeline_mode = #tpu.pipeline_mode<synchronous>, transform_indices = @transform_1, window_bounds = array<i64: 72, 1>}, {pipeline_mode = #tpu.pipeline_mode<synchronous>, transform_indices = @transform_2, window_bounds = array<i64: 64, 8>}, {pipeline_mode = #tpu.pipeline_mode<synchronous>, transform_indices = @transform_3, window_bounds = array<i64: 64, 1>}, {pipeline_mode = #tpu.pipeline_mode<synchronous>, transform_indices = @transform_4, window_bounds = array<i64: 40, 24>}, {pipeline_mode = #tpu.pipeline_mode<synchronous>, transform_indices = @transform_5, window_bounds = array<i64: 64, 5>}, {pipeline_mode = #tpu.pipeline_mode<synchronous>, transform_indices = @transform_6, window_bounds = array<i64: 64, 64>}, {pipeline_mode = #tpu.pipeline_mode<synchronous>, transform_indices = @transform_7, window_bounds = array<i64: 64, 1>}, {pipeline_mode = #tpu.pipeline_mode<synchronous>, transform_indices = @transform_8, window_bounds = array<i64: 20, 4>}, {transform_indices = @transform_9, window_bounds = array<i64: 1, 4, 128>}]} {
    %c0 = arith.constant 0 : index
    %c0_0 = arith.constant 0 : index
    %c0_1 = arith.constant 0 : index
    %0 = vector.load %arg1[%c0, %c0_0, %c0_1] : memref<1x8x48xf32, #tpu.memory_space<vmem>>, vector<1x8x48xf32>
    %1 = vector.shape_cast %0 : vector<1x8x48xf32> to vector<8x48xf32>
    %c0_2 = arith.constant 0 : index
    %c0_3 = arith.constant 0 : index
    %2 = vector.load %arg2[%c0_2, %c0_3] : memref<72x1xf32, #tpu.memory_space<vmem>>, vector<72x1xf32>
    %c0_4 = arith.constant 0 : index
    %c0_5 = arith.constant 0 : index
    %3 = vector.load %arg3[%c0_4, %c0_5] : memref<64x8xbf16, #tpu.memory_space<vmem>>, vector<64x8xbf16>
    %c0_6 = arith.constant 0 : index
    %c0_7 = arith.constant 0 : index
    %4 = vector.load %arg4[%c0_6, %c0_7] : memref<64x1xf32, #tpu.memory_space<vmem>>, vector<64x1xf32>
    %c0_8 = arith.constant 0 : index
    %c0_9 = arith.constant 0 : index
    %5 = vector.load %arg5[%c0_8, %c0_9] : memref<40x24xf32, #tpu.memory_space<vmem>>, vector<40x24xf32>
    %c0_10 = arith.constant 0 : index
    %c0_11 = arith.constant 0 : index
    %6 = vector.load %arg6[%c0_10, %c0_11] : memref<64x5xf32, #tpu.memory_space<vmem>>, vector<64x5xf32>
    %c0_12 = arith.constant 0 : index
    %c0_13 = arith.constant 0 : index
    %7 = vector.load %arg7[%c0_12, %c0_13] : memref<64x64xbf16, #tpu.memory_space<vmem>>, vector<64x64xbf16>
    %c0_14 = arith.constant 0 : index
    %c0_15 = arith.constant 0 : index
    %8 = vector.load %arg8[%c0_14, %c0_15] : memref<64x1xf32, #tpu.memory_space<vmem>>, vector<64x1xf32>
    %c0_16 = arith.constant 0 : index
    %c0_17 = arith.constant 0 : index
    %9 = vector.load %arg9[%c0_16, %c0_17] : memref<20x4xf32, #tpu.memory_space<vmem>>, vector<20x4xf32>
    %10 = vector.extract_strided_slice %1 {offsets = [0, 0], sizes = [8, 40], strides = [1, 1]} : vector<8x48xf32> to vector<8x40xf32>
    %11 = vector.extract_strided_slice %1 {offsets = [0, 1], sizes = [8, 40], strides = [1, 1]} : vector<8x48xf32> to vector<8x40xf32>
    %12 = vector.extract_strided_slice %1 {offsets = [0, 2], sizes = [8, 40], strides = [1, 1]} : vector<8x48xf32> to vector<8x40xf32>
    %13 = vector.extract_strided_slice %1 {offsets = [0, 3], sizes = [8, 40], strides = [1, 1]} : vector<8x48xf32> to vector<8x40xf32>
    %14 = vector.extract_strided_slice %1 {offsets = [0, 4], sizes = [8, 40], strides = [1, 1]} : vector<8x48xf32> to vector<8x40xf32>
    %15 = vector.extract_strided_slice %1 {offsets = [0, 5], sizes = [8, 40], strides = [1, 1]} : vector<8x48xf32> to vector<8x40xf32>
    %16 = vector.extract_strided_slice %1 {offsets = [0, 6], sizes = [8, 40], strides = [1, 1]} : vector<8x48xf32> to vector<8x40xf32>
    %17 = vector.extract_strided_slice %1 {offsets = [0, 7], sizes = [8, 40], strides = [1, 1]} : vector<8x48xf32> to vector<8x40xf32>
    %18 = vector.extract_strided_slice %1 {offsets = [0, 8], sizes = [8, 40], strides = [1, 1]} : vector<8x48xf32> to vector<8x40xf32>
    %cst = arith.constant 0.000000e+00 : f32
    %19 = vector.broadcast %cst : f32 to vector<8x40xf32>
    %20 = vector.extract_strided_slice %2 {offsets = [0, 0], sizes = [1, 1], strides = [1, 1]} : vector<72x1xf32> to vector<1x1xf32>
    %21 = vector.broadcast %20 : vector<1x1xf32> to vector<8x40xf32>
    %22 = arith.mulf %10, %21 : vector<8x40xf32>
    %23 = arith.addf %19, %22 : vector<8x40xf32>
    %24 = vector.extract_strided_slice %2 {offsets = [1, 0], sizes = [1, 1], strides = [1, 1]} : vector<72x1xf32> to vector<1x1xf32>
    %25 = vector.broadcast %24 : vector<1x1xf32> to vector<8x40xf32>
    %26 = arith.mulf %11, %25 : vector<8x40xf32>
    %27 = arith.addf %23, %26 : vector<8x40xf32>
    %28 = vector.extract_strided_slice %2 {offsets = [2, 0], sizes = [1, 1], strides = [1, 1]} : vector<72x1xf32> to vector<1x1xf32>
    %29 = vector.broadcast %28 : vector<1x1xf32> to vector<8x40xf32>
    %30 = arith.mulf %12, %29 : vector<8x40xf32>
    %31 = arith.addf %27, %30 : vector<8x40xf32>
    %32 = vector.extract_strided_slice %2 {offsets = [3, 0], sizes = [1, 1], strides = [1, 1]} : vector<72x1xf32> to vector<1x1xf32>
    %33 = vector.broadcast %32 : vector<1x1xf32> to vector<8x40xf32>
    %34 = arith.mulf %13, %33 : vector<8x40xf32>
    %35 = arith.addf %31, %34 : vector<8x40xf32>
    %36 = vector.extract_strided_slice %2 {offsets = [4, 0], sizes = [1, 1], strides = [1, 1]} : vector<72x1xf32> to vector<1x1xf32>
    %37 = vector.broadcast %36 : vector<1x1xf32> to vector<8x40xf32>
    %38 = arith.mulf %14, %37 : vector<8x40xf32>
    %39 = arith.addf %35, %38 : vector<8x40xf32>
    %40 = vector.extract_strided_slice %2 {offsets = [5, 0], sizes = [1, 1], strides = [1, 1]} : vector<72x1xf32> to vector<1x1xf32>
    %41 = vector.broadcast %40 : vector<1x1xf32> to vector<8x40xf32>
    %42 = arith.mulf %15, %41 : vector<8x40xf32>
    %43 = arith.addf %39, %42 : vector<8x40xf32>
    %44 = vector.extract_strided_slice %2 {offsets = [6, 0], sizes = [1, 1], strides = [1, 1]} : vector<72x1xf32> to vector<1x1xf32>
    %45 = vector.broadcast %44 : vector<1x1xf32> to vector<8x40xf32>
    %46 = arith.mulf %16, %45 : vector<8x40xf32>
    %47 = arith.addf %43, %46 : vector<8x40xf32>
    %48 = vector.extract_strided_slice %2 {offsets = [7, 0], sizes = [1, 1], strides = [1, 1]} : vector<72x1xf32> to vector<1x1xf32>
    %49 = vector.broadcast %48 : vector<1x1xf32> to vector<8x40xf32>
    %50 = arith.mulf %17, %49 : vector<8x40xf32>
    %51 = arith.addf %47, %50 : vector<8x40xf32>
    %52 = vector.extract_strided_slice %2 {offsets = [8, 0], sizes = [1, 1], strides = [1, 1]} : vector<72x1xf32> to vector<1x1xf32>
    %53 = vector.broadcast %52 : vector<1x1xf32> to vector<8x40xf32>
    %54 = arith.mulf %18, %53 : vector<8x40xf32>
    %55 = arith.addf %51, %54 : vector<8x40xf32>
    %56 = vector.extract_strided_slice %3 {offsets = [0, 0], sizes = [8, 8], strides = [1, 1]} : vector<64x8xbf16> to vector<8x8xbf16>
    %57 = arith.truncf %55 : vector<8x40xf32> to vector<8x40xbf16>
    %cst_18 = arith.constant dense<0.000000e+00> : vector<8x40xf32>
    %58 = tpu.matmul %56, %57, %cst_18 {dimension_numbers = #tpu.dot_dimension_numbers<[1], [0], [0], [1], [0, 0, 1, 1], [], []>} : vector<8x8xbf16>, vector<8x40xbf16>, vector<8x40xf32> -> vector<8x40xf32>
    %cst_19 = arith.constant 0.000000e+00 : f32
    %59 = vector.broadcast %cst_19 : f32 to vector<8x40xf32>
    %60 = vector.extract_strided_slice %2 {offsets = [9, 0], sizes = [1, 1], strides = [1, 1]} : vector<72x1xf32> to vector<1x1xf32>
    %61 = vector.broadcast %60 : vector<1x1xf32> to vector<8x40xf32>
    %62 = arith.mulf %10, %61 : vector<8x40xf32>
    %63 = arith.addf %59, %62 : vector<8x40xf32>
    %64 = vector.extract_strided_slice %2 {offsets = [10, 0], sizes = [1, 1], strides = [1, 1]} : vector<72x1xf32> to vector<1x1xf32>
    %65 = vector.broadcast %64 : vector<1x1xf32> to vector<8x40xf32>
    %66 = arith.mulf %11, %65 : vector<8x40xf32>
    %67 = arith.addf %63, %66 : vector<8x40xf32>
    %68 = vector.extract_strided_slice %2 {offsets = [11, 0], sizes = [1, 1], strides = [1, 1]} : vector<72x1xf32> to vector<1x1xf32>
    %69 = vector.broadcast %68 : vector<1x1xf32> to vector<8x40xf32>
    %70 = arith.mulf %12, %69 : vector<8x40xf32>
    %71 = arith.addf %67, %70 : vector<8x40xf32>
    %72 = vector.extract_strided_slice %2 {offsets = [12, 0], sizes = [1, 1], strides = [1, 1]} : vector<72x1xf32> to vector<1x1xf32>
    %73 = vector.broadcast %72 : vector<1x1xf32> to vector<8x40xf32>
    %74 = arith.mulf %13, %73 : vector<8x40xf32>
    %75 = arith.addf %71, %74 : vector<8x40xf32>
    %76 = vector.extract_strided_slice %2 {offsets = [13, 0], sizes = [1, 1], strides = [1, 1]} : vector<72x1xf32> to vector<1x1xf32>
    %77 = vector.broadcast %76 : vector<1x1xf32> to vector<8x40xf32>
    %78 = arith.mulf %14, %77 : vector<8x40xf32>
    %79 = arith.addf %75, %78 : vector<8x40xf32>
    %80 = vector.extract_strided_slice %2 {offsets = [14, 0], sizes = [1, 1], strides = [1, 1]} : vector<72x1xf32> to vector<1x1xf32>
    %81 = vector.broadcast %80 : vector<1x1xf32> to vector<8x40xf32>
    %82 = arith.mulf %15, %81 : vector<8x40xf32>
    %83 = arith.addf %79, %82 : vector<8x40xf32>
    %84 = vector.extract_strided_slice %2 {offsets = [15, 0], sizes = [1, 1], strides = [1, 1]} : vector<72x1xf32> to vector<1x1xf32>
    %85 = vector.broadcast %84 : vector<1x1xf32> to vector<8x40xf32>
    %86 = arith.mulf %16, %85 : vector<8x40xf32>
    %87 = arith.addf %83, %86 : vector<8x40xf32>
    %88 = vector.extract_strided_slice %2 {offsets = [16, 0], sizes = [1, 1], strides = [1, 1]} : vector<72x1xf32> to vector<1x1xf32>
    %89 = vector.broadcast %88 : vector<1x1xf32> to vector<8x40xf32>
    %90 = arith.mulf %17, %89 : vector<8x40xf32>
    %91 = arith.addf %87, %90 : vector<8x40xf32>
    %92 = vector.extract_strided_slice %2 {offsets = [17, 0], sizes = [1, 1], strides = [1, 1]} : vector<72x1xf32> to vector<1x1xf32>
    %93 = vector.broadcast %92 : vector<1x1xf32> to vector<8x40xf32>
    %94 = arith.mulf %18, %93 : vector<8x40xf32>
    %95 = arith.addf %91, %94 : vector<8x40xf32>
    %96 = vector.extract_strided_slice %3 {offsets = [8, 0], sizes = [8, 8], strides = [1, 1]} : vector<64x8xbf16> to vector<8x8xbf16>
    %97 = arith.truncf %95 : vector<8x40xf32> to vector<8x40xbf16>
    %cst_20 = arith.constant dense<0.000000e+00> : vector<8x40xf32>
    %98 = tpu.matmul %96, %97, %cst_20 {dimension_numbers = #tpu.dot_dimension_numbers<[1], [0], [0], [1], [0, 0, 1, 1], [], []>} : vector<8x8xbf16>, vector<8x40xbf16>, vector<8x40xf32> -> vector<8x40xf32>
    %cst_21 = arith.constant 0.000000e+00 : f32
    %99 = vector.broadcast %cst_21 : f32 to vector<8x40xf32>
    %100 = vector.extract_strided_slice %2 {offsets = [18, 0], sizes = [1, 1], strides = [1, 1]} : vector<72x1xf32> to vector<1x1xf32>
    %101 = vector.broadcast %100 : vector<1x1xf32> to vector<8x40xf32>
    %102 = arith.mulf %10, %101 : vector<8x40xf32>
    %103 = arith.addf %99, %102 : vector<8x40xf32>
    %104 = vector.extract_strided_slice %2 {offsets = [19, 0], sizes = [1, 1], strides = [1, 1]} : vector<72x1xf32> to vector<1x1xf32>
    %105 = vector.broadcast %104 : vector<1x1xf32> to vector<8x40xf32>
    %106 = arith.mulf %11, %105 : vector<8x40xf32>
    %107 = arith.addf %103, %106 : vector<8x40xf32>
    %108 = vector.extract_strided_slice %2 {offsets = [20, 0], sizes = [1, 1], strides = [1, 1]} : vector<72x1xf32> to vector<1x1xf32>
    %109 = vector.broadcast %108 : vector<1x1xf32> to vector<8x40xf32>
    %110 = arith.mulf %12, %109 : vector<8x40xf32>
    %111 = arith.addf %107, %110 : vector<8x40xf32>
    %112 = vector.extract_strided_slice %2 {offsets = [21, 0], sizes = [1, 1], strides = [1, 1]} : vector<72x1xf32> to vector<1x1xf32>
    %113 = vector.broadcast %112 : vector<1x1xf32> to vector<8x40xf32>
    %114 = arith.mulf %13, %113 : vector<8x40xf32>
    %115 = arith.addf %111, %114 : vector<8x40xf32>
    %116 = vector.extract_strided_slice %2 {offsets = [22, 0], sizes = [1, 1], strides = [1, 1]} : vector<72x1xf32> to vector<1x1xf32>
    %117 = vector.broadcast %116 : vector<1x1xf32> to vector<8x40xf32>
    %118 = arith.mulf %14, %117 : vector<8x40xf32>
    %119 = arith.addf %115, %118 : vector<8x40xf32>
    %120 = vector.extract_strided_slice %2 {offsets = [23, 0], sizes = [1, 1], strides = [1, 1]} : vector<72x1xf32> to vector<1x1xf32>
    %121 = vector.broadcast %120 : vector<1x1xf32> to vector<8x40xf32>
    %122 = arith.mulf %15, %121 : vector<8x40xf32>
    %123 = arith.addf %119, %122 : vector<8x40xf32>
    %124 = vector.extract_strided_slice %2 {offsets = [24, 0], sizes = [1, 1], strides = [1, 1]} : vector<72x1xf32> to vector<1x1xf32>
    %125 = vector.broadcast %124 : vector<1x1xf32> to vector<8x40xf32>
    %126 = arith.mulf %16, %125 : vector<8x40xf32>
    %127 = arith.addf %123, %126 : vector<8x40xf32>
    %128 = vector.extract_strided_slice %2 {offsets = [25, 0], sizes = [1, 1], strides = [1, 1]} : vector<72x1xf32> to vector<1x1xf32>
    %129 = vector.broadcast %128 : vector<1x1xf32> to vector<8x40xf32>
    %130 = arith.mulf %17, %129 : vector<8x40xf32>
    %131 = arith.addf %127, %130 : vector<8x40xf32>
    %132 = vector.extract_strided_slice %2 {offsets = [26, 0], sizes = [1, 1], strides = [1, 1]} : vector<72x1xf32> to vector<1x1xf32>
    %133 = vector.broadcast %132 : vector<1x1xf32> to vector<8x40xf32>
    %134 = arith.mulf %18, %133 : vector<8x40xf32>
    %135 = arith.addf %131, %134 : vector<8x40xf32>
    %136 = vector.extract_strided_slice %3 {offsets = [16, 0], sizes = [8, 8], strides = [1, 1]} : vector<64x8xbf16> to vector<8x8xbf16>
    %137 = arith.truncf %135 : vector<8x40xf32> to vector<8x40xbf16>
    %cst_22 = arith.constant dense<0.000000e+00> : vector<8x40xf32>
    %138 = tpu.matmul %136, %137, %cst_22 {dimension_numbers = #tpu.dot_dimension_numbers<[1], [0], [0], [1], [0, 0, 1, 1], [], []>} : vector<8x8xbf16>, vector<8x40xbf16>, vector<8x40xf32> -> vector<8x40xf32>
    %cst_23 = arith.constant 0.000000e+00 : f32
    %139 = vector.broadcast %cst_23 : f32 to vector<8x40xf32>
    %140 = vector.extract_strided_slice %2 {offsets = [27, 0], sizes = [1, 1], strides = [1, 1]} : vector<72x1xf32> to vector<1x1xf32>
    %141 = vector.broadcast %140 : vector<1x1xf32> to vector<8x40xf32>
    %142 = arith.mulf %10, %141 : vector<8x40xf32>
    %143 = arith.addf %139, %142 : vector<8x40xf32>
    %144 = vector.extract_strided_slice %2 {offsets = [28, 0], sizes = [1, 1], strides = [1, 1]} : vector<72x1xf32> to vector<1x1xf32>
    %145 = vector.broadcast %144 : vector<1x1xf32> to vector<8x40xf32>
    %146 = arith.mulf %11, %145 : vector<8x40xf32>
    %147 = arith.addf %143, %146 : vector<8x40xf32>
    %148 = vector.extract_strided_slice %2 {offsets = [29, 0], sizes = [1, 1], strides = [1, 1]} : vector<72x1xf32> to vector<1x1xf32>
    %149 = vector.broadcast %148 : vector<1x1xf32> to vector<8x40xf32>
    %150 = arith.mulf %12, %149 : vector<8x40xf32>
    %151 = arith.addf %147, %150 : vector<8x40xf32>
    %152 = vector.extract_strided_slice %2 {offsets = [30, 0], sizes = [1, 1], strides = [1, 1]} : vector<72x1xf32> to vector<1x1xf32>
    %153 = vector.broadcast %152 : vector<1x1xf32> to vector<8x40xf32>
    %154 = arith.mulf %13, %153 : vector<8x40xf32>
    %155 = arith.addf %151, %154 : vector<8x40xf32>
    %156 = vector.extract_strided_slice %2 {offsets = [31, 0], sizes = [1, 1], strides = [1, 1]} : vector<72x1xf32> to vector<1x1xf32>
    %157 = vector.broadcast %156 : vector<1x1xf32> to vector<8x40xf32>
    %158 = arith.mulf %14, %157 : vector<8x40xf32>
    %159 = arith.addf %155, %158 : vector<8x40xf32>
    %160 = vector.extract_strided_slice %2 {offsets = [32, 0], sizes = [1, 1], strides = [1, 1]} : vector<72x1xf32> to vector<1x1xf32>
    %161 = vector.broadcast %160 : vector<1x1xf32> to vector<8x40xf32>
    %162 = arith.mulf %15, %161 : vector<8x40xf32>
    %163 = arith.addf %159, %162 : vector<8x40xf32>
    %164 = vector.extract_strided_slice %2 {offsets = [33, 0], sizes = [1, 1], strides = [1, 1]} : vector<72x1xf32> to vector<1x1xf32>
    %165 = vector.broadcast %164 : vector<1x1xf32> to vector<8x40xf32>
    %166 = arith.mulf %16, %165 : vector<8x40xf32>
    %167 = arith.addf %163, %166 : vector<8x40xf32>
    %168 = vector.extract_strided_slice %2 {offsets = [34, 0], sizes = [1, 1], strides = [1, 1]} : vector<72x1xf32> to vector<1x1xf32>
    %169 = vector.broadcast %168 : vector<1x1xf32> to vector<8x40xf32>
    %170 = arith.mulf %17, %169 : vector<8x40xf32>
    %171 = arith.addf %167, %170 : vector<8x40xf32>
    %172 = vector.extract_strided_slice %2 {offsets = [35, 0], sizes = [1, 1], strides = [1, 1]} : vector<72x1xf32> to vector<1x1xf32>
    %173 = vector.broadcast %172 : vector<1x1xf32> to vector<8x40xf32>
    %174 = arith.mulf %18, %173 : vector<8x40xf32>
    %175 = arith.addf %171, %174 : vector<8x40xf32>
    %176 = vector.extract_strided_slice %3 {offsets = [24, 0], sizes = [8, 8], strides = [1, 1]} : vector<64x8xbf16> to vector<8x8xbf16>
    %177 = arith.truncf %175 : vector<8x40xf32> to vector<8x40xbf16>
    %cst_24 = arith.constant dense<0.000000e+00> : vector<8x40xf32>
    %178 = tpu.matmul %176, %177, %cst_24 {dimension_numbers = #tpu.dot_dimension_numbers<[1], [0], [0], [1], [0, 0, 1, 1], [], []>} : vector<8x8xbf16>, vector<8x40xbf16>, vector<8x40xf32> -> vector<8x40xf32>
    %cst_25 = arith.constant 0.000000e+00 : f32
    %179 = vector.broadcast %cst_25 : f32 to vector<8x40xf32>
    %180 = vector.extract_strided_slice %2 {offsets = [36, 0], sizes = [1, 1], strides = [1, 1]} : vector<72x1xf32> to vector<1x1xf32>
    %181 = vector.broadcast %180 : vector<1x1xf32> to vector<8x40xf32>
    %182 = arith.mulf %10, %181 : vector<8x40xf32>
    %183 = arith.addf %179, %182 : vector<8x40xf32>
    %184 = vector.extract_strided_slice %2 {offsets = [37, 0], sizes = [1, 1], strides = [1, 1]} : vector<72x1xf32> to vector<1x1xf32>
    %185 = vector.broadcast %184 : vector<1x1xf32> to vector<8x40xf32>
    %186 = arith.mulf %11, %185 : vector<8x40xf32>
    %187 = arith.addf %183, %186 : vector<8x40xf32>
    %188 = vector.extract_strided_slice %2 {offsets = [38, 0], sizes = [1, 1], strides = [1, 1]} : vector<72x1xf32> to vector<1x1xf32>
    %189 = vector.broadcast %188 : vector<1x1xf32> to vector<8x40xf32>
    %190 = arith.mulf %12, %189 : vector<8x40xf32>
    %191 = arith.addf %187, %190 : vector<8x40xf32>
    %192 = vector.extract_strided_slice %2 {offsets = [39, 0], sizes = [1, 1], strides = [1, 1]} : vector<72x1xf32> to vector<1x1xf32>
    %193 = vector.broadcast %192 : vector<1x1xf32> to vector<8x40xf32>
    %194 = arith.mulf %13, %193 : vector<8x40xf32>
    %195 = arith.addf %191, %194 : vector<8x40xf32>
    %196 = vector.extract_strided_slice %2 {offsets = [40, 0], sizes = [1, 1], strides = [1, 1]} : vector<72x1xf32> to vector<1x1xf32>
    %197 = vector.broadcast %196 : vector<1x1xf32> to vector<8x40xf32>
    %198 = arith.mulf %14, %197 : vector<8x40xf32>
    %199 = arith.addf %195, %198 : vector<8x40xf32>
    %200 = vector.extract_strided_slice %2 {offsets = [41, 0], sizes = [1, 1], strides = [1, 1]} : vector<72x1xf32> to vector<1x1xf32>
    %201 = vector.broadcast %200 : vector<1x1xf32> to vector<8x40xf32>
    %202 = arith.mulf %15, %201 : vector<8x40xf32>
    %203 = arith.addf %199, %202 : vector<8x40xf32>
    %204 = vector.extract_strided_slice %2 {offsets = [42, 0], sizes = [1, 1], strides = [1, 1]} : vector<72x1xf32> to vector<1x1xf32>
    %205 = vector.broadcast %204 : vector<1x1xf32> to vector<8x40xf32>
    %206 = arith.mulf %16, %205 : vector<8x40xf32>
    %207 = arith.addf %203, %206 : vector<8x40xf32>
    %208 = vector.extract_strided_slice %2 {offsets = [43, 0], sizes = [1, 1], strides = [1, 1]} : vector<72x1xf32> to vector<1x1xf32>
    %209 = vector.broadcast %208 : vector<1x1xf32> to vector<8x40xf32>
    %210 = arith.mulf %17, %209 : vector<8x40xf32>
    %211 = arith.addf %207, %210 : vector<8x40xf32>
    %212 = vector.extract_strided_slice %2 {offsets = [44, 0], sizes = [1, 1], strides = [1, 1]} : vector<72x1xf32> to vector<1x1xf32>
    %213 = vector.broadcast %212 : vector<1x1xf32> to vector<8x40xf32>
    %214 = arith.mulf %18, %213 : vector<8x40xf32>
    %215 = arith.addf %211, %214 : vector<8x40xf32>
    %216 = vector.extract_strided_slice %3 {offsets = [32, 0], sizes = [8, 8], strides = [1, 1]} : vector<64x8xbf16> to vector<8x8xbf16>
    %217 = arith.truncf %215 : vector<8x40xf32> to vector<8x40xbf16>
    %cst_26 = arith.constant dense<0.000000e+00> : vector<8x40xf32>
    %218 = tpu.matmul %216, %217, %cst_26 {dimension_numbers = #tpu.dot_dimension_numbers<[1], [0], [0], [1], [0, 0, 1, 1], [], []>} : vector<8x8xbf16>, vector<8x40xbf16>, vector<8x40xf32> -> vector<8x40xf32>
    %cst_27 = arith.constant 0.000000e+00 : f32
    %219 = vector.broadcast %cst_27 : f32 to vector<8x40xf32>
    %220 = vector.extract_strided_slice %2 {offsets = [45, 0], sizes = [1, 1], strides = [1, 1]} : vector<72x1xf32> to vector<1x1xf32>
    %221 = vector.broadcast %220 : vector<1x1xf32> to vector<8x40xf32>
    %222 = arith.mulf %10, %221 : vector<8x40xf32>
    %223 = arith.addf %219, %222 : vector<8x40xf32>
    %224 = vector.extract_strided_slice %2 {offsets = [46, 0], sizes = [1, 1], strides = [1, 1]} : vector<72x1xf32> to vector<1x1xf32>
    %225 = vector.broadcast %224 : vector<1x1xf32> to vector<8x40xf32>
    %226 = arith.mulf %11, %225 : vector<8x40xf32>
    %227 = arith.addf %223, %226 : vector<8x40xf32>
    %228 = vector.extract_strided_slice %2 {offsets = [47, 0], sizes = [1, 1], strides = [1, 1]} : vector<72x1xf32> to vector<1x1xf32>
    %229 = vector.broadcast %228 : vector<1x1xf32> to vector<8x40xf32>
    %230 = arith.mulf %12, %229 : vector<8x40xf32>
    %231 = arith.addf %227, %230 : vector<8x40xf32>
    %232 = vector.extract_strided_slice %2 {offsets = [48, 0], sizes = [1, 1], strides = [1, 1]} : vector<72x1xf32> to vector<1x1xf32>
    %233 = vector.broadcast %232 : vector<1x1xf32> to vector<8x40xf32>
    %234 = arith.mulf %13, %233 : vector<8x40xf32>
    %235 = arith.addf %231, %234 : vector<8x40xf32>
    %236 = vector.extract_strided_slice %2 {offsets = [49, 0], sizes = [1, 1], strides = [1, 1]} : vector<72x1xf32> to vector<1x1xf32>
    %237 = vector.broadcast %236 : vector<1x1xf32> to vector<8x40xf32>
    %238 = arith.mulf %14, %237 : vector<8x40xf32>
    %239 = arith.addf %235, %238 : vector<8x40xf32>
    %240 = vector.extract_strided_slice %2 {offsets = [50, 0], sizes = [1, 1], strides = [1, 1]} : vector<72x1xf32> to vector<1x1xf32>
    %241 = vector.broadcast %240 : vector<1x1xf32> to vector<8x40xf32>
    %242 = arith.mulf %15, %241 : vector<8x40xf32>
    %243 = arith.addf %239, %242 : vector<8x40xf32>
    %244 = vector.extract_strided_slice %2 {offsets = [51, 0], sizes = [1, 1], strides = [1, 1]} : vector<72x1xf32> to vector<1x1xf32>
    %245 = vector.broadcast %244 : vector<1x1xf32> to vector<8x40xf32>
    %246 = arith.mulf %16, %245 : vector<8x40xf32>
    %247 = arith.addf %243, %246 : vector<8x40xf32>
    %248 = vector.extract_strided_slice %2 {offsets = [52, 0], sizes = [1, 1], strides = [1, 1]} : vector<72x1xf32> to vector<1x1xf32>
    %249 = vector.broadcast %248 : vector<1x1xf32> to vector<8x40xf32>
    %250 = arith.mulf %17, %249 : vector<8x40xf32>
    %251 = arith.addf %247, %250 : vector<8x40xf32>
    %252 = vector.extract_strided_slice %2 {offsets = [53, 0], sizes = [1, 1], strides = [1, 1]} : vector<72x1xf32> to vector<1x1xf32>
    %253 = vector.broadcast %252 : vector<1x1xf32> to vector<8x40xf32>
    %254 = arith.mulf %18, %253 : vector<8x40xf32>
    %255 = arith.addf %251, %254 : vector<8x40xf32>
    %256 = vector.extract_strided_slice %3 {offsets = [40, 0], sizes = [8, 8], strides = [1, 1]} : vector<64x8xbf16> to vector<8x8xbf16>
    %257 = arith.truncf %255 : vector<8x40xf32> to vector<8x40xbf16>
    %cst_28 = arith.constant dense<0.000000e+00> : vector<8x40xf32>
    %258 = tpu.matmul %256, %257, %cst_28 {dimension_numbers = #tpu.dot_dimension_numbers<[1], [0], [0], [1], [0, 0, 1, 1], [], []>} : vector<8x8xbf16>, vector<8x40xbf16>, vector<8x40xf32> -> vector<8x40xf32>
    %cst_29 = arith.constant 0.000000e+00 : f32
    %259 = vector.broadcast %cst_29 : f32 to vector<8x40xf32>
    %260 = vector.extract_strided_slice %2 {offsets = [54, 0], sizes = [1, 1], strides = [1, 1]} : vector<72x1xf32> to vector<1x1xf32>
    %261 = vector.broadcast %260 : vector<1x1xf32> to vector<8x40xf32>
    %262 = arith.mulf %10, %261 : vector<8x40xf32>
    %263 = arith.addf %259, %262 : vector<8x40xf32>
    %264 = vector.extract_strided_slice %2 {offsets = [55, 0], sizes = [1, 1], strides = [1, 1]} : vector<72x1xf32> to vector<1x1xf32>
    %265 = vector.broadcast %264 : vector<1x1xf32> to vector<8x40xf32>
    %266 = arith.mulf %11, %265 : vector<8x40xf32>
    %267 = arith.addf %263, %266 : vector<8x40xf32>
    %268 = vector.extract_strided_slice %2 {offsets = [56, 0], sizes = [1, 1], strides = [1, 1]} : vector<72x1xf32> to vector<1x1xf32>
    %269 = vector.broadcast %268 : vector<1x1xf32> to vector<8x40xf32>
    %270 = arith.mulf %12, %269 : vector<8x40xf32>
    %271 = arith.addf %267, %270 : vector<8x40xf32>
    %272 = vector.extract_strided_slice %2 {offsets = [57, 0], sizes = [1, 1], strides = [1, 1]} : vector<72x1xf32> to vector<1x1xf32>
    %273 = vector.broadcast %272 : vector<1x1xf32> to vector<8x40xf32>
    %274 = arith.mulf %13, %273 : vector<8x40xf32>
    %275 = arith.addf %271, %274 : vector<8x40xf32>
    %276 = vector.extract_strided_slice %2 {offsets = [58, 0], sizes = [1, 1], strides = [1, 1]} : vector<72x1xf32> to vector<1x1xf32>
    %277 = vector.broadcast %276 : vector<1x1xf32> to vector<8x40xf32>
    %278 = arith.mulf %14, %277 : vector<8x40xf32>
    %279 = arith.addf %275, %278 : vector<8x40xf32>
    %280 = vector.extract_strided_slice %2 {offsets = [59, 0], sizes = [1, 1], strides = [1, 1]} : vector<72x1xf32> to vector<1x1xf32>
    %281 = vector.broadcast %280 : vector<1x1xf32> to vector<8x40xf32>
    %282 = arith.mulf %15, %281 : vector<8x40xf32>
    %283 = arith.addf %279, %282 : vector<8x40xf32>
    %284 = vector.extract_strided_slice %2 {offsets = [60, 0], sizes = [1, 1], strides = [1, 1]} : vector<72x1xf32> to vector<1x1xf32>
    %285 = vector.broadcast %284 : vector<1x1xf32> to vector<8x40xf32>
    %286 = arith.mulf %16, %285 : vector<8x40xf32>
    %287 = arith.addf %283, %286 : vector<8x40xf32>
    %288 = vector.extract_strided_slice %2 {offsets = [61, 0], sizes = [1, 1], strides = [1, 1]} : vector<72x1xf32> to vector<1x1xf32>
    %289 = vector.broadcast %288 : vector<1x1xf32> to vector<8x40xf32>
    %290 = arith.mulf %17, %289 : vector<8x40xf32>
    %291 = arith.addf %287, %290 : vector<8x40xf32>
    %292 = vector.extract_strided_slice %2 {offsets = [62, 0], sizes = [1, 1], strides = [1, 1]} : vector<72x1xf32> to vector<1x1xf32>
    %293 = vector.broadcast %292 : vector<1x1xf32> to vector<8x40xf32>
    %294 = arith.mulf %18, %293 : vector<8x40xf32>
    %295 = arith.addf %291, %294 : vector<8x40xf32>
    %296 = vector.extract_strided_slice %3 {offsets = [48, 0], sizes = [8, 8], strides = [1, 1]} : vector<64x8xbf16> to vector<8x8xbf16>
    %297 = arith.truncf %295 : vector<8x40xf32> to vector<8x40xbf16>
    %cst_30 = arith.constant dense<0.000000e+00> : vector<8x40xf32>
    %298 = tpu.matmul %296, %297, %cst_30 {dimension_numbers = #tpu.dot_dimension_numbers<[1], [0], [0], [1], [0, 0, 1, 1], [], []>} : vector<8x8xbf16>, vector<8x40xbf16>, vector<8x40xf32> -> vector<8x40xf32>
    %cst_31 = arith.constant 0.000000e+00 : f32
    %299 = vector.broadcast %cst_31 : f32 to vector<8x40xf32>
    %300 = vector.extract_strided_slice %2 {offsets = [63, 0], sizes = [1, 1], strides = [1, 1]} : vector<72x1xf32> to vector<1x1xf32>
    %301 = vector.broadcast %300 : vector<1x1xf32> to vector<8x40xf32>
    %302 = arith.mulf %10, %301 : vector<8x40xf32>
    %303 = arith.addf %299, %302 : vector<8x40xf32>
    %304 = vector.extract_strided_slice %2 {offsets = [64, 0], sizes = [1, 1], strides = [1, 1]} : vector<72x1xf32> to vector<1x1xf32>
    %305 = vector.broadcast %304 : vector<1x1xf32> to vector<8x40xf32>
    %306 = arith.mulf %11, %305 : vector<8x40xf32>
    %307 = arith.addf %303, %306 : vector<8x40xf32>
    %308 = vector.extract_strided_slice %2 {offsets = [65, 0], sizes = [1, 1], strides = [1, 1]} : vector<72x1xf32> to vector<1x1xf32>
    %309 = vector.broadcast %308 : vector<1x1xf32> to vector<8x40xf32>
    %310 = arith.mulf %12, %309 : vector<8x40xf32>
    %311 = arith.addf %307, %310 : vector<8x40xf32>
    %312 = vector.extract_strided_slice %2 {offsets = [66, 0], sizes = [1, 1], strides = [1, 1]} : vector<72x1xf32> to vector<1x1xf32>
    %313 = vector.broadcast %312 : vector<1x1xf32> to vector<8x40xf32>
    %314 = arith.mulf %13, %313 : vector<8x40xf32>
    %315 = arith.addf %311, %314 : vector<8x40xf32>
    %316 = vector.extract_strided_slice %2 {offsets = [67, 0], sizes = [1, 1], strides = [1, 1]} : vector<72x1xf32> to vector<1x1xf32>
    %317 = vector.broadcast %316 : vector<1x1xf32> to vector<8x40xf32>
    %318 = arith.mulf %14, %317 : vector<8x40xf32>
    %319 = arith.addf %315, %318 : vector<8x40xf32>
    %320 = vector.extract_strided_slice %2 {offsets = [68, 0], sizes = [1, 1], strides = [1, 1]} : vector<72x1xf32> to vector<1x1xf32>
    %321 = vector.broadcast %320 : vector<1x1xf32> to vector<8x40xf32>
    %322 = arith.mulf %15, %321 : vector<8x40xf32>
    %323 = arith.addf %319, %322 : vector<8x40xf32>
    %324 = vector.extract_strided_slice %2 {offsets = [69, 0], sizes = [1, 1], strides = [1, 1]} : vector<72x1xf32> to vector<1x1xf32>
    %325 = vector.broadcast %324 : vector<1x1xf32> to vector<8x40xf32>
    %326 = arith.mulf %16, %325 : vector<8x40xf32>
    %327 = arith.addf %323, %326 : vector<8x40xf32>
    %328 = vector.extract_strided_slice %2 {offsets = [70, 0], sizes = [1, 1], strides = [1, 1]} : vector<72x1xf32> to vector<1x1xf32>
    %329 = vector.broadcast %328 : vector<1x1xf32> to vector<8x40xf32>
    %330 = arith.mulf %17, %329 : vector<8x40xf32>
    %331 = arith.addf %327, %330 : vector<8x40xf32>
    %332 = vector.extract_strided_slice %2 {offsets = [71, 0], sizes = [1, 1], strides = [1, 1]} : vector<72x1xf32> to vector<1x1xf32>
    %333 = vector.broadcast %332 : vector<1x1xf32> to vector<8x40xf32>
    %334 = arith.mulf %18, %333 : vector<8x40xf32>
    %335 = arith.addf %331, %334 : vector<8x40xf32>
    %336 = vector.extract_strided_slice %3 {offsets = [56, 0], sizes = [8, 8], strides = [1, 1]} : vector<64x8xbf16> to vector<8x8xbf16>
    %337 = arith.truncf %335 : vector<8x40xf32> to vector<8x40xbf16>
    %cst_32 = arith.constant dense<0.000000e+00> : vector<8x40xf32>
    %338 = tpu.matmul %336, %337, %cst_32 {dimension_numbers = #tpu.dot_dimension_numbers<[1], [0], [0], [1], [0, 0, 1, 1], [], []>} : vector<8x8xbf16>, vector<8x40xbf16>, vector<8x40xf32> -> vector<8x40xf32>
    %339 = tpu.concatenate %58, %98, %138, %178, %218, %258, %298, %338 in 0 : vector<8x40xf32>, vector<8x40xf32>, vector<8x40xf32>, vector<8x40xf32>, vector<8x40xf32>, vector<8x40xf32>, vector<8x40xf32>, vector<8x40xf32> -> vector<64x40xf32>
    %340 = vector.broadcast %4 : vector<64x1xf32> to vector<64x40xf32>
    %341 = arith.addf %339, %340 : vector<64x40xf32>
    %cst_33 = arith.constant 0.000000e+00 : f32
    %342 = vector.broadcast %cst_33 : f32 to vector<64x40xf32>
    %343 = arith.cmpf ogt, %341, %342 : vector<64x40xf32>
    %cst_34 = arith.constant 0.000000e+00 : f32
    %344 = vector.broadcast %cst_34 : f32 to vector<64x40xf32>
    %345 = arith.minimumf %341, %344 : vector<64x40xf32>
    %346 = math.exp %345 : vector<64x40xf32>
    %cst_35 = arith.constant 1.000000e+00 : f32
    %347 = vector.broadcast %cst_35 : f32 to vector<64x40xf32>
    %348 = arith.subf %346, %347 : vector<64x40xf32>
    %349 = arith.select %343, %341, %348 : vector<64x40xi1>, vector<64x40xf32>
    %cst_36 = arith.constant dense<0.000000e+00> : vector<64x24xf32>
    %350 = tpu.matmul %349, %5, %cst_36 {dimension_numbers = #tpu.dot_dimension_numbers<[1], [0], [0], [1], [0, 0, 1, 1], [], []>} : vector<64x40xf32>, vector<40x24xf32>, vector<64x24xf32> -> vector<64x24xf32>
    %cst_37 = arith.constant 0.000000e+00 : f32
    %351 = vector.broadcast %cst_37 : f32 to vector<64x20xf32>
    %352 = vector.extract_strided_slice %350 {offsets = [0, 0], sizes = [64, 20], strides = [1, 1]} : vector<64x24xf32> to vector<64x20xf32>
    %353 = vector.extract_strided_slice %6 {offsets = [0, 0], sizes = [64, 1], strides = [1, 1]} : vector<64x5xf32> to vector<64x1xf32>
    %354 = vector.broadcast %353 : vector<64x1xf32> to vector<64x20xf32>
    %355 = arith.mulf %352, %354 : vector<64x20xf32>
    %356 = arith.addf %351, %355 : vector<64x20xf32>
    %357 = vector.extract_strided_slice %350 {offsets = [0, 1], sizes = [64, 20], strides = [1, 1]} : vector<64x24xf32> to vector<64x20xf32>
    %358 = vector.extract_strided_slice %6 {offsets = [0, 1], sizes = [64, 1], strides = [1, 1]} : vector<64x5xf32> to vector<64x1xf32>
    %359 = vector.broadcast %358 : vector<64x1xf32> to vector<64x20xf32>
    %360 = arith.mulf %357, %359 : vector<64x20xf32>
    %361 = arith.addf %356, %360 : vector<64x20xf32>
    %362 = vector.extract_strided_slice %350 {offsets = [0, 2], sizes = [64, 20], strides = [1, 1]} : vector<64x24xf32> to vector<64x20xf32>
    %363 = vector.extract_strided_slice %6 {offsets = [0, 2], sizes = [64, 1], strides = [1, 1]} : vector<64x5xf32> to vector<64x1xf32>
    %364 = vector.broadcast %363 : vector<64x1xf32> to vector<64x20xf32>
    %365 = arith.mulf %362, %364 : vector<64x20xf32>
    %366 = arith.addf %361, %365 : vector<64x20xf32>
    %367 = vector.extract_strided_slice %350 {offsets = [0, 3], sizes = [64, 20], strides = [1, 1]} : vector<64x24xf32> to vector<64x20xf32>
    %368 = vector.extract_strided_slice %6 {offsets = [0, 3], sizes = [64, 1], strides = [1, 1]} : vector<64x5xf32> to vector<64x1xf32>
    %369 = vector.broadcast %368 : vector<64x1xf32> to vector<64x20xf32>
    %370 = arith.mulf %367, %369 : vector<64x20xf32>
    %371 = arith.addf %366, %370 : vector<64x20xf32>
    %372 = vector.extract_strided_slice %350 {offsets = [0, 4], sizes = [64, 20], strides = [1, 1]} : vector<64x24xf32> to vector<64x20xf32>
    %373 = vector.extract_strided_slice %6 {offsets = [0, 4], sizes = [64, 1], strides = [1, 1]} : vector<64x5xf32> to vector<64x1xf32>
    %374 = vector.broadcast %373 : vector<64x1xf32> to vector<64x20xf32>
    %375 = arith.mulf %372, %374 : vector<64x20xf32>
    %376 = arith.addf %371, %375 : vector<64x20xf32>
    %377 = arith.truncf %376 : vector<64x20xf32> to vector<64x20xbf16>
    %cst_38 = arith.constant dense<0.000000e+00> : vector<64x20xf32>
    %378 = tpu.matmul %7, %377, %cst_38 {dimension_numbers = #tpu.dot_dimension_numbers<[1], [0], [0], [1], [0, 0, 1, 1], [], []>} : vector<64x64xbf16>, vector<64x20xbf16>, vector<64x20xf32> -> vector<64x20xf32>
    %379 = vector.broadcast %8 : vector<64x1xf32> to vector<64x20xf32>
    %380 = arith.addf %378, %379 : vector<64x20xf32>
    %cst_39 = arith.constant 0.000000e+00 : f32
    %381 = vector.broadcast %cst_39 : f32 to vector<64x20xf32>
    %382 = arith.cmpf ogt, %380, %381 : vector<64x20xf32>
    %cst_40 = arith.constant 0.000000e+00 : f32
    %383 = vector.broadcast %cst_40 : f32 to vector<64x20xf32>
    %384 = arith.minimumf %380, %383 : vector<64x20xf32>
    %385 = math.exp %384 : vector<64x20xf32>
    %cst_41 = arith.constant 1.000000e+00 : f32
    %386 = vector.broadcast %cst_41 : f32 to vector<64x20xf32>
    %387 = arith.subf %385, %386 : vector<64x20xf32>
    %388 = arith.select %382, %380, %387 : vector<64x20xi1>, vector<64x20xf32>
    %cst_42 = arith.constant dense<0.000000e+00> : vector<4x64xf32>
    %389 = tpu.matmul %9, %388, %cst_42 {dimension_numbers = #tpu.dot_dimension_numbers<[0], [1], [1], [0], [0, 1, 1, 0], [], []>} : vector<20x4xf32>, vector<64x20xf32>, vector<4x64xf32> -> vector<4x64xf32>
    %cst_43 = arith.constant 0.000000e+00 : f32
    %390 = vector.broadcast %cst_43 : f32 to vector<4x64xf32>
    %391 = tpu.concatenate %389, %390 in 1 : vector<4x64xf32>, vector<4x64xf32> -> vector<4x128xf32>
    %c0_44 = arith.constant 0 : index
    %c0_45 = arith.constant 0 : index
    %c0_46 = arith.constant 0 : index
    %392 = vector.load %arg10[%c0_44, %c0_45, %c0_46] : memref<1x4x128xf32, #tpu.memory_space<vmem>>, vector<1x4x128xf32>
    %393 = vector.shape_cast %392 : vector<1x4x128xf32> to vector<4x128xf32>
    %394 = vector.shape_cast %391 : vector<4x128xf32> to vector<1x4x128xf32>
    tpu.vector_store %arg10[%c0_44, %c0_45, %c0_46], %394 {strides = array<i32>} : memref<1x4x128xf32, #tpu.memory_space<vmem>>, vector<1x4x128xf32>,
    return
  }
  func.func @transform_0(%arg0: i32) -> (i32, i32, i32) {
    %c0_i32 = arith.constant 0 : i32
    %c0_i32_0 = arith.constant 0 : i32
    %c0_i32_1 = arith.constant 0 : i32
    return %arg0, %c0_i32, %c0_i32_0 : i32, i32, i32
  }
  func.func @transform_1(%arg0: i32) -> (i32, i32) {
    %c0_i32 = arith.constant 0 : i32
    %c0_i32_0 = arith.constant 0 : i32
    %c0_i32_1 = arith.constant 0 : i32
    return %c0_i32, %c0_i32_0 : i32, i32
  }
  func.func @transform_2(%arg0: i32) -> (i32, i32) {
    %c0_i32 = arith.constant 0 : i32
    %c0_i32_0 = arith.constant 0 : i32
    %c0_i32_1 = arith.constant 0 : i32
    return %c0_i32, %c0_i32_0 : i32, i32
  }
  func.func @transform_3(%arg0: i32) -> (i32, i32) {
    %c0_i32 = arith.constant 0 : i32
    %c0_i32_0 = arith.constant 0 : i32
    %c0_i32_1 = arith.constant 0 : i32
    return %c0_i32, %c0_i32_0 : i32, i32
  }
  func.func @transform_4(%arg0: i32) -> (i32, i32) {
    %c0_i32 = arith.constant 0 : i32
    %c0_i32_0 = arith.constant 0 : i32
    %c0_i32_1 = arith.constant 0 : i32
    return %c0_i32, %c0_i32_0 : i32, i32
  }
  func.func @transform_5(%arg0: i32) -> (i32, i32) {
    %c0_i32 = arith.constant 0 : i32
    %c0_i32_0 = arith.constant 0 : i32
    %c0_i32_1 = arith.constant 0 : i32
    return %c0_i32, %c0_i32_0 : i32, i32
  }
  func.func @transform_6(%arg0: i32) -> (i32, i32) {
    %c0_i32 = arith.constant 0 : i32
    %c0_i32_0 = arith.constant 0 : i32
    %c0_i32_1 = arith.constant 0 : i32
    return %c0_i32, %c0_i32_0 : i32, i32
  }
  func.func @transform_7(%arg0: i32) -> (i32, i32) {
    %c0_i32 = arith.constant 0 : i32
    %c0_i32_0 = arith.constant 0 : i32
    %c0_i32_1 = arith.constant 0 : i32
    return %c0_i32, %c0_i32_0 : i32, i32
  }
  func.func @transform_8(%arg0: i32) -> (i32, i32) {
    %c0_i32 = arith.constant 0 : i32
    %c0_i32_0 = arith.constant 0 : i32
    %c0_i32_1 = arith.constant 0 : i32
    return %c0_i32, %c0_i32_0 : i32, i32
  }
  func.func @transform_9(%arg0: i32) -> (i32, i32, i32) {
    %c0_i32 = arith.constant 0 : i32
    %c0_i32_0 = arith.constant 0 : i32
    %c0_i32_1 = arith.constant 0 : i32
    return %arg0, %c0_i32, %c0_i32_0 : i32, i32, i32
  }
}

module attributes {stable_mosaic.version = 11 : i64} {
  func.func @_transformer_head_kernel(%arg0: i32, %arg1: memref<1x4x128xf32, #tpu.memory_space<vmem>>, %arg2: memref<4x64xf32, #tpu.memory_space<vmem>>, %arg3: memref<1x1x4xf32, #tpu.memory_space<vmem>>, %arg4: memref<32x64xf32, #tpu.memory_space<vmem>>, %arg5: memref<4x64x192xbf16, #tpu.memory_space<vmem>>, %arg6: memref<4x1x192xf32, #tpu.memory_space<vmem>>, %arg7: memref<4x64x64xbf16, #tpu.memory_space<vmem>>, %arg8: memref<4x1x64xf32, #tpu.memory_space<vmem>>, %arg9: memref<4x1x64xf32, #tpu.memory_space<vmem>>, %arg10: memref<4x1x64xf32, #tpu.memory_space<vmem>>, %arg11: memref<4x64x256xbf16, #tpu.memory_space<vmem>>, %arg12: memref<4x1x256xf32, #tpu.memory_space<vmem>>, %arg13: memref<4x256x64xbf16, #tpu.memory_space<vmem>>, %arg14: memref<4x1x64xf32, #tpu.memory_space<vmem>>, %arg15: memref<4x1x64xf32, #tpu.memory_space<vmem>>, %arg16: memref<4x1x64xf32, #tpu.memory_space<vmem>>, %arg17: memref<128x128xbf16, #tpu.memory_space<vmem>>, %arg18: memref<1x128xf32, #tpu.memory_space<vmem>>, %arg19: memref<128x128xbf16, #tpu.memory_space<vmem>>, %arg20: memref<1x128xf32, #tpu.memory_space<vmem>>, %arg21: memref<1x1x128xf32, #tpu.memory_space<vmem>>) attributes {dimension_semantics = [#tpu.dimension_semantics<parallel>], iteration_bounds = array<i64: 2>, scalar_prefetch = 0 : i64, scratch_operands = 0 : i64, tpu.core_type = #tpu.core_type<tc>, window_params = [{transform_indices = @transform_0, window_bounds = array<i64: 1, 4, 128>}, {pipeline_mode = #tpu.pipeline_mode<synchronous>, transform_indices = @transform_1, window_bounds = array<i64: 4, 64>}, {transform_indices = @transform_2, window_bounds = array<i64: 1, 1, 4>}, {pipeline_mode = #tpu.pipeline_mode<synchronous>, transform_indices = @transform_3, window_bounds = array<i64: 32, 64>}, {pipeline_mode = #tpu.pipeline_mode<synchronous>, transform_indices = @transform_4, window_bounds = array<i64: 4, 64, 192>}, {pipeline_mode = #tpu.pipeline_mode<synchronous>, transform_indices = @transform_5, window_bounds = array<i64: 4, 1, 192>}, {pipeline_mode = #tpu.pipeline_mode<synchronous>, transform_indices = @transform_6, window_bounds = array<i64: 4, 64, 64>}, {pipeline_mode = #tpu.pipeline_mode<synchronous>, transform_indices = @transform_7, window_bounds = array<i64: 4, 1, 64>}, {pipeline_mode = #tpu.pipeline_mode<synchronous>, transform_indices = @transform_8, window_bounds = array<i64: 4, 1, 64>}, {pipeline_mode = #tpu.pipeline_mode<synchronous>, transform_indices = @transform_9, window_bounds = array<i64: 4, 1, 64>}, {pipeline_mode = #tpu.pipeline_mode<synchronous>, transform_indices = @transform_10, window_bounds = array<i64: 4, 64, 256>}, {pipeline_mode = #tpu.pipeline_mode<synchronous>, transform_indices = @transform_11, window_bounds = array<i64: 4, 1, 256>}, {pipeline_mode = #tpu.pipeline_mode<synchronous>, transform_indices = @transform_12, window_bounds = array<i64: 4, 256, 64>}, {pipeline_mode = #tpu.pipeline_mode<synchronous>, transform_indices = @transform_13, window_bounds = array<i64: 4, 1, 64>}, {pipeline_mode = #tpu.pipeline_mode<synchronous>, transform_indices = @transform_14, window_bounds = array<i64: 4, 1, 64>}, {pipeline_mode = #tpu.pipeline_mode<synchronous>, transform_indices = @transform_15, window_bounds = array<i64: 4, 1, 64>}, {pipeline_mode = #tpu.pipeline_mode<synchronous>, transform_indices = @transform_16, window_bounds = array<i64: 128, 128>}, {pipeline_mode = #tpu.pipeline_mode<synchronous>, transform_indices = @transform_17, window_bounds = array<i64: 1, 128>}, {pipeline_mode = #tpu.pipeline_mode<synchronous>, transform_indices = @transform_18, window_bounds = array<i64: 128, 128>}, {pipeline_mode = #tpu.pipeline_mode<synchronous>, transform_indices = @transform_19, window_bounds = array<i64: 1, 128>}, {transform_indices = @transform_20, window_bounds = array<i64: 1, 1, 128>}]} {
    %c0 = arith.constant 0 : index
    %c0_0 = arith.constant 0 : index
    %c0_1 = arith.constant 0 : index
    %0 = vector.load %arg3[%c0, %c0_0, %c0_1] : memref<1x1x4xf32, #tpu.memory_space<vmem>>, vector<1x1x4xf32>
    %1 = vector.shape_cast %0 : vector<1x1x4xf32> to vector<1x4xf32>
    %cst = arith.constant 1.000000e+00 : f32
    %2 = vector.broadcast %cst : f32 to vector<1x4xf32>
    %3 = arith.subf %2, %1 : vector<1x4xf32>
    %cst_2 = arith.constant -1.000000e+09 : f32
    %4 = vector.broadcast %cst_2 : f32 to vector<1x4xf32>
    %5 = arith.mulf %3, %4 : vector<1x4xf32>
    %c0_3 = arith.constant 0 : index
    %c0_4 = arith.constant 0 : index
    %6 = vector.load %arg2[%c0_3, %c0_4] : memref<4x64xf32, #tpu.memory_space<vmem>>, vector<4x64xf32>
    %c0_5 = arith.constant 0 : index
    %c0_6 = arith.constant 0 : index
    %7 = vector.load %arg4[%c0_5, %c0_6] : memref<32x64xf32, #tpu.memory_space<vmem>>, vector<32x64xf32>
    %c0_7 = arith.constant 0 : index
    %c0_8 = arith.constant 0 : index
    %c0_9 = arith.constant 0 : index
    %8 = vector.load %arg1[%c0_7, %c0_8, %c0_9] : memref<1x4x128xf32, #tpu.memory_space<vmem>>, vector<1x4x128xf32>
    %9 = vector.shape_cast %8 : vector<1x4x128xf32> to vector<4x128xf32>
    %10 = vector.extract_strided_slice %9 {offsets = [0, 0], sizes = [4, 64], strides = [1, 1]} : vector<4x128xf32> to vector<4x64xf32>
    %11 = arith.addf %10, %6 : vector<4x64xf32>
    %12 = arith.truncf %11 : vector<4x64xf32> to vector<4x64xbf16>
    %c0_10 = arith.constant 0 : index
    %c0_11 = arith.constant 0 : index
    %c0_12 = arith.constant 0 : index
    %13 = vector.load %arg5[%c0_10, %c0_11, %c0_12] : memref<4x64x192xbf16, #tpu.memory_space<vmem>>, vector<1x64x192xbf16>
    %14 = vector.shape_cast %13 : vector<1x64x192xbf16> to vector<64x192xbf16>
    %cst_13 = arith.constant dense<0.000000e+00> : vector<4x192xf32>
    %15 = tpu.matmul %12, %14, %cst_13 {dimension_numbers = #tpu.dot_dimension_numbers<[1], [0], [0], [1], [0, 0, 1, 1], [], []>} : vector<4x64xbf16>, vector<64x192xbf16>, vector<4x192xf32> -> vector<4x192xf32>
    %c0_14 = arith.constant 0 : index
    %c0_15 = arith.constant 0 : index
    %c0_16 = arith.constant 0 : index
    %16 = vector.load %arg6[%c0_14, %c0_15, %c0_16] : memref<4x1x192xf32, #tpu.memory_space<vmem>>, vector<1x1x192xf32>
    %17 = vector.shape_cast %16 : vector<1x1x192xf32> to vector<1x192xf32>
    %18 = vector.broadcast %17 : vector<1x192xf32> to vector<4x192xf32>
    %19 = arith.addf %15, %18 : vector<4x192xf32>
    %20 = vector.extract_strided_slice %19 {offsets = [0, 0], sizes = [4, 64], strides = [1, 1]} : vector<4x192xf32> to vector<4x64xf32>
    %21 = vector.extract_strided_slice %19 {offsets = [0, 64], sizes = [4, 64], strides = [1, 1]} : vector<4x192xf32> to vector<4x64xf32>
    %22 = vector.extract_strided_slice %19 {offsets = [0, 128], sizes = [4, 64], strides = [1, 1]} : vector<4x192xf32> to vector<4x64xf32>
    %23 = tpu.concatenate %20, %20, %20, %20, %20, %20, %20, %20 in 0 : vector<4x64xf32>, vector<4x64xf32>, vector<4x64xf32>, vector<4x64xf32>, vector<4x64xf32>, vector<4x64xf32>, vector<4x64xf32>, vector<4x64xf32> -> vector<32x64xf32>
    %24 = arith.mulf %23, %7 : vector<32x64xf32>
    %25 = arith.truncf %24 : vector<32x64xf32> to vector<32x64xbf16>
    %26 = arith.truncf %21 : vector<4x64xf32> to vector<4x64xbf16>
    %cst_17 = arith.constant dense<0.000000e+00> : vector<32x4xf32>
    %27 = tpu.matmul %25, %26, %cst_17 {dimension_numbers = #tpu.dot_dimension_numbers<[1], [1], [0], [0], [0, 0, 1, 0], [], []>} : vector<32x64xbf16>, vector<4x64xbf16>, vector<32x4xf32> -> vector<32x4xf32>
    %cst_18 = arith.constant 0.353553385 : f32
    %28 = vector.broadcast %cst_18 : f32 to vector<32x4xf32>
    %29 = arith.mulf %27, %28 : vector<32x4xf32>
    %30 = vector.broadcast %5 : vector<1x4xf32> to vector<32x4xf32>
    %31 = arith.addf %29, %30 : vector<32x4xf32>
    %cst_19 = arith.constant dense<0xFF800000> : vector<32xf32>
    %32 = vector.multi_reduction <maximumf>, %31, %cst_19 [1] : vector<32x4xf32> to vector<32xf32>
    %33 = vector.shape_cast %32 : vector<32xf32> to vector<32x1xf32>
    %34 = vector.broadcast %33 : vector<32x1xf32> to vector<32x4xf32>
    %35 = arith.subf %31, %34 : vector<32x4xf32>
    %36 = math.exp %35 : vector<32x4xf32>
    %cst_20 = arith.constant dense<0.000000e+00> : vector<32xf32>
    %37 = vector.multi_reduction <add>, %36, %cst_20 [1] : vector<32x4xf32> to vector<32xf32>
    %38 = vector.shape_cast %37 : vector<32xf32> to vector<32x1xf32>
    %39 = tpu.reciprocal %38 {approx = true} : vector<32x1xf32> -> vector<32x1xf32>
    %40 = vector.broadcast %39 : vector<32x1xf32> to vector<32x4xf32>
    %41 = arith.mulf %36, %40 : vector<32x4xf32>
    %42 = arith.truncf %41 : vector<32x4xf32> to vector<32x4xbf16>
    %43 = arith.truncf %22 : vector<4x64xf32> to vector<4x64xbf16>
    %cst_21 = arith.constant dense<0.000000e+00> : vector<32x64xf32>
    %44 = tpu.matmul %42, %43, %cst_21 {dimension_numbers = #tpu.dot_dimension_numbers<[1], [0], [0], [1], [0, 0, 1, 1], [], []>} : vector<32x4xbf16>, vector<4x64xbf16>, vector<32x64xf32> -> vector<32x64xf32>
    %cst_22 = arith.constant 0.000000e+00 : f32
    %45 = vector.broadcast %cst_22 : f32 to vector<4x64xf32>
    %46 = vector.extract_strided_slice %44 {offsets = [0, 0], sizes = [4, 64], strides = [1, 1]} : vector<32x64xf32> to vector<4x64xf32>
    %47 = vector.extract_strided_slice %7 {offsets = [0, 0], sizes = [1, 64], strides = [1, 1]} : vector<32x64xf32> to vector<1x64xf32>
    %48 = vector.broadcast %47 : vector<1x64xf32> to vector<4x64xf32>
    %49 = arith.mulf %46, %48 : vector<4x64xf32>
    %50 = arith.addf %45, %49 : vector<4x64xf32>
    %51 = vector.extract_strided_slice %44 {offsets = [4, 0], sizes = [4, 64], strides = [1, 1]} : vector<32x64xf32> to vector<4x64xf32>
    %52 = vector.extract_strided_slice %7 {offsets = [4, 0], sizes = [1, 64], strides = [1, 1]} : vector<32x64xf32> to vector<1x64xf32>
    %53 = vector.broadcast %52 : vector<1x64xf32> to vector<4x64xf32>
    %54 = arith.mulf %51, %53 : vector<4x64xf32>
    %55 = arith.addf %50, %54 : vector<4x64xf32>
    %56 = vector.extract_strided_slice %44 {offsets = [8, 0], sizes = [4, 64], strides = [1, 1]} : vector<32x64xf32> to vector<4x64xf32>
    %57 = vector.extract_strided_slice %7 {offsets = [8, 0], sizes = [1, 64], strides = [1, 1]} : vector<32x64xf32> to vector<1x64xf32>
    %58 = vector.broadcast %57 : vector<1x64xf32> to vector<4x64xf32>
    %59 = arith.mulf %56, %58 : vector<4x64xf32>
    %60 = arith.addf %55, %59 : vector<4x64xf32>
    %61 = vector.extract_strided_slice %44 {offsets = [12, 0], sizes = [4, 64], strides = [1, 1]} : vector<32x64xf32> to vector<4x64xf32>
    %62 = vector.extract_strided_slice %7 {offsets = [12, 0], sizes = [1, 64], strides = [1, 1]} : vector<32x64xf32> to vector<1x64xf32>
    %63 = vector.broadcast %62 : vector<1x64xf32> to vector<4x64xf32>
    %64 = arith.mulf %61, %63 : vector<4x64xf32>
    %65 = arith.addf %60, %64 : vector<4x64xf32>
    %66 = vector.extract_strided_slice %44 {offsets = [16, 0], sizes = [4, 64], strides = [1, 1]} : vector<32x64xf32> to vector<4x64xf32>
    %67 = vector.extract_strided_slice %7 {offsets = [16, 0], sizes = [1, 64], strides = [1, 1]} : vector<32x64xf32> to vector<1x64xf32>
    %68 = vector.broadcast %67 : vector<1x64xf32> to vector<4x64xf32>
    %69 = arith.mulf %66, %68 : vector<4x64xf32>
    %70 = arith.addf %65, %69 : vector<4x64xf32>
    %71 = vector.extract_strided_slice %44 {offsets = [20, 0], sizes = [4, 64], strides = [1, 1]} : vector<32x64xf32> to vector<4x64xf32>
    %72 = vector.extract_strided_slice %7 {offsets = [20, 0], sizes = [1, 64], strides = [1, 1]} : vector<32x64xf32> to vector<1x64xf32>
    %73 = vector.broadcast %72 : vector<1x64xf32> to vector<4x64xf32>
    %74 = arith.mulf %71, %73 : vector<4x64xf32>
    %75 = arith.addf %70, %74 : vector<4x64xf32>
    %76 = vector.extract_strided_slice %44 {offsets = [24, 0], sizes = [4, 64], strides = [1, 1]} : vector<32x64xf32> to vector<4x64xf32>
    %77 = vector.extract_strided_slice %7 {offsets = [24, 0], sizes = [1, 64], strides = [1, 1]} : vector<32x64xf32> to vector<1x64xf32>
    %78 = vector.broadcast %77 : vector<1x64xf32> to vector<4x64xf32>
    %79 = arith.mulf %76, %78 : vector<4x64xf32>
    %80 = arith.addf %75, %79 : vector<4x64xf32>
    %81 = vector.extract_strided_slice %44 {offsets = [28, 0], sizes = [4, 64], strides = [1, 1]} : vector<32x64xf32> to vector<4x64xf32>
    %82 = vector.extract_strided_slice %7 {offsets = [28, 0], sizes = [1, 64], strides = [1, 1]} : vector<32x64xf32> to vector<1x64xf32>
    %83 = vector.broadcast %82 : vector<1x64xf32> to vector<4x64xf32>
    %84 = arith.mulf %81, %83 : vector<4x64xf32>
    %85 = arith.addf %80, %84 : vector<4x64xf32>
    %86 = arith.truncf %85 : vector<4x64xf32> to vector<4x64xbf16>
    %c0_23 = arith.constant 0 : index
    %c0_24 = arith.constant 0 : index
    %c0_25 = arith.constant 0 : index
    %87 = vector.load %arg7[%c0_23, %c0_24, %c0_25] : memref<4x64x64xbf16, #tpu.memory_space<vmem>>, vector<1x64x64xbf16>
    %88 = vector.shape_cast %87 : vector<1x64x64xbf16> to vector<64x64xbf16>
    %cst_26 = arith.constant dense<0.000000e+00> : vector<4x64xf32>
    %89 = tpu.matmul %86, %88, %cst_26 {dimension_numbers = #tpu.dot_dimension_numbers<[1], [0], [0], [1], [0, 0, 1, 1], [], []>} : vector<4x64xbf16>, vector<64x64xbf16>, vector<4x64xf32> -> vector<4x64xf32>
    %c0_27 = arith.constant 0 : index
    %c0_28 = arith.constant 0 : index
    %c0_29 = arith.constant 0 : index
    %90 = vector.load %arg8[%c0_27, %c0_28, %c0_29] : memref<4x1x64xf32, #tpu.memory_space<vmem>>, vector<1x1x64xf32>
    %91 = vector.shape_cast %90 : vector<1x1x64xf32> to vector<1x64xf32>
    %92 = vector.broadcast %91 : vector<1x64xf32> to vector<4x64xf32>
    %93 = arith.addf %89, %92 : vector<4x64xf32>
    %94 = arith.addf %11, %93 : vector<4x64xf32>
    %c0_30 = arith.constant 0 : index
    %c0_31 = arith.constant 0 : index
    %c0_32 = arith.constant 0 : index
    %95 = vector.load %arg9[%c0_30, %c0_31, %c0_32] : memref<4x1x64xf32, #tpu.memory_space<vmem>>, vector<1x1x64xf32>
    %96 = vector.shape_cast %95 : vector<1x1x64xf32> to vector<1x64xf32>
    %c0_33 = arith.constant 0 : index
    %c0_34 = arith.constant 0 : index
    %c0_35 = arith.constant 0 : index
    %97 = vector.load %arg10[%c0_33, %c0_34, %c0_35] : memref<4x1x64xf32, #tpu.memory_space<vmem>>, vector<1x1x64xf32>
    %98 = vector.shape_cast %97 : vector<1x1x64xf32> to vector<1x64xf32>
    %cst_36 = arith.constant dense<0.000000e+00> : vector<4xf32>
    %99 = vector.multi_reduction <add>, %94, %cst_36 [1] : vector<4x64xf32> to vector<4xf32>
    %100 = vector.shape_cast %99 : vector<4xf32> to vector<4x1xf32>
    %cst_37 = arith.constant 6.400000e+01 : f32
    %101 = vector.broadcast %cst_37 : f32 to vector<4x1xf32>
    %102 = arith.divf %100, %101 : vector<4x1xf32>
    %103 = vector.broadcast %102 : vector<4x1xf32> to vector<4x64xf32>
    %104 = arith.subf %94, %103 : vector<4x64xf32>
    %105 = arith.mulf %104, %104 : vector<4x64xf32>
    %cst_38 = arith.constant dense<0.000000e+00> : vector<4xf32>
    %106 = vector.multi_reduction <add>, %105, %cst_38 [1] : vector<4x64xf32> to vector<4xf32>
    %107 = vector.shape_cast %106 : vector<4xf32> to vector<4x1xf32>
    %cst_39 = arith.constant 6.400000e+01 : f32
    %108 = vector.broadcast %cst_39 : f32 to vector<4x1xf32>
    %109 = arith.divf %107, %108 : vector<4x1xf32>
    %cst_40 = arith.constant 9.99999974E-6 : f32
    %110 = vector.broadcast %cst_40 : f32 to vector<4x1xf32>
    %111 = arith.addf %109, %110 : vector<4x1xf32>
    %112 = math.rsqrt %111 : vector<4x1xf32>
    %113 = vector.broadcast %112 : vector<4x1xf32> to vector<4x64xf32>
    %114 = arith.mulf %104, %113 : vector<4x64xf32>
    %115 = vector.broadcast %96 : vector<1x64xf32> to vector<4x64xf32>
    %116 = arith.mulf %114, %115 : vector<4x64xf32>
    %117 = vector.broadcast %98 : vector<1x64xf32> to vector<4x64xf32>
    %118 = arith.addf %116, %117 : vector<4x64xf32>
    %119 = arith.truncf %118 : vector<4x64xf32> to vector<4x64xbf16>
    %c0_41 = arith.constant 0 : index
    %c0_42 = arith.constant 0 : index
    %c0_43 = arith.constant 0 : index
    %120 = vector.load %arg11[%c0_41, %c0_42, %c0_43] : memref<4x64x256xbf16, #tpu.memory_space<vmem>>, vector<1x64x256xbf16>
    %121 = vector.shape_cast %120 : vector<1x64x256xbf16> to vector<64x256xbf16>
    %cst_44 = arith.constant dense<0.000000e+00> : vector<4x256xf32>
    %122 = tpu.matmul %119, %121, %cst_44 {dimension_numbers = #tpu.dot_dimension_numbers<[1], [0], [0], [1], [0, 0, 1, 1], [], []>} : vector<4x64xbf16>, vector<64x256xbf16>, vector<4x256xf32> -> vector<4x256xf32>
    %c0_45 = arith.constant 0 : index
    %c0_46 = arith.constant 0 : index
    %c0_47 = arith.constant 0 : index
    %123 = vector.load %arg12[%c0_45, %c0_46, %c0_47] : memref<4x1x256xf32, #tpu.memory_space<vmem>>, vector<1x1x256xf32>
    %124 = vector.shape_cast %123 : vector<1x1x256xf32> to vector<1x256xf32>
    %125 = vector.broadcast %124 : vector<1x256xf32> to vector<4x256xf32>
    %126 = arith.addf %122, %125 : vector<4x256xf32>
    %cst_48 = arith.constant 0.000000e+00 : f32
    %127 = vector.broadcast %cst_48 : f32 to vector<4x256xf32>
    %128 = arith.maximumf %126, %127 : vector<4x256xf32>
    %129 = arith.truncf %128 : vector<4x256xf32> to vector<4x256xbf16>
    %c0_49 = arith.constant 0 : index
    %c0_50 = arith.constant 0 : index
    %c0_51 = arith.constant 0 : index
    %130 = vector.load %arg13[%c0_49, %c0_50, %c0_51] : memref<4x256x64xbf16, #tpu.memory_space<vmem>>, vector<1x256x64xbf16>
    %131 = vector.shape_cast %130 : vector<1x256x64xbf16> to vector<256x64xbf16>
    %cst_52 = arith.constant dense<0.000000e+00> : vector<4x64xf32>
    %132 = tpu.matmul %129, %131, %cst_52 {dimension_numbers = #tpu.dot_dimension_numbers<[1], [0], [0], [1], [0, 0, 1, 1], [], []>} : vector<4x256xbf16>, vector<256x64xbf16>, vector<4x64xf32> -> vector<4x64xf32>
    %c0_53 = arith.constant 0 : index
    %c0_54 = arith.constant 0 : index
    %c0_55 = arith.constant 0 : index
    %133 = vector.load %arg14[%c0_53, %c0_54, %c0_55] : memref<4x1x64xf32, #tpu.memory_space<vmem>>, vector<1x1x64xf32>
    %134 = vector.shape_cast %133 : vector<1x1x64xf32> to vector<1x64xf32>
    %135 = vector.broadcast %134 : vector<1x64xf32> to vector<4x64xf32>
    %136 = arith.addf %132, %135 : vector<4x64xf32>
    %137 = arith.addf %118, %136 : vector<4x64xf32>
    %c0_56 = arith.constant 0 : index
    %c0_57 = arith.constant 0 : index
    %c0_58 = arith.constant 0 : index
    %138 = vector.load %arg15[%c0_56, %c0_57, %c0_58] : memref<4x1x64xf32, #tpu.memory_space<vmem>>, vector<1x1x64xf32>
    %139 = vector.shape_cast %138 : vector<1x1x64xf32> to vector<1x64xf32>
    %c0_59 = arith.constant 0 : index
    %c0_60 = arith.constant 0 : index
    %c0_61 = arith.constant 0 : index
    %140 = vector.load %arg16[%c0_59, %c0_60, %c0_61] : memref<4x1x64xf32, #tpu.memory_space<vmem>>, vector<1x1x64xf32>
    %141 = vector.shape_cast %140 : vector<1x1x64xf32> to vector<1x64xf32>
    %cst_62 = arith.constant dense<0.000000e+00> : vector<4xf32>
    %142 = vector.multi_reduction <add>, %137, %cst_62 [1] : vector<4x64xf32> to vector<4xf32>
    %143 = vector.shape_cast %142 : vector<4xf32> to vector<4x1xf32>
    %cst_63 = arith.constant 6.400000e+01 : f32
    %144 = vector.broadcast %cst_63 : f32 to vector<4x1xf32>
    %145 = arith.divf %143, %144 : vector<4x1xf32>
    %146 = vector.broadcast %145 : vector<4x1xf32> to vector<4x64xf32>
    %147 = arith.subf %137, %146 : vector<4x64xf32>
    %148 = arith.mulf %147, %147 : vector<4x64xf32>
    %cst_64 = arith.constant dense<0.000000e+00> : vector<4xf32>
    %149 = vector.multi_reduction <add>, %148, %cst_64 [1] : vector<4x64xf32> to vector<4xf32>
    %150 = vector.shape_cast %149 : vector<4xf32> to vector<4x1xf32>
    %cst_65 = arith.constant 6.400000e+01 : f32
    %151 = vector.broadcast %cst_65 : f32 to vector<4x1xf32>
    %152 = arith.divf %150, %151 : vector<4x1xf32>
    %cst_66 = arith.constant 9.99999974E-6 : f32
    %153 = vector.broadcast %cst_66 : f32 to vector<4x1xf32>
    %154 = arith.addf %152, %153 : vector<4x1xf32>
    %155 = math.rsqrt %154 : vector<4x1xf32>
    %156 = vector.broadcast %155 : vector<4x1xf32> to vector<4x64xf32>
    %157 = arith.mulf %147, %156 : vector<4x64xf32>
    %158 = vector.broadcast %139 : vector<1x64xf32> to vector<4x64xf32>
    %159 = arith.mulf %157, %158 : vector<4x64xf32>
    %160 = vector.broadcast %141 : vector<1x64xf32> to vector<4x64xf32>
    %161 = arith.addf %159, %160 : vector<4x64xf32>
    %162 = arith.truncf %161 : vector<4x64xf32> to vector<4x64xbf16>
    %c1 = arith.constant 1 : index
    %c0_67 = arith.constant 0 : index
    %c0_68 = arith.constant 0 : index
    %163 = vector.load %arg5[%c1, %c0_67, %c0_68] : memref<4x64x192xbf16, #tpu.memory_space<vmem>>, vector<1x64x192xbf16>
    %164 = vector.shape_cast %163 : vector<1x64x192xbf16> to vector<64x192xbf16>
    %cst_69 = arith.constant dense<0.000000e+00> : vector<4x192xf32>
    %165 = tpu.matmul %162, %164, %cst_69 {dimension_numbers = #tpu.dot_dimension_numbers<[1], [0], [0], [1], [0, 0, 1, 1], [], []>} : vector<4x64xbf16>, vector<64x192xbf16>, vector<4x192xf32> -> vector<4x192xf32>
    %c1_70 = arith.constant 1 : index
    %c0_71 = arith.constant 0 : index
    %c0_72 = arith.constant 0 : index
    %166 = vector.load %arg6[%c1_70, %c0_71, %c0_72] : memref<4x1x192xf32, #tpu.memory_space<vmem>>, vector<1x1x192xf32>
    %167 = vector.shape_cast %166 : vector<1x1x192xf32> to vector<1x192xf32>
    %168 = vector.broadcast %167 : vector<1x192xf32> to vector<4x192xf32>
    %169 = arith.addf %165, %168 : vector<4x192xf32>
    %170 = vector.extract_strided_slice %169 {offsets = [0, 0], sizes = [4, 64], strides = [1, 1]} : vector<4x192xf32> to vector<4x64xf32>
    %171 = vector.extract_strided_slice %169 {offsets = [0, 64], sizes = [4, 64], strides = [1, 1]} : vector<4x192xf32> to vector<4x64xf32>
    %172 = vector.extract_strided_slice %169 {offsets = [0, 128], sizes = [4, 64], strides = [1, 1]} : vector<4x192xf32> to vector<4x64xf32>
    %173 = tpu.concatenate %170, %170, %170, %170, %170, %170, %170, %170 in 0 : vector<4x64xf32>, vector<4x64xf32>, vector<4x64xf32>, vector<4x64xf32>, vector<4x64xf32>, vector<4x64xf32>, vector<4x64xf32>, vector<4x64xf32> -> vector<32x64xf32>
    %174 = arith.mulf %173, %7 : vector<32x64xf32>
    %175 = arith.truncf %174 : vector<32x64xf32> to vector<32x64xbf16>
    %176 = arith.truncf %171 : vector<4x64xf32> to vector<4x64xbf16>
    %cst_73 = arith.constant dense<0.000000e+00> : vector<32x4xf32>
    %177 = tpu.matmul %175, %176, %cst_73 {dimension_numbers = #tpu.dot_dimension_numbers<[1], [1], [0], [0], [0, 0, 1, 0], [], []>} : vector<32x64xbf16>, vector<4x64xbf16>, vector<32x4xf32> -> vector<32x4xf32>
    %cst_74 = arith.constant 0.353553385 : f32
    %178 = vector.broadcast %cst_74 : f32 to vector<32x4xf32>
    %179 = arith.mulf %177, %178 : vector<32x4xf32>
    %180 = vector.broadcast %5 : vector<1x4xf32> to vector<32x4xf32>
    %181 = arith.addf %179, %180 : vector<32x4xf32>
    %cst_75 = arith.constant dense<0xFF800000> : vector<32xf32>
    %182 = vector.multi_reduction <maximumf>, %181, %cst_75 [1] : vector<32x4xf32> to vector<32xf32>
    %183 = vector.shape_cast %182 : vector<32xf32> to vector<32x1xf32>
    %184 = vector.broadcast %183 : vector<32x1xf32> to vector<32x4xf32>
    %185 = arith.subf %181, %184 : vector<32x4xf32>
    %186 = math.exp %185 : vector<32x4xf32>
    %cst_76 = arith.constant dense<0.000000e+00> : vector<32xf32>
    %187 = vector.multi_reduction <add>, %186, %cst_76 [1] : vector<32x4xf32> to vector<32xf32>
    %188 = vector.shape_cast %187 : vector<32xf32> to vector<32x1xf32>
    %189 = tpu.reciprocal %188 {approx = true} : vector<32x1xf32> -> vector<32x1xf32>
    %190 = vector.broadcast %189 : vector<32x1xf32> to vector<32x4xf32>
    %191 = arith.mulf %186, %190 : vector<32x4xf32>
    %192 = arith.truncf %191 : vector<32x4xf32> to vector<32x4xbf16>
    %193 = arith.truncf %172 : vector<4x64xf32> to vector<4x64xbf16>
    %cst_77 = arith.constant dense<0.000000e+00> : vector<32x64xf32>
    %194 = tpu.matmul %192, %193, %cst_77 {dimension_numbers = #tpu.dot_dimension_numbers<[1], [0], [0], [1], [0, 0, 1, 1], [], []>} : vector<32x4xbf16>, vector<4x64xbf16>, vector<32x64xf32> -> vector<32x64xf32>
    %cst_78 = arith.constant 0.000000e+00 : f32
    %195 = vector.broadcast %cst_78 : f32 to vector<4x64xf32>
    %196 = vector.extract_strided_slice %194 {offsets = [0, 0], sizes = [4, 64], strides = [1, 1]} : vector<32x64xf32> to vector<4x64xf32>
    %197 = vector.extract_strided_slice %7 {offsets = [0, 0], sizes = [1, 64], strides = [1, 1]} : vector<32x64xf32> to vector<1x64xf32>
    %198 = vector.broadcast %197 : vector<1x64xf32> to vector<4x64xf32>
    %199 = arith.mulf %196, %198 : vector<4x64xf32>
    %200 = arith.addf %195, %199 : vector<4x64xf32>
    %201 = vector.extract_strided_slice %194 {offsets = [4, 0], sizes = [4, 64], strides = [1, 1]} : vector<32x64xf32> to vector<4x64xf32>
    %202 = vector.extract_strided_slice %7 {offsets = [4, 0], sizes = [1, 64], strides = [1, 1]} : vector<32x64xf32> to vector<1x64xf32>
    %203 = vector.broadcast %202 : vector<1x64xf32> to vector<4x64xf32>
    %204 = arith.mulf %201, %203 : vector<4x64xf32>
    %205 = arith.addf %200, %204 : vector<4x64xf32>
    %206 = vector.extract_strided_slice %194 {offsets = [8, 0], sizes = [4, 64], strides = [1, 1]} : vector<32x64xf32> to vector<4x64xf32>
    %207 = vector.extract_strided_slice %7 {offsets = [8, 0], sizes = [1, 64], strides = [1, 1]} : vector<32x64xf32> to vector<1x64xf32>
    %208 = vector.broadcast %207 : vector<1x64xf32> to vector<4x64xf32>
    %209 = arith.mulf %206, %208 : vector<4x64xf32>
    %210 = arith.addf %205, %209 : vector<4x64xf32>
    %211 = vector.extract_strided_slice %194 {offsets = [12, 0], sizes = [4, 64], strides = [1, 1]} : vector<32x64xf32> to vector<4x64xf32>
    %212 = vector.extract_strided_slice %7 {offsets = [12, 0], sizes = [1, 64], strides = [1, 1]} : vector<32x64xf32> to vector<1x64xf32>
    %213 = vector.broadcast %212 : vector<1x64xf32> to vector<4x64xf32>
    %214 = arith.mulf %211, %213 : vector<4x64xf32>
    %215 = arith.addf %210, %214 : vector<4x64xf32>
    %216 = vector.extract_strided_slice %194 {offsets = [16, 0], sizes = [4, 64], strides = [1, 1]} : vector<32x64xf32> to vector<4x64xf32>
    %217 = vector.extract_strided_slice %7 {offsets = [16, 0], sizes = [1, 64], strides = [1, 1]} : vector<32x64xf32> to vector<1x64xf32>
    %218 = vector.broadcast %217 : vector<1x64xf32> to vector<4x64xf32>
    %219 = arith.mulf %216, %218 : vector<4x64xf32>
    %220 = arith.addf %215, %219 : vector<4x64xf32>
    %221 = vector.extract_strided_slice %194 {offsets = [20, 0], sizes = [4, 64], strides = [1, 1]} : vector<32x64xf32> to vector<4x64xf32>
    %222 = vector.extract_strided_slice %7 {offsets = [20, 0], sizes = [1, 64], strides = [1, 1]} : vector<32x64xf32> to vector<1x64xf32>
    %223 = vector.broadcast %222 : vector<1x64xf32> to vector<4x64xf32>
    %224 = arith.mulf %221, %223 : vector<4x64xf32>
    %225 = arith.addf %220, %224 : vector<4x64xf32>
    %226 = vector.extract_strided_slice %194 {offsets = [24, 0], sizes = [4, 64], strides = [1, 1]} : vector<32x64xf32> to vector<4x64xf32>
    %227 = vector.extract_strided_slice %7 {offsets = [24, 0], sizes = [1, 64], strides = [1, 1]} : vector<32x64xf32> to vector<1x64xf32>
    %228 = vector.broadcast %227 : vector<1x64xf32> to vector<4x64xf32>
    %229 = arith.mulf %226, %228 : vector<4x64xf32>
    %230 = arith.addf %225, %229 : vector<4x64xf32>
    %231 = vector.extract_strided_slice %194 {offsets = [28, 0], sizes = [4, 64], strides = [1, 1]} : vector<32x64xf32> to vector<4x64xf32>
    %232 = vector.extract_strided_slice %7 {offsets = [28, 0], sizes = [1, 64], strides = [1, 1]} : vector<32x64xf32> to vector<1x64xf32>
    %233 = vector.broadcast %232 : vector<1x64xf32> to vector<4x64xf32>
    %234 = arith.mulf %231, %233 : vector<4x64xf32>
    %235 = arith.addf %230, %234 : vector<4x64xf32>
    %236 = arith.truncf %235 : vector<4x64xf32> to vector<4x64xbf16>
    %c1_79 = arith.constant 1 : index
    %c0_80 = arith.constant 0 : index
    %c0_81 = arith.constant 0 : index
    %237 = vector.load %arg7[%c1_79, %c0_80, %c0_81] : memref<4x64x64xbf16, #tpu.memory_space<vmem>>, vector<1x64x64xbf16>
    %238 = vector.shape_cast %237 : vector<1x64x64xbf16> to vector<64x64xbf16>
    %cst_82 = arith.constant dense<0.000000e+00> : vector<4x64xf32>
    %239 = tpu.matmul %236, %238, %cst_82 {dimension_numbers = #tpu.dot_dimension_numbers<[1], [0], [0], [1], [0, 0, 1, 1], [], []>} : vector<4x64xbf16>, vector<64x64xbf16>, vector<4x64xf32> -> vector<4x64xf32>
    %c1_83 = arith.constant 1 : index
    %c0_84 = arith.constant 0 : index
    %c0_85 = arith.constant 0 : index
    %240 = vector.load %arg8[%c1_83, %c0_84, %c0_85] : memref<4x1x64xf32, #tpu.memory_space<vmem>>, vector<1x1x64xf32>
    %241 = vector.shape_cast %240 : vector<1x1x64xf32> to vector<1x64xf32>
    %242 = vector.broadcast %241 : vector<1x64xf32> to vector<4x64xf32>
    %243 = arith.addf %239, %242 : vector<4x64xf32>
    %244 = arith.addf %161, %243 : vector<4x64xf32>
    %c1_86 = arith.constant 1 : index
    %c0_87 = arith.constant 0 : index
    %c0_88 = arith.constant 0 : index
    %245 = vector.load %arg9[%c1_86, %c0_87, %c0_88] : memref<4x1x64xf32, #tpu.memory_space<vmem>>, vector<1x1x64xf32>
    %246 = vector.shape_cast %245 : vector<1x1x64xf32> to vector<1x64xf32>
    %c1_89 = arith.constant 1 : index
    %c0_90 = arith.constant 0 : index
    %c0_91 = arith.constant 0 : index
    %247 = vector.load %arg10[%c1_89, %c0_90, %c0_91] : memref<4x1x64xf32, #tpu.memory_space<vmem>>, vector<1x1x64xf32>
    %248 = vector.shape_cast %247 : vector<1x1x64xf32> to vector<1x64xf32>
    %cst_92 = arith.constant dense<0.000000e+00> : vector<4xf32>
    %249 = vector.multi_reduction <add>, %244, %cst_92 [1] : vector<4x64xf32> to vector<4xf32>
    %250 = vector.shape_cast %249 : vector<4xf32> to vector<4x1xf32>
    %cst_93 = arith.constant 6.400000e+01 : f32
    %251 = vector.broadcast %cst_93 : f32 to vector<4x1xf32>
    %252 = arith.divf %250, %251 : vector<4x1xf32>
    %253 = vector.broadcast %252 : vector<4x1xf32> to vector<4x64xf32>
    %254 = arith.subf %244, %253 : vector<4x64xf32>
    %255 = arith.mulf %254, %254 : vector<4x64xf32>
    %cst_94 = arith.constant dense<0.000000e+00> : vector<4xf32>
    %256 = vector.multi_reduction <add>, %255, %cst_94 [1] : vector<4x64xf32> to vector<4xf32>
    %257 = vector.shape_cast %256 : vector<4xf32> to vector<4x1xf32>
    %cst_95 = arith.constant 6.400000e+01 : f32
    %258 = vector.broadcast %cst_95 : f32 to vector<4x1xf32>
    %259 = arith.divf %257, %258 : vector<4x1xf32>
    %cst_96 = arith.constant 9.99999974E-6 : f32
    %260 = vector.broadcast %cst_96 : f32 to vector<4x1xf32>
    %261 = arith.addf %259, %260 : vector<4x1xf32>
    %262 = math.rsqrt %261 : vector<4x1xf32>
    %263 = vector.broadcast %262 : vector<4x1xf32> to vector<4x64xf32>
    %264 = arith.mulf %254, %263 : vector<4x64xf32>
    %265 = vector.broadcast %246 : vector<1x64xf32> to vector<4x64xf32>
    %266 = arith.mulf %264, %265 : vector<4x64xf32>
    %267 = vector.broadcast %248 : vector<1x64xf32> to vector<4x64xf32>
    %268 = arith.addf %266, %267 : vector<4x64xf32>
    %269 = arith.truncf %268 : vector<4x64xf32> to vector<4x64xbf16>
    %c1_97 = arith.constant 1 : index
    %c0_98 = arith.constant 0 : index
    %c0_99 = arith.constant 0 : index
    %270 = vector.load %arg11[%c1_97, %c0_98, %c0_99] : memref<4x64x256xbf16, #tpu.memory_space<vmem>>, vector<1x64x256xbf16>
    %271 = vector.shape_cast %270 : vector<1x64x256xbf16> to vector<64x256xbf16>
    %cst_100 = arith.constant dense<0.000000e+00> : vector<4x256xf32>
    %272 = tpu.matmul %269, %271, %cst_100 {dimension_numbers = #tpu.dot_dimension_numbers<[1], [0], [0], [1], [0, 0, 1, 1], [], []>} : vector<4x64xbf16>, vector<64x256xbf16>, vector<4x256xf32> -> vector<4x256xf32>
    %c1_101 = arith.constant 1 : index
    %c0_102 = arith.constant 0 : index
    %c0_103 = arith.constant 0 : index
    %273 = vector.load %arg12[%c1_101, %c0_102, %c0_103] : memref<4x1x256xf32, #tpu.memory_space<vmem>>, vector<1x1x256xf32>
    %274 = vector.shape_cast %273 : vector<1x1x256xf32> to vector<1x256xf32>
    %275 = vector.broadcast %274 : vector<1x256xf32> to vector<4x256xf32>
    %276 = arith.addf %272, %275 : vector<4x256xf32>
    %cst_104 = arith.constant 0.000000e+00 : f32
    %277 = vector.broadcast %cst_104 : f32 to vector<4x256xf32>
    %278 = arith.maximumf %276, %277 : vector<4x256xf32>
    %279 = arith.truncf %278 : vector<4x256xf32> to vector<4x256xbf16>
    %c1_105 = arith.constant 1 : index
    %c0_106 = arith.constant 0 : index
    %c0_107 = arith.constant 0 : index
    %280 = vector.load %arg13[%c1_105, %c0_106, %c0_107] : memref<4x256x64xbf16, #tpu.memory_space<vmem>>, vector<1x256x64xbf16>
    %281 = vector.shape_cast %280 : vector<1x256x64xbf16> to vector<256x64xbf16>
    %cst_108 = arith.constant dense<0.000000e+00> : vector<4x64xf32>
    %282 = tpu.matmul %279, %281, %cst_108 {dimension_numbers = #tpu.dot_dimension_numbers<[1], [0], [0], [1], [0, 0, 1, 1], [], []>} : vector<4x256xbf16>, vector<256x64xbf16>, vector<4x64xf32> -> vector<4x64xf32>
    %c1_109 = arith.constant 1 : index
    %c0_110 = arith.constant 0 : index
    %c0_111 = arith.constant 0 : index
    %283 = vector.load %arg14[%c1_109, %c0_110, %c0_111] : memref<4x1x64xf32, #tpu.memory_space<vmem>>, vector<1x1x64xf32>
    %284 = vector.shape_cast %283 : vector<1x1x64xf32> to vector<1x64xf32>
    %285 = vector.broadcast %284 : vector<1x64xf32> to vector<4x64xf32>
    %286 = arith.addf %282, %285 : vector<4x64xf32>
    %287 = arith.addf %268, %286 : vector<4x64xf32>
    %c1_112 = arith.constant 1 : index
    %c0_113 = arith.constant 0 : index
    %c0_114 = arith.constant 0 : index
    %288 = vector.load %arg15[%c1_112, %c0_113, %c0_114] : memref<4x1x64xf32, #tpu.memory_space<vmem>>, vector<1x1x64xf32>
    %289 = vector.shape_cast %288 : vector<1x1x64xf32> to vector<1x64xf32>
    %c1_115 = arith.constant 1 : index
    %c0_116 = arith.constant 0 : index
    %c0_117 = arith.constant 0 : index
    %290 = vector.load %arg16[%c1_115, %c0_116, %c0_117] : memref<4x1x64xf32, #tpu.memory_space<vmem>>, vector<1x1x64xf32>
    %291 = vector.shape_cast %290 : vector<1x1x64xf32> to vector<1x64xf32>
    %cst_118 = arith.constant dense<0.000000e+00> : vector<4xf32>
    %292 = vector.multi_reduction <add>, %287, %cst_118 [1] : vector<4x64xf32> to vector<4xf32>
    %293 = vector.shape_cast %292 : vector<4xf32> to vector<4x1xf32>
    %cst_119 = arith.constant 6.400000e+01 : f32
    %294 = vector.broadcast %cst_119 : f32 to vector<4x1xf32>
    %295 = arith.divf %293, %294 : vector<4x1xf32>
    %296 = vector.broadcast %295 : vector<4x1xf32> to vector<4x64xf32>
    %297 = arith.subf %287, %296 : vector<4x64xf32>
    %298 = arith.mulf %297, %297 : vector<4x64xf32>
    %cst_120 = arith.constant dense<0.000000e+00> : vector<4xf32>
    %299 = vector.multi_reduction <add>, %298, %cst_120 [1] : vector<4x64xf32> to vector<4xf32>
    %300 = vector.shape_cast %299 : vector<4xf32> to vector<4x1xf32>
    %cst_121 = arith.constant 6.400000e+01 : f32
    %301 = vector.broadcast %cst_121 : f32 to vector<4x1xf32>
    %302 = arith.divf %300, %301 : vector<4x1xf32>
    %cst_122 = arith.constant 9.99999974E-6 : f32
    %303 = vector.broadcast %cst_122 : f32 to vector<4x1xf32>
    %304 = arith.addf %302, %303 : vector<4x1xf32>
    %305 = math.rsqrt %304 : vector<4x1xf32>
    %306 = vector.broadcast %305 : vector<4x1xf32> to vector<4x64xf32>
    %307 = arith.mulf %297, %306 : vector<4x64xf32>
    %308 = vector.broadcast %289 : vector<1x64xf32> to vector<4x64xf32>
    %309 = arith.mulf %307, %308 : vector<4x64xf32>
    %310 = vector.broadcast %291 : vector<1x64xf32> to vector<4x64xf32>
    %311 = arith.addf %309, %310 : vector<4x64xf32>
    %cst_123 = arith.constant dense<0.000000e+00> : vector<1x64xf32>
    %312 = tpu.matmul %1, %311, %cst_123 {dimension_numbers = #tpu.dot_dimension_numbers<[1], [0], [0], [1], [0, 0, 1, 1], [], []>} : vector<1x4xf32>, vector<4x64xf32>, vector<1x64xf32> -> vector<1x64xf32>
    %cst_124 = arith.constant dense<0.000000e+00> : vector<1xf32>
    %313 = vector.multi_reduction <add>, %1, %cst_124 [1] : vector<1x4xf32> to vector<1xf32>
    %314 = vector.shape_cast %313 : vector<1xf32> to vector<1x1xf32>
    %cst_125 = arith.constant 9.99999997E-7 : f32
    %315 = vector.broadcast %cst_125 : f32 to vector<1x1xf32>
    %316 = arith.maximumf %314, %315 : vector<1x1xf32>
    %317 = tpu.reciprocal %316 {approx = true} : vector<1x1xf32> -> vector<1x1xf32>
    %318 = vector.broadcast %317 : vector<1x1xf32> to vector<1x64xf32>
    %319 = arith.mulf %312, %318 : vector<1x64xf32>
    %320 = vector.extract_strided_slice %9 {offsets = [0, 64], sizes = [4, 64], strides = [1, 1]} : vector<4x128xf32> to vector<4x64xf32>
    %321 = arith.addf %320, %6 : vector<4x64xf32>
    %322 = arith.truncf %321 : vector<4x64xf32> to vector<4x64xbf16>
    %c2 = arith.constant 2 : index
    %c0_126 = arith.constant 0 : index
    %c0_127 = arith.constant 0 : index
    %323 = vector.load %arg5[%c2, %c0_126, %c0_127] : memref<4x64x192xbf16, #tpu.memory_space<vmem>>, vector<1x64x192xbf16>
    %324 = vector.shape_cast %323 : vector<1x64x192xbf16> to vector<64x192xbf16>
    %cst_128 = arith.constant dense<0.000000e+00> : vector<4x192xf32>
    %325 = tpu.matmul %322, %324, %cst_128 {dimension_numbers = #tpu.dot_dimension_numbers<[1], [0], [0], [1], [0, 0, 1, 1], [], []>} : vector<4x64xbf16>, vector<64x192xbf16>, vector<4x192xf32> -> vector<4x192xf32>
    %c2_129 = arith.constant 2 : index
    %c0_130 = arith.constant 0 : index
    %c0_131 = arith.constant 0 : index
    %326 = vector.load %arg6[%c2_129, %c0_130, %c0_131] : memref<4x1x192xf32, #tpu.memory_space<vmem>>, vector<1x1x192xf32>
    %327 = vector.shape_cast %326 : vector<1x1x192xf32> to vector<1x192xf32>
    %328 = vector.broadcast %327 : vector<1x192xf32> to vector<4x192xf32>
    %329 = arith.addf %325, %328 : vector<4x192xf32>
    %330 = vector.extract_strided_slice %329 {offsets = [0, 0], sizes = [4, 64], strides = [1, 1]} : vector<4x192xf32> to vector<4x64xf32>
    %331 = vector.extract_strided_slice %329 {offsets = [0, 64], sizes = [4, 64], strides = [1, 1]} : vector<4x192xf32> to vector<4x64xf32>
    %332 = vector.extract_strided_slice %329 {offsets = [0, 128], sizes = [4, 64], strides = [1, 1]} : vector<4x192xf32> to vector<4x64xf32>
    %333 = tpu.concatenate %330, %330, %330, %330, %330, %330, %330, %330 in 0 : vector<4x64xf32>, vector<4x64xf32>, vector<4x64xf32>, vector<4x64xf32>, vector<4x64xf32>, vector<4x64xf32>, vector<4x64xf32>, vector<4x64xf32> -> vector<32x64xf32>
    %334 = arith.mulf %333, %7 : vector<32x64xf32>
    %335 = arith.truncf %334 : vector<32x64xf32> to vector<32x64xbf16>
    %336 = arith.truncf %331 : vector<4x64xf32> to vector<4x64xbf16>
    %cst_132 = arith.constant dense<0.000000e+00> : vector<32x4xf32>
    %337 = tpu.matmul %335, %336, %cst_132 {dimension_numbers = #tpu.dot_dimension_numbers<[1], [1], [0], [0], [0, 0, 1, 0], [], []>} : vector<32x64xbf16>, vector<4x64xbf16>, vector<32x4xf32> -> vector<32x4xf32>
    %cst_133 = arith.constant 0.353553385 : f32
    %338 = vector.broadcast %cst_133 : f32 to vector<32x4xf32>
    %339 = arith.mulf %337, %338 : vector<32x4xf32>
    %340 = vector.broadcast %5 : vector<1x4xf32> to vector<32x4xf32>
    %341 = arith.addf %339, %340 : vector<32x4xf32>
    %cst_134 = arith.constant dense<0xFF800000> : vector<32xf32>
    %342 = vector.multi_reduction <maximumf>, %341, %cst_134 [1] : vector<32x4xf32> to vector<32xf32>
    %343 = vector.shape_cast %342 : vector<32xf32> to vector<32x1xf32>
    %344 = vector.broadcast %343 : vector<32x1xf32> to vector<32x4xf32>
    %345 = arith.subf %341, %344 : vector<32x4xf32>
    %346 = math.exp %345 : vector<32x4xf32>
    %cst_135 = arith.constant dense<0.000000e+00> : vector<32xf32>
    %347 = vector.multi_reduction <add>, %346, %cst_135 [1] : vector<32x4xf32> to vector<32xf32>
    %348 = vector.shape_cast %347 : vector<32xf32> to vector<32x1xf32>
    %349 = tpu.reciprocal %348 {approx = true} : vector<32x1xf32> -> vector<32x1xf32>
    %350 = vector.broadcast %349 : vector<32x1xf32> to vector<32x4xf32>
    %351 = arith.mulf %346, %350 : vector<32x4xf32>
    %352 = arith.truncf %351 : vector<32x4xf32> to vector<32x4xbf16>
    %353 = arith.truncf %332 : vector<4x64xf32> to vector<4x64xbf16>
    %cst_136 = arith.constant dense<0.000000e+00> : vector<32x64xf32>
    %354 = tpu.matmul %352, %353, %cst_136 {dimension_numbers = #tpu.dot_dimension_numbers<[1], [0], [0], [1], [0, 0, 1, 1], [], []>} : vector<32x4xbf16>, vector<4x64xbf16>, vector<32x64xf32> -> vector<32x64xf32>
    %cst_137 = arith.constant 0.000000e+00 : f32
    %355 = vector.broadcast %cst_137 : f32 to vector<4x64xf32>
    %356 = vector.extract_strided_slice %354 {offsets = [0, 0], sizes = [4, 64], strides = [1, 1]} : vector<32x64xf32> to vector<4x64xf32>
    %357 = vector.extract_strided_slice %7 {offsets = [0, 0], sizes = [1, 64], strides = [1, 1]} : vector<32x64xf32> to vector<1x64xf32>
    %358 = vector.broadcast %357 : vector<1x64xf32> to vector<4x64xf32>
    %359 = arith.mulf %356, %358 : vector<4x64xf32>
    %360 = arith.addf %355, %359 : vector<4x64xf32>
    %361 = vector.extract_strided_slice %354 {offsets = [4, 0], sizes = [4, 64], strides = [1, 1]} : vector<32x64xf32> to vector<4x64xf32>
    %362 = vector.extract_strided_slice %7 {offsets = [4, 0], sizes = [1, 64], strides = [1, 1]} : vector<32x64xf32> to vector<1x64xf32>
    %363 = vector.broadcast %362 : vector<1x64xf32> to vector<4x64xf32>
    %364 = arith.mulf %361, %363 : vector<4x64xf32>
    %365 = arith.addf %360, %364 : vector<4x64xf32>
    %366 = vector.extract_strided_slice %354 {offsets = [8, 0], sizes = [4, 64], strides = [1, 1]} : vector<32x64xf32> to vector<4x64xf32>
    %367 = vector.extract_strided_slice %7 {offsets = [8, 0], sizes = [1, 64], strides = [1, 1]} : vector<32x64xf32> to vector<1x64xf32>
    %368 = vector.broadcast %367 : vector<1x64xf32> to vector<4x64xf32>
    %369 = arith.mulf %366, %368 : vector<4x64xf32>
    %370 = arith.addf %365, %369 : vector<4x64xf32>
    %371 = vector.extract_strided_slice %354 {offsets = [12, 0], sizes = [4, 64], strides = [1, 1]} : vector<32x64xf32> to vector<4x64xf32>
    %372 = vector.extract_strided_slice %7 {offsets = [12, 0], sizes = [1, 64], strides = [1, 1]} : vector<32x64xf32> to vector<1x64xf32>
    %373 = vector.broadcast %372 : vector<1x64xf32> to vector<4x64xf32>
    %374 = arith.mulf %371, %373 : vector<4x64xf32>
    %375 = arith.addf %370, %374 : vector<4x64xf32>
    %376 = vector.extract_strided_slice %354 {offsets = [16, 0], sizes = [4, 64], strides = [1, 1]} : vector<32x64xf32> to vector<4x64xf32>
    %377 = vector.extract_strided_slice %7 {offsets = [16, 0], sizes = [1, 64], strides = [1, 1]} : vector<32x64xf32> to vector<1x64xf32>
    %378 = vector.broadcast %377 : vector<1x64xf32> to vector<4x64xf32>
    %379 = arith.mulf %376, %378 : vector<4x64xf32>
    %380 = arith.addf %375, %379 : vector<4x64xf32>
    %381 = vector.extract_strided_slice %354 {offsets = [20, 0], sizes = [4, 64], strides = [1, 1]} : vector<32x64xf32> to vector<4x64xf32>
    %382 = vector.extract_strided_slice %7 {offsets = [20, 0], sizes = [1, 64], strides = [1, 1]} : vector<32x64xf32> to vector<1x64xf32>
    %383 = vector.broadcast %382 : vector<1x64xf32> to vector<4x64xf32>
    %384 = arith.mulf %381, %383 : vector<4x64xf32>
    %385 = arith.addf %380, %384 : vector<4x64xf32>
    %386 = vector.extract_strided_slice %354 {offsets = [24, 0], sizes = [4, 64], strides = [1, 1]} : vector<32x64xf32> to vector<4x64xf32>
    %387 = vector.extract_strided_slice %7 {offsets = [24, 0], sizes = [1, 64], strides = [1, 1]} : vector<32x64xf32> to vector<1x64xf32>
    %388 = vector.broadcast %387 : vector<1x64xf32> to vector<4x64xf32>
    %389 = arith.mulf %386, %388 : vector<4x64xf32>
    %390 = arith.addf %385, %389 : vector<4x64xf32>
    %391 = vector.extract_strided_slice %354 {offsets = [28, 0], sizes = [4, 64], strides = [1, 1]} : vector<32x64xf32> to vector<4x64xf32>
    %392 = vector.extract_strided_slice %7 {offsets = [28, 0], sizes = [1, 64], strides = [1, 1]} : vector<32x64xf32> to vector<1x64xf32>
    %393 = vector.broadcast %392 : vector<1x64xf32> to vector<4x64xf32>
    %394 = arith.mulf %391, %393 : vector<4x64xf32>
    %395 = arith.addf %390, %394 : vector<4x64xf32>
    %396 = arith.truncf %395 : vector<4x64xf32> to vector<4x64xbf16>
    %c2_138 = arith.constant 2 : index
    %c0_139 = arith.constant 0 : index
    %c0_140 = arith.constant 0 : index
    %397 = vector.load %arg7[%c2_138, %c0_139, %c0_140] : memref<4x64x64xbf16, #tpu.memory_space<vmem>>, vector<1x64x64xbf16>
    %398 = vector.shape_cast %397 : vector<1x64x64xbf16> to vector<64x64xbf16>
    %cst_141 = arith.constant dense<0.000000e+00> : vector<4x64xf32>
    %399 = tpu.matmul %396, %398, %cst_141 {dimension_numbers = #tpu.dot_dimension_numbers<[1], [0], [0], [1], [0, 0, 1, 1], [], []>} : vector<4x64xbf16>, vector<64x64xbf16>, vector<4x64xf32> -> vector<4x64xf32>
    %c2_142 = arith.constant 2 : index
    %c0_143 = arith.constant 0 : index
    %c0_144 = arith.constant 0 : index
    %400 = vector.load %arg8[%c2_142, %c0_143, %c0_144] : memref<4x1x64xf32, #tpu.memory_space<vmem>>, vector<1x1x64xf32>
    %401 = vector.shape_cast %400 : vector<1x1x64xf32> to vector<1x64xf32>
    %402 = vector.broadcast %401 : vector<1x64xf32> to vector<4x64xf32>
    %403 = arith.addf %399, %402 : vector<4x64xf32>
    %404 = arith.addf %321, %403 : vector<4x64xf32>
    %c2_145 = arith.constant 2 : index
    %c0_146 = arith.constant 0 : index
    %c0_147 = arith.constant 0 : index
    %405 = vector.load %arg9[%c2_145, %c0_146, %c0_147] : memref<4x1x64xf32, #tpu.memory_space<vmem>>, vector<1x1x64xf32>
    %406 = vector.shape_cast %405 : vector<1x1x64xf32> to vector<1x64xf32>
    %c2_148 = arith.constant 2 : index
    %c0_149 = arith.constant 0 : index
    %c0_150 = arith.constant 0 : index
    %407 = vector.load %arg10[%c2_148, %c0_149, %c0_150] : memref<4x1x64xf32, #tpu.memory_space<vmem>>, vector<1x1x64xf32>
    %408 = vector.shape_cast %407 : vector<1x1x64xf32> to vector<1x64xf32>
    %cst_151 = arith.constant dense<0.000000e+00> : vector<4xf32>
    %409 = vector.multi_reduction <add>, %404, %cst_151 [1] : vector<4x64xf32> to vector<4xf32>
    %410 = vector.shape_cast %409 : vector<4xf32> to vector<4x1xf32>
    %cst_152 = arith.constant 6.400000e+01 : f32
    %411 = vector.broadcast %cst_152 : f32 to vector<4x1xf32>
    %412 = arith.divf %410, %411 : vector<4x1xf32>
    %413 = vector.broadcast %412 : vector<4x1xf32> to vector<4x64xf32>
    %414 = arith.subf %404, %413 : vector<4x64xf32>
    %415 = arith.mulf %414, %414 : vector<4x64xf32>
    %cst_153 = arith.constant dense<0.000000e+00> : vector<4xf32>
    %416 = vector.multi_reduction <add>, %415, %cst_153 [1] : vector<4x64xf32> to vector<4xf32>
    %417 = vector.shape_cast %416 : vector<4xf32> to vector<4x1xf32>
    %cst_154 = arith.constant 6.400000e+01 : f32
    %418 = vector.broadcast %cst_154 : f32 to vector<4x1xf32>
    %419 = arith.divf %417, %418 : vector<4x1xf32>
    %cst_155 = arith.constant 9.99999974E-6 : f32
    %420 = vector.broadcast %cst_155 : f32 to vector<4x1xf32>
    %421 = arith.addf %419, %420 : vector<4x1xf32>
    %422 = math.rsqrt %421 : vector<4x1xf32>
    %423 = vector.broadcast %422 : vector<4x1xf32> to vector<4x64xf32>
    %424 = arith.mulf %414, %423 : vector<4x64xf32>
    %425 = vector.broadcast %406 : vector<1x64xf32> to vector<4x64xf32>
    %426 = arith.mulf %424, %425 : vector<4x64xf32>
    %427 = vector.broadcast %408 : vector<1x64xf32> to vector<4x64xf32>
    %428 = arith.addf %426, %427 : vector<4x64xf32>
    %429 = arith.truncf %428 : vector<4x64xf32> to vector<4x64xbf16>
    %c2_156 = arith.constant 2 : index
    %c0_157 = arith.constant 0 : index
    %c0_158 = arith.constant 0 : index
    %430 = vector.load %arg11[%c2_156, %c0_157, %c0_158] : memref<4x64x256xbf16, #tpu.memory_space<vmem>>, vector<1x64x256xbf16>
    %431 = vector.shape_cast %430 : vector<1x64x256xbf16> to vector<64x256xbf16>
    %cst_159 = arith.constant dense<0.000000e+00> : vector<4x256xf32>
    %432 = tpu.matmul %429, %431, %cst_159 {dimension_numbers = #tpu.dot_dimension_numbers<[1], [0], [0], [1], [0, 0, 1, 1], [], []>} : vector<4x64xbf16>, vector<64x256xbf16>, vector<4x256xf32> -> vector<4x256xf32>
    %c2_160 = arith.constant 2 : index
    %c0_161 = arith.constant 0 : index
    %c0_162 = arith.constant 0 : index
    %433 = vector.load %arg12[%c2_160, %c0_161, %c0_162] : memref<4x1x256xf32, #tpu.memory_space<vmem>>, vector<1x1x256xf32>
    %434 = vector.shape_cast %433 : vector<1x1x256xf32> to vector<1x256xf32>
    %435 = vector.broadcast %434 : vector<1x256xf32> to vector<4x256xf32>
    %436 = arith.addf %432, %435 : vector<4x256xf32>
    %cst_163 = arith.constant 0.000000e+00 : f32
    %437 = vector.broadcast %cst_163 : f32 to vector<4x256xf32>
    %438 = arith.maximumf %436, %437 : vector<4x256xf32>
    %439 = arith.truncf %438 : vector<4x256xf32> to vector<4x256xbf16>
    %c2_164 = arith.constant 2 : index
    %c0_165 = arith.constant 0 : index
    %c0_166 = arith.constant 0 : index
    %440 = vector.load %arg13[%c2_164, %c0_165, %c0_166] : memref<4x256x64xbf16, #tpu.memory_space<vmem>>, vector<1x256x64xbf16>
    %441 = vector.shape_cast %440 : vector<1x256x64xbf16> to vector<256x64xbf16>
    %cst_167 = arith.constant dense<0.000000e+00> : vector<4x64xf32>
    %442 = tpu.matmul %439, %441, %cst_167 {dimension_numbers = #tpu.dot_dimension_numbers<[1], [0], [0], [1], [0, 0, 1, 1], [], []>} : vector<4x256xbf16>, vector<256x64xbf16>, vector<4x64xf32> -> vector<4x64xf32>
    %c2_168 = arith.constant 2 : index
    %c0_169 = arith.constant 0 : index
    %c0_170 = arith.constant 0 : index
    %443 = vector.load %arg14[%c2_168, %c0_169, %c0_170] : memref<4x1x64xf32, #tpu.memory_space<vmem>>, vector<1x1x64xf32>
    %444 = vector.shape_cast %443 : vector<1x1x64xf32> to vector<1x64xf32>
    %445 = vector.broadcast %444 : vector<1x64xf32> to vector<4x64xf32>
    %446 = arith.addf %442, %445 : vector<4x64xf32>
    %447 = arith.addf %428, %446 : vector<4x64xf32>
    %c2_171 = arith.constant 2 : index
    %c0_172 = arith.constant 0 : index
    %c0_173 = arith.constant 0 : index
    %448 = vector.load %arg15[%c2_171, %c0_172, %c0_173] : memref<4x1x64xf32, #tpu.memory_space<vmem>>, vector<1x1x64xf32>
    %449 = vector.shape_cast %448 : vector<1x1x64xf32> to vector<1x64xf32>
    %c2_174 = arith.constant 2 : index
    %c0_175 = arith.constant 0 : index
    %c0_176 = arith.constant 0 : index
    %450 = vector.load %arg16[%c2_174, %c0_175, %c0_176] : memref<4x1x64xf32, #tpu.memory_space<vmem>>, vector<1x1x64xf32>
    %451 = vector.shape_cast %450 : vector<1x1x64xf32> to vector<1x64xf32>
    %cst_177 = arith.constant dense<0.000000e+00> : vector<4xf32>
    %452 = vector.multi_reduction <add>, %447, %cst_177 [1] : vector<4x64xf32> to vector<4xf32>
    %453 = vector.shape_cast %452 : vector<4xf32> to vector<4x1xf32>
    %cst_178 = arith.constant 6.400000e+01 : f32
    %454 = vector.broadcast %cst_178 : f32 to vector<4x1xf32>
    %455 = arith.divf %453, %454 : vector<4x1xf32>
    %456 = vector.broadcast %455 : vector<4x1xf32> to vector<4x64xf32>
    %457 = arith.subf %447, %456 : vector<4x64xf32>
    %458 = arith.mulf %457, %457 : vector<4x64xf32>
    %cst_179 = arith.constant dense<0.000000e+00> : vector<4xf32>
    %459 = vector.multi_reduction <add>, %458, %cst_179 [1] : vector<4x64xf32> to vector<4xf32>
    %460 = vector.shape_cast %459 : vector<4xf32> to vector<4x1xf32>
    %cst_180 = arith.constant 6.400000e+01 : f32
    %461 = vector.broadcast %cst_180 : f32 to vector<4x1xf32>
    %462 = arith.divf %460, %461 : vector<4x1xf32>
    %cst_181 = arith.constant 9.99999974E-6 : f32
    %463 = vector.broadcast %cst_181 : f32 to vector<4x1xf32>
    %464 = arith.addf %462, %463 : vector<4x1xf32>
    %465 = math.rsqrt %464 : vector<4x1xf32>
    %466 = vector.broadcast %465 : vector<4x1xf32> to vector<4x64xf32>
    %467 = arith.mulf %457, %466 : vector<4x64xf32>
    %468 = vector.broadcast %449 : vector<1x64xf32> to vector<4x64xf32>
    %469 = arith.mulf %467, %468 : vector<4x64xf32>
    %470 = vector.broadcast %451 : vector<1x64xf32> to vector<4x64xf32>
    %471 = arith.addf %469, %470 : vector<4x64xf32>
    %472 = arith.truncf %471 : vector<4x64xf32> to vector<4x64xbf16>
    %c3 = arith.constant 3 : index
    %c0_182 = arith.constant 0 : index
    %c0_183 = arith.constant 0 : index
    %473 = vector.load %arg5[%c3, %c0_182, %c0_183] : memref<4x64x192xbf16, #tpu.memory_space<vmem>>, vector<1x64x192xbf16>
    %474 = vector.shape_cast %473 : vector<1x64x192xbf16> to vector<64x192xbf16>
    %cst_184 = arith.constant dense<0.000000e+00> : vector<4x192xf32>
    %475 = tpu.matmul %472, %474, %cst_184 {dimension_numbers = #tpu.dot_dimension_numbers<[1], [0], [0], [1], [0, 0, 1, 1], [], []>} : vector<4x64xbf16>, vector<64x192xbf16>, vector<4x192xf32> -> vector<4x192xf32>
    %c3_185 = arith.constant 3 : index
    %c0_186 = arith.constant 0 : index
    %c0_187 = arith.constant 0 : index
    %476 = vector.load %arg6[%c3_185, %c0_186, %c0_187] : memref<4x1x192xf32, #tpu.memory_space<vmem>>, vector<1x1x192xf32>
    %477 = vector.shape_cast %476 : vector<1x1x192xf32> to vector<1x192xf32>
    %478 = vector.broadcast %477 : vector<1x192xf32> to vector<4x192xf32>
    %479 = arith.addf %475, %478 : vector<4x192xf32>
    %480 = vector.extract_strided_slice %479 {offsets = [0, 0], sizes = [4, 64], strides = [1, 1]} : vector<4x192xf32> to vector<4x64xf32>
    %481 = vector.extract_strided_slice %479 {offsets = [0, 64], sizes = [4, 64], strides = [1, 1]} : vector<4x192xf32> to vector<4x64xf32>
    %482 = vector.extract_strided_slice %479 {offsets = [0, 128], sizes = [4, 64], strides = [1, 1]} : vector<4x192xf32> to vector<4x64xf32>
    %483 = tpu.concatenate %480, %480, %480, %480, %480, %480, %480, %480 in 0 : vector<4x64xf32>, vector<4x64xf32>, vector<4x64xf32>, vector<4x64xf32>, vector<4x64xf32>, vector<4x64xf32>, vector<4x64xf32>, vector<4x64xf32> -> vector<32x64xf32>
    %484 = arith.mulf %483, %7 : vector<32x64xf32>
    %485 = arith.truncf %484 : vector<32x64xf32> to vector<32x64xbf16>
    %486 = arith.truncf %481 : vector<4x64xf32> to vector<4x64xbf16>
    %cst_188 = arith.constant dense<0.000000e+00> : vector<32x4xf32>
    %487 = tpu.matmul %485, %486, %cst_188 {dimension_numbers = #tpu.dot_dimension_numbers<[1], [1], [0], [0], [0, 0, 1, 0], [], []>} : vector<32x64xbf16>, vector<4x64xbf16>, vector<32x4xf32> -> vector<32x4xf32>
    %cst_189 = arith.constant 0.353553385 : f32
    %488 = vector.broadcast %cst_189 : f32 to vector<32x4xf32>
    %489 = arith.mulf %487, %488 : vector<32x4xf32>
    %490 = vector.broadcast %5 : vector<1x4xf32> to vector<32x4xf32>
    %491 = arith.addf %489, %490 : vector<32x4xf32>
    %cst_190 = arith.constant dense<0xFF800000> : vector<32xf32>
    %492 = vector.multi_reduction <maximumf>, %491, %cst_190 [1] : vector<32x4xf32> to vector<32xf32>
    %493 = vector.shape_cast %492 : vector<32xf32> to vector<32x1xf32>
    %494 = vector.broadcast %493 : vector<32x1xf32> to vector<32x4xf32>
    %495 = arith.subf %491, %494 : vector<32x4xf32>
    %496 = math.exp %495 : vector<32x4xf32>
    %cst_191 = arith.constant dense<0.000000e+00> : vector<32xf32>
    %497 = vector.multi_reduction <add>, %496, %cst_191 [1] : vector<32x4xf32> to vector<32xf32>
    %498 = vector.shape_cast %497 : vector<32xf32> to vector<32x1xf32>
    %499 = tpu.reciprocal %498 {approx = true} : vector<32x1xf32> -> vector<32x1xf32>
    %500 = vector.broadcast %499 : vector<32x1xf32> to vector<32x4xf32>
    %501 = arith.mulf %496, %500 : vector<32x4xf32>
    %502 = arith.truncf %501 : vector<32x4xf32> to vector<32x4xbf16>
    %503 = arith.truncf %482 : vector<4x64xf32> to vector<4x64xbf16>
    %cst_192 = arith.constant dense<0.000000e+00> : vector<32x64xf32>
    %504 = tpu.matmul %502, %503, %cst_192 {dimension_numbers = #tpu.dot_dimension_numbers<[1], [0], [0], [1], [0, 0, 1, 1], [], []>} : vector<32x4xbf16>, vector<4x64xbf16>, vector<32x64xf32> -> vector<32x64xf32>
    %cst_193 = arith.constant 0.000000e+00 : f32
    %505 = vector.broadcast %cst_193 : f32 to vector<4x64xf32>
    %506 = vector.extract_strided_slice %504 {offsets = [0, 0], sizes = [4, 64], strides = [1, 1]} : vector<32x64xf32> to vector<4x64xf32>
    %507 = vector.extract_strided_slice %7 {offsets = [0, 0], sizes = [1, 64], strides = [1, 1]} : vector<32x64xf32> to vector<1x64xf32>
    %508 = vector.broadcast %507 : vector<1x64xf32> to vector<4x64xf32>
    %509 = arith.mulf %506, %508 : vector<4x64xf32>
    %510 = arith.addf %505, %509 : vector<4x64xf32>
    %511 = vector.extract_strided_slice %504 {offsets = [4, 0], sizes = [4, 64], strides = [1, 1]} : vector<32x64xf32> to vector<4x64xf32>
    %512 = vector.extract_strided_slice %7 {offsets = [4, 0], sizes = [1, 64], strides = [1, 1]} : vector<32x64xf32> to vector<1x64xf32>
    %513 = vector.broadcast %512 : vector<1x64xf32> to vector<4x64xf32>
    %514 = arith.mulf %511, %513 : vector<4x64xf32>
    %515 = arith.addf %510, %514 : vector<4x64xf32>
    %516 = vector.extract_strided_slice %504 {offsets = [8, 0], sizes = [4, 64], strides = [1, 1]} : vector<32x64xf32> to vector<4x64xf32>
    %517 = vector.extract_strided_slice %7 {offsets = [8, 0], sizes = [1, 64], strides = [1, 1]} : vector<32x64xf32> to vector<1x64xf32>
    %518 = vector.broadcast %517 : vector<1x64xf32> to vector<4x64xf32>
    %519 = arith.mulf %516, %518 : vector<4x64xf32>
    %520 = arith.addf %515, %519 : vector<4x64xf32>
    %521 = vector.extract_strided_slice %504 {offsets = [12, 0], sizes = [4, 64], strides = [1, 1]} : vector<32x64xf32> to vector<4x64xf32>
    %522 = vector.extract_strided_slice %7 {offsets = [12, 0], sizes = [1, 64], strides = [1, 1]} : vector<32x64xf32> to vector<1x64xf32>
    %523 = vector.broadcast %522 : vector<1x64xf32> to vector<4x64xf32>
    %524 = arith.mulf %521, %523 : vector<4x64xf32>
    %525 = arith.addf %520, %524 : vector<4x64xf32>
    %526 = vector.extract_strided_slice %504 {offsets = [16, 0], sizes = [4, 64], strides = [1, 1]} : vector<32x64xf32> to vector<4x64xf32>
    %527 = vector.extract_strided_slice %7 {offsets = [16, 0], sizes = [1, 64], strides = [1, 1]} : vector<32x64xf32> to vector<1x64xf32>
    %528 = vector.broadcast %527 : vector<1x64xf32> to vector<4x64xf32>
    %529 = arith.mulf %526, %528 : vector<4x64xf32>
    %530 = arith.addf %525, %529 : vector<4x64xf32>
    %531 = vector.extract_strided_slice %504 {offsets = [20, 0], sizes = [4, 64], strides = [1, 1]} : vector<32x64xf32> to vector<4x64xf32>
    %532 = vector.extract_strided_slice %7 {offsets = [20, 0], sizes = [1, 64], strides = [1, 1]} : vector<32x64xf32> to vector<1x64xf32>
    %533 = vector.broadcast %532 : vector<1x64xf32> to vector<4x64xf32>
    %534 = arith.mulf %531, %533 : vector<4x64xf32>
    %535 = arith.addf %530, %534 : vector<4x64xf32>
    %536 = vector.extract_strided_slice %504 {offsets = [24, 0], sizes = [4, 64], strides = [1, 1]} : vector<32x64xf32> to vector<4x64xf32>
    %537 = vector.extract_strided_slice %7 {offsets = [24, 0], sizes = [1, 64], strides = [1, 1]} : vector<32x64xf32> to vector<1x64xf32>
    %538 = vector.broadcast %537 : vector<1x64xf32> to vector<4x64xf32>
    %539 = arith.mulf %536, %538 : vector<4x64xf32>
    %540 = arith.addf %535, %539 : vector<4x64xf32>
    %541 = vector.extract_strided_slice %504 {offsets = [28, 0], sizes = [4, 64], strides = [1, 1]} : vector<32x64xf32> to vector<4x64xf32>
    %542 = vector.extract_strided_slice %7 {offsets = [28, 0], sizes = [1, 64], strides = [1, 1]} : vector<32x64xf32> to vector<1x64xf32>
    %543 = vector.broadcast %542 : vector<1x64xf32> to vector<4x64xf32>
    %544 = arith.mulf %541, %543 : vector<4x64xf32>
    %545 = arith.addf %540, %544 : vector<4x64xf32>
    %546 = arith.truncf %545 : vector<4x64xf32> to vector<4x64xbf16>
    %c3_194 = arith.constant 3 : index
    %c0_195 = arith.constant 0 : index
    %c0_196 = arith.constant 0 : index
    %547 = vector.load %arg7[%c3_194, %c0_195, %c0_196] : memref<4x64x64xbf16, #tpu.memory_space<vmem>>, vector<1x64x64xbf16>
    %548 = vector.shape_cast %547 : vector<1x64x64xbf16> to vector<64x64xbf16>
    %cst_197 = arith.constant dense<0.000000e+00> : vector<4x64xf32>
    %549 = tpu.matmul %546, %548, %cst_197 {dimension_numbers = #tpu.dot_dimension_numbers<[1], [0], [0], [1], [0, 0, 1, 1], [], []>} : vector<4x64xbf16>, vector<64x64xbf16>, vector<4x64xf32> -> vector<4x64xf32>
    %c3_198 = arith.constant 3 : index
    %c0_199 = arith.constant 0 : index
    %c0_200 = arith.constant 0 : index
    %550 = vector.load %arg8[%c3_198, %c0_199, %c0_200] : memref<4x1x64xf32, #tpu.memory_space<vmem>>, vector<1x1x64xf32>
    %551 = vector.shape_cast %550 : vector<1x1x64xf32> to vector<1x64xf32>
    %552 = vector.broadcast %551 : vector<1x64xf32> to vector<4x64xf32>
    %553 = arith.addf %549, %552 : vector<4x64xf32>
    %554 = arith.addf %471, %553 : vector<4x64xf32>
    %c3_201 = arith.constant 3 : index
    %c0_202 = arith.constant 0 : index
    %c0_203 = arith.constant 0 : index
    %555 = vector.load %arg9[%c3_201, %c0_202, %c0_203] : memref<4x1x64xf32, #tpu.memory_space<vmem>>, vector<1x1x64xf32>
    %556 = vector.shape_cast %555 : vector<1x1x64xf32> to vector<1x64xf32>
    %c3_204 = arith.constant 3 : index
    %c0_205 = arith.constant 0 : index
    %c0_206 = arith.constant 0 : index
    %557 = vector.load %arg10[%c3_204, %c0_205, %c0_206] : memref<4x1x64xf32, #tpu.memory_space<vmem>>, vector<1x1x64xf32>
    %558 = vector.shape_cast %557 : vector<1x1x64xf32> to vector<1x64xf32>
    %cst_207 = arith.constant dense<0.000000e+00> : vector<4xf32>
    %559 = vector.multi_reduction <add>, %554, %cst_207 [1] : vector<4x64xf32> to vector<4xf32>
    %560 = vector.shape_cast %559 : vector<4xf32> to vector<4x1xf32>
    %cst_208 = arith.constant 6.400000e+01 : f32
    %561 = vector.broadcast %cst_208 : f32 to vector<4x1xf32>
    %562 = arith.divf %560, %561 : vector<4x1xf32>
    %563 = vector.broadcast %562 : vector<4x1xf32> to vector<4x64xf32>
    %564 = arith.subf %554, %563 : vector<4x64xf32>
    %565 = arith.mulf %564, %564 : vector<4x64xf32>
    %cst_209 = arith.constant dense<0.000000e+00> : vector<4xf32>
    %566 = vector.multi_reduction <add>, %565, %cst_209 [1] : vector<4x64xf32> to vector<4xf32>
    %567 = vector.shape_cast %566 : vector<4xf32> to vector<4x1xf32>
    %cst_210 = arith.constant 6.400000e+01 : f32
    %568 = vector.broadcast %cst_210 : f32 to vector<4x1xf32>
    %569 = arith.divf %567, %568 : vector<4x1xf32>
    %cst_211 = arith.constant 9.99999974E-6 : f32
    %570 = vector.broadcast %cst_211 : f32 to vector<4x1xf32>
    %571 = arith.addf %569, %570 : vector<4x1xf32>
    %572 = math.rsqrt %571 : vector<4x1xf32>
    %573 = vector.broadcast %572 : vector<4x1xf32> to vector<4x64xf32>
    %574 = arith.mulf %564, %573 : vector<4x64xf32>
    %575 = vector.broadcast %556 : vector<1x64xf32> to vector<4x64xf32>
    %576 = arith.mulf %574, %575 : vector<4x64xf32>
    %577 = vector.broadcast %558 : vector<1x64xf32> to vector<4x64xf32>
    %578 = arith.addf %576, %577 : vector<4x64xf32>
    %579 = arith.truncf %578 : vector<4x64xf32> to vector<4x64xbf16>
    %c3_212 = arith.constant 3 : index
    %c0_213 = arith.constant 0 : index
    %c0_214 = arith.constant 0 : index
    %580 = vector.load %arg11[%c3_212, %c0_213, %c0_214] : memref<4x64x256xbf16, #tpu.memory_space<vmem>>, vector<1x64x256xbf16>
    %581 = vector.shape_cast %580 : vector<1x64x256xbf16> to vector<64x256xbf16>
    %cst_215 = arith.constant dense<0.000000e+00> : vector<4x256xf32>
    %582 = tpu.matmul %579, %581, %cst_215 {dimension_numbers = #tpu.dot_dimension_numbers<[1], [0], [0], [1], [0, 0, 1, 1], [], []>} : vector<4x64xbf16>, vector<64x256xbf16>, vector<4x256xf32> -> vector<4x256xf32>
    %c3_216 = arith.constant 3 : index
    %c0_217 = arith.constant 0 : index
    %c0_218 = arith.constant 0 : index
    %583 = vector.load %arg12[%c3_216, %c0_217, %c0_218] : memref<4x1x256xf32, #tpu.memory_space<vmem>>, vector<1x1x256xf32>
    %584 = vector.shape_cast %583 : vector<1x1x256xf32> to vector<1x256xf32>
    %585 = vector.broadcast %584 : vector<1x256xf32> to vector<4x256xf32>
    %586 = arith.addf %582, %585 : vector<4x256xf32>
    %cst_219 = arith.constant 0.000000e+00 : f32
    %587 = vector.broadcast %cst_219 : f32 to vector<4x256xf32>
    %588 = arith.maximumf %586, %587 : vector<4x256xf32>
    %589 = arith.truncf %588 : vector<4x256xf32> to vector<4x256xbf16>
    %c3_220 = arith.constant 3 : index
    %c0_221 = arith.constant 0 : index
    %c0_222 = arith.constant 0 : index
    %590 = vector.load %arg13[%c3_220, %c0_221, %c0_222] : memref<4x256x64xbf16, #tpu.memory_space<vmem>>, vector<1x256x64xbf16>
    %591 = vector.shape_cast %590 : vector<1x256x64xbf16> to vector<256x64xbf16>
    %cst_223 = arith.constant dense<0.000000e+00> : vector<4x64xf32>
    %592 = tpu.matmul %589, %591, %cst_223 {dimension_numbers = #tpu.dot_dimension_numbers<[1], [0], [0], [1], [0, 0, 1, 1], [], []>} : vector<4x256xbf16>, vector<256x64xbf16>, vector<4x64xf32> -> vector<4x64xf32>
    %c3_224 = arith.constant 3 : index
    %c0_225 = arith.constant 0 : index
    %c0_226 = arith.constant 0 : index
    %593 = vector.load %arg14[%c3_224, %c0_225, %c0_226] : memref<4x1x64xf32, #tpu.memory_space<vmem>>, vector<1x1x64xf32>
    %594 = vector.shape_cast %593 : vector<1x1x64xf32> to vector<1x64xf32>
    %595 = vector.broadcast %594 : vector<1x64xf32> to vector<4x64xf32>
    %596 = arith.addf %592, %595 : vector<4x64xf32>
    %597 = arith.addf %578, %596 : vector<4x64xf32>
    %c3_227 = arith.constant 3 : index
    %c0_228 = arith.constant 0 : index
    %c0_229 = arith.constant 0 : index
    %598 = vector.load %arg15[%c3_227, %c0_228, %c0_229] : memref<4x1x64xf32, #tpu.memory_space<vmem>>, vector<1x1x64xf32>
    %599 = vector.shape_cast %598 : vector<1x1x64xf32> to vector<1x64xf32>
    %c3_230 = arith.constant 3 : index
    %c0_231 = arith.constant 0 : index
    %c0_232 = arith.constant 0 : index
    %600 = vector.load %arg16[%c3_230, %c0_231, %c0_232] : memref<4x1x64xf32, #tpu.memory_space<vmem>>, vector<1x1x64xf32>
    %601 = vector.shape_cast %600 : vector<1x1x64xf32> to vector<1x64xf32>
    %cst_233 = arith.constant dense<0.000000e+00> : vector<4xf32>
    %602 = vector.multi_reduction <add>, %597, %cst_233 [1] : vector<4x64xf32> to vector<4xf32>
    %603 = vector.shape_cast %602 : vector<4xf32> to vector<4x1xf32>
    %cst_234 = arith.constant 6.400000e+01 : f32
    %604 = vector.broadcast %cst_234 : f32 to vector<4x1xf32>
    %605 = arith.divf %603, %604 : vector<4x1xf32>
    %606 = vector.broadcast %605 : vector<4x1xf32> to vector<4x64xf32>
    %607 = arith.subf %597, %606 : vector<4x64xf32>
    %608 = arith.mulf %607, %607 : vector<4x64xf32>
    %cst_235 = arith.constant dense<0.000000e+00> : vector<4xf32>
    %609 = vector.multi_reduction <add>, %608, %cst_235 [1] : vector<4x64xf32> to vector<4xf32>
    %610 = vector.shape_cast %609 : vector<4xf32> to vector<4x1xf32>
    %cst_236 = arith.constant 6.400000e+01 : f32
    %611 = vector.broadcast %cst_236 : f32 to vector<4x1xf32>
    %612 = arith.divf %610, %611 : vector<4x1xf32>
    %cst_237 = arith.constant 9.99999974E-6 : f32
    %613 = vector.broadcast %cst_237 : f32 to vector<4x1xf32>
    %614 = arith.addf %612, %613 : vector<4x1xf32>
    %615 = math.rsqrt %614 : vector<4x1xf32>
    %616 = vector.broadcast %615 : vector<4x1xf32> to vector<4x64xf32>
    %617 = arith.mulf %607, %616 : vector<4x64xf32>
    %618 = vector.broadcast %599 : vector<1x64xf32> to vector<4x64xf32>
    %619 = arith.mulf %617, %618 : vector<4x64xf32>
    %620 = vector.broadcast %601 : vector<1x64xf32> to vector<4x64xf32>
    %621 = arith.addf %619, %620 : vector<4x64xf32>
    %cst_238 = arith.constant dense<0.000000e+00> : vector<1x64xf32>
    %622 = tpu.matmul %1, %621, %cst_238 {dimension_numbers = #tpu.dot_dimension_numbers<[1], [0], [0], [1], [0, 0, 1, 1], [], []>} : vector<1x4xf32>, vector<4x64xf32>, vector<1x64xf32> -> vector<1x64xf32>
    %cst_239 = arith.constant dense<0.000000e+00> : vector<1xf32>
    %623 = vector.multi_reduction <add>, %1, %cst_239 [1] : vector<1x4xf32> to vector<1xf32>
    %624 = vector.shape_cast %623 : vector<1xf32> to vector<1x1xf32>
    %cst_240 = arith.constant 9.99999997E-7 : f32
    %625 = vector.broadcast %cst_240 : f32 to vector<1x1xf32>
    %626 = arith.maximumf %624, %625 : vector<1x1xf32>
    %627 = tpu.reciprocal %626 {approx = true} : vector<1x1xf32> -> vector<1x1xf32>
    %628 = vector.broadcast %627 : vector<1x1xf32> to vector<1x64xf32>
    %629 = arith.mulf %622, %628 : vector<1x64xf32>
    %630 = tpu.concatenate %319, %629 in 1 : vector<1x64xf32>, vector<1x64xf32> -> vector<1x128xf32>
    %631 = arith.truncf %630 : vector<1x128xf32> to vector<1x128xbf16>
    %c0_241 = arith.constant 0 : index
    %c0_242 = arith.constant 0 : index
    %632 = vector.load %arg17[%c0_241, %c0_242] : memref<128x128xbf16, #tpu.memory_space<vmem>>, vector<128x128xbf16>
    %cst_243 = arith.constant dense<0.000000e+00> : vector<1x128xf32>
    %633 = tpu.matmul %631, %632, %cst_243 {dimension_numbers = #tpu.dot_dimension_numbers<[1], [0], [0], [1], [0, 0, 1, 1], [], []>} : vector<1x128xbf16>, vector<128x128xbf16>, vector<1x128xf32> -> vector<1x128xf32>
    %c0_244 = arith.constant 0 : index
    %c0_245 = arith.constant 0 : index
    %634 = vector.load %arg18[%c0_244, %c0_245] : memref<1x128xf32, #tpu.memory_space<vmem>>, vector<1x128xf32>
    %635 = arith.addf %633, %634 : vector<1x128xf32>
    %cst_246 = arith.constant 0.000000e+00 : f32
    %636 = vector.broadcast %cst_246 : f32 to vector<1x128xf32>
    %637 = arith.maximumf %635, %636 : vector<1x128xf32>
    %638 = arith.truncf %637 : vector<1x128xf32> to vector<1x128xbf16>
    %c0_247 = arith.constant 0 : index
    %c0_248 = arith.constant 0 : index
    %639 = vector.load %arg19[%c0_247, %c0_248] : memref<128x128xbf16, #tpu.memory_space<vmem>>, vector<128x128xbf16>
    %cst_249 = arith.constant dense<0.000000e+00> : vector<1x128xf32>
    %640 = tpu.matmul %638, %639, %cst_249 {dimension_numbers = #tpu.dot_dimension_numbers<[1], [0], [0], [1], [0, 0, 1, 1], [], []>} : vector<1x128xbf16>, vector<128x128xbf16>, vector<1x128xf32> -> vector<1x128xf32>
    %c0_250 = arith.constant 0 : index
    %c0_251 = arith.constant 0 : index
    %641 = vector.load %arg20[%c0_250, %c0_251] : memref<1x128xf32, #tpu.memory_space<vmem>>, vector<1x128xf32>
    %642 = arith.addf %640, %641 : vector<1x128xf32>
    %c0_252 = arith.constant 0 : index
    %c0_253 = arith.constant 0 : index
    %c0_254 = arith.constant 0 : index
    %643 = vector.load %arg21[%c0_252, %c0_253, %c0_254] : memref<1x1x128xf32, #tpu.memory_space<vmem>>, vector<1x1x128xf32>
    %644 = vector.shape_cast %643 : vector<1x1x128xf32> to vector<1x128xf32>
    %645 = vector.shape_cast %642 : vector<1x128xf32> to vector<1x1x128xf32>
    tpu.vector_store %arg21[%c0_252, %c0_253, %c0_254], %645 {strides = array<i32>} : memref<1x1x128xf32, #tpu.memory_space<vmem>>, vector<1x1x128xf32>,
    return
  }
  func.func @transform_0(%arg0: i32) -> (i32, i32, i32) {
    %c0_i32 = arith.constant 0 : i32
    %c0_i32_0 = arith.constant 0 : i32
    %c0_i32_1 = arith.constant 0 : i32
    return %arg0, %c0_i32, %c0_i32_0 : i32, i32, i32
  }
  func.func @transform_1(%arg0: i32) -> (i32, i32) {
    %c0_i32 = arith.constant 0 : i32
    %c0_i32_0 = arith.constant 0 : i32
    %c0_i32_1 = arith.constant 0 : i32
    return %c0_i32, %c0_i32_0 : i32, i32
  }
  func.func @transform_2(%arg0: i32) -> (i32, i32, i32) {
    %c0_i32 = arith.constant 0 : i32
    %c0_i32_0 = arith.constant 0 : i32
    %c0_i32_1 = arith.constant 0 : i32
    return %arg0, %c0_i32, %c0_i32_0 : i32, i32, i32
  }
  func.func @transform_3(%arg0: i32) -> (i32, i32) {
    %c0_i32 = arith.constant 0 : i32
    %c0_i32_0 = arith.constant 0 : i32
    %c0_i32_1 = arith.constant 0 : i32
    return %c0_i32, %c0_i32_0 : i32, i32
  }
  func.func @transform_4(%arg0: i32) -> (i32, i32, i32) {
    %c0_i32 = arith.constant 0 : i32
    %c0_i32_0 = arith.constant 0 : i32
    %c0_i32_1 = arith.constant 0 : i32
    %c0_i32_2 = arith.constant 0 : i32
    return %c0_i32, %c0_i32_0, %c0_i32_1 : i32, i32, i32
  }
  func.func @transform_5(%arg0: i32) -> (i32, i32, i32) {
    %c0_i32 = arith.constant 0 : i32
    %c0_i32_0 = arith.constant 0 : i32
    %c0_i32_1 = arith.constant 0 : i32
    %c0_i32_2 = arith.constant 0 : i32
    return %c0_i32, %c0_i32_0, %c0_i32_1 : i32, i32, i32
  }
  func.func @transform_6(%arg0: i32) -> (i32, i32, i32) {
    %c0_i32 = arith.constant 0 : i32
    %c0_i32_0 = arith.constant 0 : i32
    %c0_i32_1 = arith.constant 0 : i32
    %c0_i32_2 = arith.constant 0 : i32
    return %c0_i32, %c0_i32_0, %c0_i32_1 : i32, i32, i32
  }
  func.func @transform_7(%arg0: i32) -> (i32, i32, i32) {
    %c0_i32 = arith.constant 0 : i32
    %c0_i32_0 = arith.constant 0 : i32
    %c0_i32_1 = arith.constant 0 : i32
    %c0_i32_2 = arith.constant 0 : i32
    return %c0_i32, %c0_i32_0, %c0_i32_1 : i32, i32, i32
  }
  func.func @transform_8(%arg0: i32) -> (i32, i32, i32) {
    %c0_i32 = arith.constant 0 : i32
    %c0_i32_0 = arith.constant 0 : i32
    %c0_i32_1 = arith.constant 0 : i32
    %c0_i32_2 = arith.constant 0 : i32
    return %c0_i32, %c0_i32_0, %c0_i32_1 : i32, i32, i32
  }
  func.func @transform_9(%arg0: i32) -> (i32, i32, i32) {
    %c0_i32 = arith.constant 0 : i32
    %c0_i32_0 = arith.constant 0 : i32
    %c0_i32_1 = arith.constant 0 : i32
    %c0_i32_2 = arith.constant 0 : i32
    return %c0_i32, %c0_i32_0, %c0_i32_1 : i32, i32, i32
  }
  func.func @transform_10(%arg0: i32) -> (i32, i32, i32) {
    %c0_i32 = arith.constant 0 : i32
    %c0_i32_0 = arith.constant 0 : i32
    %c0_i32_1 = arith.constant 0 : i32
    %c0_i32_2 = arith.constant 0 : i32
    return %c0_i32, %c0_i32_0, %c0_i32_1 : i32, i32, i32
  }
  func.func @transform_11(%arg0: i32) -> (i32, i32, i32) {
    %c0_i32 = arith.constant 0 : i32
    %c0_i32_0 = arith.constant 0 : i32
    %c0_i32_1 = arith.constant 0 : i32
    %c0_i32_2 = arith.constant 0 : i32
    return %c0_i32, %c0_i32_0, %c0_i32_1 : i32, i32, i32
  }
  func.func @transform_12(%arg0: i32) -> (i32, i32, i32) {
    %c0_i32 = arith.constant 0 : i32
    %c0_i32_0 = arith.constant 0 : i32
    %c0_i32_1 = arith.constant 0 : i32
    %c0_i32_2 = arith.constant 0 : i32
    return %c0_i32, %c0_i32_0, %c0_i32_1 : i32, i32, i32
  }
  func.func @transform_13(%arg0: i32) -> (i32, i32, i32) {
    %c0_i32 = arith.constant 0 : i32
    %c0_i32_0 = arith.constant 0 : i32
    %c0_i32_1 = arith.constant 0 : i32
    %c0_i32_2 = arith.constant 0 : i32
    return %c0_i32, %c0_i32_0, %c0_i32_1 : i32, i32, i32
  }
  func.func @transform_14(%arg0: i32) -> (i32, i32, i32) {
    %c0_i32 = arith.constant 0 : i32
    %c0_i32_0 = arith.constant 0 : i32
    %c0_i32_1 = arith.constant 0 : i32
    %c0_i32_2 = arith.constant 0 : i32
    return %c0_i32, %c0_i32_0, %c0_i32_1 : i32, i32, i32
  }
  func.func @transform_15(%arg0: i32) -> (i32, i32, i32) {
    %c0_i32 = arith.constant 0 : i32
    %c0_i32_0 = arith.constant 0 : i32
    %c0_i32_1 = arith.constant 0 : i32
    %c0_i32_2 = arith.constant 0 : i32
    return %c0_i32, %c0_i32_0, %c0_i32_1 : i32, i32, i32
  }
  func.func @transform_16(%arg0: i32) -> (i32, i32) {
    %c0_i32 = arith.constant 0 : i32
    %c0_i32_0 = arith.constant 0 : i32
    %c0_i32_1 = arith.constant 0 : i32
    return %c0_i32, %c0_i32_0 : i32, i32
  }
  func.func @transform_17(%arg0: i32) -> (i32, i32) {
    %c0_i32 = arith.constant 0 : i32
    %c0_i32_0 = arith.constant 0 : i32
    %c0_i32_1 = arith.constant 0 : i32
    return %c0_i32, %c0_i32_0 : i32, i32
  }
  func.func @transform_18(%arg0: i32) -> (i32, i32) {
    %c0_i32 = arith.constant 0 : i32
    %c0_i32_0 = arith.constant 0 : i32
    %c0_i32_1 = arith.constant 0 : i32
    return %c0_i32, %c0_i32_0 : i32, i32
  }
  func.func @transform_19(%arg0: i32) -> (i32, i32) {
    %c0_i32 = arith.constant 0 : i32
    %c0_i32_0 = arith.constant 0 : i32
    %c0_i32_1 = arith.constant 0 : i32
    return %c0_i32, %c0_i32_0 : i32, i32
  }
  func.func @transform_20(%arg0: i32) -> (i32, i32, i32) {
    %c0_i32 = arith.constant 0 : i32
    %c0_i32_0 = arith.constant 0 : i32
    %c0_i32_1 = arith.constant 0 : i32
    return %arg0, %c0_i32, %c0_i32_0 : i32, i32, i32
  }
}

</mosaic_0001>

<bundles_post_ra>
// kernel: fused_eeg_forward.3
= control target key start
LH: loop header
LB: loop body
LE: loop exit
PB: predicated region body
PF: predicated region fallthrough
CT: control target
= control target key end

     0   :  { %s2447_s30 = smov 0   ;;  %s3193_s0 = inlined_call_operand.vmem [shape: f32[2,8,48], index: 0, kind: input, shape index: {}]   ;;  %s3194_s1 = inlined_call_operand.vmem [shape: f32[72,1], index: 1, kind: input, shape index: {}]   ;;  %s3195_s2 = inlined_call_operand.vmem [shape: bf16[64,8], index: 2, kind: input, shape index: {}]   ;;  %s3196_s3 = inlined_call_operand.vmem [shape: f32[64,1], index: 3, kind: input, shape index: {}]   ;;  %s3197_s4 = inlined_call_operand.vmem [shape: f32[40,24], index: 4, kind: input, shape index: {}]   ;;  %s3198_s5 = inlined_call_operand.vmem [shape: f32[64,5], index: 5, kind: input, shape index: {}]   ;;  %s3199_s6 = inlined_call_operand.vmem [shape: bf16[64,64], index: 6, kind: input, shape index: {}]   ;;  %s3200_s7 = inlined_call_operand.vmem [shape: f32[64,1], index: 7, kind: input, shape index: {}]   ;;  %s3201_s8 = inlined_call_operand.vmem [shape: f32[20,4], index: 8, kind: input, shape index: {}]   ;;  %s3202_s9 = inlined_call_operand.vmem [shape: f32[2,4,128], index: 9, kind: output, shape index: {}]  }
   0x1   :  { %3228 = sst [smem:[#allocation10_spill]] %s3193_s0 }
   0x2   :  { %3229 = sst [smem:[#allocation11_spill]] %s3195_s2 }
   0x3   :  { %3230 = sst [smem:[#allocation12_spill]] %s3196_s3 }
   0x4   :  { %3231 = sst [smem:[#allocation13_spill]] %s3197_s4 }
   0x5   :  { %3232 = sst [smem:[#allocation14_spill]] %s3198_s5 }
   0x6   :  { %3233 = sst [smem:[#allocation15_spill]] %s3199_s6 }
   0x7   :  { %3234 = sst [smem:[#allocation16_spill]] %s3200_s7 }
   0x8   :  { %3235 = sst [smem:[#allocation17_spill]] %s3201_s8 }
   0x9   :  { %3236 = sst [smem:[#allocation18_spill]] %s3202_s9 }
   0xa LB: > { %3237 = sst [smem:[#allocation2_spill]] %s2382_s30  ;;  %s2064_s10 = sadd.s32 4294967295, %s2382_s30   ;;  %s2382_s30 = sphi %s2447_s30, %s19_s30  }
   0xb   : > { %p2068_p0 = scmp.ge.s32.totalorder %s2382_s30, 1  ;;  %p286_p1 = scmp.lt.s32.totalorder %s2382_s30, 3 }
   0xd   : > { %p287_p2 = pnand %p2068_p0, %p286_p1 }
   0xf   : > { %290 = sbr.rel (%p287_p2) target bundleno = 1187 (0x4a3), region = 56 }
  0x14   : > { %v330_v0 = vld [vmem:[%s3194_s1] sm:$0xff]  ;;  %v331_v7 = vld [vmem:[%s3194_s1 + $0x8] sm:$0xff]  ;;  %v332_v15 = vld [vmem:[%s3194_s1 + $0x10] sm:$0xff]  ;;  %p320_p3 = scmp.lt.s32.totalorder %s2064_s10, 1  ;;  %s3240_s0 = sld [smem:[#allocation10_spill]]  ;;  %vm478_vm0 = vcmask 1043456  }
  0x15   : > { %2143 = vpush %v330_v0  ;;  %v393_v1 = vrot.slane %v330_v0, 1  ;;  %v403_v2 = vrot.slane %v330_v0, 2  ;;  %v413_v3 = vrot.slane %v330_v0, 3  ;;  %v423_v4 = vrot.slane %v330_v0, 4  ;;  %v333_v23 = vld [vmem:[%s3194_s1 + $0x18] sm:$0xff]  ;;  %v334_v32 = vld [vmem:[%s3194_s1 + $0x20] sm:$0xff] }
  0x16   : > { %v433_v5 = vrot.slane %v330_v0, 5  ;;  %v443_v6 = vrot.slane %v330_v0, 6  ;;  %v453_v8 = vrot.slane %v330_v0, 7  ;;  %v495_v9 = vrot.slane %v331_v7, 1  ;;  %v335_v39 = vld [vmem:[%s3194_s1 + $0x28] sm:$0xff]  ;;  %s3271_s10 = smov (!%p320_p3, %s2064_s10), 1 }
  0x17   : > { %2145 = vpush %v393_v1  ;;  %v501_v10 = vrot.slane %v331_v7, 2  ;;  %v511_v11 = vrot.slane %v331_v7, 3  ;;  %v521_v12 = vrot.slane %v331_v7, 4  ;;  %v531_v13 = vrot.slane %v331_v7, 5  ;;  %3238 = sst [smem:[#allocation3_spill]] %s3271_s10  ;;  %s2069_s26 = sshll.u32 %s3271_s10, 3 }
  0x18   : > { %2147 = vpush %v403_v2  ;;  %v541_v14 = vrot.slane %v331_v7, 6  ;;  %v551_v16 = vrot.slane %v331_v7, 7  ;;  %v571_v17 = vrot.slane %v332_v15, 1  ;;  %v601_v18 = vrot.slane %v332_v15, 2  ;;  %v2504_v48 = vld [vmem:[%s3194_s1 + $0x30] sm:$0xff]  ;;  %s3203_s12 = smov 127  }
  0x19   : > { %2149 = vpush %v413_v3  ;;  %v607_v19 = vrot.slane %v332_v15, 3  ;;  %v617_v20 = vrot.slane %v332_v15, 4  ;;  %v627_v21 = vrot.slane %v332_v15, 5  ;;  %v637_v22 = vrot.slane %v332_v15, 6  ;;  %s3205_s17 = smov 125   ;;  %s3213_s9 = smov 124  }
  0x1a   : > { %2151 = vpush %v423_v4  ;;  %v647_v24 = vrot.slane %v332_v15, 7  ;;  %v667_v25 = vrot.slane %v333_v23, 1  ;;  %v677_v26 = vrot.slane %v333_v23, 2  ;;  %v707_v27 = vrot.slane %v333_v23, 3  ;;  %s323_s13 = scalar_lea.vmem %s3240_s0, %s2069_s26  ;;  %s3221_s6 = smov 122  }
  0x1b   : > { %2153 = vpush %v433_v5  ;;  %v713_v28 = vrot.slane %v333_v23, 4  ;;  %v723_v29 = vrot.slane %v333_v23, 5  ;;  %v733_v30 = vrot.slane %v333_v23, 6  ;;  %v743_v31 = vrot.slane %v333_v23, 7  ;;  %v2506_v49 = vld [vmem:[%s323_s13] sm:$0xff]  ;;  %s3242_s4 = smov 127  }
  0x1c   : > { %2155 = vpush %v443_v6  ;;  %v763_v33 = vrot.slane %v334_v32, 1  ;;  %v773_v34 = vrot.slane %v334_v32, 2  ;;  %v783_v35 = vrot.slane %v334_v32, 3  ;;  %v813_v36 = vrot.slane %v334_v32, 4  ;;  %s3226_s5 = smov 121  }
  0x1d   : > { %2157 = vpush %v453_v8  ;;  %v819_v37 = vrot.slane %v334_v32, 5  ;;  %v829_v38 = vrot.slane %v334_v32, 6  ;;  %v839_v40 = vrot.slane %v334_v32, 7  ;;  %v859_v41 = vrot.slane %v335_v39, 1 }
  0x1e   : > { %2159 = vpush %v331_v7  ;;  %v869_v42 = vrot.slane %v335_v39, 2  ;;  %v879_v43 = vrot.slane %v335_v39, 3  ;;  %v889_v44 = vrot.slane %v335_v39, 4  ;;  %v919_v45 = vrot.slane %v335_v39, 5 }
  0x1f   : > { %2161 = vpush %v495_v9  ;;  %v925_v46 = vrot.slane %v335_v39, 6  ;;  %v935_v47 = vrot.slane %v335_v39, 7  ;;  %v955_v56 = vrot.slane %v2504_v48, 1  ;;  %v965_v62 = vrot.slane %v2504_v48, 2 }
  0x20   : > { %2163 = vpush %v501_v10  ;;  %v975_v63 = vrot.slane %v2504_v48, 3  ;;  %v985_v0 = vrot.slane %v2504_v48, 4  ;;  %v995_v1 = vrot.slane %v2504_v48, 5  ;;  %v1025_v3 = vrot.slane %v2504_v48, 6  ;;  %v2563_v10 = vld [vmem:[%s3194_s1 + $0x38] sm:$0xff] }
  0x21   : > { %2165 = vpush %v511_v11  ;;  %v1031_v4 = vrot.slane %v2504_v48, 7  ;;  %vm474_vm1 = vcmask 64512   ;;  %vm1333_vm3 = vcmask 326656   ;;  %vm1839_vm11 = vcmask 523264  }
  0x22   : > { %2167 = vpush %v521_v12  ;;  %vm1961_vm12 = vcmask 162816  }
  0x23   : > { %2169 = vpush %v531_v13 }
  0x24   : > { %2171 = vpush %v541_v14 }
  0x25   : > { %2173 = vpush %v551_v16  ;;  %v1051_v16 = vrot.slane %v2563_v10, 1 }
  0x26   : > { %2175 = vpush %v332_v15 }
  0x27   : > { %2177 = vpush %v571_v17 }
  0x28   : > { %2179 = vpush %v601_v18 }
  0x29   : > { %2181 = vpush %v607_v19 }
  0x2a   : > { %2183 = vpush %v617_v20 }
  0x2b   : > { %2185 = vpush %v627_v21 }
  0x2c   : > { %2187 = vpush %v637_v22 }
  0x2d   : > { %2189 = vpush %v647_v24  ;;  %v1061_v24 = vrot.slane %v2563_v10, 2 }
  0x2e   : > { %2191 = vpush %v333_v23 }
  0x2f   : > { %2193 = vpush %v667_v25  ;;  %v1071_v25 = vrot.slane %v2563_v10, 3 }
  0x30   : > { %2195 = vpush %v677_v26 }
  0x31   : > { %2197 = vpush %v707_v27 }
  0x32   : > { %2199 = vpush %v713_v28 }
  0x33   : > { %2201 = vpush %v723_v29 }
  0x34   : > { %2203 = vpush %v733_v30 }
  0x35   : > { %2205 = vpush %v743_v31  ;;  %v1081_v31 = vrot.slane %v2563_v10, 4 }
  0x36   : > { %2207 = vpush %v334_v32  ;;  %v1091_v32 = vrot.slane %v2563_v10, 5 }
  0x37   : > { %2209 = vpush %v763_v33  ;;  %v1101_v33 = vrot.slane %v2563_v10, 6 }
  0x38   : > { %2211 = vpush %v773_v34  ;;  %v338_v34 = vld [vmem:[%s3194_s1 + $0x40] sm:$0xff] }
  0x39   : > { %2213 = vpush %v783_v35 }
  0x3a   : > { %2215 = vpush %v813_v36 }
  0x3b   : > { %2217 = vpush %v819_v37  ;;  %v1131_v37 = vrot.slane %v2563_v10, 7 }
  0x3c   : > { %2219 = vpush %v829_v38 }
  0x3d   : > { %2221 = vpush %v839_v40 }
  0x3e   : > { %2223 = vpush %v335_v39  ;;  %v1147_v39 = vrot.slane %v338_v34, 1 }
  0x3f   : > { %2225 = vpush %v859_v41 }
  0x40   : > { %2227 = vpush %v869_v42 }
  0x41   : > { %2229 = vpush %v879_v43  ;;  %v1157_v43 = vrot.slane %v338_v34, 2 }
  0x42   : > { %2231 = vpush %v889_v44 }
  0x43   : > { %2233 = vpush %v919_v45 }
  0x44   : > { %2235 = vpush %v925_v46 }
  0x45   : > { %2237 = vpush %v935_v47 }
  0x46   : > { %s2479_s23 = spop %2143  ;;  %2239 = vpush %v2504_v48 }
  0x47   : > { %3239 = sst [smem:[#allocation4_spill]] %s2479_s23  ;;  %2241 = vpush %v955_v56 }
  0x48   : > { %s2481_s24 = spop %2145  ;;  %2243 = vpush %v965_v62 }
  0x49   : > { %s2483_s25 = spop %2147  ;;  %2245 = vpush %v975_v63  ;;  %v395_v46 = vstv %s2481_s24 }
  0x4a   : > { %s2486_s27 = spop %2149  ;;  %2247 = vpush %v985_v0  ;;  %v405_v56 = vstv %s2483_s25 }
  0x4b   : > { %s2488_s28 = spop %2151  ;;  %2249 = vpush %v995_v1  ;;  %v415_v0 = vstv %s2486_s27 }
  0x4c   : > { %s2490_s29 = spop %2153  ;;  %2251 = vpush %v1025_v3  ;;  %v417_v3 = vmul.f32 %v415_v0, %v2506_v49 }
  0x4d   : > { %s2495_s14 = spop %2155  ;;  %2253 = vpush %v1031_v4 }
  0x4e   : > { %s2497_s15 = spop %2157  ;;  %2255 = vpush %v2563_v10 }
  0x4f   : > { %s2499_s16 = spop %2159  ;;  %2257 = vpush %v1051_v16 }
  0x50   : > { %s2508_s19 = spop %2161  ;;  %2259 = vpush %v1061_v24 }
  0x51   : > { %s2164_s20 = spop %2163  ;;  %2261 = vpush %v1071_v25  ;;  %v455_v25 = vstv %s2497_s15 }
  0x52   : > { %v503_v50 = vstv %s2164_s20  ;;  %s2166_s21 = spop %2165  ;;  %2263 = vpush %v1081_v31 }
  0x53   : > { %s2168_s22 = spop %2167  ;;  %v505_v51 = vmul.f32 %v503_v50, %v2506_v49  ;;  %v513_v57 = vstv %s2166_s21  ;;  %2265 = vpush %v1091_v32  ;;  %v397_v50 = vmul.f32 %v395_v46, %v2506_v49  ;;  %v465_v32 = vstv %s2499_s16 }
  0x54   : > { %v523_v52 = vstv %s2168_s22  ;;  %s2170_s26 = spop %2169  ;;  %s3207_s22 = smov 123   ;;  %v515_v59 = vmul.f32 %v513_v57, %v2506_v49  ;;  %2267 = vpush %v1101_v33 }
  0x55   : > { %s2172_s11 = spop %2171  ;;  %v525_v53 = vmul.f32 %v523_v52, %v2506_v49  ;;  %507 = vrot.lane.b32.xlu0 %v505_v51, %s3203_s12  ;;  %v533_v58 = vstv %s2170_s26  ;;  %s3211_s26 = smov 126   ;;  %2269 = vpush %v1131_v37  ;;  %v1167_v51 = vrot.slane %v338_v34, 3  ;;  %v1177_v52 = vrot.slane %v338_v34, 4 }
  0x56   : > { %v543_v54 = vstv %s2172_s11  ;;  %s2514_s13 = spop %2173  ;;  %v535_v60 = vmul.f32 %v533_v58, %v2506_v49  ;;  %2271 = vpush %v338_v34 }
  0x57   : > { %v545_v55 = vmul.f32 %v543_v54, %v2506_v49  ;;  %527 = vrot.lane.b32.xlu1 %v525_v53, %s3205_s17  ;;  %s2518_s18 = spop %2175  ;;  %v553_v61 = vstv %s2514_s13  ;;  %2273 = vpush %v1147_v39  ;;  %v1187_v53 = vrot.slane %v338_v34, 5  ;;  %v497_v39 = vstv %s2508_s19 }
  0x58   : > { %s2521_s20 = spop %2177  ;;  %v555_v2 = vmul.f32 %v553_v61, %v2506_v49  ;;  %v563_v11 = vstv %s2518_s18  ;;  %s3224_s18 = smov 120   ;;  %2275 = vpush %v1157_v43  ;;  %v1207_v61 = vrot.slane %v338_v34, 7 }
  0x59   : > { %547 = vrot.lane.b32.xlu2 %v545_v55, %s3207_s22  ;;  %s2524_s11 = spop %2179  ;;  %v565_v13 = vmul.f32 %v563_v11, %v2506_v49  ;;  %v573_v14 = vstv %s2521_s20  ;;  %2277 = vpush %v1167_v51 }
  0x5a   : > { %3241 = sst [smem:[#allocation5_spill]] %s2524_s11  ;;  %s2526_s12 = spop %2181  ;;  %v575_v15 = vmul.f32 %v573_v14, %v2506_v49  ;;  %2279 = vpush %v1177_v52 }
  0x5b   : > { %s2530_s17 = spop %2183  ;;  %v609_v17 = vstv %s2526_s12  ;;  %s3250_s11 = smov 122   ;;  %2281 = vpush %v1187_v53 }
  0x5c   : > { %s2532_s0 = spop %2185  ;;  %v611_v20 = vmul.f32 %v609_v17, %v2506_v49  ;;  %v619_v27 = vstv %s2530_s17 }
  0x5d   : > { %s2534_s21 = spop %2187  ;;  %517 = vrot.lane.b32.xlu0 %v515_v59, %s3211_s26  ;;  %v629_v28 = vstv %s2532_s0  ;;  %v621_v29 = vmul.f32 %v619_v27, %v2506_v49  ;;  %s3253_s0 = smov 120   ;;  %v407_v59 = vmul.f32 %v405_v56, %v2506_v49 }
  0x5e   : > { %s2538_s22 = spop %2189  ;;  %v631_v30 = vmul.f32 %v629_v28, %v2506_v49  ;;  %v639_v35 = vstv %s2534_s21  ;;  %v457_v28 = vmul.f32 %v455_v25, %v2506_v49 }
  0x5f   : > { %s2540_s30 = spop %2191  ;;  %537 = vrot.lane.b32.xlu1 %v535_v60, %s3213_s9  ;;  %v641_v40 = vmul.f32 %v639_v35, %v2506_v49  ;;  %v649_v44 = vstv %s2538_s22  ;;  %v1197_v60 = vrot.slane %v338_v34, 6  ;;  %v467_v35 = vmul.f32 %v465_v32, %v2506_v49 }
  0x60   : > { %s2545_s10 = spop %2193  ;;  %v651_v47 = vmul.f32 %v649_v44, %v2506_v49  ;;  %v659_v54 = vstv %s2540_s30 }
  0x61   : > { %s2550_s13 = spop %2195  ;;  %v661_v57 = vmul.f32 %v659_v54, %v2506_v49  ;;  %v669_v62 = vstv %s2545_s10  ;;  %2283 = vpush %v1197_v60 }
  0x62   : > { %s2553_s26 = spop %2197  ;;  %2285 = vpush %v1207_v61  ;;  %v671_v1 = vmul.f32 %v669_v62, %v2506_v49  ;;  %v679_v4 = vstv %s2550_s13 }
  0x63   : > { %s2200_s9 = spop %2199 }
  0x64   : > { %v715_v5 = vstv %s2200_s9  ;;  %s2202_s8 = spop %2201  ;;  %s3243_s9 = smov 126  }
  0x65   : > { %v717_v6 = vmul.f32 %v715_v5, %v2506_v49  ;;  %v725_v7 = vstv %s2202_s8  ;;  %557 = vrot.lane.b32.xlu0 %v555_v2, %s3221_s6  ;;  %s2204_s7 = spop %2203  ;;  %s3244_s8 = smov 125  }
  0x66   : > { %v727_v8 = vmul.f32 %v725_v7, %v2506_v49  ;;  %v735_v9 = vstv %s2204_s7  ;;  %s2206_s7 = spop %2205  ;;  %v681_v7 = vmul.f32 %v679_v4, %v2506_v49 }
  0x67   : > { %719 = vrot.lane.b32.xlu2 %v717_v6, %s3242_s4  ;;  %v737_v12 = vmul.f32 %v735_v9, %v2506_v49  ;;  %s2208_s6 = spop %2207  ;;  %v745_v18 = vstv %s2206_s7  ;;  %v425_v6 = vstv %s2488_s28 }
  0x68   : > { %729 = vrot.lane.b32.xlu1 %v727_v8, %s3243_s9  ;;  %s2210_s3 = spop %2209  ;;  %v755_v19 = vstv %s2208_s6  ;;  %v747_v21 = vmul.f32 %v745_v18, %v2506_v49  ;;  %s3246_s6 = smov 124   ;;  %v427_v9 = vmul.f32 %v425_v6, %v2506_v49  ;;  %v445_v18 = vstv %s2495_s14 }
  0x69   : > { %s2577_s2 = spop %2211  ;;  %v757_v22 = vmul.f32 %v755_v19, %v2506_v49  ;;  %v765_v23 = vstv %s2210_s3 }
  0x6a   : > { %s2579_s20 = spop %2213  ;;  %v767_v26 = vmul.f32 %v765_v23, %v2506_v49  ;;  %v775_v36 = vstv %s2577_s2 }
  0x6b   : > { %s2581_s23 = spop %2215  ;;  %v785_v38 = vstv %s2579_s20  ;;  %v777_v41 = vmul.f32 %v775_v36, %v2506_v49  ;;  %s3252_s20 = smov 121  }
  0x6c   : > { %3245 = sst [smem:[#allocation6_spill]] %s2581_s23  ;;  %s2586_s12 = spop %2217  ;;  %v787_v42 = vmul.f32 %v785_v38, %v2506_v49 }
  0x6d   : > { %739 = vrot.lane.b32.xlu0 %v737_v12, %s3244_s8  ;;  %s2589_s7 = spop %2219 }
  0x6f   : > { %567 = vrot.lane.b32.xlu2 %v565_v13, %s3226_s5  ;;  %s2595_s5 = spop %2221  ;;  %v435_v13 = vstv %s2490_s29 }
  0x70   : > { %577 = vrot.lane.b32.xlu1 %v575_v15, %s3224_s18  ;;  %s3247_s18 = smov 123   ;;  %3248 = sst [smem:[#allocation7_spill]] %s2595_s5  ;;  %v437_v15 = vmul.f32 %v435_v13, %v2506_v49 }
  0x71   : > { %s2599_s23 = spop %2223 }
  0x72   : > { %3249 = sst [smem:[#allocation8_spill]] %s2599_s23  ;;  %s2602_s3 = spop %2225 }
  0x73   : > { %s2607_s5 = spop %2227 }
  0x74   : > { %3251 = sst [smem:[#allocation9_spill]] %s2607_s5  ;;  %s2619_s23 = spop %2229 }
  0x75   : > { %613 = vrot.lane.b32.xlu0 %v611_v20, %s3242_s4  ;;  %s2623_s5 = spop %2231 }
  0x76   : > { %s2628_s2 = spop %2233 }
  0x77   : > { %749 = vrot.lane.b32.xlu2 %v747_v21, %s3246_s6  ;;  %s2236_s21 = spop %2235  ;;  %v447_v21 = vmul.f32 %v445_v18, %v2506_v49  ;;  %v709_v18 = vstv %s2553_s26  ;;  %s3255_s26 = sld [smem:[#allocation8_spill]] }
  0x78   : > { %759 = vrot.lane.b32.xlu1 %v757_v22, %s3247_s18  ;;  %v927_v45 = vstv %s2236_s21  ;;  %s2238_s17 = spop %2237 }
  0x79   : > { %v929_v48 = vmul.f32 %v927_v45, %v2506_v49  ;;  %v937_v55 = vstv %s2238_s17  ;;  %s2240_s24 = spop %2239  ;;  %v499_v45 = vmul.f32 %v497_v39, %v2506_v49 }
  0x7a   : > { %v939_v58 = vmul.f32 %v937_v55, %v2506_v49  ;;  %v947_v63 = vstv %s2240_s24  ;;  %s2242_s30 = spop %2241 }
  0x7b   : > { %v949_v2 = vmul.f32 %v947_v63, %v2506_v49  ;;  %s2244_s25 = spop %2243  ;;  %v957_v5 = vstv %s2242_s30 }
  0x7c   : > { %s2246_s22 = spop %2245  ;;  %v959_v8 = vmul.f32 %v957_v5, %v2506_v49  ;;  %v967_v10 = vstv %s2244_s25 }
  0x7d   : > { %769 = vrot.lane.b32.xlu0 %v767_v26, %s3250_s11  ;;  %s2658_s10 = spop %2247  ;;  %v969_v11 = vmul.f32 %v967_v10, %v2506_v49  ;;  %v977_v16 = vstv %s2246_s22  ;;  %v851_v39 = vstv %s3255_s26 }
  0x7e   : > { %s2661_s27 = spop %2249  ;;  %v979_v19 = vmul.f32 %v977_v16, %v2506_v49  ;;  %v987_v23 = vstv %s2658_s10 }
  0x7f   : > { %623 = vrot.lane.b32.xlu2 %v621_v29, %s3243_s9  ;;  %s2665_s21 = spop %2251  ;;  %v989_v26 = vmul.f32 %v987_v23, %v2506_v49  ;;  %v997_v29 = vstv %s2661_s27 }
  0x80   : > { %633 = vrot.lane.b32.xlu1 %v631_v30, %s3244_s8  ;;  %s2254_s13 = spop %2253  ;;  %v999_v33 = vmul.f32 %v997_v29, %v2506_v49 }
  0x81   : > { %v1033_v12 = vstv %s2254_s13  ;;  %s2256_s28 = spop %2255 }
  0x82   : > { %v1035_v14 = vmul.f32 %v1033_v12, %v2506_v49  ;;  %v1043_v17 = vstv %s2256_s28  ;;  %s2258_s29 = spop %2257 }
  0x83   : > { %v1045_v20 = vmul.f32 %v1043_v17, %v2506_v49  ;;  %s2260_s17 = spop %2259  ;;  %v1053_v24 = vstv %s2258_s29 }
  0x84   : > { %s2262_s14 = spop %2261  ;;  %v1055_v27 = vmul.f32 %v1053_v24, %v2506_v49  ;;  %v1063_v31 = vstv %s2260_s17  ;;  %s3254_s17 = sld [smem:[#allocation7_spill]]  ;;  %v831_v24 = vstv %s2589_s7 }
  0x85   : > { %643 = vrot.lane.b32.xlu0 %v641_v40, %s3246_s6  ;;  %s2264_s24 = spop %2263  ;;  %v1065_v34 = vmul.f32 %v1063_v31, %v2506_v49  ;;  %v1073_v38 = vstv %s2262_s14  ;;  %v833_v29 = vmul.f32 %v831_v24, %v2506_v49  ;;  %s3256_s14 = sld [smem:[#allocation9_spill]] }
  0x86   : > { %s2693_s30 = spop %2265  ;;  %v1075_v44 = vmul.f32 %v1073_v38, %v2506_v49 }
  0x87   : > { %779 = vrot.lane.b32.xlu2 %v777_v41, %s3252_s20  ;;  %s2696_s25 = spop %2267 }
  0x88   : > { %789 = vrot.lane.b32.xlu1 %v787_v42, %s3253_s0  ;;  %s2702_s15 = spop %2269  ;;  %v1083_v42 = vstv %s2264_s24  ;;  %s3261_s24 = sld [smem:[#allocation14_spill]] }
  0x89   : > { %s2272_s22 = spop %2271  ;;  %v1085_v46 = vmul.f32 %v1083_v42, %v2506_v49 }
  0x8a   : > { %v1139_v36 = vstv %s2272_s22  ;;  %s2274_s16 = spop %2273  ;;  %v841_v31 = vstv %s3254_s17 }
  0x8b   : > { %v1141_v43 = vmul.f32 %v1139_v36, %v2506_v49  ;;  %s2276_s10 = spop %2275  ;;  %v1149_v51 = vstv %s2274_s16  ;;  %v861_v36 = vstv %s2602_s3  ;;  %v871_v42 = vstv %s3256_s14  ;;  %s3267_s14 = sld [smem:[#allocation3_spill]] }
  0x8c   : > { %v1159_v55 = vstv %s2276_s10  ;;  %s2278_s19 = spop %2277 }
  0x8d   : > { %653 = vrot.lane.b32.xlu0 %v651_v47, %s3247_s18  ;;  %v1169_v61 = vstv %s2278_s19  ;;  %s2280_s27 = spop %2279 }
  0x8e   : > { %s2282_s13 = spop %2281 }
  0x8f   : > { %399 = vrot.lane.b32.xlu2 %v397_v50, %s3242_s4  ;;  %v1093_v50 = vstv %s2693_s30  ;;  %v1189_v10 = vstv %s2282_s13  ;;  %s3264_s13 = sld [smem:[#allocation16_spill]] }
  0x90   : > { %931 = vrot.lane.b32.xlu1 %v929_v48, %s3242_s4  ;;  %v1191_v16 = vmul.f32 %v1189_v10, %v2506_v49 }
  0x92   : > { %s2284_s28 = spop %2283 }
  0x93   : > { %s2286_s29 = spop %2285 }
  0x95   : > { %663 = vrot.lane.b32.xlu0 %v661_v57, %s3250_s11  ;;  %v1095_v57 = vmul.f32 %v1093_v50, %v2506_v49 }
  0x97   : > { %409 = vrot.lane.b32.xlu2 %v407_v59, %s3243_s9  ;;  %v1161_v59 = vmul.f32 %v1159_v55, %v2506_v49 }
  0x98   : > { %941 = vrot.lane.b32.xlu1 %v939_v58, %s3243_s9  ;;  %v1151_v58 = vmul.f32 %v1149_v51, %v2506_v49 }
  0x9d   : > { %673 = vrot.lane.b32.xlu0 %v671_v1, %s3252_s20  ;;  %v1171_v1 = vmul.f32 %v1169_v61, %v2506_v49 }
  0x9f   : > { %419 = vrot.lane.b32.xlu2 %v417_v3, %s3244_s8  ;;  %v1103_v3 = vstv %s2696_s25  ;;  %s3262_s25 = sld [smem:[#allocation6_spill]] }
  0xa0   : > { %951 = vrot.lane.b32.xlu1 %v949_v2, %s3244_s8  ;;  %v1179_v2 = vstv %s2280_s27  ;;  %v1105_v6 = vmul.f32 %v1103_v3, %v2506_v49 }
  0xa1   : > { %v1181_v5 = vmul.f32 %v1179_v2, %v2506_v49 }
  0xa5   : > { %683 = vrot.lane.b32.xlu0 %v681_v7, %s3253_s0 }
  0xa7   : > { %429 = vrot.lane.b32.xlu2 %v427_v9, %s3246_s6 }
  0xa8   : > { %961 = vrot.lane.b32.xlu1 %v959_v8, %s3246_s6  ;;  %v1199_v8 = vstv %s2284_s28 }
  0xa9   : > { %v1201_v13 = vmul.f32 %v1199_v8, %v2506_v49 }
  0xad   : > { %971 = vrot.lane.b32.xlu0 %v969_v11, %s3247_s18 }
  0xaf   : > { %439 = vrot.lane.b32.xlu2 %v437_v15, %s3247_s18 }
  0xb0   : > { %1037 = vrot.lane.b32.xlu1 %v1035_v14, %s3242_s4  ;;  %v1209_v14 = vstv %s2286_s29 }
  0xb3   : > { %v2684_v22 = vpop.permute.xlu2 %547 }
  0xb5   : > { %981 = vrot.lane.b32.xlu0 %v979_v19, %s3250_s11  ;;  %v1211_v19 = vmul.f32 %v1209_v14, %v2506_v49 }
  0xb7   : > { %449 = vrot.lane.b32.xlu2 %v447_v21, %s3250_s11  ;;  %v711_v21 = vmul.f32 %v709_v18, %v2506_v49 }
  0xb8   : > { %1047 = vrot.lane.b32.xlu1 %v1045_v20, %s3243_s9 }
  0xbd   : > { %991 = vrot.lane.b32.xlu0 %v989_v26, %s3252_s20 }
  0xbf   : > { %459 = vrot.lane.b32.xlu2 %v457_v28, %s3252_s20 }
  0xc0   : > { %1057 = vrot.lane.b32.xlu1 %v1055_v27, %s3244_s8  ;;  %v821_v27 = vstv %s2586_s12  ;;  %s3257_s12 = sld [smem:[#allocation5_spill]] }
  0xc1   : > { %v2700_v30 = vpop.permute.xlu2 %719 }
  0xc2   : > { %v722_v25 = vadd.f32 %v2700_v30, %v711_v21 }
  0xc5   : > { %1001 = vrot.lane.b32.xlu0 %v999_v33, %s3253_s0  ;;  %v823_v33 = vmul.f32 %v821_v27, %v2506_v49 }
  0xc7   : > { %469 = vrot.lane.b32.xlu2 %v467_v35, %s3253_s0  ;;  %v508_v37 = vpop.permute.xlu0 %507  ;;  %v843_v35 = vmul.f32 %v841_v31, %v2506_v49 }
  0xc8   : > { %1067 = vrot.lane.b32.xlu1 %v1065_v34, %s3246_s6  ;;  %v510_v47 = vadd.f32 %v508_v37, %v499_v45 }
  0xc9   : > { %v568_v40 = vpop.permute.xlu2 %567  ;;  %v528_v41 = vpop.permute.xlu1 %527 }
  0xcd   : > { %1143 = vrot.lane.b32.xlu0 %v1141_v43, %s3242_s4 }
  0xcf   : > { %1077 = vrot.lane.b32.xlu2 %v1075_v44, %s3247_s18  ;;  %v518_v48 = vpop.permute.xlu0 %517  ;;  %v853_v44 = vmul.f32 %v851_v39, %v2506_v49  ;;  %v921_v39 = vstv %s2628_s2  ;;  %s3266_s2 = sld [smem:[#allocation17_spill]] }
  0xd0   : > { %1087 = vrot.lane.b32.xlu1 %v1085_v46, %s3250_s11  ;;  %v520_v52 = vadd.f32 %v518_v48, %v510_v47  ;;  %v873_v46 = vmul.f32 %v871_v42, %v2506_v49  ;;  %v891_v48 = vstv %s2623_s5  ;;  %s3258_s5 = sld [smem:[#allocation4_spill]] }
  0xd1   : > { %v2720_v53 = vpop.permute.xlu2 %749  ;;  %v538_v54 = vpop.permute.xlu1 %537 }
  0xd2   : > { %v530_v56 = vadd.f32 %v528_v41, %v520_v52  ;;  %v863_v41 = vmul.f32 %v861_v36, %v2506_v49  ;;  %v881_v52 = vstv %s2619_s23  ;;  %s3268_s23 = sld [smem:[#allocation18_spill]] }
  0xd4   : > { %v540_v60 = vadd.f32 %v538_v54, %v530_v56  ;;  %v893_v54 = vmul.f32 %v891_v48, %v2506_v49  ;;  %v883_v56 = vmul.f32 %v881_v52, %v2506_v49 }
  0xd5   : > { %1097 = vrot.lane.b32.xlu0 %v1095_v57, %s3252_s20 }
  0xd6   : > { %v550_v0 = vadd.f32 %v2684_v22, %v540_v60  ;;  %v389_v8 = vstv %s3258_s5 }
  0xd7   : > { %1153 = vrot.lane.b32.xlu2 %v1151_v58, %s3243_s9  ;;  %v558_v62 = vpop.permute.xlu0 %557 }
  0xd8   : > { %1163 = vrot.lane.b32.xlu1 %v1161_v59, %s3244_s8  ;;  %v560_v7 = vadd.f32 %v558_v62, %v550_v0  ;;  %v603_v62 = vstv %s3257_s12  ;;  %s2070_s12 = sshll.u32 %s3267_s14, 2 }
  0xd9   : > { %v2728_v63 = vpop.permute.xlu2 %623  ;;  %s327_s7 = scalar_lea.vmem %s3268_s23, %s2070_s12 }
  0xda   : > { %v730_v4 = vpop.permute.xlu1 %729  ;;  %v570_v12 = vadd.f32 %v568_v40, %v560_v7 }
  0xdb   : > { %v732_v32 = vadd.f32 %v730_v4, %v722_v25 }
  0xdd   : > { %1173 = vrot.lane.b32.xlu0 %v1171_v1, %s3246_s6  ;;  %v605_v1 = vmul.f32 %v603_v62, %v2506_v49 }
  0xdf   : > { %1107 = vrot.lane.b32.xlu2 %v1105_v6, %s3253_s0  ;;  %v740_v9 = vpop.permute.xlu0 %739 }
  0xe0   : > { %1183 = vrot.lane.b32.xlu1 %v1181_v5, %s3247_s18  ;;  %v742_v34 = vadd.f32 %v740_v9, %v732_v32 }
  0xe1   : > { %v780_v11 = vpop.permute.xlu2 %779 }
  0xe2   : > { %v578_v15 = vpop.permute.xlu1 %577  ;;  %v752_v37 = vadd.f32 %v2720_v53, %v742_v34 }
  0xe3   : > { %v580_v17 = vadd.f32 %v578_v15, %v570_v12 }
  0xe5   : > { %1203 = vrot.lane.b32.xlu0 %v1201_v13, %s3252_s20  ;;  %v581_v20 = vpack.c.bf16 %v580_v17, %v580_v17  ;;  %v391_v13 = vmul.f32 %v389_v8, %v2506_v49 }
  0xe7   : > { %1193 = vrot.lane.b32.xlu2 %v1191_v16, %s3250_s11  ;;  %v586_v22 = vsel %vm478_vm0, %v581_v20, 0  ;;  %v614_v23 = vpop.permute.xlu0 %613  ;;  %v2392_v16 = vmov 0  }
  0xe8   : > { %1213 = vrot.lane.b32.xlu1 %v1211_v19, %s3253_s0  ;;  %595 = vmatpush.bf16.msra.mxu2 %v586_v22  ;;  %v616_v3 = vadd.f32 %v614_v23, %v605_v1 }
  0xe9   : > { %v2749_v26 = vpop.permute.xlu2 %399  ;;  %2309 = vset.pattern.permute.xlu1 %v2392_v16  ;;  %2311 = vset.pattern.permute.xlu0 %v2392_v16 }
  0xea   : > { %v760_v28 = vpop.permute.xlu1 %759  ;;  %v626_v6 = vadd.f32 %v2728_v63, %v616_v3  ;;  %2310 = vset.pattern.permute.xlu2 %v2392_v16  ;;  %v402_v63 = vadd.f32 %v2749_v26, %v391_v13  ;;  %v1133_v13 = vstv %s2702_s15 }
  0xeb   : > { %v762_v43 = vadd.f32 %v760_v28, %v752_v37 }
  0xed   : > { %835 = vrot.lane.b32.xlu0 %v833_v29, %s3243_s9 }
  0xef   : > { %825 = vrot.lane.b32.xlu2 %v823_v33, %s3242_s4  ;;  %v770_v30 = vpop.permute.xlu0 %769 }
  0xf0   : > { %845 = vrot.lane.b32.xlu1 %v843_v35, %s3244_s8  ;;  %v772_v45 = vadd.f32 %v770_v30, %v762_v43  ;;  %v923_v43 = vmul.f32 %v921_v39, %v2506_v49 }
  0xf1   : > { %v410_v38 = vpop.permute.xlu2 %409 }
  0xf2   : > { %v634_v40 = vpop.permute.xlu1 %633  ;;  %v782_v51 = vadd.f32 %v780_v11, %v772_v45  ;;  %v412_v18 = vadd.f32 %v410_v38, %v402_v63 }
  0xf3   : > { %v636_v7 = vadd.f32 %v634_v40, %v626_v6 }
  0xf5   : > { %865 = vrot.lane.b32.xlu0 %v863_v41, %s3247_s18  ;;  %s3259_s18 = sld [smem:[#allocation11_spill]] }
  0xf7   : > { %855 = vrot.lane.b32.xlu2 %v853_v44, %s3246_s6  ;;  %v644_v47 = vpop.permute.xlu0 %643 }
  0xf8   : > { %875 = vrot.lane.b32.xlu1 %v873_v46, %s3250_s11  ;;  %v646_v10 = vadd.f32 %v644_v47, %v636_v7  ;;  %s3263_s11 = sld [smem:[#allocation13_spill]] }
  0xf9   : > { %v420_v50 = vpop.permute.xlu2 %419 }
  0xfa   : > { %v790_v53 = vpop.permute.xlu1 %789  ;;  %v422_v21 = vadd.f32 %v420_v50, %v412_v18 }
  0xfb   : > { %v792_v55 = vadd.f32 %v790_v53, %v782_v51  ;;  %v340_v0 = vld [vmem:[%s3259_s18 + $0x4] sm:$0xf]  ;;  %v342_v24 = vld [vmem:[%s3259_s18 + $0xc] sm:$0xf]  ;;  %v341_v32 = vld [vmem:[%s3259_s18 + $0x8] sm:$0xf] }
  0xfc   : > { %2072 = vmatmul.msk.bf16.vlgmr.msra.gmra.mxu2 %vm474_vm1, %v340_v0  ;;  %v339_v41 = vld [vmem:[%s3259_s18] sm:$0xf]  ;;  %v344_v7 = vld [vmem:[%s3259_s18 + $0x14] sm:$0xf] }
  0xfd   : > { %v793_v57 = vpack.c.bf16 %v792_v55, %v792_v55  ;;  %895 = vrot.lane.b32.xlu0 %v893_v54, %s3253_s0 }
  0xff   : > { %885 = vrot.lane.b32.xlu2 %v883_v56, %s3252_s20  ;;  %v798_v58 = vsel %vm478_vm0, %v793_v57, 0  ;;  %v654_v59 = vpop.permute.xlu0 %653  ;;  %s3260_s20 = sld [smem:[#allocation12_spill]]  ;;  %v1027_v57 = vstv %s2665_s21 }
 0x100   : > { %807 = vmatpush.bf16.msra.mxu3 %v798_v58  ;;  %v656_v14 = vadd.f32 %v654_v59, %v646_v10 }
 0x101   : > { %v430_v60 = vpop.permute.xlu2 %429 }
 0x102   : > { %v932_v61 = vpop.permute.xlu1 %931  ;;  %v432_v27 = vadd.f32 %v430_v60, %v422_v21  ;;  %v1029_v60 = vmul.f32 %v1027_v57, %v2506_v49 }
 0x103   : > { %2074 = vmatmul.msk.bf16.vlgmr.msra.gmra.mxu3 %vm474_vm1, %v342_v24  ;;  %v934_v44 = vadd.f32 %v932_v61, %v923_v43  ;;  %v815_v43 = vstv %s3262_s25  ;;  %s3265_s25 = sld [smem:[#allocation15_spill]] }
 0x105   : > { %v347_v12 = vld [vmem:[%s3260_s20] sm:$0xff]  ;;  %v348_v25 = vld [vmem:[%s3260_s20 + $0x8] sm:$0xff]  ;;  %v353_v56 = vld [vmem:[%s3260_s20 + $0x30] sm:$0xff] }
 0x106   : > { %1239 = vperm.xlu1 %2309, %v347_v12   ;;  %1244 = vperm.xlu0 %2311, %v348_v25   ;;  %v352_v52 = vld [vmem:[%s3260_s20 + $0x28] sm:$0xff]  ;;  %v349_v62 = vld [vmem:[%s3260_s20 + $0x10] sm:$0xff]  ;;  %v354_v6 = vld [vmem:[%s3260_s20 + $0x38] sm:$0xff] }
 0x107   : > { %v664_v2 = vpop.permute.xlu0 %663  ;;  %1264 = vperm.xlu2 %2310, %v352_v52   ;;  %v350_v10 = vld [vmem:[%s3260_s20 + $0x18] sm:$0xff] }
 0x108   : > { %v666_v17 = vadd.f32 %v664_v2, %v656_v14 }
 0x109   : > { %v440_v4 = vpop.permute.xlu2 %439 }
 0x10a   : > { %v942_v5 = vpop.permute.xlu1 %941  ;;  %v442_v26 = vadd.f32 %v440_v4, %v432_v27 }
 0x10b   : > { %v944_v46 = vadd.f32 %v942_v5, %v934_v44 }
 0x10e   : > { %1269 = vperm.xlu1 %2309, %v353_v56  }
 0x10f   : > { %v674_v9 = vpop.permute.xlu0 %673  ;;  %1249 = vperm.xlu2 %2310, %v349_v62  }
 0x110   : > { %v676_v19 = vadd.f32 %v674_v9, %v666_v17  ;;  %v1135_v17 = vmul.f32 %v1133_v13, %v2506_v49  ;;  %v358_v13 = vld [vmem:[%s3263_s11 + $0x18] sm:$0xff] }
 0x111   : > { %v450_v11 = vpop.permute.xlu2 %449 }
 0x112   : > { %v952_v15 = vpop.permute.xlu1 %951  ;;  %v452_v33 = vadd.f32 %v450_v11, %v442_v26 }
 0x113   : > { %v954_v47 = vadd.f32 %v952_v15, %v944_v46  ;;  %v351_v15 = vld [vmem:[%s3260_s20 + $0x20] sm:$0xff] }
 0x114   : > { %1259 = vperm.xlu0 %2311, %v351_v15   ;;  %v357_v15 = vld [vmem:[%s3263_s11 + $0x10] sm:$0xff] }
 0x116   : > { %1274 = vperm.xlu1 %2309, %v354_v6  }
 0x117   : > { %v684_v20 = vpop.permute.xlu0 %683  ;;  %1254 = vperm.xlu2 %2310, %v350_v10  }
 0x118   : > { %v686_v22 = vadd.f32 %v684_v20, %v676_v19 }
 0x119   : > { %v460_v23 = vpop.permute.xlu2 %459 }
 0x11a   : > { %v962_v28 = vpop.permute.xlu1 %961  ;;  %v687_v29 = vpack.c.bf16 %v686_v22, %v686_v22  ;;  %v462_v35 = vadd.f32 %v460_v23, %v452_v33  ;;  %v2393_v22 = vmov 1   ;;  %v2842_v23 = vld [vmem:[%s3261_s24 + $0x30] sm:$0xff]  ;;  %v345_v33 = vld [vmem:[%s3259_s18 + $0x18] sm:$0xf] }
 0x11b   : > { %v964_v50 = vadd.f32 %v962_v28, %v954_v47  ;;  %v817_v47 = vmul.f32 %v815_v43, %v2506_v49  ;;  %v2887_v49 = vld [vmem:[%s3261_s24 + $0x10] sm:$0xff] }
 0x11c   : > { %v692_v31 = vsel %vm478_vm0, %v687_v29, 0  ;;  %2321 = vset.pattern.permute.xlu0 %v2393_v22 }
 0x11d   : > { %701 = vmatpush.bf16.msrb.mxu2 %v692_v31  ;;  %1464 = vperm.xlu0 %2321, %v2887_v49  }
 0x11e   : > { %2312 = vset.pattern.permute.xlu1 %v2393_v22 }
 0x11f   : > { %v972_v34 = vpop.permute.xlu0 %971  ;;  %1480 = vperm.xlu1 %2312, %v2842_v23   ;;  %2313 = vset.pattern.permute.xlu2 %v2393_v22 }
 0x120   : > { %2073 = vmatmul.msk.bf16.vlgmr.msrb.gmra.mxu2 %vm474_vm1, %v341_v32  ;;  %v974_v53 = vadd.f32 %v972_v34, %v964_v50 }
 0x121   : > { %v470_v30 = vpop.permute.xlu2 %469 }
 0x122   : > { %v472_v36 = vadd.f32 %v470_v30, %v462_v35  ;;  %v1038_v37 = vpop.permute.xlu1 %1037  ;;  %v2394_v35 = vmov 2   ;;  %v2855_v30 = vld [vmem:[%s3261_s24 + $0x38] sm:$0xff] }
 0x123   : > { %v1040_v0 = vadd.f32 %v1038_v37, %v1029_v60  ;;  %1484 = vperm.xlu2 %2313, %v2855_v30  }
 0x124   : > { %v473_v38 = vpack.c.bf16 %v472_v36, %v472_v36 }
 0x125   : > { %2322 = vset.pattern.permute.xlu0 %v2394_v35 }
 0x126   : > { %v480_v40 = vsel %vm478_vm0, %v473_v38, 0  ;;  %1560 = vperm.xlu0 %2322, %v2842_v23  }
 0x127   : > { %489 = vmatpush.bf16.msra.mxu0 %v480_v40  ;;  %v982_v42 = vpop.permute.xlu0 %981  ;;  %2314 = vset.pattern.permute.xlu1 %v2394_v35 }
 0x128   : > { %v984_v55 = vadd.f32 %v982_v42, %v974_v53  ;;  %1564 = vperm.xlu1 %2314, %v2855_v30   ;;  %v2868_v42 = vld [vmem:[%s3261_s24 + $0x28] sm:$0xff] }
 0x129   : > { %v1078_v51 = vpop.permute.xlu2 %1077 }
 0x12a   : > { %2071 = vmatmul.msk.bf16.vlgmr.msra.gmra.mxu0 %vm474_vm1, %v339_v41  ;;  %v1048_v45 = vpop.permute.xlu1 %1047  ;;  %v2863_v41 = vld [vmem:[%s3261_s24 + $0x20] sm:$0xff] }
 0x12b   : > { %v1050_v4 = vadd.f32 %v1048_v45, %v1040_v0  ;;  %1472 = vperm.xlu2 %2313, %v2863_v41  }
 0x12f   : > { %v992_v48 = vpop.permute.xlu0 %991 }
 0x130   : > { %v994_v58 = vadd.f32 %v992_v48, %v984_v55  ;;  %2315 = vset.pattern.permute.xlu1 %v2393_v22 }
 0x131   : > { %v1154_v3 = vpop.permute.xlu2 %1153  ;;  %1476 = vperm.xlu1 %2315, %v2868_v42  }
 0x132   : > { %v1058_v54 = vpop.permute.xlu1 %1057 }
 0x133   : > { %v1060_v8 = vadd.f32 %v1058_v54, %v1050_v4  ;;  %v346_v54 = vld [vmem:[%s3259_s18 + $0x1c] sm:$0xf] }
 0x137   : > { %v1002_v59 = vpop.permute.xlu0 %1001 }
 0x138   : > { %v1004_v61 = vadd.f32 %v1002_v59, %v994_v58  ;;  %v2395_v58 = vmov 3  }
 0x139   : > { %v1108_v63 = vpop.permute.xlu2 %1107  ;;  %2316 = vset.pattern.permute.xlu2 %v2395_v58  ;;  %2317 = vset.pattern.permute.xlu1 %v2394_v35 }
 0x13a   : > { %v1068_v1 = vpop.permute.xlu1 %1067  ;;  %v1005_v2 = vpack.c.bf16 %v1004_v61, %v1004_v61  ;;  %1640 = vperm.xlu2 %2316, %v2842_v23   ;;  %1552 = vperm.xlu1 %2317, %v2863_v41  }
 0x13b   : > { %v1070_v11 = vadd.f32 %v1068_v1, %v1060_v8  ;;  %v2900_v8 = vld [vmem:[%s3261_s24 + $0x18] sm:$0xff] }
 0x13c   : > { %v1010_v5 = vsel %vm478_vm0, %v1005_v2, 0  ;;  %v2396_v2 = vmov 4   ;;  %1548 = vperm.xlu0 %2322, %v2900_v8  }
 0x13d   : > { %1019 = vmatpush.bf16.msrb.mxu3 %v1010_v5  ;;  %v1080_v14 = vadd.f32 %v1078_v51, %v1070_v11  ;;  %v359_v11 = vld [vmem:[%s3263_s11 + $0x20] sm:$0xff] }
 0x13f   : > { %v1144_v9 = vpop.permute.xlu0 %1143 }
 0x140   : > { %2076 = vmatmul.msk.bf16.vlgmr.msrb.gmra.mxu3 %vm474_vm1, %v344_v7  ;;  %v1146_v20 = vadd.f32 %v1144_v9, %v1135_v17  ;;  %v343_v9 = vld [vmem:[%s3259_s18 + $0x10] sm:$0xf]  ;;  %v355_v17 = vld [vmem:[%s3263_s11] sm:$0xff] }
 0x141   : > { %v1194_v31 = vpop.permute.xlu2 %1193 }
 0x142   : > { %v1088_v12 = vpop.permute.xlu1 %1087  ;;  %v1156_v27 = vadd.f32 %v1154_v3, %v1146_v20  ;;  %2318 = vset.pattern.permute.xlu2 %v2394_v35  ;;  %2319 = vset.pattern.permute.xlu1 %v2396_v2 }
 0x143   : > { %v1090_v18 = vadd.f32 %v1088_v12, %v1080_v14  ;;  %1556 = vperm.xlu2 %2318, %v2868_v42   ;;  %1720 = vperm.xlu1 %2319, %v2842_v23   ;;  %v2932_v14 = vld [vmem:[%s3261_s24] sm:$0xff] }
 0x144   : > { %2327 = vset.pattern.permute.xlu0 %v2395_v58 }
 0x145   : > { %1644 = vperm.xlu0 %2327, %v2855_v30  }
 0x147   : > { %v1098_v19 = vpop.permute.xlu0 %1097 }
 0x148   : > { %v1100_v21 = vadd.f32 %v1098_v19, %v1090_v18  ;;  %v361_v18 = vld [vmem:[%s3261_s24 + $0x8] sm:$0xff] }
 0x149   : > { %v826_v44 = vpop.permute.xlu2 %825 }
 0x14a   : > { %v1164_v24 = vpop.permute.xlu1 %1163  ;;  %v1110_v25 = vadd.f32 %v1108_v63, %v1100_v21  ;;  %v828_v50 = vadd.f32 %v826_v44, %v817_v47  ;;  %v356_v63 = vld [vmem:[%s3263_s11 + $0x8] sm:$0xff] }
 0x14b   : > { %v1166_v29 = vadd.f32 %v1164_v24, %v1156_v27  ;;  %2320 = vset.pattern.permute.xlu2 %v2396_v2  ;;  %2323 = vset.pattern.permute.xlu1 %v2393_v22 }
 0x14c   : > { %v1111_v28 = vpack.c.bf16 %v1110_v25, %v1110_v25  ;;  %1724 = vperm.xlu2 %2320, %v2855_v30   ;;  %1468 = vperm.xlu1 %2323, %v2900_v8  }
 0x14d   : > { %1624 = vperm.xlu0 %2327, %v2887_v49  }
 0x14e   : > { %v1116_v26 = vsel %vm478_vm0, %v1111_v28, 0 }
 0x14f   : > { %v1174_v32 = vpop.permute.xlu0 %1173  ;;  %1125 = vmatpush.bf16.msra.mxu2 %v1116_v26 }
 0x150   : > { %v1176_v34 = vadd.f32 %v1174_v32, %v1166_v29 }
 0x151   : > { %v856_v56 = vpop.permute.xlu2 %855 }
 0x152   : > { %v1184_v36 = vpop.permute.xlu1 %1183  ;;  %2077 = vmatmul.msk.bf16.vlgmr.msra.gmra.mxu2 %vm474_vm1, %v345_v33 }
 0x153   : > { %v1186_v37 = vadd.f32 %v1184_v36, %v1176_v34 }
 0x154   : > { %2324 = vset.pattern.permute.xlu2 %v2395_v58  ;;  %2325 = vset.pattern.permute.xlu1 %v2395_v58 }
 0x155   : > { %v1196_v38 = vadd.f32 %v1194_v31, %v1186_v37  ;;  %1632 = vperm.xlu2 %2324, %v2863_v41   ;;  %1636 = vperm.xlu1 %2325, %v2868_v42  }
 0x156   : > { %2336 = vset.pattern.permute.xlu0 %v2396_v2 }
 0x157   : > { %v1204_v39 = vpop.permute.xlu0 %1203  ;;  %1708 = vperm.xlu0 %2336, %v2900_v8  }
 0x158   : > { %v1206_v40 = vadd.f32 %v1204_v39, %v1196_v38 }
 0x159   : > { %v886_v1 = vpop.permute.xlu2 %885 }
 0x15a   : > { %v1214_v45 = vpop.permute.xlu1 %1213 }
 0x15b   : > { %v1216_v46 = vadd.f32 %v1214_v45, %v1206_v40 }
 0x15d   : > { %v1217_v48 = vpack.c.bf16 %v1216_v46, %v1216_v46  ;;  %2326 = vset.pattern.permute.xlu2 %v2394_v35  ;;  %2328 = vset.pattern.permute.xlu1 %v2396_v2 }
 0x15e   : > { %1544 = vperm.xlu2 %2326, %v2887_v49   ;;  %1712 = vperm.xlu1 %2328, %v2863_v41  }
 0x15f   : > { %v836_v51 = vpop.permute.xlu0 %835  ;;  %v1222_v52 = vsel %vm478_vm0, %v1217_v48, 0  ;;  %2341 = vset.pattern.permute.xlu0 %v2392_v16 }
 0x160   : > { %v838_v53 = vadd.f32 %v836_v51, %v828_v50  ;;  %1231 = vmatpush.bf16.msra.mxu3 %v1222_v52  ;;  %1431 = vperm.xlu0 %2341, %v2842_v23  }
 0x161   : > { %v1265_v19 = vpop.permute.xlu2 %1264 }
 0x162   : > { %v846_v55 = vpop.permute.xlu1 %845 }
 0x163   : > { %v848_v57 = vadd.f32 %v846_v55, %v838_v53  ;;  %2078 = vmatmul.msk.bf16.vlgmr.msra.gmra.mxu3 %vm474_vm1, %v346_v54 }
 0x164   : > { %2138 = vmatpush.msrb.mxu3 %v359_v11 }
 0x165   : > { %v858_v59 = vadd.f32 %v856_v56, %v848_v57 }
 0x166   : > { %2329 = vset.pattern.permute.xlu2 %v2396_v2  ;;  %2330 = vset.pattern.permute.xlu1 %v2393_v22 }
 0x167   : > { %v866_v60 = vpop.permute.xlu0 %865  ;;  %1716 = vperm.xlu2 %2329, %v2868_v42   ;;  %1456 = vperm.xlu1 %2330, %v2932_v14  }
 0x168   : > { %v868_v61 = vadd.f32 %v866_v60, %v858_v59  ;;  %2139 = vmatpush.msrb.mxu3 %v358_v13  ;;  %1426 = vperm.xlu0 %2341, %v2868_v42  }
 0x169   : > { %v1250_v29 = vpop.permute.xlu2 %1249 }
 0x16a   : > { %v876_v62 = vpop.permute.xlu1 %875  ;;  %2140 = vmatpush.msrb.mxu3 %v357_v15 }
 0x16b   : > { %v878_v0 = vadd.f32 %v876_v62, %v868_v61 }
 0x16c   : > { %2141 = vmatpush.msrb.mxu3 %v356_v63 }
 0x16d   : > { %v888_v3 = vadd.f32 %v886_v1, %v878_v0 }
 0x16e   : > { %2142 = vmatpush.msrb.mxu3 %v355_v17 }
 0x16f   : > { %v896_v4 = vpop.permute.xlu0 %895  ;;  %2331 = vset.pattern.permute.xlu2 %v2393_v22  ;;  %2332 = vset.pattern.permute.xlu1 %v2395_v58 }
 0x170   : > { %v898_v5 = vadd.f32 %v896_v4, %v888_v3  ;;  %1460 = vperm.xlu2 %2331, %v361_v18   ;;  %1628 = vperm.xlu1 %2332, %v2900_v8  }
 0x171   : > { %1406 = vperm.xlu0 %2341, %v361_v18   ;;  %v1255_v38 = vpop.permute.xlu2 %1254 }
 0x172   : > { %v899_v6 = vpack.c.bf16 %v898_v5, %v898_v5 }
 0x174   : > { %v904_v7 = vsel %vm478_vm0, %v899_v6, 0 }
 0x175   : > { %913 = vmatpush.bf16.msrb.mxu0 %v904_v7 }
 0x178   : > { %2075 = vmatmul.msk.bf16.vlgmr.msrb.gmra.mxu0 %vm474_vm1, %v343_v9  ;;  %v1245_v21 = vpop.permute.xlu0 %1244  ;;  %2333 = vset.pattern.permute.xlu2 %v2394_v35  ;;  %v1240_v22 = vpop.permute.xlu1 %1239 }
 0x179   : > { %1369 = vmatpush.msra.mxu0 %v359_v11  ;;  %2334 = vset.pattern.permute.xlu1 %v2394_v35 }
 0x17a   : > { %1536 = vperm.xlu2 %2333, %v2932_v14   ;;  %1540 = vperm.xlu1 %2334, %v361_v18  }
 0x17b   : > { %1370 = vmatpush.msra.mxu0 %v358_v13 }
 0x17d   : > { %1371 = vmatpush.msra.mxu0 %v357_v15  ;;  %v2972_v53 = vpop.permute.xlu2 %1484 }
 0x17f   : > { %v597_v10 = vpop.f32.mrf.mxu2  ;;  %1372 = vmatpush.msra.mxu0 %v356_v63 }
 0x180   : > { %v1278_v25 = vadd.f32 %v1245_v21, %v597_v10  ;;  %v1270_v1 = vpop.permute.xlu1 %1269 }
 0x181   : > { %1373 = vmatpush.msra.mxu0 %v355_v17 }
 0x182   : > { %v1294_v31 = vmin.f32 %v1278_v25, 0.0  ;;  %2335 = vset.pattern.permute.xlu2 %v2396_v2  ;;  %2337 = vset.pattern.permute.xlu1 %v2395_v58  ;;  %vm1286_vm4 = vcmp.gt.f32.partialorder %v1278_v25, 0.0 }
 0x183   : > { %1704 = vperm.xlu2 %2335, %v2887_v49   ;;  %1616 = vperm.xlu1 %2337, %v2932_v14  }
 0x184   : > { %v1303_v34 = vmul.f32 1.442695, %v1294_v31 }
 0x185   : > { %v2978_v61 = vpop.permute.xlu2 %1472 }
 0x186   : > { %v809_v20 = vpop.f32.mrf.mxu3 }
 0x187   : > { %v599_v12 = vpop.f32.mrf.mxu2  ;;  %v1280_v42 = vadd.f32 %v1255_v38, %v809_v20 }
 0x188   : > { %v1275_v6 = vpop.permute.xlu1 %1274 }
 0x189   : > { %v1296_v46 = vmin.f32 %v1280_v42, 0.0  ;;  %vm1288_vm6 = vcmp.gt.f32.partialorder %v1280_v42, 0.0 }
 0x18b   : > { %2338 = vset.pattern.permute.xlu2 %v2395_v58  ;;  %2339 = vset.pattern.permute.xlu1 %v2396_v2  ;;  %v1307_v48 = vmul.f32 1.442695, %v1296_v46 }
 0x18c   : > { %1620 = vperm.xlu2 %2338, %v361_v18   ;;  %1696 = vperm.xlu1 %2339, %v2932_v14  }
 0x18e   : > { %v811_v27 = vpop.f32.mrf.mxu3 }
 0x191   : > { %v2988_v12 = vpop.permute.xlu1 %1480 }
 0x194   : > { %2340 = vset.pattern.permute.xlu2 %v2396_v2  ;;  %2342 = vset.pattern.permute.xlu1 %v2392_v16 }
 0x195   : > { %1700 = vperm.xlu2 %2340, %v361_v18   ;;  %1436 = vperm.xlu1 %2342, %v2855_v30  }
 0x19d   : > { %2343 = vset.pattern.permute.xlu2 %v2392_v16  ;;  %1411 = vperm.xlu1 %2342, %v2887_v49  }
 0x19e   : > { %1421 = vperm.xlu2 %2343, %v2863_v41   ;;  %v2983_v41 = vpop.permute.xlu2 %1640 }
 0x1a3   : > { %v703_v24 = vpop.f32.mrf.mxu2 }
 0x1a4   : > { %v1279_v36 = vadd.f32 %v1250_v29, %v703_v24 }
 0x1a6   : > { %v1295_v37 = vmin.f32 %v1279_v36, 0.0  ;;  %vm1287_vm5 = vcmp.gt.f32.partialorder %v1279_v36, 0.0  ;;  %1416 = vperm.xlu2 %2343, %v2900_v8   ;;  %v2986_v9 = vpop.permute.xlu2 %1556 }
 0x1a7   : > { %v491_v28 = vpop.f32.mrf.mxu0 }
 0x1a8   : > { %v1277_v26 = vadd.f32 %v1240_v22, %v491_v28  ;;  %v1305_v40 = vmul.f32 1.442695, %v1295_v37 }
 0x1aa   : > { %v1293_v32 = vmin.f32 %v1277_v26, 0.0  ;;  %vm1285_vm2 = vcmp.gt.f32.partialorder %v1277_v26, 0.0 }
 0x1ab   : > { %v705_v23 = vpop.f32.mrf.mxu2 }
 0x1ac   : > { %v1301_v33 = vmul.f32 1.442695, %v1293_v32 }
 0x1ae   : > { %2344 = vpow2.f32 %v1301_v33  ;;  %1401 = vperm.xlu2 %2343, %v2932_v14   ;;  %v2991_v17 = vpop.permute.xlu2 %1724 }
 0x1af   : > { %v493_v35 = vpop.f32.mrf.mxu0  ;;  %2346 = vpow2.f32 %v1303_v34 }
 0x1b0   : > { %2348 = vpow2.f32 %v1305_v40 }
 0x1b1   : > { %2350 = vpow2.f32 %v1307_v48 }
 0x1b4   : > { %v2345_v39 = vpop.eup %2344 }
 0x1b5   : > { %v2079_v43 = vadd.f32 -1.0, %v2345_v39  ;;  %v2347_v44 = vpop.eup %2346 }
 0x1b6   : > { %v2080_v47 = vadd.f32 -1.0, %v2347_v44  ;;  %v2349_v51 = vpop.eup %2348  ;;  %v2995_v21 = vpop.permute.xlu2 %1632 }
 0x1b7   : > { %v1325_v45 = vsel %vm1285_vm2, %v1277_v26, %v2079_v43  ;;  %v2081_v52 = vadd.f32 -1.0, %v2349_v51  ;;  %v2351_v57 = vpop.eup %2350 }
 0x1b8   : > { %2087 = vmatmul.msk.f32.vlgmr.msra.gmra.mxu0 %vm1333_vm3, %v1325_v45  ;;  %v1326_v50 = vsel %vm1286_vm4, %v1278_v25, %v2080_v47  ;;  %v2082_v30 = vadd.f32 -1.0, %v2351_v57  ;;  %v1260_v25 = vpop.permute.xlu0 %1259 }
 0x1b9   : > { %v1327_v56 = vsel %vm1287_vm5, %v1279_v36, %v2081_v52 }
 0x1ba   : > { %v1328_v62 = vsel %vm1288_vm6, %v1280_v42, %v2082_v30 }
 0x1be   : > { %v1545_v23 = vpop.permute.xlu2 %1544 }
 0x1c0   : > { %2088 = vmatmul.msk.f32.gmra.mxu0 %vm1333_vm3, %v1326_v50  ;;  %v1465_v40 = vpop.permute.xlu0 %1464 }
 0x1c3   : > { %v1021_v54 = vpop.f32.mrf.mxu3 }
 0x1c4   : > { %v1282_v55 = vadd.f32 %v1265_v19, %v1021_v54  ;;  %v2993_v19 = vpop.permute.xlu1 %1564 }
 0x1c6   : > { %v1298_v58 = vmin.f32 %v1282_v55, 0.0  ;;  %vm1290_vm7 = vcmp.gt.f32.partialorder %v1282_v55, 0.0  ;;  %v1717_v37 = vpop.permute.xlu2 %1716 }
 0x1c8   : > { %2089 = vmatmul.msk.f32.gmra.mxu0 %vm1333_vm3, %v1327_v56  ;;  %v1311_v59 = vmul.f32 1.442695, %v1298_v58  ;;  %v1561_v44 = vpop.permute.xlu0 %1560 }
 0x1ca   : > { %2352 = vpow2.f32 %v1311_v59 }
 0x1cb   : > { %v1023_v60 = vpop.f32.mrf.mxu3 }
 0x1cc   : > { %v1477_v26 = vpop.permute.xlu1 %1476 }
 0x1ce   : > { %v1461_v39 = vpop.permute.xlu2 %1460 }
 0x1d0   : > { %v2353_v0 = vpop.eup %2352  ;;  %2090 = vmatmul.msk.f32.gmra.mxu0 %vm1333_vm3, %v1328_v62  ;;  %v1549_v47 = vpop.permute.xlu0 %1548 }
 0x1d1   : > { %v2084_v16 = vadd.f32 -1.0, %v2353_v0 }
 0x1d3   : > { %v1330_v49 = vsel %vm1290_vm7, %v1282_v55, %v2084_v16 }
 0x1d4   : > { %2092 = vmatmul.msk.f32.vlgmr.msrb.gmra.mxu3 %vm1333_vm3, %v1330_v49  ;;  %v2998_v34 = vpop.permute.xlu1 %1552 }
 0x1d5   : > { %v1127_v2 = vpop.f32.mrf.mxu2 }
 0x1d6   : > { %v1283_v3 = vadd.f32 %v1270_v1, %v1127_v2  ;;  %v1537_v43 = vpop.permute.xlu2 %1536 }
 0x1d8   : > { %v1299_v4 = vmin.f32 %v1283_v3, 0.0  ;;  %vm1291_vm8 = vcmp.gt.f32.partialorder %v1283_v3, 0.0  ;;  %v3007_v51 = vpop.permute.xlu0 %1644 }
 0x1da   : > { %v1313_v5 = vmul.f32 1.442695, %v1299_v4 }
 0x1dc   : > { %2354 = vpow2.f32 %v1313_v5  ;;  %v1721_v38 = vpop.permute.xlu1 %1720 }
 0x1dd   : > { %v1129_v7 = vpop.f32.mrf.mxu2 }
 0x1de   : > { %v3001_v46 = vpop.permute.xlu2 %1704 }
 0x1e0   : > { %v1625_v58 = vpop.permute.xlu0 %1624 }
 0x1e2   : > { %v2355_v8 = vpop.eup %2354 }
 0x1e3   : > { %v2085_v10 = vadd.f32 -1.0, %v2355_v8 }
 0x1e4   : > { %v1469_v42 = vpop.permute.xlu1 %1468 }
 0x1e5   : > { %v1331_v11 = vsel %vm1291_vm8, %v1283_v3, %v2085_v10 }
 0x1e6   : > { %v1233_v13 = vpop.f32.mrf.mxu3  ;;  %2093 = vmatmul.msk.f32.gmra.mxu3 %vm1333_vm3, %v1331_v11  ;;  %v3005_v50 = vpop.permute.xlu2 %1620 }
 0x1e7   : > { %v1284_v15 = vadd.f32 %v1275_v6, %v1233_v13 }
 0x1e8   : > { %v3023_v62 = vpop.permute.xlu0 %1708 }
 0x1e9   : > { %v1300_v63 = vmin.f32 %v1284_v15, 0.0  ;;  %vm1292_vm9 = vcmp.gt.f32.partialorder %v1284_v15, 0.0 }
 0x1eb   : > { %v1315_v14 = vmul.f32 1.442695, %v1300_v63 }
 0x1ec   : > { %v1637_v45 = vpop.permute.xlu1 %1636 }
 0x1ed   : > { %2356 = vpow2.f32 %v1315_v14 }
 0x1ee   : > { %v1235_v18 = vpop.f32.mrf.mxu3 }
 0x1ef   : > { %v3015_v57 = vpop.permute.xlu2 %1700 }
 0x1f0   : > { %v3032_v3 = vpop.permute.xlu0 %1431 }
 0x1f3   : > { %v2357_v20 = vpop.eup %2356 }
 0x1f4   : > { %v2086_v24 = vadd.f32 -1.0, %v2357_v20  ;;  %v3003_v48 = vpop.permute.xlu1 %1712 }
 0x1f5   : > { %v915_v22 = vpop.f32.mrf.mxu0 }
 0x1f6   : > { %v1281_v27 = vadd.f32 %v1260_v25, %v915_v22  ;;  %v1332_v28 = vsel %vm1292_vm9, %v1284_v15, %v2086_v24 }
 0x1f7   : > { %2094 = vmatmul.msk.f32.gmra.mxu3 %vm1333_vm3, %v1332_v28 }
 0x1f8   : > { %v1297_v29 = vmin.f32 %v1281_v27, 0.0  ;;  %vm1289_vm10 = vcmp.gt.f32.partialorder %v1281_v27, 0.0  ;;  %v3021_v60 = vpop.permute.xlu2 %1421  ;;  %v1427_v10 = vpop.permute.xlu0 %1426 }
 0x1fa   : > { %v1309_v31 = vmul.f32 1.442695, %v1297_v29 }
 0x1fc   : > { %2358 = vpow2.f32 %v1309_v31  ;;  %v1457_v52 = vpop.permute.xlu1 %1456 }
 0x1fd   : > { %v917_v32 = vpop.f32.mrf.mxu0 }
 0x200   : > { %v1417_v2 = vpop.permute.xlu2 %1416 }
 0x202   : > { %v2359_v33 = vpop.eup %2358 }
 0x203   : > { %v2083_v36 = vadd.f32 -1.0, %v2359_v33 }
 0x204   : > { %v1629_v15 = vpop.permute.xlu1 %1628 }
 0x205   : > { %v1329_v35 = vsel %vm1289_vm10, %v1281_v27, %v2083_v36 }
 0x206   : > { %2091 = vmatmul.msk.f32.gmra.mxu0 %vm1333_vm3, %v1329_v35 }
 0x208   : > { %v1402_v32 = vpop.permute.xlu2 %1401 }
 0x20c   : > { %v1541_v31 = vpop.permute.xlu1 %1540 }
 0x235   : > { %v3009_v54 = vpop.f32.mrf.mxu0 }
 0x236   : > { %v1567_v55 = vmul.f32 %v1537_v43, %v3009_v54  ;;  %v1487_v56 = vmul.f32 %v1457_v52, %v3009_v54 }
 0x238   : > { %1583 = vrot.lane.b32.xlu0 %v1567_v55, %s3243_s9  ;;  %1503 = vrot.lane.b32.xlu2 %v1487_v56, %s3242_s4 }
 0x23d   : > { %v3017_v59 = vpop.f32.mrf.mxu0 }
 0x23e   : > { %v1488_v30 = vmul.f32 %v1461_v39, %v3017_v59  ;;  %v1568_v33 = vmul.f32 %v1541_v31, %v3017_v59  ;;  %v1648_v36 = vmul.f32 %v3005_v50, %v3017_v59  ;;  %v383_v39 = vld [vmem:[%s3264_s13 + $0x38] sm:$0xff] }
 0x240   : > { %1505 = vrot.lane.b32.xlu0 %v1488_v30, %s3242_s4 }
 0x245   : > { %v3025_v0 = vpop.f32.mrf.mxu0 }
 0x246   : > { %v1489_v16 = vmul.f32 %v1465_v40, %v3025_v0  ;;  %v1569_v49 = vmul.f32 %v1545_v23, %v3025_v0  ;;  %v1649_v6 = vmul.f32 %v1625_v58, %v3025_v0  ;;  %v1729_v23 = vmul.f32 %v3001_v46, %v3025_v0  ;;  %v381_v46 = vld [vmem:[%s3264_s13 + $0x28] sm:$0xff] }
 0x248   : > { %1507 = vrot.lane.b32.xlu1 %v1489_v16, %s3242_s4 }
 0x24d   : > { %v3030_v1 = vpop.f32.mrf.mxu0 }
 0x24e   : > { %v1490_v4 = vmul.f32 %v1469_v42, %v3030_v1  ;;  %v3036_v5 = vmul.f32 %v1417_v2, %v3030_v1  ;;  %v1570_v7 = vmul.f32 %v1549_v47, %v3030_v1  ;;  %v1650_v63 = vmul.f32 %v1629_v15, %v3030_v1 }
 0x24f   : > { %v1728_v42 = vmul.f32 %v3015_v57, %v3017_v59  ;;  %v1730_v57 = vmul.f32 %v3023_v62, %v3030_v1  ;;  %v379_v62 = vld [vmem:[%s3264_s13 + $0x18] sm:$0xff] }
 0x250   : > { %1587 = vrot.lane.b32.xlu1 %v1569_v49, %s3243_s9  ;;  %1509 = vrot.lane.b32.xlu2 %v1490_v4, %s3242_s4  ;;  %v382_v4 = vld [vmem:[%s3264_s13 + $0x30] sm:$0xff] }
 0x257   : > { %v1390_v8 = vpop.f32.mrf.mxu3 }
 0x258   : > { %1667 = vrot.lane.b32.xlu1 %v1649_v6, %s3244_s8  ;;  %1589 = vrot.lane.b32.xlu2 %v1570_v7, %s3243_s9  ;;  %v3044_v11 = vmul.f32 %v1427_v10, %v1390_v8  ;;  %v1492_v13 = vmul.f32 %v1477_v26, %v1390_v8  ;;  %v1572_v14 = vmul.f32 %v2986_v9, %v1390_v8 }
 0x259   : > { %v1652_v24 = vmul.f32 %v1637_v45, %v1390_v8  ;;  %v1732_v22 = vmul.f32 %v1717_v37, %v1390_v8  ;;  %v1617_v37 = vpop.permute.xlu1 %1616 }
 0x260   : > { %1669 = vrot.lane.b32.xlu2 %v1650_v63, %s3244_s8  ;;  %1513 = vrot.lane.b32.xlu1 %v1492_v13, %s3242_s4 }
 0x261   : > { %v1697_v43 = vpop.permute.xlu1 %1696 }
 0x262   : > { %v1727_v49 = vmul.f32 %v1697_v43, %v3009_v54 }
 0x268   : > { %1593 = vrot.lane.b32.xlu1 %v1572_v14, %s3243_s9 }
 0x269   : > { %v3051_v18 = vpop.f32.mrf.mxu3  ;;  %v1437_v47 = vpop.permute.xlu1 %1436 }
 0x26a   : > { %v1493_v20 = vmul.f32 %v2988_v12, %v3051_v18  ;;  %v1653_v25 = vmul.f32 %v2983_v41, %v3051_v18  ;;  %v1733_v9 = vmul.f32 %v1721_v38, %v3051_v18  ;;  %v1573_v27 = vmul.f32 %v1561_v44, %v3051_v18  ;;  %v3107_v44 = vpop.permute.xlu0 %1406 }
 0x26c   : > { %1515 = vrot.lane.b32.xlu2 %v1493_v20, %s3242_s4 }
 0x270   : > { %1673 = vrot.lane.b32.xlu1 %v1652_v24, %s3244_s8 }
 0x271   : > { %v1412_v56 = vpop.permute.xlu1 %1411 }
 0x272   : > { %v1441_v58 = vmul.f32 %v1412_v56, %v3025_v0  ;;  %v376_v0 = vld [vmem:[%s3264_s13] sm:$0xff] }
 0x274   : > { %1675 = vrot.lane.b32.xlu2 %v1653_v25, %s3244_s8 }
 0x278   : > { %1753 = vrot.lane.b32.xlu1 %v1732_v22, %s3246_s6 }
 0x27a   : > { %v3064_v12 = vpop.f32.mrf.mxu3 }
 0x27b   : > { %v1574_v28 = vmul.f32 %v2993_v19, %v3064_v12  ;;  %v1494_v26 = vmul.f32 %v2972_v53, %v3064_v12  ;;  %v1439_v53 = vmul.f32 %v1402_v32, %v3009_v54  ;;  %v1654_v45 = vmul.f32 %v3007_v51, %v3064_v12  ;;  %v378_v51 = vld [vmem:[%s3264_s13 + $0x10] sm:$0xff] }
 0x27c   : > { %1755 = vrot.lane.b32.xlu2 %v1733_v9, %s3246_s6  ;;  %v1734_v55 = vmul.f32 %v2991_v17, %v3064_v12 }
 0x280   : > { %1595 = vrot.lane.b32.xlu1 %v1573_v27, %s3243_s9 }
 0x283   : > { %v3069_v29 = vpop.f32.mrf.mxu0 }
 0x284   : > { %1597 = vrot.lane.b32.xlu2 %v1574_v28, %s3243_s9  ;;  %v1491_v41 = vmul.f32 %v2978_v61, %v3069_v29  ;;  %v1571_v19 = vmul.f32 %v2998_v34, %v3069_v29  ;;  %v1651_v38 = vmul.f32 %v2995_v21, %v3069_v29  ;;  %v1647_v34 = vmul.f32 %v1617_v37, %v3009_v54  ;;  %v380_v21 = vld [vmem:[%s3264_s13 + $0x20] sm:$0xff] }
 0x285   : > { %v1731_v40 = vmul.f32 %v3003_v48, %v3069_v29  ;;  %v377_v48 = vld [vmem:[%s3264_s13 + $0x8] sm:$0xff]  ;;  %v1443_v27 = vmul.f32 %v3021_v60, %v3069_v29  ;;  %v1445_v37 = vmul.f32 %v3032_v3, %v3051_v18  ;;  %v1440_v18 = vmul.f32 %v3107_v44, %v3017_v59  ;;  %v2134_v59 = vld [vmem:[%s3265_s25] sm:$0xff] }
 0x286   : > { %1511 = vrot.lane.b32.xlu0 %v1491_v41, %s3242_s4  ;;  %v2135_v44 = vld [vmem:[%s3265_s25 + $0x8] sm:$0xff] }
 0x288   : > { %1517 = vrot.lane.b32.xlu1 %v1494_v26, %s3242_s4 }
 0x28c   : > { %1747 = vrot.lane.b32.xlu2 %v1729_v23, %s3246_s6 }
 0x28e   : > { %1591 = vrot.lane.b32.xlu0 %v1571_v19, %s3243_s9 }
 0x290   : > { %1585 = vrot.lane.b32.xlu1 %v1568_v33, %s3243_s9 }
 0x292   : > { %v1504_v61 = vpop.permute.xlu2 %1503 }
 0x293   : > { %v1527_v35 = vadd.f32 %v1504_v61, %v1439_v53 }
 0x294   : > { %1665 = vrot.lane.b32.xlu2 %v1648_v36, %s3244_s8 }
 0x296   : > { %1671 = vrot.lane.b32.xlu0 %v1651_v38, %s3244_s8 }
 0x298   : > { %1663 = vrot.lane.b32.xlu1 %v1647_v34, %s3244_s8  ;;  %v1446_v34 = vmul.f32 %v1437_v47, %v3064_v12 }
 0x29c   : > { %1816 = vperm.xlu2 %2343, %v383_v39  }
 0x29e   : > { %1751 = vrot.lane.b32.xlu0 %v1731_v40, %s3246_s6 }
 0x2a0   : > { %1745 = vrot.lane.b32.xlu1 %v1728_v42, %s3246_s6 }
 0x2a4   : > { %1801 = vperm.xlu2 %2343, %v380_v21  }
 0x2a6   : > { %1677 = vrot.lane.b32.xlu0 %v1654_v45, %s3244_s8 }
 0x2a8   : > { %1806 = vperm.xlu1 %2342, %v381_v46  }
 0x2aa   : > { %v1584_v50 = vpop.permute.xlu0 %1583  ;;  %v1510_v6 = vpop.permute.xlu2 %1509 }
 0x2ab   : > { %v3118_v52 = vadd.f32 %v1584_v50, %v1527_v35  ;;  %v1530_v50 = vadd.f32 %v1510_v6, %v3036_v5 }
 0x2ac   : > { %1786 = vperm.xlu2 %2343, %v377_v48  }
 0x2ae   : > { %1757 = vrot.lane.b32.xlu0 %v1734_v55, %s3246_s6 }
 0x2b0   : > { %1791 = vperm.xlu1 %2342, %v378_v51  }
 0x2b2   : > { %v1590_v8 = vpop.permute.xlu2 %1589  ;;  %v1506_v10 = vpop.permute.xlu0 %1505 }
 0x2b3   : > { %v1610_v3 = vadd.f32 %v1590_v8, %v1530_v50 }
 0x2b6   : > { %1749 = vrot.lane.b32.xlu0 %v1730_v57, %s3246_s6 }
 0x2ba   : > { %v1508_v30 = vpop.permute.xlu1 %1507  ;;  %v1670_v15 = vpop.permute.xlu2 %1669 }
 0x2bb   : > { %v1529_v16 = vadd.f32 %v1508_v30, %v1441_v58  ;;  %v1690_v12 = vadd.f32 %v1670_v15, %v1610_v3  ;;  %v1528_v58 = vadd.f32 %v1506_v10, %v1440_v18  ;;  %v386_v10 = vld [vmem:[%s3266_s2 + $0x10] sm:$0xf] }
 0x2be   : > { %1743 = vrot.lane.b32.xlu0 %v1727_v49, %s3246_s6 }
 0x2c2   : > { %v1588_v17 = vpop.permute.xlu1 %1587 }
 0x2c3   : > { %v1609_v2 = vadd.f32 %v1588_v17, %v1529_v16 }
 0x2c6   : > { %1811 = vperm.xlu0 %2341, %v382_v4   ;;  %v1516_v14 = vpop.permute.xlu2 %1515 }
 0x2c7   : > { %v1533_v38 = vadd.f32 %v1516_v14, %v1445_v37 }
 0x2ca   : > { %v1668_v1 = vpop.permute.xlu1 %1667 }
 0x2cb   : > { %v1689_v47 = vadd.f32 %v1668_v1, %v1609_v2  ;;  %v385_v2 = vld [vmem:[%s3266_s2 + $0x8] sm:$0xff]  ;;  %v2136_v1 = vld [vmem:[%s3265_s25 + $0x10] sm:$0xff] }
 0x2ce   : > { %1796 = vperm.xlu0 %2341, %v379_v62   ;;  %v1676_v25 = vpop.permute.xlu2 %1675 }
 0x2d2   : > { %v1514_v54 = vpop.permute.xlu1 %1513 }
 0x2d3   : > { %v1532_v28 = vadd.f32 %v1514_v54, %v3044_v11 }
 0x2d6   : > { %1781 = vperm.xlu0 %2341, %v376_v0   ;;  %v1756_v32 = vpop.permute.xlu2 %1755 }
 0x2da   : > { %v1594_v7 = vpop.permute.xlu1 %1593 }
 0x2db   : > { %v1612_v26 = vadd.f32 %v1594_v7, %v1532_v28 }
 0x2de   : > { %v1598_v39 = vpop.permute.xlu2 %1597 }
 0x2e2   : > { %v1674_v13 = vpop.permute.xlu1 %1673 }
 0x2e3   : > { %v1692_v23 = vadd.f32 %v1674_v13, %v1612_v26  ;;  %v2137_v13 = vld [vmem:[%s3265_s25 + $0x18] sm:$0xff] }
 0x2e6   : > { %v1748_v51 = vpop.permute.xlu2 %1747 }
 0x2e7   : > { %v1769_v30 = vadd.f32 %v1748_v51, %v1689_v47 }
 0x2ea   : > { %v1754_v20 = vpop.permute.xlu1 %1753 }
 0x2eb   : > { %v1772_v61 = vadd.f32 %v1754_v20, %v1692_v23 }
 0x2ee   : > { %v1666_v4 = vpop.permute.xlu2 %1665 }
 0x2f2   : > { %v1596_v22 = vpop.permute.xlu1 %1595 }
 0x2f3   : > { %v1613_v29 = vadd.f32 %v1596_v22, %v1533_v38 }
 0x2f5   : > { %v1693_v42 = vadd.f32 %v1676_v25, %v1613_v29 }
 0x2f6   : > { %v1817_v22 = vpop.permute.xlu2 %1816 }
 0x2f7   : > { %v1773_v48 = vadd.f32 %v1756_v32, %v1693_v42 }
 0x2f8   : > { %v1512_v63 = vpop.permute.xlu0 %1511 }
 0x2f9   : > { %v1531_v41 = vadd.f32 %v1512_v63, %v1443_v27 }
 0x2fa   : > { %v1518_v33 = vpop.permute.xlu1 %1517 }
 0x2fb   : > { %v1534_v11 = vadd.f32 %v1518_v33, %v1446_v34 }
 0x2fd   : > { %v1614_v43 = vadd.f32 %v1598_v39, %v1534_v11 }
 0x300   : > { %v1592_v24 = vpop.permute.xlu0 %1591 }
 0x301   : > { %v1611_v31 = vadd.f32 %v1592_v24, %v1531_v41 }
 0x302   : > { %v1586_v40 = vpop.permute.xlu1 %1585 }
 0x303   : > { %v1608_v49 = vadd.f32 %v1586_v40, %v1528_v58 }
 0x305   : > { %v1688_v0 = vadd.f32 %v1666_v4, %v1608_v49 }
 0x308   : > { %v1672_v9 = vpop.permute.xlu0 %1671 }
 0x309   : > { %v1691_v19 = vadd.f32 %v1672_v9, %v1611_v31 }
 0x30a   : > { %v1664_v56 = vpop.permute.xlu1 %1663 }
 0x30b   : > { %v1687_v62 = vadd.f32 %v1664_v56, %v3118_v52  ;;  %v384_v52 = vld [vmem:[%s3266_s2] sm:$0xff] }
 0x30c   : > { %1929 = vxpose.xlu1.b32.start [1/3] (short) (narrow) %v384_v52, 8 }
 0x310   : > { %v1752_v53 = vpop.permute.xlu0 %1751 }
 0x311   : > { %v1771_v36 = vadd.f32 %v1752_v53, %v1691_v19  ;;  %v1802_v19 = vpop.permute.xlu2 %1801 }
 0x312   : > { %v1746_v5 = vpop.permute.xlu1 %1745 }
 0x313   : > { %v1777_v35 = vpack.c.bf16 %v1772_v61, %v1771_v36  ;;  %v1768_v6 = vadd.f32 %v1746_v5, %v1688_v0 }
 0x314   : > { %1930 = vxpose.xlu1.b32.cont [2/3] (short) (narrow) %v385_v2, 8 }
 0x318   : > { %v1678_v60 = vpop.permute.xlu0 %1677 }
 0x319   : > { %v1694_v21 = vadd.f32 %v1678_v60, %v1614_v43 }
 0x31a   : > { %v1807_v41 = vpop.permute.xlu1 %1806 }
 0x31c   : > { %1931 = vxpose.xlu1.b32.end [3/3] (short) (narrow) %v386_v10, 8 }
 0x320   : > { %v1758_v45 = vpop.permute.xlu0 %1757 }
 0x321   : > { %v1774_v46 = vadd.f32 %v1758_v45, %v1694_v21  ;;  %v1787_v21 = vpop.permute.xlu2 %1786 }
 0x322   : > { %v1792_v29 = vpop.permute.xlu1 %1791 }
 0x323   : > { %v1778_v55 = vpack.c.bf16 %v1774_v46, %v1773_v48 }
 0x325   : > { %1856 = vmatpush.bf16.msra.mxu1 %v1778_v55 }
 0x328   : > { %v1750_v57 = vpop.permute.xlu0 %1749 }
 0x329   : > { %v1770_v16 = vadd.f32 %v1750_v57, %v1690_v12  ;;  %1857 = vmatpush.bf16.msra.mxu1 %v1777_v35 }
 0x32b   : > { %v1776_v17 = vpack.c.bf16 %v1770_v16, %v1769_v30 }
 0x32d   : > { %1858 = vmatpush.bf16.msra.mxu1 %v1776_v17 }
 0x330   : > { %v1744_v54 = vpop.permute.xlu0 %1743 }
 0x331   : > { %v1767_v7 = vadd.f32 %v1744_v54, %v1687_v62 }
 0x333   : > { %v1775_v8 = vpack.c.bf16 %v1768_v6, %v1767_v7 }
 0x335   : > { %1859 = vmatpush.bf16.msra.mxu1 %v1775_v8 }
 0x338   : > { %2111 = vmatmul.msk.bf16.vlgmr.msra.gmra.mxu1 %vm1839_vm11, %v2134_v59  ;;  %v1812_v27 = vpop.permute.xlu0 %1811 }
 0x340   : > { %v1797_v37 = vpop.permute.xlu0 %1796 }
 0x348   : > { %2112 = vmatmul.msk.bf16.gmra.mxu1 %vm1839_vm11, %v2135_v44  ;;  %v1782_v3 = vpop.permute.xlu0 %1781 }
 0x358   : > { %2113 = vmatmul.msk.bf16.gmra.mxu1 %vm1839_vm11, %v2136_v1 }
 0x368   : > { %2114 = vmatmul.msk.bf16.gmra.mxu1 %vm1839_vm11, %v2137_v13 }
 0x3b5   : > { %v1861_v15 = vpop.f32.mrf.mxu1 }
 0x3b6   : > { %v1862_v18 = vadd.f32 %v1861_v15, %v1782_v3  ;;  %v1945_v15 = vpop.trf.xlu1 }
 0x3b8   : > { %v1889_v16 = vmin.f32 %v1862_v18, 0.0  ;;  %vm1881_vm4 = vcmp.gt.f32.partialorder %v1862_v18, 0.0 }
 0x3ba   : > { %v1897_v62 = vmul.f32 1.442695, %v1889_v16 }
 0x3bd   : > { %v1863_v63 = vpop.f32.mrf.mxu1 }
 0x3be   : > { %v1864_v45 = vadd.f32 %v1863_v63, %v1787_v21 }
 0x3c0   : > { %v1890_v12 = vmin.f32 %v1864_v45, 0.0  ;;  %vm1882_vm3 = vcmp.gt.f32.partialorder %v1864_v45, 0.0 }
 0x3c2   : > { %v1899_v49 = vmul.f32 1.442695, %v1890_v12 }
 0x3c5   : > { %v1866_v14 = vpop.f32.mrf.mxu1 }
 0x3c6   : > { %v1867_v11 = vadd.f32 %v1866_v14, %v1792_v29 }
 0x3c8   : > { %v1891_v48 = vmin.f32 %v1867_v11, 0.0  ;;  %vm1883_vm2 = vcmp.gt.f32.partialorder %v1867_v11, 0.0 }
 0x3ca   : > { %v1901_v47 = vmul.f32 1.442695, %v1891_v48 }
 0x3cd   : > { %v1868_v20 = vpop.f32.mrf.mxu1 }
 0x3ce   : > { %v1869_v38 = vadd.f32 %v1868_v20, %v1797_v37 }
 0x3d0   : > { %v1892_v39 = vmin.f32 %v1869_v38, 0.0  ;;  %vm1884_vm1 = vcmp.gt.f32.partialorder %v1869_v38, 0.0 }
 0x3d2   : > { %v1903_v50 = vmul.f32 1.442695, %v1892_v39 }
 0x3d5   : > { %v1871_v24 = vpop.f32.mrf.mxu1 }
 0x3d6   : > { %v1872_v53 = vadd.f32 %v1871_v24, %v1802_v19 }
 0x3d8   : > { %v1893_v34 = vmin.f32 %v1872_v53, 0.0  ;;  %vm1885_vm0 = vcmp.gt.f32.partialorder %v1872_v53, 0.0 }
 0x3da   : > { %v1905_v40 = vmul.f32 1.442695, %v1893_v34 }
 0x3dd   : > { %v1873_v25 = vpop.f32.mrf.mxu1 }
 0x3de   : > { %v1874_v31 = vadd.f32 %v1873_v25, %v1807_v41 }
 0x3e0   : > { %v1894_v61 = vmin.f32 %v1874_v31, 0.0  ;;  %vm1886_vm15 = vcmp.gt.f32.partialorder %v1874_v31, 0.0 }
 0x3e2   : > { %v1907_v60 = vmul.f32 1.442695, %v1894_v61 }
 0x3e5   : > { %v1876_v9 = vpop.f32.mrf.mxu1 }
 0x3e6   : > { %v1877_v28 = vadd.f32 %v1876_v9, %v1812_v27 }
 0x3e8   : > { %v1895_v26 = vmin.f32 %v1877_v28, 0.0  ;;  %vm1887_vm14 = vcmp.gt.f32.partialorder %v1877_v28, 0.0 }
 0x3ea   : > { %v1909_v33 = vmul.f32 1.442695, %v1895_v26 }
 0x3ec   : > { %2360 = vpow2.f32 %v1909_v33 }
 0x3ed   : > { %v1878_v32 = vpop.f32.mrf.mxu1 }
 0x3ee   : > { %v1879_v23 = vadd.f32 %v1878_v32, %v1817_v22 }
 0x3f0   : > { %v1896_v36 = vmin.f32 %v1879_v23, 0.0  ;;  %vm1888_vm13 = vcmp.gt.f32.partialorder %v1879_v23, 0.0 }
 0x3f2   : > { %v1911_v35 = vmul.f32 1.442695, %v1896_v36  ;;  %v2361_v42 = vpop.eup %2360 }
 0x3f3   : > { %v2121_v55 = vadd.f32 -1.0, %v2361_v42 }
 0x3f4   : > { %2362 = vpow2.f32 %v1911_v35 }
 0x3f5   : > { %2364 = vpow2.f32 %v1907_v60  ;;  %v1927_v58 = vsel %vm1887_vm14, %v1877_v28, %v2121_v55 }
 0x3f6   : > { %2366 = vpow2.f32 %v1905_v40 }
 0x3f7   : > { %2368 = vpow2.f32 %v1903_v50 }
 0x3f8   : > { %2370 = vpow2.f32 %v1901_v47 }
 0x3f9   : > { %2372 = vpow2.f32 %v1899_v49 }
 0x3fa   : > { %v2363_v43 = vpop.eup %2362  ;;  %2374 = vpow2.f32 %v1897_v62 }
 0x3fb   : > { %v2122_v46 = vadd.f32 -1.0, %v2363_v43  ;;  %v2365_v56 = vpop.eup %2364 }
 0x3fc   : > { %v2120_v57 = vadd.f32 -1.0, %v2365_v56  ;;  %v2367_v30 = vpop.eup %2366 }
 0x3fd   : > { %v1928_v51 = vsel %vm1888_vm13, %v1879_v23, %v2122_v46  ;;  %v2119_v17 = vadd.f32 -1.0, %v2367_v30  ;;  %v2369_v5 = vpop.eup %2368 }
 0x3fe   : > { %2123 = vmatpush.xpose.msk.msrb.mxu2 %vm1961_vm12, %v1928_v51  ;;  %v1926_v4 = vsel %vm1886_vm15, %v1874_v31, %v2120_v57  ;;  %v2118_v0 = vadd.f32 -1.0, %v2369_v5  ;;  %v2371_v6 = vpop.eup %2370 }
 0x3ff   : > { %v1925_v54 = vsel %vm1885_vm0, %v1872_v53, %v2119_v17  ;;  %v2117_v7 = vadd.f32 -1.0, %v2371_v6  ;;  %v2373_v59 = vpop.eup %2372 }
 0x400   : > { %v1924_v8 = vsel %vm1884_vm1, %v1869_v38, %v2118_v0  ;;  %v2116_v44 = vadd.f32 -1.0, %v2373_v59  ;;  %v2375_v2 = vpop.eup %2374 }
 0x401   : > { %v1923_v52 = vsel %vm1883_vm2, %v1867_v11, %v2117_v7  ;;  %v2115_v1 = vadd.f32 -1.0, %v2375_v2 }
 0x402   : > { %2124 = vmatpush.xpose.msk.msrb.mxu2 %vm1961_vm12, %v1927_v58  ;;  %v1922_v10 = vsel %vm1882_vm3, %v1864_v45, %v2116_v44 }
 0x403   : > { %v1921_v13 = vsel %vm1881_vm4, %v1862_v18, %v2115_v1 }
 0x406   : > { %2125 = vmatpush.xpose.msk.msrb.mxu2 %vm1961_vm12, %v1926_v4 }
 0x40a   : > { %2126 = vmatpush.xpose.msk.msrb.mxu2 %vm1961_vm12, %v1925_v54 }
 0x40e   : > { %2127 = vmatpush.xpose.msk.msrb.mxu2 %vm1961_vm12, %v1924_v8 }
 0x412   : > { %2128 = vmatpush.xpose.msk.msrb.mxu2 %vm1961_vm12, %v1923_v52 }
 0x416   : > { %2129 = vmatpush.xpose.msk.msrb.mxu2 %vm1961_vm12, %v1922_v10 }
 0x41a   : > { %2130 = vmatpush.xpose.msk.msrb.mxu2 %vm1961_vm12, %v1921_v13 }
 0x41d   : > { %2131 = vmatmul.msk.f32.vlgmr.msrb.gmra.mxu2 %vm1961_vm12, %v1945_v15 }
 0x4a0   : > { %v2006_v63 = vpop.f32.mrf.mxu2 }
 0x4a1   : > { %v2009_v14 = vsel %vm1839_vm11, %v2006_v63, 0.0 }
 0x4a2   : > { %2010 = vst [vmem:[%s327_s7] sm:$0xf] %v2009_v14 }
 0x4a3 PF: > { %s3269_s3 = sld [smem:[#allocation2_spill]] }
 0x4a9   : > { %s19_s30 = sadd.s32 1, %s3269_s3  }
 0x4aa   : > { %p16_p4 = scmp.ge.s32.totalorder %s19_s30, 4  }
 0x4ac   :  { %18 = sbr.rel (!%p16_p4) target bundleno = 10 (0xa), region = 86 }

// kernel: fused_eeg_forward.4
= control target key start
LH: loop header
LB: loop body
LE: loop exit
PB: predicated region body
PF: predicated region fallthrough
CT: control target
= control target key end

     0   :  { %s3174_s30 = smov 0   ;;  %s4365_s0 = inlined_call_operand.vmem [shape: f32[2,24,45], index: 0, kind: input, shape index: {}]   ;;  %s4366_s1 = inlined_call_operand.vmem [shape: f32[144,1], index: 1, kind: input, shape index: {}]   ;;  %s4367_s2 = inlined_call_operand.vmem [shape: bf16[64,8], index: 2, kind: input, shape index: {}]   ;;  %s4368_s3 = inlined_call_operand.vmem [shape: f32[64,1], index: 3, kind: input, shape index: {}]   ;;  %s4369_s4 = inlined_call_operand.vmem [shape: f32[40,23], index: 4, kind: input, shape index: {}]   ;;  %s4370_s5 = inlined_call_operand.vmem [shape: f32[64,4], index: 5, kind: input, shape index: {}]   ;;  %s4371_s6 = inlined_call_operand.vmem [shape: bf16[64,64], index: 6, kind: input, shape index: {}]   ;;  %s4372_s7 = inlined_call_operand.vmem [shape: f32[64,1], index: 7, kind: input, shape index: {}]   ;;  %s4373_s8 = inlined_call_operand.vmem [shape: f32[20,4], index: 8, kind: input, shape index: {}]   ;;  %s4374_s9 = inlined_call_operand.vmem [shape: f32[2,4,128], index: 9, kind: output, shape index: {}]  }
   0x1   :  { %4394 = sst [smem:[#allocation54_spill]] %s4365_s0 }
   0x2   :  { %4395 = sst [smem:[#allocation55_spill]] %s4367_s2 }
   0x3   :  { %4396 = sst [smem:[#allocation56_spill]] %s4368_s3 }
   0x4   :  { %4397 = sst [smem:[#allocation57_spill]] %s4369_s4 }
   0x5   :  { %4398 = sst [smem:[#allocation58_spill]] %s4370_s5 }
   0x6   :  { %4399 = sst [smem:[#allocation59_spill]] %s4371_s6 }
   0x7   :  { %4400 = sst [smem:[#allocation60_spill]] %s4372_s7 }
   0x8   :  { %4401 = sst [smem:[#allocation61_spill]] %s4373_s8 }
   0x9   :  { %4402 = sst [smem:[#allocation62_spill]] %s4374_s9 }
   0xa LB: > { %4403 = sst [smem:[#allocation2_spill]] %s3112_s30  ;;  %s2658_s10 = sadd.s32 4294967295, %s3112_s30   ;;  %s3112_s30 = sphi %s3174_s30, %s19_s30  }
   0xb   : > { %p2662_p0 = scmp.ge.s32.totalorder %s3112_s30, 1  ;;  %p287_p1 = scmp.lt.s32.totalorder %s3112_s30, 3 }
   0xd   : > { %p288_p2 = pnand %p2662_p0, %p287_p1 }
   0xf   : > { %291 = sbr.rel (%p288_p2) target bundleno = 1474 (0x5c2), region = 56 }
  0x14   : > { %v335_v0 = vld [vmem:[%s4366_s1] sm:$0xff]  ;;  %v336_v7 = vld [vmem:[%s4366_s1 + $0x8] sm:$0xff]  ;;  %v337_v15 = vld [vmem:[%s4366_s1 + $0x10] sm:$0xff]  ;;  %p322_p3 = scmp.lt.s32.totalorder %s2658_s10, 1  ;;  %s4415_s0 = sld [smem:[#allocation54_spill]]  ;;  %vm574_vm0 = vcmask 1043456  }
  0x15   : > { %2738 = vpush %v335_v0  ;;  %v407_v1 = vrot.slane %v335_v0, 1  ;;  %v417_v2 = vrot.slane %v335_v0, 2  ;;  %v427_v3 = vrot.slane %v335_v0, 3  ;;  %v437_v4 = vrot.slane %v335_v0, 4  ;;  %v338_v23 = vld [vmem:[%s4366_s1 + $0x18] sm:$0xff]  ;;  %v339_v31 = vld [vmem:[%s4366_s1 + $0x20] sm:$0xff] }
  0x16   : > { %v447_v5 = vrot.slane %v335_v0, 5  ;;  %v457_v6 = vrot.slane %v335_v0, 6  ;;  %v463_v8 = vrot.slane %v335_v0, 7  ;;  %v483_v9 = vrot.slane %v336_v7, 1  ;;  %v340_v39 = vld [vmem:[%s4366_s1 + $0x28] sm:$0xff]  ;;  %v341_v47 = vld [vmem:[%s4366_s1 + $0x30] sm:$0xff] }
  0x17   : > { %2740 = vpush %v407_v1  ;;  %v493_v10 = vrot.slane %v336_v7, 2  ;;  %v503_v11 = vrot.slane %v336_v7, 3  ;;  %v513_v12 = vrot.slane %v336_v7, 4  ;;  %v519_v13 = vrot.slane %v336_v7, 5  ;;  %s4536_s10 = smov (!%p322_p3, %s2658_s10), 1  ;;  %v3214_v55 = vld [vmem:[%s4366_s1 + $0x38] sm:$0xff] }
  0x18   : > { %2742 = vpush %v417_v2  ;;  %v529_v14 = vrot.slane %v336_v7, 6  ;;  %v539_v16 = vrot.slane %v336_v7, 7  ;;  %v559_v17 = vrot.slane %v337_v15, 1  ;;  %v591_v18 = vrot.slane %v337_v15, 2  ;;  %4405 = sst [smem:[#allocation4_spill]] %s4536_s10  ;;  %s2737_s19 = smul.u32 24, %s4536_s10 }
  0x19   : > { %2744 = vpush %v427_v3  ;;  %v597_v19 = vrot.slane %v337_v15, 3  ;;  %v607_v20 = vrot.slane %v337_v15, 4  ;;  %v617_v21 = vrot.slane %v337_v15, 5  ;;  %v627_v22 = vrot.slane %v337_v15, 6  ;;  %s4383_s26 = smov 127   ;;  %s4388_s5 = smov 125  }
  0x1a   : > { %2746 = vpush %v437_v4  ;;  %v637_v24 = vrot.slane %v337_v15, 7  ;;  %v653_v25 = vrot.slane %v338_v23, 1  ;;  %v663_v26 = vrot.slane %v338_v23, 2  ;;  %v673_v27 = vrot.slane %v338_v23, 3  ;;  %s3255_s27 = scalar_lea.vmem %s4415_s0, %s2737_s19  ;;  %s4386_s3 = smov 123  }
  0x1b   : > { %2748 = vpush %v447_v5  ;;  %v683_v28 = vrot.slane %v338_v23, 4  ;;  %v693_v29 = vrot.slane %v338_v23, 5  ;;  %v703_v30 = vrot.slane %v338_v23, 6  ;;  %v709_v32 = vrot.slane %v338_v23, 7  ;;  %v3264_v63 = vld [vmem:[%s3255_s27] sm:$0xff] }
  0x1c   : > { %2750 = vpush %v457_v6  ;;  %v729_v33 = vrot.slane %v339_v31, 1  ;;  %v739_v34 = vrot.slane %v339_v31, 2  ;;  %v749_v35 = vrot.slane %v339_v31, 3  ;;  %v779_v36 = vrot.slane %v339_v31, 4 }
  0x1d   : > { %2752 = vpush %v463_v8  ;;  %v785_v37 = vrot.slane %v339_v31, 5  ;;  %v795_v38 = vrot.slane %v339_v31, 6  ;;  %v805_v40 = vrot.slane %v339_v31, 7  ;;  %v825_v41 = vrot.slane %v340_v39, 1 }
  0x1e   : > { %2754 = vpush %v336_v7  ;;  %v835_v42 = vrot.slane %v340_v39, 2  ;;  %v841_v43 = vrot.slane %v340_v39, 3  ;;  %v851_v44 = vrot.slane %v340_v39, 4  ;;  %v861_v45 = vrot.slane %v340_v39, 5 }
  0x1f   : > { %2756 = vpush %v483_v9  ;;  %v871_v46 = vrot.slane %v340_v39, 6  ;;  %v881_v48 = vrot.slane %v340_v39, 7  ;;  %v897_v49 = vrot.slane %v341_v47, 1  ;;  %v907_v50 = vrot.slane %v341_v47, 2  ;;  %v343_v9 = vld [vmem:[%s4366_s1 + $0x40] sm:$0xff] }
  0x20   : > { %2758 = vpush %v493_v10  ;;  %v917_v51 = vrot.slane %v341_v47, 3  ;;  %v927_v52 = vrot.slane %v341_v47, 4  ;;  %v937_v53 = vrot.slane %v341_v47, 5  ;;  %v967_v54 = vrot.slane %v341_v47, 6 }
  0x21   : > { %2760 = vpush %v503_v11  ;;  %v973_v56 = vrot.slane %v341_v47, 7  ;;  %v993_v57 = vrot.slane %v3214_v55, 1  ;;  %v1003_v58 = vrot.slane %v3214_v55, 2  ;;  %v1013_v59 = vrot.slane %v3214_v55, 3 }
  0x22   : > { %2762 = vpush %v513_v12  ;;  %v1023_v60 = vrot.slane %v3214_v55, 4  ;;  %v1029_v61 = vrot.slane %v3214_v55, 5  ;;  %v1039_v62 = vrot.slane %v3214_v55, 6  ;;  %v1049_v8 = vrot.slane %v3214_v55, 7 }
  0x23   : > { %2764 = vpush %v519_v13  ;;  %v1069_v10 = vrot.slane %v343_v9, 1  ;;  %v1079_v11 = vrot.slane %v343_v9, 2  ;;  %vm570_vm1 = vcmask 64512   ;;  %vm2003_vm3 = vcmask 326656  }
  0x24   : > { %2766 = vpush %v529_v14  ;;  %v1085_v14 = vrot.slane %v343_v9, 3  ;;  %vm2429_vm11 = vcmask 523264   ;;  %vm2551_vm12 = vcmask 162816  }
  0x25   : > { %2768 = vpush %v539_v16  ;;  %v1105_v16 = vrot.slane %v343_v9, 5 }
  0x26   : > { %2770 = vpush %v337_v15  ;;  %v1095_v15 = vrot.slane %v343_v9, 4 }
  0x27   : > { %2772 = vpush %v559_v17  ;;  %v1115_v17 = vrot.slane %v343_v9, 6 }
  0x28   : > { %2774 = vpush %v591_v18  ;;  %v344_v18 = vld [vmem:[%s4366_s1 + $0x48] sm:$0xff] }
  0x29   : > { %2776 = vpush %v597_v19  ;;  %v1125_v19 = vrot.slane %v343_v9, 7 }
  0x2a   : > { %2778 = vpush %v607_v20 }
  0x2b   : > { %2780 = vpush %v617_v21  ;;  %v1161_v21 = vrot.slane %v344_v18, 1 }
  0x2c   : > { %2782 = vpush %v627_v22  ;;  %v3311_v22 = vld [vmem:[%s3255_s27 + $0x8] sm:$0xff] }
  0x2d   : > { %2784 = vpush %v637_v24 }
  0x2e   : > { %2786 = vpush %v338_v23  ;;  %v1171_v23 = vrot.slane %v344_v18, 2 }
  0x2f   : > { %2788 = vpush %v653_v25  ;;  %v1181_v25 = vrot.slane %v344_v18, 3 }
  0x30   : > { %2790 = vpush %v663_v26  ;;  %v1191_v26 = vrot.slane %v344_v18, 4 }
  0x31   : > { %2792 = vpush %v673_v27  ;;  %v1201_v27 = vrot.slane %v344_v18, 5 }
  0x32   : > { %2794 = vpush %v683_v28  ;;  %v1211_v28 = vrot.slane %v344_v18, 6 }
  0x33   : > { %2796 = vpush %v693_v29  ;;  %v345_v29 = vld [vmem:[%s4366_s1 + $0x50] sm:$0xff] }
  0x34   : > { %2798 = vpush %v703_v30  ;;  %v1217_v30 = vrot.slane %v344_v18, 7 }
  0x35   : > { %2800 = vpush %v709_v32  ;;  %v1247_v32 = vrot.slane %v345_v29, 2 }
  0x36   : > { %2802 = vpush %v339_v31  ;;  %v1237_v31 = vrot.slane %v345_v29, 1 }
  0x37   : > { %2804 = vpush %v729_v33  ;;  %v1257_v33 = vrot.slane %v345_v29, 3 }
  0x38   : > { %2806 = vpush %v739_v34  ;;  %v1267_v34 = vrot.slane %v345_v29, 4 }
  0x39   : > { %2808 = vpush %v749_v35  ;;  %v1273_v35 = vrot.slane %v345_v29, 5 }
  0x3a   : > { %2810 = vpush %v779_v36  ;;  %v1283_v36 = vrot.slane %v345_v29, 6 }
  0x3b   : > { %2812 = vpush %v785_v37  ;;  %v3347_v37 = vld [vmem:[%s4366_s1 + $0x58] sm:$0xff] }
  0x3c   : > { %2814 = vpush %v795_v38  ;;  %v1293_v38 = vrot.slane %v345_v29, 7 }
  0x3d   : > { %2816 = vpush %v805_v40  ;;  %v1343_v40 = vrot.slane %v3347_v37, 2 }
  0x3e   : > { %2818 = vpush %v340_v39  ;;  %v1313_v39 = vrot.slane %v3347_v37, 1 }
  0x3f   : > { %2820 = vpush %v825_v41  ;;  %v1349_v41 = vrot.slane %v3347_v37, 3 }
  0x40   : > { %2822 = vpush %v835_v42  ;;  %v1359_v42 = vrot.slane %v3347_v37, 4 }
  0x41   : > { %2824 = vpush %v841_v43  ;;  %v1369_v43 = vrot.slane %v3347_v37, 5 }
  0x42   : > { %2826 = vpush %v851_v44 }
  0x43   : > { %2828 = vpush %v861_v45 }
  0x44   : > { %2830 = vpush %v871_v46 }
  0x45   : > { %2832 = vpush %v881_v48 }
  0x46   : > { %2834 = vpush %v341_v47  ;;  %s3205_s25 = spop %2738 }
  0x47   : > { %4404 = sst [smem:[#allocation3_spill]] %s3205_s25  ;;  %2836 = vpush %v897_v49  ;;  %v1379_v49 = vrot.slane %v3347_v37, 6 }
  0x48   : > { %2838 = vpush %v907_v50  ;;  %s3216_s28 = spop %2740 }
  0x49   : > { %2840 = vpush %v917_v51  ;;  %s3218_s29 = spop %2742 }
  0x4a   : > { %2842 = vpush %v927_v52  ;;  %s3220_s11 = spop %2744 }
  0x4b   : > { %2844 = vpush %v937_v53  ;;  %s3223_s12 = spop %2746 }
  0x4c   : > { %2846 = vpush %v967_v54  ;;  %s3226_s13 = spop %2748 }
  0x4d   : > { %2848 = vpush %v973_v56  ;;  %s3229_s14 = spop %2750 }
  0x4e   : > { %4406 = sst [smem:[#allocation5_spill]] %s3229_s14  ;;  %2850 = vpush %v3214_v55  ;;  %s3233_s15 = spop %2752 }
  0x4f   : > { %4407 = sst [smem:[#allocation6_spill]] %s3233_s15  ;;  %2852 = vpush %v993_v57  ;;  %s3236_s16 = spop %2754 }
  0x50   : > { %4408 = sst [smem:[#allocation7_spill]] %s3236_s16  ;;  %2854 = vpush %v1003_v58  ;;  %s3239_s17 = spop %2756 }
  0x51   : > { %4409 = sst [smem:[#allocation8_spill]] %s3239_s17  ;;  %2856 = vpush %v1013_v59  ;;  %s3241_s18 = spop %2758 }
  0x52   : > { %4410 = sst [smem:[#allocation9_spill]] %s3241_s18  ;;  %2858 = vpush %v1023_v60  ;;  %s3244_s20 = spop %2760 }
  0x53   : > { %4411 = sst [smem:[#allocation10_spill]] %s3244_s20  ;;  %2860 = vpush %v1029_v61  ;;  %s3246_s21 = spop %2762 }
  0x54   : > { %4412 = sst [smem:[#allocation11_spill]] %s3246_s21  ;;  %2862 = vpush %v1039_v62  ;;  %s3248_s22 = spop %2764  ;;  %v1389_v62 = vrot.slane %v3347_v37, 7 }
  0x55   : > { %4413 = sst [smem:[#allocation12_spill]] %s3248_s22  ;;  %s3250_s23 = spop %2766  ;;  %2864 = vpush %v1049_v8 }
  0x56   : > { %4414 = sst [smem:[#allocation13_spill]] %s3250_s23  ;;  %s3257_s30 = spop %2768  ;;  %2866 = vpush %v343_v9 }
  0x57   : > { %4416 = sst [smem:[#allocation14_spill]] %s3257_s30  ;;  %s3259_s9 = spop %2770  ;;  %2868 = vpush %v1069_v10  ;;  %v3409_v10 = vld [vmem:[%s4366_s1 + $0x68] sm:$0xff] }
  0x58   : > { %4417 = sst [smem:[#allocation15_spill]] %s3259_s9  ;;  %s3261_s10 = spop %2772  ;;  %2870 = vpush %v1079_v11 }
  0x59   : > { %4418 = sst [smem:[#allocation16_spill]] %s3261_s10  ;;  %s3266_s8 = spop %2774  ;;  %2872 = vpush %v1085_v14 }
  0x5a   : > { %s2777_s6 = spop %2776  ;;  %s4392_s9 = smov 124   ;;  %2874 = vpush %v1095_v15  ;;  %v1481_v15 = vrot.slane %v3409_v10, 1 }
  0x5b   : > { %v599_v0 = vstv %s2777_s6  ;;  %s2779_s7 = spop %2778  ;;  %2876 = vpush %v1105_v16  ;;  %s4423_s18 = smov 127  }
  0x5c   : > { %s2781_s4 = spop %2780  ;;  %v601_v1 = vmul.f32 %v599_v0, %v3264_v63  ;;  %v609_v6 = vstv %s2779_s7  ;;  %2878 = vpush %v1115_v17  ;;  %v347_v0 = vld [vmem:[%s4366_s1 + $0x60] sm:$0xff]  ;;  %v1491_v17 = vrot.slane %v3409_v10, 2 }
  0x5d   : > { %v619_v2 = vstv %s2781_s4  ;;  %s2783_s19 = spop %2782  ;;  %v611_v12 = vmul.f32 %v609_v6, %v3264_v63  ;;  %2880 = vpush %v1125_v19  ;;  %v1435_v6 = vrot.slane %v347_v0, 4  ;;  %v1445_v8 = vrot.slane %v347_v0, 5 }
  0x5e   : > { %s2785_s24 = spop %2784  ;;  %v621_v3 = vmul.f32 %v619_v2, %v3264_v63  ;;  %603 = vrot.lane.b32.xlu0 %v601_v1, %s4383_s26  ;;  %v629_v7 = vstv %s2783_s19  ;;  %s4390_s26 = smov 126   ;;  %2882 = vpush %v344_v18  ;;  %v1405_v2 = vrot.slane %v347_v0, 1  ;;  %v1455_v9 = vrot.slane %v347_v0, 6 }
  0x5f   : > { %v639_v4 = vstv %s2785_s24  ;;  %s3271_s0 = spop %2786  ;;  %v631_v13 = vmul.f32 %v629_v7, %v3264_v63  ;;  %2884 = vpush %v1161_v21  ;;  %v1501_v19 = vrot.slane %v3409_v10, 3  ;;  %v1531_v21 = vrot.slane %v3409_v10, 4 }
  0x60   : > { %4419 = sst [smem:[#allocation17_spill]] %s3271_s0  ;;  %v641_v5 = vmul.f32 %v639_v4, %v3264_v63  ;;  %623 = vrot.lane.b32.xlu1 %v621_v3, %s4388_s5  ;;  %s3275_s6 = spop %2788  ;;  %2886 = vpush %v1171_v23  ;;  %v1415_v3 = vrot.slane %v347_v0, 2  ;;  %v1425_v4 = vrot.slane %v347_v0, 3  ;;  %v1537_v23 = vrot.slane %v3409_v10, 5 }
  0x61   : > { %s3277_s4 = spop %2790  ;;  %v655_v20 = vstv %s3275_s6  ;;  %2888 = vpush %v1181_v25  ;;  %v1547_v25 = vrot.slane %v3409_v10, 6 }
  0x62   : > { %643 = vrot.lane.b32.xlu2 %v641_v5, %s4386_s3  ;;  %s3280_s21 = spop %2792  ;;  %v657_v24 = vmul.f32 %v655_v20, %v3311_v22  ;;  %2890 = vpush %v1191_v26  ;;  %v665_v52 = vstv %s3277_s4 }
  0x63   : > { %s3286_s2 = spop %2794  ;;  %2892 = vpush %v1201_v27  ;;  %v667_v55 = vmul.f32 %v665_v52, %v3311_v22  ;;  %v675_v57 = vstv %s3280_s21 }
  0x64   : > { %s3290_s7 = spop %2796  ;;  %2894 = vpush %v1211_v28  ;;  %v677_v59 = vmul.f32 %v675_v57, %v3311_v22  ;;  %v685_v5 = vstv %s3286_s2  ;;  %v3453_v28 = vld [vmem:[%s3255_s27 + $0x10] sm:$0xff] }
  0x65   : > { %s3292_s19 = spop %2798  ;;  %2896 = vpush %v1217_v30  ;;  %v695_v60 = vstv %s3290_s7  ;;  %v687_v11 = vmul.f32 %v685_v5, %v3311_v22 }
  0x66   : > { %4420 = sst [smem:[#allocation18_spill]] %s3292_s19  ;;  %s3294_s3 = spop %2800  ;;  %613 = vrot.lane.b32.xlu0 %v611_v12, %s4390_s26  ;;  %2898 = vpush %v345_v29  ;;  %v697_v1 = vmul.f32 %v695_v60, %v3311_v22 }
  0x67   : > { %s3297_s24 = spop %2802  ;;  %2900 = vpush %v1237_v31  ;;  %v711_v26 = vstv %s3294_s3  ;;  %v409_v31 = vstv %s3216_s28 }
  0x68   : > { %s3302_s10 = spop %2804  ;;  %633 = vrot.lane.b32.xlu1 %v631_v13, %s4392_s9  ;;  %2902 = vpush %v1247_v32  ;;  %v1461_v13 = vrot.slane %v347_v0, 7  ;;  %v713_v29 = vmul.f32 %v711_v26, %v3453_v28  ;;  %v449_v26 = vstv %s3226_s13 }
  0x69   : > { %s3306_s26 = spop %2806  ;;  %2904 = vpush %v1257_v33  ;;  %v411_v33 = vmul.f32 %v409_v31, %v3264_v63 }
  0x6a   : > { %s3308_s25 = spop %2808  ;;  %2906 = vpush %v1267_v34  ;;  %v1557_v34 = vrot.slane %v3409_v10, 7 }
  0x6b   : > { %4421 = sst [smem:[#allocation19_spill]] %s3308_s25  ;;  %s3313_s30 = spop %2810  ;;  %2908 = vpush %v1273_v35 }
  0x6c   : > { %4422 = sst [smem:[#allocation20_spill]] %s3313_s30  ;;  %s3316_s5 = spop %2812  ;;  %2910 = vpush %v1283_v36 }
  0x6d   : > { %s3318_s14 = spop %2814  ;;  %2912 = vpush %v1293_v38  ;;  %v787_v58 = vstv %s3316_s5 }
  0x6e   : > { %s3320_s6 = spop %2816  ;;  %2914 = vpush %v3347_v37  ;;  %v789_v61 = vmul.f32 %v787_v58, %v3264_v63  ;;  %v797_v7 = vstv %s3318_s14 }
  0x6f   : > { %s3322_s9 = spop %2818  ;;  %2916 = vpush %v1313_v39  ;;  %v799_v14 = vmul.f32 %v797_v7, %v3264_v63  ;;  %v807_v20 = vstv %s3320_s6 }
  0x70   : > { %s3327_s20 = spop %2820  ;;  %659 = vrot.lane.b32.xlu1 %v657_v24, %s4423_s18  ;;  %2918 = vpush %v1343_v40  ;;  %v817_v12 = vstv %s3322_s9  ;;  %v809_v27 = vmul.f32 %v807_v20, %v3264_v63  ;;  %v349_v40 = vld [vmem:[%s4366_s1 + $0x70] sm:$0xff] }
  0x71   : > { %s3330_s30 = spop %2822  ;;  %2920 = vpush %v1349_v41  ;;  %v819_v16 = vmul.f32 %v817_v12, %v3264_v63  ;;  %v827_v36 = vstv %s3327_s20  ;;  %v1603_v57 = vrot.slane %v349_v40, 4 }
  0x72   : > { %4424 = sst [smem:[#allocation21_spill]] %s3330_s30  ;;  %s3332_s17 = spop %2824  ;;  %2922 = vpush %v1359_v42  ;;  %v829_v38 = vmul.f32 %v827_v36, %v3264_v63  ;;  %v419_v42 = vstv %s3218_s29 }
  0x73   : > { %s3334_s19 = spop %2826  ;;  %2924 = vpush %v1369_v43  ;;  %v721_v43 = vstv %s3297_s24  ;;  %v843_v58 = vstv %s3332_s17 }
  0x74   : > { %s3336_s16 = spop %2828  ;;  %2926 = vpush %v1379_v49  ;;  %v429_v49 = vstv %s3220_s11 }
  0x75   : > { %4425 = sst [smem:[#allocation22_spill]] %s3336_s16  ;;  %s3338_s22 = spop %2830  ;;  %2928 = vpush %v1389_v62  ;;  %v431_v52 = vmul.f32 %v429_v49, %v3264_v63  ;;  %v1623_v62 = vrot.slane %v349_v40, 6 }
  0x76   : > { %4426 = sst [smem:[#allocation23_spill]] %s3338_s22  ;;  %s3340_s23 = spop %2832  ;;  %2930 = vpush %v347_v0  ;;  %v350_v0 = vld [vmem:[%s4366_s1 + $0x78] sm:$0xff] }
  0x77   : > { %4427 = sst [smem:[#allocation24_spill]] %s3340_s23  ;;  %s3342_s30 = spop %2834  ;;  %2932 = vpush %v1405_v2  ;;  %v845_v2 = vmul.f32 %v843_v58, %v3311_v22  ;;  %v1649_v5 = vrot.slane %v350_v0, 1  ;;  %v1669_v7 = vrot.slane %v350_v0, 3  ;;  %v1719_v12 = vrot.slane %v350_v0, 6 }
  0x78   : > { %4428 = sst [smem:[#allocation25_spill]] %s3342_s30  ;;  %s3349_s16 = spop %2836  ;;  %2934 = vpush %v1415_v3 }
  0x79   : > { %4429 = sst [smem:[#allocation26_spill]] %s3349_s16  ;;  %s3351_s22 = spop %2838  ;;  %2936 = vpush %v1425_v4 }
  0x7a   : > { %4430 = sst [smem:[#allocation27_spill]] %s3351_s22  ;;  %s3353_s25 = spop %2840  ;;  %2938 = vpush %v1435_v6  ;;  %v1659_v6 = vrot.slane %v350_v0, 2 }
  0x7b   : > { %4431 = sst [smem:[#allocation28_spill]] %s3353_s25  ;;  %s3356_s30 = spop %2842  ;;  %2940 = vpush %v1445_v8  ;;  %v1679_v8 = vrot.slane %v350_v0, 4 }
  0x7c   : > { %4432 = sst [smem:[#allocation29_spill]] %s3356_s30  ;;  %s3359_s0 = spop %2844  ;;  %2942 = vpush %v1455_v9  ;;  %v439_v9 = vstv %s3223_s12 }
  0x7d   : > { %4433 = sst [smem:[#allocation30_spill]] %s3359_s0  ;;  %s3362_s15 = spop %2846  ;;  %2944 = vpush %v1461_v13  ;;  %v1725_v13 = vrot.slane %v350_v0, 7 }
  0x7e   : > { %4434 = sst [smem:[#allocation31_spill]] %s3362_s15  ;;  %s2849_s25 = spop %2848  ;;  %2946 = vpush %v3409_v10  ;;  %v1689_v10 = vrot.slane %v350_v0, 5 }
  0x7f   : > { %v975_v44 = vstv %s2849_s25  ;;  %s2851_s30 = spop %2850  ;;  %s4435_s25 = smov 126   ;;  %2948 = vpush %v1481_v15  ;;  %v853_v15 = vstv %s3334_s19 }
  0x80   : > { %v977_v45 = vmul.f32 %v975_v44, %v3264_v63  ;;  %v985_v46 = vstv %s2851_s30  ;;  %s2853_s0 = spop %2852  ;;  %s4436_s16 = smov 124   ;;  %2950 = vpush %v1491_v17  ;;  %v421_v44 = vmul.f32 %v419_v42, %v3264_v63 }
  0x81   : > { %v987_v47 = vmul.f32 %v985_v46, %v3264_v63  ;;  %s2855_s22 = spop %2854  ;;  %v995_v50 = vstv %s2853_s0  ;;  %s4438_s0 = smov 123   ;;  %2952 = vpush %v1501_v19  ;;  %v723_v46 = vmul.f32 %v721_v43, %v3453_v28 }
  0x82   : > { %979 = vrot.lane.b32.xlu2 %v977_v45, %s4423_s18  ;;  %v1005_v48 = vstv %s2855_s22  ;;  %s2857_s30 = spop %2856  ;;  %v997_v53 = vmul.f32 %v995_v50, %v3264_v63  ;;  %s4437_s22 = smov 125   ;;  %2954 = vpush %v1531_v21  ;;  %v855_v21 = vmul.f32 %v853_v15, %v3311_v22 }
  0x83   : > { %989 = vrot.lane.b32.xlu0 %v987_v47, %s4435_s25  ;;  %v1007_v51 = vmul.f32 %v1005_v48, %v3264_v63  ;;  %v1015_v54 = vstv %s2857_s30  ;;  %s3385_s4 = spop %2858  ;;  %2956 = vpush %v1537_v23  ;;  %s4461_s12 = sld [smem:[#allocation19_spill]] }
  0x84   : > { %v1017_v56 = vmul.f32 %v1015_v54, %v3264_v63  ;;  %4439 = sst [smem:[#allocation32_spill]] %s3385_s4  ;;  %s3389_s30 = spop %2860  ;;  %2958 = vpush %v1547_v25  ;;  %v1577_v54 = vrot.slane %v349_v40, 1 }
  0x85   : > { %1009 = vrot.lane.b32.xlu1 %v1007_v51, %s4436_s16  ;;  %s3397_s7 = spop %2862  ;;  %v1031_v18 = vstv %s3389_s30  ;;  %2960 = vpush %v1557_v34  ;;  %v731_v51 = vstv %s3302_s10 }
  0x86   : > { %s3401_s5 = spop %2864  ;;  %v1033_v24 = vmul.f32 %v1031_v18, %v3311_v22  ;;  %v1041_v30 = vstv %s3397_s7  ;;  %2962 = vpush %v349_v40  ;;  %v593_v18 = vstv %s3266_s8  ;;  %s4463_s8 = sld [smem:[#allocation17_spill]] }
  0x87   : > { %s3404_s15 = spop %2866  ;;  %v1043_v32 = vmul.f32 %v1041_v30, %v3311_v22  ;;  %v1051_v35 = vstv %s3401_s5  ;;  %2964 = vpush %v1577_v54  ;;  %v595_v25 = vmul.f32 %v593_v18, %v3264_v63 }
  0x88   : > { %s3411_s23 = spop %2868  ;;  %v1053_v37 = vmul.f32 %v1051_v35, %v3311_v22  ;;  %v1061_v45 = vstv %s3404_s15  ;;  %s4464_s15 = sld [smem:[#allocation22_spill]] }
  0x89   : > { %s3415_s2 = spop %2870  ;;  %v1063_v47 = vmul.f32 %v1061_v45, %v3311_v22  ;;  %v1071_v60 = vstv %s3411_s23  ;;  %v751_v30 = vstv %s4461_s12  ;;  %s4465_s12 = sld [smem:[#allocation23_spill]] }
  0x8a   : > { %999 = vrot.lane.b32.xlu2 %v997_v53, %s4437_s22  ;;  %4440 = sst [smem:[#allocation33_spill]] %s3415_s2  ;;  %s3418_s14 = spop %2872  ;;  %v733_v53 = vmul.f32 %v731_v51, %v3453_v28  ;;  %v1073_v3 = vmul.f32 %v1071_v60, %v3311_v22  ;;  %v753_v34 = vmul.f32 %v751_v30, %v3453_v28 }
  0x8b   : > { %669 = vrot.lane.b32.xlu0 %v667_v55, %s4435_s25  ;;  %s3422_s4 = spop %2874  ;;  %v1587_v55 = vrot.slane %v349_v40, 2  ;;  %v1087_v42 = vstv %s3418_s14  ;;  %s4467_s14 = sld [smem:[#allocation6_spill]] }
  0x8c   : > { %s3427_s9 = spop %2876 }
  0x8d   : > { %1019 = vrot.lane.b32.xlu1 %v1017_v56, %s4438_s0  ;;  %s3431_s21 = spop %2878  ;;  %v1593_v56 = vrot.slane %v349_v40, 3  ;;  %2966 = vpush %v1587_v55  ;;  %v1097_v55 = vstv %s3422_s4 }
  0x8e   : > { %4441 = sst [smem:[#allocation34_spill]] %s3431_s21  ;;  %s3437_s2 = spop %2880 }
  0x8f   : > { %4442 = sst [smem:[#allocation35_spill]] %s3437_s2  ;;  %s3440_s30 = spop %2882  ;;  %2968 = vpush %v1593_v56 }
  0x90   : > { %4443 = sst [smem:[#allocation36_spill]] %s3440_s30  ;;  %s3443_s21 = spop %2884  ;;  %2970 = vpush %v1603_v57  ;;  %v1099_v57 = vmul.f32 %v1097_v55, %v3453_v28 }
  0x91   : > { %4444 = sst [smem:[#allocation37_spill]] %s3443_s21  ;;  %s3448_s6 = spop %2886 }
  0x92   : > { %679 = vrot.lane.b32.xlu2 %v677_v59, %s4437_s22  ;;  %4445 = sst [smem:[#allocation38_spill]] %s3448_s6  ;;  %s3450_s2 = spop %2888  ;;  %v1613_v59 = vrot.slane %v349_v40, 5 }
  0x93   : > { %791 = vrot.lane.b32.xlu0 %v789_v61, %s4423_s18  ;;  %4446 = sst [smem:[#allocation39_spill]] %s3450_s2  ;;  %s3456_s30 = spop %2890 }
  0x94   : > { %4447 = sst [smem:[#allocation40_spill]] %s3456_s30  ;;  %s3461_s3 = spop %2892  ;;  %2972 = vpush %v1613_v59 }
  0x95   : > { %699 = vrot.lane.b32.xlu1 %v697_v1, %s4438_s0  ;;  %4448 = sst [smem:[#allocation41_spill]] %s3461_s3  ;;  %s3463_s6 = spop %2894  ;;  %v1633_v1 = vrot.slane %v349_v40, 7  ;;  %2974 = vpush %v1623_v62  ;;  %v863_v40 = vstv %s4464_s15 }
  0x96   : > { %4449 = sst [smem:[#allocation42_spill]] %s3463_s6  ;;  %s3466_s2 = spop %2896 }
  0x97   : > { %4450 = sst [smem:[#allocation43_spill]] %s3466_s2  ;;  %s3470_s30 = spop %2898  ;;  %2976 = vpush %v1633_v1 }
  0x98   : > { %4451 = sst [smem:[#allocation44_spill]] %s3470_s30  ;;  %s3472_s21 = spop %2900  ;;  %2978 = vpush %v350_v0 }
  0x99   : > { %4452 = sst [smem:[#allocation45_spill]] %s3472_s21  ;;  %s3474_s7 = spop %2902  ;;  %2980 = vpush %v1649_v5 }
  0x9a   : > { %689 = vrot.lane.b32.xlu2 %v687_v11, %s4436_s16  ;;  %4453 = sst [smem:[#allocation46_spill]] %s3474_s7  ;;  %s3477_s3 = spop %2904  ;;  %v741_v11 = vstv %s3306_s26  ;;  %2982 = vpush %v1659_v6 }
  0x9b   : > { %801 = vrot.lane.b32.xlu0 %v799_v14, %s4435_s25  ;;  %4454 = sst [smem:[#allocation47_spill]] %s3477_s3  ;;  %s3480_s6 = spop %2906  ;;  %2984 = vpush %v1669_v7  ;;  %v441_v14 = vmul.f32 %v439_v9, %v3264_v63  ;;  %v743_v17 = vmul.f32 %v741_v11, %v3453_v28 }
  0x9c   : > { %4455 = sst [smem:[#allocation48_spill]] %s3480_s6  ;;  %s3484_s28 = spop %2908  ;;  %2986 = vpush %v1679_v8  ;;  %v1107_v8 = vstv %s3427_s9 }
  0x9d   : > { %821 = vrot.lane.b32.xlu1 %v819_v16, %s4436_s16  ;;  %4456 = sst [smem:[#allocation49_spill]] %s3484_s28  ;;  %s3487_s30 = spop %2910  ;;  %2988 = vpush %v1689_v10 }
  0x9e   : > { %4457 = sst [smem:[#allocation50_spill]] %s3487_s30  ;;  %s3490_s7 = spop %2912  ;;  %2990 = vpush %v1719_v12 }
  0x9f   : > { %4458 = sst [smem:[#allocation51_spill]] %s3490_s7  ;;  %s3492_s3 = spop %2914  ;;  %2992 = vpush %v1725_v13 }
  0xa0   : > { %4459 = sst [smem:[#allocation52_spill]] %s3492_s3  ;;  %s3495_s6 = spop %2916 }
  0xa1   : > { %4460 = sst [smem:[#allocation53_spill]] %s3495_s6  ;;  %s3498_s21 = spop %2918 }
  0xa2   : > { %811 = vrot.lane.b32.xlu2 %v809_v27, %s4437_s22  ;;  %s2921_s5 = spop %2920  ;;  %s4469_s15 = sld [smem:[#allocation31_spill]] }
  0xa3   : > { %1035 = vrot.lane.b32.xlu0 %v1033_v24, %s4423_s18  ;;  %v1351_v39 = vstv %s2921_s5  ;;  %s2923_s6 = spop %2922  ;;  %v3568_v24 = vld [vmem:[%s4366_s1 + $0x80] sm:$0xff] }
  0xa4   : > { %v1353_v41 = vmul.f32 %v1351_v39, %v3264_v63  ;;  %v1361_v48 = vstv %s2923_s6  ;;  %s2925_s29 = spop %2924  ;;  %2994 = vpush %v3568_v24  ;;  %v1745_v36 = vrot.slane %v3568_v24, 1  ;;  %v1755_v51 = vrot.slane %v3568_v24, 2 }
  0xa5   : > { %715 = vrot.lane.b32.xlu1 %v713_v29, %s4423_s18  ;;  %v1363_v50 = vmul.f32 %v1361_v48, %v3264_v63  ;;  %s3523_s24 = spop %2926  ;;  %v1371_v61 = vstv %s2925_s29 }
  0xa6   : > { %s3527_s10 = spop %2928  ;;  %v1373_v4 = vmul.f32 %v1371_v61, %v3264_v63  ;;  %v1381_v23 = vstv %s3523_s24  ;;  %2996 = vpush %v1745_v36  ;;  %v465_v61 = vstv %s4467_s14  ;;  %s4471_s14 = sld [smem:[#allocation32_spill]] }
  0xa7   : > { %s3533_s30 = spop %2930  ;;  %v1383_v27 = vmul.f32 %v1381_v23, %v3264_v63  ;;  %v1391_v43 = vstv %s3527_s10  ;;  %s4468_s10 = sld [smem:[#allocation24_spill]]  ;;  %2998 = vpush %v1755_v51  ;;  %v467_v1 = vmul.f32 %v465_v61, %v3311_v22 }
  0xa8   : > { %s3536_s17 = spop %2932  ;;  %v1393_v48 = vmul.f32 %v1391_v43, %v3264_v63 }
  0xa9   : > { %s3541_s23 = spop %2934  ;;  %v1407_v6 = vstv %s3536_s17  ;;  %s4473_s17 = sld [smem:[#allocation34_spill]] }
  0xaa   : > { %1045 = vrot.lane.b32.xlu2 %v1043_v32, %s4435_s25  ;;  %s3544_s6 = spop %2936  ;;  %v451_v32 = vmul.f32 %v449_v26, %v3264_v63  ;;  %v1409_v12 = vmul.f32 %v1407_v6, %v3311_v22 }
  0xab   : > { %413 = vrot.lane.b32.xlu0 %v411_v33, %s4423_s18  ;;  %s3549_s5 = spop %2938  ;;  %v1427_v61 = vstv %s3544_s6  ;;  %s4486_s6 = sld [smem:[#allocation10_spill]] }
  0xac   : > { %s3553_s20 = spop %2940 }
  0xad   : > { %1355 = vrot.lane.b32.xlu1 %v1353_v41, %s4423_s18  ;;  %s3558_s26 = spop %2942  ;;  %v883_v0 = vstv %s4468_s10 }
  0xae   : > { %4462 = sst [smem:[#allocation19_spill]] %s3558_s26  ;;  %s3563_s19 = spop %2944 }
  0xaf   : > { %s3575_s24 = spop %2946  ;;  %s4474_s26 = sld [smem:[#allocation18_spill]] }
  0xb0   : > { %s3578_s3 = spop %2948 }
  0xb1   : > { %s3582_s29 = spop %2950 }
  0xb2   : > { %831 = vrot.lane.b32.xlu2 %v829_v38, %s4438_s0  ;;  %s3588_s13 = spop %2952 }
  0xb3   : > { %1055 = vrot.lane.b32.xlu0 %v1053_v37, %s4437_s22  ;;  %v649_v37 = vstv %s4463_s8  ;;  %s3594_s11 = spop %2954 }
  0xb4   : > { %4466 = sst [smem:[#allocation17_spill]] %s3594_s11  ;;  %s2957_s8 = spop %2956 }
  0xb5   : > { %1065 = vrot.lane.b32.xlu1 %v1063_v47, %s4436_s16  ;;  %v1089_v47 = vmul.f32 %v1087_v42, %v3453_v28  ;;  %s2959_s7 = spop %2958  ;;  %v705_v42 = vstv %s4474_s26 }
  0xb6   : > { %v1549_v58 = vstv %s2959_s7  ;;  %s2961_s4 = spop %2960 }
  0xb7   : > { %v1551_v62 = vmul.f32 %v1549_v58, %v3264_v63  ;;  %s3625_s7 = spop %2962  ;;  %v1559_v11 = vstv %s2961_s4 }
  0xba   : > { %423 = vrot.lane.b32.xlu2 %v421_v44, %s4435_s25  ;;  %v651_v44 = vmul.f32 %v649_v37, %v3311_v22 }
  0xbb   : > { %725 = vrot.lane.b32.xlu0 %v723_v46, %s4435_s25  ;;  %v865_v46 = vmul.f32 %v863_v40, %v3311_v22  ;;  %v1781_v40 = vrot.slane %v3568_v24, 5 }
  0xbc   : > { %v644_v19 = vpop.permute.xlu2 %643 }
  0xbd   : > { %735 = vrot.lane.b32.xlu1 %v733_v53, %s4437_s22  ;;  %v873_v53 = vstv %s4465_s12  ;;  %s4470_s12 = sld [smem:[#allocation7_spill]] }
  0xbe   : > { %v875_v56 = vmul.f32 %v873_v53, %v3311_v22 }
  0xc2   : > { %1365 = vrot.lane.b32.xlu2 %v1363_v50, %s4435_s25  ;;  %v1539_v50 = vstv %s2957_s8  ;;  %s3627_s8 = spop %2964 }
  0xc3   : > { %433 = vrot.lane.b32.xlu0 %v431_v52, %s4437_s22  ;;  %v1541_v54 = vmul.f32 %v1539_v50, %v3264_v63  ;;  %s3630_s10 = spop %2966 }
  0xc4   : > { %4472 = sst [smem:[#allocation22_spill]] %s3630_s10  ;;  %s3633_s9 = spop %2968 }
  0xc5   : > { %1375 = vrot.lane.b32.xlu1 %v1373_v4, %s4437_s22  ;;  %v1765_v4 = vrot.slane %v3568_v24, 3 }
  0xc7   : > { %3000 = vpush %v1765_v4 }
  0xca   : > { %847 = vrot.lane.b32.xlu2 %v845_v2, %s4423_s18  ;;  %v969_v2 = vstv %s4469_s15  ;;  %s3637_s15 = spop %2970 }
  0xcb   : > { %1075 = vrot.lane.b32.xlu0 %v1073_v3, %s4438_s0  ;;  %v885_v3 = vmul.f32 %v883_v0, %v3311_v22  ;;  %v971_v5 = vmul.f32 %v969_v2, %v3264_v63  ;;  %s3642_s4 = spop %2972  ;;  %v1579_v0 = vstv %s3627_s8  ;;  %s4487_s8 = sld [smem:[#allocation28_spill]] }
  0xcc   : > { %s3648_s28 = spop %2974  ;;  %v1581_v6 = vmul.f32 %v1579_v0, %v3264_v63 }
  0xcd   : > { %857 = vrot.lane.b32.xlu1 %v855_v21, %s4435_s25  ;;  %v1025_v21 = vstv %s4471_s14  ;;  %s3653_s2 = spop %2976 }
  0xce   : > { %s3657_s14 = spop %2978 }
  0xcf   : > { %4476 = sst [smem:[#allocation23_spill]] %s3657_s14  ;;  %s3668_s10 = spop %2980 }
  0xd0   : > { %v604_v16 = vpop.permute.xlu0 %603  ;;  %s4480_s14 = sld [smem:[#allocation35_spill]] }
  0xd1   : > { %v606_v29 = vadd.f32 %v604_v16, %v595_v25  ;;  %v1561_v16 = vmul.f32 %v1559_v11, %v3264_v63  ;;  %v1117_v25 = vstv %s4473_s17  ;;  %s4477_s17 = sld [smem:[#allocation20_spill]] }
  0xd2   : > { %443 = vrot.lane.b32.xlu2 %v441_v14, %s4436_s16  ;;  %v624_v20 = vpop.permute.xlu1 %623  ;;  %v1109_v14 = vmul.f32 %v1107_v8, %v3453_v28 }
  0xd3   : > { %745 = vrot.lane.b32.xlu0 %v743_v17, %s4436_s16 }
  0xd5   : > { %755 = vrot.lane.b32.xlu1 %v753_v34, %s4438_s0  ;;  %v1119_v34 = vmul.f32 %v1117_v25, %v3453_v28 }
  0xd8   : > { %v614_v31 = vpop.permute.xlu0 %613 }
  0xd9   : > { %v616_v33 = vadd.f32 %v614_v31, %v606_v29  ;;  %v1027_v31 = vmul.f32 %v1025_v21, %v3311_v22  ;;  %v1437_v21 = vstv %s3549_s5  ;;  %s4500_s5 = sld [smem:[#allocation17_spill]] }
  0xda   : > { %1385 = vrot.lane.b32.xlu2 %v1383_v27, %s4436_s16  ;;  %v634_v39 = vpop.permute.xlu1 %633 }
  0xdb   : > { %453 = vrot.lane.b32.xlu0 %v451_v32, %s4438_s0  ;;  %v626_v35 = vadd.f32 %v624_v20, %v616_v33  ;;  %v475_v20 = vstv %s4470_s12  ;;  %v1417_v32 = vstv %s3541_s23  ;;  %s4475_s12 = sld [smem:[#allocation8_spill]] }
  0xdc   : > { %v980_v38 = vpop.permute.xlu2 %979  ;;  %v477_v30 = vmul.f32 %v475_v20, %v3311_v22  ;;  %v1419_v37 = vmul.f32 %v1417_v32, %v3311_v22  ;;  %s4478_s23 = sld [smem:[#allocation26_spill]]  ;;  %v3742_v32 = vld [vmem:[%s4366_s1 + $0x88] sm:$0xff] }
  0xdd   : > { %v636_v41 = vadd.f32 %v634_v39, %v626_v35  ;;  %1395 = vrot.lane.b32.xlu1 %v1393_v48, %s4438_s0  ;;  %v982_v10 = vadd.f32 %v980_v38, %v971_v5  ;;  %v1569_v38 = vstv %s3625_s7  ;;  %v1775_v39 = vrot.slane %v3568_v24, 4  ;;  %s3674_s7 = spop %2982 }
  0xde   : > { %4479 = sst [smem:[#allocation6_spill]] %s3674_s7  ;;  %s3679_s11 = spop %2984  ;;  %v1429_v5 = vmul.f32 %v1427_v61, %v3311_v22 }
  0xdf   : > { %v646_v45 = vadd.f32 %v644_v19, %v636_v41  ;;  %3002 = vpush %v1775_v39  ;;  %4481 = sst [smem:[#allocation24_spill]] %s3679_s11  ;;  %s3684_s26 = spop %2986  ;;  %v1595_v39 = vstv %s3633_s9 }
  0xe0   : > { %3004 = vpush %v1781_v40  ;;  %4482 = sst [smem:[#allocation31_spill]] %s3684_s26 }
  0xe1   : > { %v652_v49 = vadd.f32 %v651_v44, %v646_v45  ;;  %v485_v44 = vstv %s4475_s12  ;;  %v1571_v45 = vmul.f32 %v1569_v38, %v3264_v63  ;;  %s4483_s12 = sld [smem:[#allocation21_spill]] }
  0xe2   : > { %867 = vrot.lane.b32.xlu2 %v865_v46, %s4437_s22  ;;  %v660_v60 = vpop.permute.xlu1 %659  ;;  %v899_v50 = vstv %s4478_s23  ;;  %s4484_s26 = sld [smem:[#allocation9_spill]] }
  0xe3   : > { %1091 = vrot.lane.b32.xlu0 %v1089_v47, %s4423_s18  ;;  %v662_v18 = vadd.f32 %v660_v60, %v652_v49  ;;  %v781_v47 = vstv %s4477_s17  ;;  %v707_v49 = vmul.f32 %v705_v42, %v3453_v28  ;;  %v901_v55 = vmul.f32 %v899_v50, %v3453_v28  ;;  %s3691_s17 = spop %2988  ;;  %s4485_s7 = sld [smem:[#allocation27_spill]] }
  0xe4   : > { %v1000_v52 = vpop.permute.xlu2 %999  ;;  %v783_v53 = vmul.f32 %v781_v47, %v3264_v63  ;;  %s3697_s23 = spop %2990  ;;  %v1597_v42 = vmul.f32 %v1595_v39, %v3311_v22  ;;  %s4490_s9 = sld [smem:[#allocation30_spill]]  ;;  %v1605_v50 = vstv %s3637_s15 }
  0xe5   : > { %1101 = vrot.lane.b32.xlu1 %v1099_v57, %s4435_s25  ;;  %s2993_s11 = spop %2992 }
  0xe6   : > { %v1727_v8 = vstv %s2993_s11  ;;  %s2995_s11 = spop %2994 }
  0xe7   : > { %v837_v4 = vstv %s4483_s12 }
  0xea   : > { %1543 = vrot.lane.b32.xlu2 %v1541_v54, %s4423_s18 }
  0xeb   : > { %877 = vrot.lane.b32.xlu0 %v875_v56, %s4436_s16  ;;  %v1791_v56 = vrot.slane %v3568_v24, 6 }
  0xec   : > { %v680_v59 = vpop.permute.xlu2 %679 }
  0xed   : > { %887 = vrot.lane.b32.xlu1 %v885_v3, %s4438_s0  ;;  %3006 = vpush %v1791_v56 }
  0xf2   : > { %1553 = vrot.lane.b32.xlu2 %v1551_v62, %s4435_s25 }
  0xf3   : > { %469 = vrot.lane.b32.xlu0 %v467_v1, %s4423_s18 }
  0xf4   : > { %v690_v7 = vpop.permute.xlu2 %689 }
  0xf5   : > { %v990_v9 = vpop.permute.xlu0 %989  ;;  %1563 = vrot.lane.b32.xlu1 %v1561_v16, %s4437_s22  ;;  %v909_v16 = vstv %s4485_s7  ;;  %s4488_s7 = sld [smem:[#allocation29_spill]] }
  0xf6   : > { %v992_v15 = vadd.f32 %v990_v9, %v982_v10  ;;  %v839_v9 = vmul.f32 %v837_v4, %v3311_v22  ;;  %v1847_v4 = vrot.slane %v3742_v32, 4 }
  0xf7   : > { %v1010_v13 = vpop.permute.xlu1 %1009 }
  0xf8   : > { %v1002_v19 = vadd.f32 %v1000_v52, %v992_v15  ;;  %v487_v52 = vmul.f32 %v485_v44, %v3311_v22  ;;  %v1821_v44 = vrot.slane %v3742_v32, 1 }
  0xfa   : > { %1111 = vrot.lane.b32.xlu2 %v1109_v14, %s4437_s22  ;;  %v1012_v26 = vadd.f32 %v1010_v13, %v1002_v19  ;;  %v495_v13 = vstv %s4484_s26  ;;  %v1729_v14 = vmul.f32 %v1727_v8, %v3264_v63  ;;  %v1801_v19 = vrot.slane %v3568_v24, 7  ;;  %s2997_s26 = spop %2996 }
  0xfb   : > { %1411 = vrot.lane.b32.xlu0 %v1409_v12, %s4423_s18  ;;  %v1737_v63 = vstv %s2995_s11  ;;  %v1439_v24 = vmul.f32 %v1437_v21, %v3311_v22  ;;  %v929_v47 = vstv %s4488_s7  ;;  %s2999_s12 = spop %2998  ;;  %s4492_s11 = sld [smem:[#allocation13_spill]]  ;;  %v1867_v21 = vrot.slane %v3742_v32, 6 }
  0xfc   : > { %v3640_v17 = vpop.permute.xlu2 %811  ;;  %3008 = vpush %v1801_v19  ;;  %s3001_s15 = spop %3000  ;;  %s4501_s7 = sld [smem:[#allocation38_spill]] }
  0xfd   : > { %v670_v23 = vpop.permute.xlu0 %669  ;;  %1421 = vrot.lane.b32.xlu1 %v1419_v37, %s4435_s25  ;;  %3010 = vpush %v3742_v32 }
  0xfe   : > { %v672_v27 = vadd.f32 %v670_v23, %v662_v18  ;;  %v911_v18 = vmul.f32 %v909_v16, %v3453_v28  ;;  %3012 = vpush %v1821_v44 }
  0xff   : > { %v1020_v29 = vpop.permute.xlu1 %1019 }
 0x100   : > { %v1022_v33 = vadd.f32 %v1020_v29, %v1012_v26  ;;  %v682_v35 = vadd.f32 %v680_v59, %v672_v27  ;;  %v1127_v59 = vstv %s4480_s14  ;;  %v3729_v26 = vld [vmem:[%s3255_s27] sm:$0xff]  ;;  %v505_v29 = vstv %s4486_s6  ;;  %s4491_s6 = sld [smem:[#allocation33_spill]] }
 0x101   : > { %v1129_v2 = vmul.f32 %v1127_v59, %v3453_v28  ;;  %v1739_v27 = vmul.f32 %v3729_v26, %v1737_v63  ;;  %v1857_v63 = vrot.slane %v3742_v32, 5 }
 0x102   : > { %479 = vrot.lane.b32.xlu2 %v477_v30, %s4435_s25  ;;  %v3659_v36 = vadd.f32 %v1027_v31, %v1022_v33  ;;  %v692_v46 = vadd.f32 %v690_v7, %v682_v35  ;;  %v507_v30 = vmul.f32 %v505_v29, %v3311_v22  ;;  %v919_v33 = vstv %s4487_s8  ;;  %s4498_s8 = sld [smem:[#allocation37_spill]] }
 0x103   : > { %1121 = vrot.lane.b32.xlu0 %v1119_v34, %s4436_s16  ;;  %v1447_v35 = vstv %s3553_s20  ;;  %v921_v38 = vmul.f32 %v919_v33, %v3453_v28  ;;  %s4489_s20 = sld [smem:[#allocation12_spill]]  ;;  %v531_v29 = vstv %s4492_s11  ;;  %v1345_v33 = vstv %s3498_s21 }
 0x104   : > { %v3666_v41 = vpop.permute.xlu2 %1045  ;;  %v1449_v40 = vmul.f32 %v1447_v35, %v3311_v22  ;;  %v533_v35 = vmul.f32 %v531_v29, %v3453_v28 }
 0x105   : > { %v792_v43 = vpop.permute.xlu0 %791  ;;  %903 = vrot.lane.b32.xlu1 %v901_v55, %s4423_s18 }
 0x106   : > { %v794_v58 = vadd.f32 %v792_v43, %v783_v53  ;;  %v1747_v43 = vstv %s2997_s26  ;;  %v1757_v53 = vstv %s2999_s12  ;;  %s4502_s26 = sld [smem:[#allocation6_spill]] }
 0x107   : > { %v700_v48 = vpop.permute.xlu1 %699  ;;  %v1759_v59 = vmul.f32 %v3729_v26, %v1757_v53  ;;  %s4506_s12 = sld [smem:[#allocation31_spill]] }
 0x108   : > { %v702_v51 = vadd.f32 %v700_v48, %v692_v46  ;;  %v1749_v48 = vmul.f32 %v3729_v26, %v1747_v43 }
 0x10a   : > { %1573 = vrot.lane.b32.xlu2 %v1571_v45, %s4436_s16  ;;  %v3686_v54 = vadd.f32 %v707_v49, %v702_v51  ;;  %v931_v51 = vmul.f32 %v929_v47, %v3453_v28  ;;  %v1877_v47 = vrot.slane %v3742_v32, 7 }
 0x10b   : > { %489 = vrot.lane.b32.xlu0 %v487_v52, %s4437_s22  ;;  %v1607_v52 = vmul.f32 %v1605_v50, %v3311_v22 }
 0x10c   : > { %v832_v57 = vpop.permute.xlu2 %831 }
 0x10d   : > { %v802_v60 = vpop.permute.xlu0 %801  ;;  %1583 = vrot.lane.b32.xlu1 %v1581_v6, %s4438_s0  ;;  %v1463_v6 = vstv %s3563_s19  ;;  %s4493_s19 = sld [smem:[#allocation14_spill]] }
 0x10e   : > { %v804_v62 = vadd.f32 %v802_v60, %v794_v58  ;;  %v521_v58 = vstv %s4489_s20  ;;  %v939_v60 = vstv %s4490_s9  ;;  %s4504_s20 = sld [smem:[#allocation24_spill]] }
 0x10f   : > { %v822_v1 = vpop.permute.xlu1 %821  ;;  %v941_v0 = vmul.f32 %v939_v60, %v3453_v28 }
 0x110   : > { %v814_v3 = vadd.f32 %v3640_v17, %v804_v62  ;;  %v497_v17 = vmul.f32 %v495_v13, %v3311_v22  ;;  %v523_v62 = vmul.f32 %v521_v58, %v3453_v28  ;;  %s3828_s21 = spop %3002 }
 0x112   : > { %1131 = vrot.lane.b32.xlu2 %v1129_v2, %s4438_s0  ;;  %v824_v7 = vadd.f32 %v822_v1, %v814_v3  ;;  %v1081_v1 = vstv %s4491_s6  ;;  %v1831_v2 = vrot.slane %v3742_v32, 2  ;;  %v1837_v3 = vrot.slane %v3742_v32, 3  ;;  %s4507_s6 = sld [smem:[#allocation41_spill]] }
 0x113   : > { %1431 = vrot.lane.b32.xlu0 %v1429_v5, %s4437_s22  ;;  %v1083_v8 = vmul.f32 %v1081_v1, %v3453_v28  ;;  %v1635_v32 = vstv %s3653_s2  ;;  %s4496_s2 = sld [smem:[#allocation16_spill]] }
 0x114   : > { %v3707_v10 = vpop.permute.xlu2 %423  ;;  %v834_v11 = vadd.f32 %v832_v57, %v824_v7  ;;  %3014 = vpush %v1831_v2 }
 0x115   : > { %v1036_v12 = vpop.permute.xlu0 %1035  ;;  %913 = vrot.lane.b32.xlu1 %v911_v18, %s4435_s25  ;;  %3016 = vpush %v1837_v3 }
 0x116   : > { %v3712_v15 = vadd.f32 %v839_v9, %v834_v11  ;;  %v1038_v55 = vadd.f32 %v1036_v12, %v3659_v36  ;;  %v1615_v9 = vstv %s3642_s4  ;;  %v1767_v12 = vstv %s3001_s15  ;;  %3018 = vpush %v1847_v4  ;;  %s4494_s4 = sld [smem:[#allocation3_spill]] }
 0x117   : > { %v3724_v23 = vpop.permute.xlu1 %715  ;;  %v1769_v19 = vmul.f32 %v3729_v26, %v1767_v12  ;;  %3020 = vpush %v1857_v63 }
 0x118   : > { %v1048_v22 = vadd.f32 %v3666_v41, %v1038_v55  ;;  %3022 = vpush %v1867_v21  ;;  %v718_v39 = vadd.f32 %v3724_v23, %v3686_v54  ;;  %v541_v23 = vstv %s4493_s19 }
 0x119   : > { %3024 = vpush %v1877_v47  ;;  %v543_v55 = vmul.f32 %v541_v23, %v3453_v28  ;;  %v561_v21 = vstv %s4496_s2  ;;  %v1651_v47 = vstv %s3668_s10  ;;  %v1533_v23 = vstv %s4500_s5  ;;  %s4503_s10 = sld [smem:[#allocation39_spill]] }
 0x11a   : > { %1731 = vrot.lane.b32.xlu2 %v1729_v14, %s4423_s18  ;;  %v1465_v14 = vmul.f32 %v1463_v6, %v3453_v28  ;;  %s4515_s5 = sld [smem:[#allocation49_spill]] }
 0x11b   : > { %499 = vrot.lane.b32.xlu0 %v497_v17, %s4436_s16  ;;  %v3797_v17 = vld [vmem:[%s3255_s27 + $0x8] sm:$0xff] }
 0x11c   : > { %v3720_v20 = vpop.permute.xlu2 %1365  ;;  %v1617_v18 = vmul.f32 %v3797_v17, %v1615_v9  ;;  %v1493_v9 = vstv %s3582_s29  ;;  %s4499_s29 = sld [smem:[#allocation25_spill]] }
 0x11d   : > { %v3726_v25 = vpop.permute.xlu0 %413  ;;  %509 = vrot.lane.b32.xlu1 %v507_v30, %s4438_s0  ;;  %v1473_v30 = vstv %s3575_s24  ;;  %s4495_s24 = sld [smem:[#allocation15_spill]] }
 0x11f   : > { %v3748_v37 = vpop.permute.xlu1 %1355 }
 0x122   : > { %1441 = vrot.lane.b32.xlu2 %v1439_v24, %s4436_s16 }
 0x123   : > { %1741 = vrot.lane.b32.xlu0 %v1739_v27, %s4435_s25  ;;  %v551_v4 = vstv %s4495_s24 }
 0x124   : > { %v3737_v31 = vpop.permute.xlu2 %847 }
 0x125   : > { %v1056_v34 = vpop.permute.xlu0 %1055  ;;  %1599 = vrot.lane.b32.xlu1 %v1597_v42, %s4423_s18  ;;  %v1347_v42 = vmul.f32 %v3729_v26, %v1345_v33 }
 0x126   : > { %v1058_v36 = vadd.f32 %v1056_v34, %v1048_v22 }
 0x127   : > { %v1066_v49 = vpop.permute.xlu1 %1065 }
 0x128   : > { %v1068_v41 = vadd.f32 %v1066_v49, %v1058_v36  ;;  %v1401_v36 = vstv %s3533_s30  ;;  %s4497_s30 = sld [smem:[#allocation5_spill]] }
 0x12a   : > { %923 = vrot.lane.b32.xlu2 %v921_v38, %s4437_s22  ;;  %v1625_v38 = vstv %s3648_s28  ;;  %s3005_s28 = spop %3004 }
 0x12b   : > { %1451 = vrot.lane.b32.xlu0 %v1449_v40, %s4438_s0  ;;  %v1475_v40 = vmul.f32 %v1473_v30, %v3453_v28  ;;  %v1627_v44 = vmul.f32 %v3797_v17, %v1625_v38  ;;  %v563_v38 = vmul.f32 %v561_v21, %v3453_v28 }
 0x12c   : > { %v3757_v45 = vpop.permute.xlu2 %443 }
 0x12d   : > { %v3760_v46 = vpop.permute.xlu0 %725  ;;  %1609 = vrot.lane.b32.xlu1 %v1607_v52, %s4435_s25  ;;  %v403_v52 = vstv %s4494_s4  ;;  %s4509_s4 = sld [smem:[#allocation43_spill]] }
 0x12e   : > { %v728_v43 = vadd.f32 %v3760_v46, %v718_v39  ;;  %v1483_v46 = vstv %s3578_s3  ;;  %v405_v60 = vmul.f32 %v3729_v26, %v403_v52  ;;  %s3007_s3 = spop %3006  ;;  %v459_v30 = vstv %s4497_s30 }
 0x12f   : > { %v736_v61 = vpop.permute.xlu1 %735  ;;  %s3009_s14 = spop %3008 }
 0x130   : > { %v738_v49 = vadd.f32 %v736_v61, %v728_v43  ;;  %v1503_v43 = vstv %s3588_s13  ;;  %s3011_s13 = spop %3010 }
 0x131   : > { %s3013_s9 = spop %3012 }
 0x132   : > { %1751 = vrot.lane.b32.xlu2 %v1749_v48, %s4437_s22  ;;  %v1358_v48 = vadd.f32 %v3748_v37, %v1347_v42  ;;  %v893_v42 = vstv %s4499_s29  ;;  %s4514_s29 = sld [smem:[#allocation47_spill]] }
 0x133   : > { %933 = vrot.lane.b32.xlu0 %v931_v51, %s4436_s16 }
 0x134   : > { %v3770_v56 = vpop.permute.xlu2 %1385  ;;  %v1368_v37 = vadd.f32 %v3720_v20, %v1358_v48  ;;  %v416_v20 = vadd.f32 %v3726_v25, %v405_v60 }
 0x135   : > { %v3773_v57 = vpop.permute.xlu0 %433  ;;  %943 = vrot.lane.b32.xlu1 %v941_v0, %s4438_s0  ;;  %v1783_v0 = vstv %s3005_s28  ;;  %s4510_s28 = sld [smem:[#allocation44_spill]] }
 0x136   : > { %v1785_v6 = vmul.f32 %v3797_v17, %v1783_v0 }
 0x137   : > { %v1376_v13 = vpop.permute.xlu1 %1375 }
 0x138   : > { %v1378_v61 = vadd.f32 %v1376_v13, %v1368_v37  ;;  %v1535_v37 = vmul.f32 %v3729_v26, %v1533_v23 }
 0x13a   : > { %1761 = vrot.lane.b32.xlu2 %v1759_v59, %s4436_s16  ;;  %v1485_v59 = vmul.f32 %v1483_v46, %v3453_v28  ;;  %v895_v46 = vmul.f32 %v893_v42, %v3453_v28 }
 0x13b   : > { %525 = vrot.lane.b32.xlu0 %v523_v62, %s4423_s18  ;;  %v1637_v62 = vmul.f32 %v3797_v17, %v1635_v32 }
 0x13c   : > { %v3787_v5 = vpop.permute.xlu2 %867 }
 0x13d   : > { %v1076_v7 = vpop.permute.xlu0 %1075  ;;  %1771 = vrot.lane.b32.xlu1 %v1769_v19, %s4438_s0 }
 0x13e   : > { %v1078_v11 = vadd.f32 %v1076_v7, %v1068_v41  ;;  %v850_v41 = vadd.f32 %v3737_v31, %v3712_v15  ;;  %v1388_v7 = vadd.f32 %v3770_v56, %v1378_v61  ;;  %v1495_v31 = vmul.f32 %v1493_v9, %v3453_v28 }
 0x13f   : > { %v858_v34 = vpop.permute.xlu1 %857  ;;  %v1793_v56 = vstv %s3007_s3  ;;  %v1173_v61 = vstv %s4501_s7  ;;  %s4512_s3 = sld [smem:[#allocation19_spill]] }
 0x140   : > { %v3794_v16 = vadd.f32 %v1083_v8, %v1078_v11  ;;  %v1403_v8 = vmul.f32 %v3797_v17, %v1401_v36  ;;  %v426_v11 = vadd.f32 %v3707_v10, %v416_v20  ;;  %v860_v12 = vadd.f32 %v858_v34, %v850_v41  ;;  %s4517_s7 = sld [smem:[#allocation51_spill]] }
 0x141   : > { %v1163_v34 = vstv %s4498_s8  ;;  %v1175_v41 = vmul.f32 %v3729_v26, %v1173_v61  ;;  %s4513_s8 = sld [smem:[#allocation46_spill]] }
 0x142   : > { %1467 = vrot.lane.b32.xlu2 %v1465_v14, %s4423_s18  ;;  %v553_v14 = vmul.f32 %v551_v4, %v3453_v28  ;;  %v870_v10 = vadd.f32 %v3787_v5, %v860_v12  ;;  %v461_v5 = vmul.f32 %v3797_v17, %v459_v30  ;;  %v1165_v39 = vmul.f32 %v3729_v26, %v1163_v34 }
 0x143   : > { %1619 = vrot.lane.b32.xlu0 %v1617_v18, %s4437_s22  ;;  %v436_v18 = vadd.f32 %v3773_v57, %v426_v11  ;;  %v1795_v57 = vmul.f32 %v3797_v17, %v1793_v56  ;;  %v1183_v11 = vstv %s4503_s10  ;;  %s4532_s10 = sld [smem:[#allocation4_spill]] }
 0x144   : > { %v3805_v27 = vpop.permute.xlu2 %1543 }
 0x145   : > { %v746_v24 = vpop.permute.xlu0 %745  ;;  %1629 = vrot.lane.b32.xlu1 %v1627_v44, %s4436_s16  ;;  %v446_v29 = vadd.f32 %v3757_v45, %v436_v18  ;;  %v1823_v18 = vstv %s3013_s9  ;;  %s3926_s15 = spop %3014  ;;  %s4520_s9 = sld [smem:[#allocation55_spill]] }
 0x146   : > { %v748_v51 = vadd.f32 %v746_v24, %v738_v49  ;;  %v1803_v49 = vstv %s3009_s14  ;;  %s3017_s11 = spop %3016  ;;  %s4516_s14 = sld [smem:[#allocation50_spill]] }
 0x147   : > { %v756_v53 = vpop.permute.xlu1 %755  ;;  %v1805_v32 = vmul.f32 %v3797_v17, %v1803_v49  ;;  %s3019_s19 = spop %3018  ;;  %v1839_v42 = vstv %s3017_s11  ;;  %s4526_s11 = sld [smem:[#allocation58_spill]] }
 0x148   : > { %v758_v58 = vadd.f32 %v756_v53, %v748_v51  ;;  %v1505_v51 = vmul.f32 %v1503_v43, %v3453_v28  ;;  %s3021_s24 = spop %3020 }
 0x149   : > { %s3023_s2 = spop %3022 }
 0x14a   : > { %535 = vrot.lane.b32.xlu2 %v533_v35, %s4435_s25  ;;  %v759_v22 = vpack.c.bf16 %v758_v58, %v758_v58  ;;  %s3025_s30 = spop %3024 }
 0x14b   : > { %1477 = vrot.lane.b32.xlu0 %v1475_v40, %s4435_s25 }
 0x14c   : > { %v3823_v54 = vpop.permute.xlu2 %1553  ;;  %v764_v2 = vsel %vm574_vm0, %v759_v22, 0  ;;  %v1661_v22 = vstv %s4502_s26  ;;  %s4518_s26 = sld [smem:[#allocation52_spill]] }
 0x14d   : > { %v454_v50 = vpop.permute.xlu0 %453  ;;  %1639 = vrot.lane.b32.xlu1 %v1637_v62, %s4438_s0  ;;  %773 = vmatpush.bf16.msra.mxu2 %v764_v2  ;;  %v1813_v2 = vstv %s3011_s13  ;;  %s4519_s13 = sld [smem:[#allocation53_spill]] }
 0x14e   : > { %v456_v35 = vadd.f32 %v454_v50, %v446_v29 }
 0x14f   : > { %v1396_v25 = vpop.permute.xlu1 %1395 }
 0x150   : > { %v1398_v13 = vadd.f32 %v1396_v25, %v1388_v7  ;;  %v462_v40 = vadd.f32 %v461_v5, %v456_v35  ;;  %v1815_v25 = vmul.f32 %v3797_v17, %v1813_v2  ;;  %v1203_v5 = vstv %s4507_s6 }
 0x152   : > { %545 = vrot.lane.b32.xlu2 %v543_v55, %s4437_s22  ;;  %v1404_v15 = vadd.f32 %v1403_v8, %v1398_v13  ;;  %v1653_v55 = vmul.f32 %v1651_v47, %v3453_v28  ;;  %v1663_v8 = vmul.f32 %v1661_v22, %v3453_v28  ;;  %v1671_v13 = vstv %s4504_s20  ;;  %s2664_s20 = sshll.u32 %s4532_s10, 2 }
 0x153   : > { %1487 = vrot.lane.b32.xlu0 %v1485_v59, %s4437_s22  ;;  %v1546_v59 = vadd.f32 %v3805_v27, %v1535_v37  ;;  %v1219_v37 = vstv %s4509_s4  ;;  %s4527_s4 = sld [smem:[#allocation48_spill]] }
 0x154   : > { %v3841_v1 = vpop.permute.xlu2 %1111  ;;  %v1221_v22 = vmul.f32 %v3797_v17, %v1219_v37 }
 0x155   : > { %v3845_v3 = vpop.permute.xlu0 %1091  ;;  %1497 = vrot.lane.b32.xlu1 %v1495_v31, %s4436_s16  ;;  %v1556_v0 = vadd.f32 %v3823_v54, %v1546_v59  ;;  %v1185_v31 = vmul.f32 %v3729_v26, %v1183_v11 }
 0x156   : > { %v1094_v36 = vadd.f32 %v3845_v3, %v3794_v16 }
 0x157   : > { %v1102_v33 = vpop.permute.xlu1 %1101 }
 0x158   : > { %v1104_v27 = vadd.f32 %v1102_v33, %v1094_v36  ;;  %v1681_v33 = vstv %s4506_s12  ;;  %v1869_v36 = vstv %s3023_s2  ;;  %s4522_s12 = sld [smem:[#allocation23_spill]] }
 0x159   : > { %s4531_s2 = sld [smem:[#allocation61_spill]] }
 0x15a   : > { %1787 = vrot.lane.b32.xlu2 %v1785_v6, %s4423_s18  ;;  %v1721_v6 = vstv %s3697_s23  ;;  %v1114_v3 = vadd.f32 %v3841_v1, %v1104_v27  ;;  %s4505_s23 = sld [smem:[#allocation40_spill]]  ;;  %v1879_v27 = vstv %s3025_s30 }
 0x15b   : > { %555 = vrot.lane.b32.xlu0 %v553_v14, %s4436_s16  ;;  %v1723_v9 = vmul.f32 %v3729_v26, %v1721_v6 }
 0x15c   : > { %v480_v19 = vpop.permute.xlu2 %479 }
 0x15d   : > { %v878_v63 = vpop.permute.xlu0 %877  ;;  %1167 = vrot.lane.b32.xlu1 %v1165_v39, %s4423_s18 }
 0x15e   : > { %v880_v24 = vadd.f32 %v878_v63, %v870_v10  ;;  %v3910_v10 = vld [vmem:[%s3255_s27 + $0x10] sm:$0xff]  ;;  %v1825_v63 = vmul.f32 %v3797_v17, %v1823_v18  ;;  %s4508_s27 = sld [smem:[#allocation22_spill]] }
 0x15f   : > { %v888_v50 = vpop.permute.xlu1 %887  ;;  %v1673_v1 = vmul.f32 %v3910_v10, %v1671_v13  ;;  %v1683_v39 = vmul.f32 %v3910_v10, %v1681_v33  ;;  %v1841_v23 = vmul.f32 %v3910_v10, %v1839_v42  ;;  %v1295_v33 = vstv %s4517_s7 }
 0x160   : > { %v890_v52 = vadd.f32 %v888_v50, %v880_v24  ;;  %v1193_v24 = vstv %s4505_s23  ;;  %s4521_s23 = sld [smem:[#allocation11_spill]] }
 0x162   : > { %1797 = vrot.lane.b32.xlu2 %v1795_v57, %s4435_s25  ;;  %v3883_v58 = vadd.f32 %v895_v46, %v890_v52 }
 0x163   : > { %565 = vrot.lane.b32.xlu0 %v563_v38, %s4438_s0  ;;  %v1195_v38 = vmul.f32 %v3729_v26, %v1193_v24  ;;  %v1285_v24 = vstv %s4516_s14 }
 0x164   : > { %v1574_v45 = vpop.permute.xlu2 %1573  ;;  %v1589_v43 = vstv %s4508_s27  ;;  %s4530_s27 = sld [smem:[#allocation59_spill]] }
 0x165   : > { %v470_v44 = vpop.permute.xlu0 %469  ;;  %1807 = vrot.lane.b32.xlu1 %v1805_v32, %s4437_s22  ;;  %v1591_v50 = vmul.f32 %v3797_v17, %v1589_v43  ;;  %v1859_v32 = vstv %s3021_s24  ;;  %v1297_v43 = vmul.f32 %v3910_v10, %v1295_v33  ;;  %s4524_s24 = sld [smem:[#allocation36_spill]] }
 0x166   : > { %v472_v48 = vadd.f32 %v470_v44, %v462_v40  ;;  %v1691_v44 = vstv %s3691_s17  ;;  %s4511_s17 = sld [smem:[#allocation45_spill]]  ;;  %v1861_v61 = vmul.f32 %v3910_v10, %v1859_v32 }
 0x167   : > { %v1564_v4 = vpop.permute.xlu1 %1563  ;;  %v1693_v46 = vmul.f32 %v3910_v10, %v1691_v44 }
 0x168   : > { %v482_v53 = vadd.f32 %v480_v19, %v472_v48  ;;  %v1566_v7 = vadd.f32 %v1564_v4, %v1556_v0  ;;  %v1849_v48 = vstv %s3019_s19  ;;  %s4523_s19 = sld [smem:[#allocation56_spill]] }
 0x169   : > { %v1851_v52 = vmul.f32 %v3910_v10, %v1849_v48 }
 0x16a   : > { %1507 = vrot.lane.b32.xlu2 %v1505_v51, %s4438_s0  ;;  %v1576_v54 = vadd.f32 %v1574_v45, %v1566_v7  ;;  %v1205_v45 = vmul.f32 %v3729_v26, %v1203_v5 }
 0x16b   : > { %1655 = vrot.lane.b32.xlu0 %v1653_v55, %s4423_s18 }
 0x16c   : > { %v1132_v60 = vpop.permute.xlu2 %1131  ;;  %v1239_v4 = vstv %s4511_s17 }
 0x16d   : > { %v1412_v62 = vpop.permute.xlu0 %1411  ;;  %1817 = vrot.lane.b32.xlu1 %v1815_v25, %s4436_s16 }
 0x16e   : > { %v1414_v20 = vadd.f32 %v1412_v62, %v1404_v15  ;;  %v1229_v62 = vstv %s4510_s28 }
 0x16f   : > { %v1422_v15 = vpop.permute.xlu1 %1421  ;;  %v1231_v0 = vmul.f32 %v3797_v17, %v1229_v62 }
 0x170   : > { %v3907_v56 = vadd.f32 %v1422_v15, %v1414_v20 }
 0x172   : > { %1177 = vrot.lane.b32.xlu2 %v1175_v41, %s4435_s25  ;;  %v1871_v41 = vmul.f32 %v3910_v10, %v1869_v36  ;;  %v354_v36 = vld [vmem:[%s4520_s9 + $0x4] sm:$0xf] }
 0x173   : > { %1665 = vrot.lane.b32.xlu0 %v1663_v8, %s4435_s25  ;;  %2666 = vmatmul.msk.bf16.vlgmr.msra.gmra.mxu2 %vm570_vm1, %v354_v36 }
 0x174   : > { %v1732_v16 = vpop.permute.xlu2 %1731 }
 0x175   : > { %v3902_v12 = vadd.f32 %v1732_v16, %v1723_v9  ;;  %v1122_v28 = vpop.permute.xlu0 %1121  ;;  %1827 = vrot.lane.b32.xlu1 %v1825_v63, %s4438_s0  ;;  %v1881_v9 = vmul.f32 %v3910_v10, %v1879_v27 }
 0x176   : > { %v1124_v14 = vadd.f32 %v1122_v28, %v1114_v3  ;;  %v1457_v3 = vstv %s4512_s3  ;;  %v1249_v28 = vstv %s4513_s8 }
 0x177   : > { %v3924_v35 = vpop.permute.xlu1 %903  ;;  %v1459_v18 = vmul.f32 %v3910_v10, %v1457_v3 }
 0x178   : > { %v1134_v19 = vadd.f32 %v1132_v60, %v1124_v14  ;;  %v1259_v14 = vstv %s4514_s29  ;;  %s4529_s29 = sld [smem:[#allocation60_spill]] }
 0x17a   : > { %1187 = vrot.lane.b32.xlu2 %v1185_v31, %s4437_s22  ;;  %v1135_v21 = vpack.c.bf16 %v1134_v19, %v1134_v19  ;;  %v1275_v19 = vstv %s4515_s5 }
 0x17b   : > { %1675 = vrot.lane.b32.xlu0 %v1673_v1, %s4437_s22 }
 0x17c   : > { %v3916_v29 = vpop.permute.xlu2 %1441  ;;  %v1140_v57 = vsel %vm574_vm0, %v1135_v21, 0  ;;  %v1261_v21 = vmul.f32 %v3797_v17, %v1259_v14 }
 0x17d   : > { %1149 = vmatpush.bf16.msra.mxu3 %v1140_v57  ;;  %v490_v30 = vpop.permute.xlu0 %489  ;;  %1207 = vrot.lane.b32.xlu1 %v1205_v45, %s4438_s0  ;;  %v1305_v45 = vstv %s4518_s26 }
 0x17e   : > { %v3922_v34 = vadd.f32 %v490_v30, %v482_v53  ;;  %v1307_v44 = vmul.f32 %v3910_v10, %v1305_v45 }
 0x17f   : > { %v1584_v49 = vpop.permute.xlu1 %1583 }
 0x180   : > { %v1586_v51 = vadd.f32 %v1584_v49, %v1576_v54  ;;  %v1241_v54 = vmul.f32 %v3797_v17, %v1239_v4 }
 0x182   : > { %1197 = vrot.lane.b32.xlu2 %v1195_v38, %s4436_s16  ;;  %v1592_v53 = vadd.f32 %v1591_v50, %v1586_v51  ;;  %v906_v38 = vadd.f32 %v3924_v35, %v3883_v58  ;;  %v356_v58 = vld [vmem:[%s4520_s9 + $0xc] sm:$0xf]  ;;  %v1315_v35 = vstv %s4519_s13  ;;  %s4525_s13 = sld [smem:[#allocation42_spill]] }
 0x183   : > { %1685 = vrot.lane.b32.xlu0 %v1683_v39, %s4436_s16  ;;  %v1287_v39 = vmul.f32 %v3910_v10, %v1285_v24  ;;  %2668 = vmatmul.msk.bf16.vlgmr.msra.gmra.mxu3 %vm570_vm1, %v356_v58  ;;  %v367_v58 = vld [vmem:[%s4523_s19 + $0x30] sm:$0xff] }
 0x184   : > { %v3934_v40 = vpop.permute.xlu2 %923 }
 0x185   : > { %v1432_v47 = vpop.permute.xlu0 %1431  ;;  %1853 = vrot.lane.b32.xlu1 %v1851_v52, %s4435_s25 }
 0x186   : > { %v1434_v8 = vadd.f32 %v1432_v47, %v3907_v56  ;;  %v1251_v56 = vmul.f32 %v3797_v17, %v1249_v28 }
 0x187   : > { %v914_v60 = vpop.permute.xlu1 %913 }
 0x188   : > { %v916_v42 = vadd.f32 %v914_v60, %v906_v38 }
 0x18a   : > { %1695 = vrot.lane.b32.xlu2 %v1693_v46, %s4438_s0  ;;  %v926_v48 = vadd.f32 %v3934_v40, %v916_v42  ;;  %v1317_v46 = vmul.f32 %v3910_v10, %v1315_v35  ;;  %v358_v42 = vld [vmem:[%s4520_s9 + $0x14] sm:$0xf] }
 0x18b   : > { %1843 = vrot.lane.b32.xlu0 %v1841_v23, %s4423_s18 }
 0x18c   : > { %v1752_v55 = vpop.permute.xlu2 %1751 }
 0x18d   : > { %v3947_v59 = vpop.permute.xlu0 %499  ;;  %1233 = vrot.lane.b32.xlu1 %v1231_v0, %s4435_s25 }
 0x18f   : > { %v3959_v7 = vpop.permute.xlu1 %509 }
 0x192   : > { %1223 = vrot.lane.b32.xlu2 %v1221_v22, %s4423_s18 }
 0x193   : > { %1863 = vrot.lane.b32.xlu0 %v1861_v61, %s4437_s22 }
 0x194   : > { %v1762_v20 = vpop.permute.xlu2 %1761 }
 0x195   : > { %v1742_v2 = vpop.permute.xlu0 %1741  ;;  %1883 = vrot.lane.b32.xlu1 %v1881_v9, %s4438_s0 }
 0x196   : > { %v1744_v6 = vadd.f32 %v1742_v2, %v3902_v12  ;;  %v1444_v12 = vadd.f32 %v3916_v29, %v1434_v8  ;;  %v1277_v29 = vmul.f32 %v3910_v10, %v1275_v19  ;;  %v502_v2 = vadd.f32 %v3947_v59, %v3922_v34 }
 0x197   : > { %v1600_v31 = vpop.permute.xlu1 %1599  ;;  %v1645_v8 = vstv %s4522_s12  ;;  %v3119_v19 = vmov 0  }
 0x198   : > { %v1754_v25 = vadd.f32 %v1752_v55, %v1744_v6  ;;  %v1602_v1 = vadd.f32 %v1600_v31, %v1592_v53  ;;  %v1777_v55 = vstv %s3828_s21  ;;  %v512_v6 = vadd.f32 %v3959_v7, %v502_v2  ;;  %v355_v7 = vld [vmem:[%s4520_s9 + $0x8] sm:$0xf]  ;;  %3045 = vset.pattern.permute.xlu0 %v3119_v19  ;;  %3046 = vset.pattern.permute.xlu1 %v3119_v19 }
 0x199   : > { %v1779_v60 = vmul.f32 %v3797_v17, %v1777_v55  ;;  %v366_v31 = vld [vmem:[%s4523_s19 + $0x28] sm:$0xff]  ;;  %3047 = vset.pattern.permute.xlu2 %v3119_v19 }
 0x19a   : > { %1873 = vrot.lane.b32.xlu2 %v1871_v41, %s4436_s16  ;;  %v1764_v16 = vadd.f32 %v1762_v20, %v1754_v25  ;;  %v515_v41 = vstv %s4521_s23  ;;  %s4528_s23 = sld [smem:[#allocation57_spill]] }
 0x19b   : > { %1243 = vrot.lane.b32.xlu0 %v1241_v54, %s4437_s22  ;;  %v517_v54 = vmul.f32 %v3910_v10, %v515_v41 }
 0x19c   : > { %v3967_v11 = vpop.permute.xlu2 %1467 }
 0x19d   : > { %v1452_v13 = vpop.permute.xlu0 %1451  ;;  %1279 = vrot.lane.b32.xlu1 %v1277_v29, %s4423_s18  ;;  %v518_v28 = vadd.f32 %v517_v54, %v512_v6  ;;  %v363_v54 = vld [vmem:[%s4523_s19 + $0x10] sm:$0xff] }
 0x19e   : > { %v1454_v15 = vadd.f32 %v1452_v13, %v1444_v12  ;;  %v1647_v12 = vmul.f32 %v3910_v10, %v1645_v8  ;;  %v368_v8 = vld [vmem:[%s4523_s19 + $0x38] sm:$0xff] }
 0x19f   : > { %v1610_v5 = vpop.permute.xlu1 %1609 }
 0x1a0   : > { %v1460_v63 = vadd.f32 %v1459_v18, %v1454_v15  ;;  %v1612_v4 = vadd.f32 %v1610_v5, %v1602_v1  ;;  %v361_v15 = vld [vmem:[%s4523_s19] sm:$0xff] }
 0x1a2   : > { %1253 = vrot.lane.b32.xlu2 %v1251_v56, %s4436_s16  ;;  %v1470_v18 = vadd.f32 %v3967_v11, %v1460_v63 }
 0x1a3   : > { %1263 = vrot.lane.b32.xlu0 %v1261_v21, %s4438_s0 }
 0x1a4   : > { %v3980_v57 = vpop.permute.xlu2 %535 }
 0x1a5   : > { %v934_v30 = vpop.permute.xlu0 %933  ;;  %1309 = vrot.lane.b32.xlu1 %v1307_v44, %s4436_s16  ;;  %s4533_s16 = sld [smem:[#allocation62_spill]] }
 0x1a6   : > { %v936_v23 = vadd.f32 %v934_v30, %v926_v48 }
 0x1a7   : > { %v944_v50 = vpop.permute.xlu1 %943 }
 0x1a8   : > { %v946_v51 = vadd.f32 %v944_v50, %v936_v23  ;;  %v364_v23 = vld [vmem:[%s4523_s19 + $0x18] sm:$0xff]  ;;  %v1157_v50 = vstv %s4524_s24 }
 0x1a9   : > { %v1159_v55 = vmul.f32 %v3729_v26, %v1157_v50 }
 0x1aa   : > { %1289 = vrot.lane.b32.xlu2 %v1287_v39, %s4435_s25  ;;  %v947_v52 = vpack.c.bf16 %v946_v51, %v946_v51 }
 0x1ab   : > { %1299 = vrot.lane.b32.xlu0 %v1297_v43, %s4437_s22 }
 0x1ac   : > { %v3993_v47 = vpop.permute.xlu2 %545  ;;  %v952_v53 = vsel %vm574_vm0, %v947_v52, 0 }
 0x1ad   : > { %v526_v49 = vpop.permute.xlu0 %525  ;;  %961 = vmatpush.bf16.msrb.mxu2 %v952_v53  ;;  %1934 = vperm.xlu1 %3046, %v366_v31  }
 0x1ae   : > { %v528_v14 = vadd.f32 %v526_v49, %v518_v28 }
 0x1af   : > { %v1772_v37 = vpop.permute.xlu1 %1771 }
 0x1b0   : > { %v1774_v61 = vadd.f32 %v1772_v37, %v1764_v16  ;;  %v538_v11 = vadd.f32 %v3980_v57, %v528_v14  ;;  %2667 = vmatmul.msk.bf16.vlgmr.msrb.gmra.mxu2 %vm570_vm1, %v355_v7 }
 0x1b2   : > { %1319 = vrot.lane.b32.xlu2 %v1317_v46, %s4438_s0  ;;  %v4009_v22 = vadd.f32 %v1779_v60, %v1774_v61  ;;  %v548_v30 = vadd.f32 %v3993_v47, %v538_v11  ;;  %v353_v47 = vld [vmem:[%s4520_s9] sm:$0xf]  ;;  %v362_v61 = vld [vmem:[%s4523_s19 + $0x8] sm:$0xff]  ;;  %s330_s0 = scalar_lea.vmem %s4533_s16, %s2664_s20 }
 0x1b3   : > { %1909 = vperm.xlu0 %3045, %v361_v15  }
 0x1b4   : > { %v4004_v40 = vpop.permute.xlu2 %1787 }
 0x1b5   : > { %v1620_v32 = vpop.permute.xlu0 %1619  ;;  %1939 = vperm.xlu1 %3046, %v367_v58   ;;  %v1790_v52 = vadd.f32 %v4004_v40, %v4009_v22 }
 0x1b6   : > { %v1622_v27 = vadd.f32 %v1620_v32, %v1612_v4 }
 0x1b7   : > { %v1630_v20 = vpop.permute.xlu1 %1629 }
 0x1b8   : > { %v1632_v9 = vadd.f32 %v1630_v20, %v1622_v27 }
 0x1ba   : > { %1914 = vperm.xlu2 %3047, %v362_v61   ;;  %v4110_v61 = vld [vmem:[%s4526_s11 + $0x20] sm:$0xff] }
 0x1bb   : > { %1944 = vperm.xlu0 %3045, %v368_v8  }
 0x1bc   : > { %v4011_v62 = vpop.permute.xlu2 %1797 }
 0x1bd   : > { %v1478_v0 = vpop.permute.xlu0 %1477  ;;  %1924 = vperm.xlu1 %3046, %v364_v23   ;;  %v1800_v32 = vadd.f32 %v4011_v62, %v1790_v52 }
 0x1be   : > { %v1480_v59 = vadd.f32 %v1478_v0, %v1470_v18  ;;  %v1833_v0 = vstv %s3926_s15 }
 0x1bf   : > { %v1640_v3 = vpop.permute.xlu1 %1639  ;;  %v1835_v40 = vmul.f32 %v3910_v10, %v1833_v0 }
 0x1c0   : > { %v1642_v13 = vadd.f32 %v1640_v3, %v1632_v9  ;;  %v1213_v9 = vstv %s4525_s13 }
 0x1c2   : > { %v1648_v34 = vadd.f32 %v1647_v12, %v1642_v13  ;;  %1919 = vperm.xlu2 %3047, %v363_v54   ;;  %v1215_v13 = vmul.f32 %v3797_v17, %v1213_v9  ;;  %v4144_v54 = vld [vmem:[%s4526_s11 + $0x18] sm:$0xff] }
 0x1c4   : > { %v1508_v16 = vpop.permute.xlu2 %1507 }
 0x1c5   : > { %v1488_v25 = vpop.permute.xlu0 %1487 }
 0x1c6   : > { %v1490_v1 = vadd.f32 %v1488_v25, %v1480_v59 }
 0x1c7   : > { %v1498_v63 = vpop.permute.xlu1 %1497 }
 0x1c8   : > { %v1500_v21 = vadd.f32 %v1498_v63, %v1490_v1 }
 0x1ca   : > { %v1510_v24 = vadd.f32 %v1508_v16, %v1500_v21 }
 0x1cc   : > { %v1178_v29 = vpop.permute.xlu2 %1177  ;;  %v1511_v38 = vpack.c.bf16 %v1510_v24, %v1510_v24 }
 0x1cd   : > { %v556_v56 = vpop.permute.xlu0 %555 }
 0x1ce   : > { %v558_v33 = vadd.f32 %v556_v56, %v548_v30  ;;  %v1516_v39 = vsel %vm574_vm0, %v1511_v38, 0  ;;  %v359_v56 = vld [vmem:[%s4520_s9 + $0x18] sm:$0xf]  ;;  %v365_v30 = vld [vmem:[%s4523_s19 + $0x20] sm:$0xff]  ;;  %v3120_v38 = vmov 1  }
 0x1cf   : > { %v1168_v57 = vpop.permute.xlu1 %1167  ;;  %1525 = vmatpush.bf16.msrb.mxu3 %v1516_v39  ;;  %1929 = vperm.xlu2 %3047, %v365_v30   ;;  %v4092_v39 = vld [vmem:[%s4526_s11 + $0x30] sm:$0xff] }
 0x1d0   : > { %v1170_v37 = vadd.f32 %v1168_v57, %v1159_v55  ;;  %3049 = vset.pattern.permute.xlu1 %v3120_v38  ;;  %3048 = vset.pattern.permute.xlu0 %v3120_v38 }
 0x1d1   : > { %2150 = vperm.xlu0 %3048, %v4092_v39  }
 0x1d2   : > { %2670 = vmatmul.msk.bf16.vlgmr.msrb.gmra.mxu3 %vm570_vm1, %v358_v42  ;;  %v1180_v20 = vadd.f32 %v1178_v29, %v1170_v37 }
 0x1d4   : > { %v1188_v48 = vpop.permute.xlu2 %1187 }
 0x1d5   : > { %v566_v5 = vpop.permute.xlu0 %565  ;;  %v1190_v6 = vadd.f32 %v1188_v48, %v1180_v20  ;;  %v3122_v20 = vmov 3  }
 0x1d6   : > { %v568_v45 = vadd.f32 %v566_v5, %v558_v33  ;;  %v4085_v33 = vld [vmem:[%s4526_s11 + $0x38] sm:$0xff] }
 0x1d7   : > { %v1808_v49 = vpop.permute.xlu1 %1807  ;;  %2154 = vperm.xlu1 %3049, %v4085_v33  }
 0x1d8   : > { %v569_v43 = vpack.c.bf16 %v568_v45, %v568_v45  ;;  %v1810_v60 = vadd.f32 %v1808_v49, %v1800_v32  ;;  %v3121_v49 = vmov 2  }
 0x1d9   : > { %3050 = vset.pattern.permute.xlu2 %v3121_v49 }
 0x1da   : > { %v576_v44 = vsel %vm574_vm0, %v569_v43, 0  ;;  %2230 = vperm.xlu2 %3050, %v4092_v39  }
 0x1db   : > { %585 = vmatpush.bf16.msra.mxu0 %v576_v44 }
 0x1dc   : > { %v1198_v46 = vpop.permute.xlu2 %1197 }
 0x1dd   : > { %v1656_v35 = vpop.permute.xlu0 %1655  ;;  %v1200_v3 = vadd.f32 %v1198_v46, %v1190_v6  ;;  %v357_v6 = vld [vmem:[%s4520_s9 + $0x10] sm:$0xf] }
 0x1de   : > { %2665 = vmatmul.msk.bf16.vlgmr.msra.gmra.mxu0 %vm570_vm1, %v353_v47  ;;  %v1658_v22 = vadd.f32 %v1656_v35, %v1648_v34  ;;  %v1269_v35 = vstv %s4527_s4 }
 0x1df   : > { %v1818_v53 = vpop.permute.xlu1 %1817  ;;  %3051 = vset.pattern.permute.xlu1 %v3121_v49  ;;  %v1271_v52 = vmul.f32 %v3910_v10, %v1269_v35 }
 0x1e0   : > { %v1820_v2 = vadd.f32 %v1818_v53, %v1810_v60  ;;  %2234 = vperm.xlu1 %3051, %v4085_v33  }
 0x1e2   : > { %3052 = vset.pattern.permute.xlu2 %v3120_v38 }
 0x1e3   : > { %2142 = vperm.xlu2 %3052, %v4110_v61  }
 0x1e4   : > { %v1696_v4 = vpop.permute.xlu2 %1695 }
 0x1e5   : > { %v1666_v51 = vpop.permute.xlu0 %1665 }
 0x1e6   : > { %v1668_v62 = vadd.f32 %v1666_v51, %v1658_v22  ;;  %v360_v51 = vld [vmem:[%s4520_s9 + $0x1c] sm:$0xf] }
 0x1e7   : > { %v1828_v41 = vpop.permute.xlu1 %1827 }
 0x1e8   : > { %v1830_v26 = vadd.f32 %v1828_v41, %v1820_v2  ;;  %3053 = vset.pattern.permute.xlu1 %v3122_v20 }
 0x1e9   : > { %2310 = vperm.xlu1 %3053, %v4092_v39  }
 0x1ea   : > { %v1836_v27 = vadd.f32 %v1835_v40, %v1830_v26 }
 0x1eb   : > { %3054 = vset.pattern.permute.xlu2 %v3122_v20 }
 0x1ec   : > { %v1224_v34 = vpop.permute.xlu2 %1223  ;;  %2314 = vperm.xlu2 %3054, %v4085_v33  }
 0x1ed   : > { %v1676_v36 = vpop.permute.xlu0 %1675 }
 0x1ee   : > { %v1678_v25 = vadd.f32 %v1676_v36, %v1668_v62 }
 0x1ef   : > { %v1208_v28 = vpop.permute.xlu1 %1207 }
 0x1f0   : > { %v1210_v14 = vadd.f32 %v1208_v28, %v1200_v3  ;;  %v371_v28 = vld [vmem:[%s4528_s23 + $0x10] sm:$0xff] }
 0x1f1   : > { %3055 = vset.pattern.permute.xlu1 %v3121_v49 }
 0x1f2   : > { %v1216_v59 = vadd.f32 %v1215_v13, %v1210_v14  ;;  %v370_v13 = vld [vmem:[%s4528_s23 + $0x8] sm:$0xff]  ;;  %v369_v14 = vld [vmem:[%s4528_s23] sm:$0xff] }
 0x1f4   : > { %v1874_v1 = vpop.permute.xlu2 %1873  ;;  %v1226_v5 = vadd.f32 %v1224_v34, %v1216_v59  ;;  %3056 = vset.pattern.permute.xlu2 %v3120_v38  ;;  %v4174_v34 = vld [vmem:[%s4526_s11] sm:$0xff] }
 0x1f5   : > { %v1686_v16 = vpop.permute.xlu0 %1685 }
 0x1f6   : > { %v1688_v12 = vadd.f32 %v1686_v16, %v1678_v25  ;;  %v4137_v25 = vld [vmem:[%s4526_s11 + $0x10] sm:$0xff]  ;;  %v775_v9 = vpop.f32.mrf.mxu2  ;;  %v373_v16 = vld [vmem:[%s4528_s23 + $0x20] sm:$0xff] }
 0x1f7   : > { %v1854_v11 = vpop.permute.xlu1 %1853  ;;  %2134 = vperm.xlu2 %3056, %v4137_v25  }
 0x1f8   : > { %v1698_v18 = vadd.f32 %v1696_v4, %v1688_v12  ;;  %v372_v12 = vld [vmem:[%s4528_s23 + $0x18] sm:$0xff] }
 0x1fa   : > { %v1699_v7 = vpack.c.bf16 %v1698_v18, %v1698_v18 }
 0x1fc   : > { %v1704_v15 = vsel %vm574_vm0, %v1699_v7, 0  ;;  %v1254_v45 = vpop.permute.xlu2 %1253 }
 0x1fd   : > { %1713 = vmatpush.bf16.msra.mxu2 %v1704_v15  ;;  %v1844_v31 = vpop.permute.xlu0 %1843 }
 0x1fe   : > { %v1846_v63 = vadd.f32 %v1844_v31, %v1836_v27  ;;  %v4130_v27 = vld [vmem:[%s4526_s11 + $0x28] sm:$0xff]  ;;  %v777_v3 = vpop.f32.mrf.mxu2 }
 0x1ff   : > { %v1234_v17 = vpop.permute.xlu1 %1233  ;;  %2226 = vperm.xlu1 %3055, %v4130_v27   ;;  %2146 = vperm.xlu0 %3048, %v4130_v27  }
 0x200   : > { %2671 = vmatmul.msk.bf16.vlgmr.msra.gmra.mxu2 %vm570_vm1, %v359_v56  ;;  %v1856_v29 = vadd.f32 %v1854_v11, %v1846_v63  ;;  %v1236_v42 = vadd.f32 %v1234_v17, %v1226_v5  ;;  %3058 = vset.pattern.permute.xlu2 %v3122_v20  ;;  %v4183_v56 = vld [vmem:[%s4526_s11 + $0x8] sm:$0xff] }
 0x201   : > { %2302 = vperm.xlu2 %3058, %v4110_v61  }
 0x204   : > { %v1290_v55 = vpop.permute.xlu2 %1289 }
 0x205   : > { %v1864_v21 = vpop.permute.xlu0 %1863 }
 0x206   : > { %v1866_v24 = vadd.f32 %v1864_v21, %v1856_v29  ;;  %v4125_v62 = vpop.f32.mrf.mxu3 }
 0x207   : > { %v1884_v44 = vpop.permute.xlu1 %1883  ;;  %3057 = vset.pattern.permute.xlu1 %v3120_v38  ;;  %3059 = vset.pattern.permute.xlu0 %v3122_v20 }
 0x208   : > { %v1876_v43 = vadd.f32 %v1874_v1, %v1866_v24  ;;  %2138 = vperm.xlu1 %3057, %v4144_v54   ;;  %2306 = vperm.xlu0 %3059, %v4130_v27  }
 0x209   : > { %3061 = vset.pattern.permute.xlu2 %v3121_v49 }
 0x20a   : > { %v1886_v48 = vadd.f32 %v1884_v44, %v1876_v43  ;;  %2218 = vperm.xlu2 %3061, %v4144_v54  }
 0x20c   : > { %v1887_v58 = vpack.c.bf16 %v1886_v48, %v1886_v48  ;;  %v1320_v41 = vpop.permute.xlu2 %1319 }
 0x20d   : > { %v1244_v57 = vpop.permute.xlu0 %1243 }
 0x20e   : > { %v1246_v47 = vadd.f32 %v1244_v57, %v1236_v42  ;;  %v1892_v23 = vsel %vm574_vm0, %v1887_v58, 0  ;;  %v1153_v8 = vpop.f32.mrf.mxu3 }
 0x20f   : > { %1901 = vmatpush.bf16.msra.mxu3 %v1892_v23  ;;  %v1280_v32 = vpop.permute.xlu1 %1279 }
 0x210   : > { %v1256_v50 = vadd.f32 %v1254_v45, %v1246_v47  ;;  %3060 = vset.pattern.permute.xlu1 %v3121_v49  ;;  %2294 = vperm.xlu0 %3059, %v4137_v25  }
 0x211   : > { %2214 = vperm.xlu1 %3060, %v4137_v25  }
 0x212   : > { %2672 = vmatmul.msk.bf16.vlgmr.msra.gmra.mxu3 %vm570_vm1, %v360_v51  ;;  %3063 = vset.pattern.permute.xlu2 %v3120_v38 }
 0x213   : > { %2732 = vmatpush.msrb.mxu3 %v373_v16  ;;  %2130 = vperm.xlu2 %3063, %v4183_v56  }
 0x214   : > { %v1915_v7 = vpop.permute.xlu2 %1914 }
 0x215   : > { %v1264_v46 = vpop.permute.xlu0 %1263  ;;  %2733 = vmatpush.msrb.mxu3 %v372_v12  ;;  %v1948_v15 = vadd.f32 %v1915_v7, %v775_v9 }
 0x216   : > { %v1266_v53 = vadd.f32 %v1264_v46, %v1256_v50 }
 0x217   : > { %v1310_v2 = vpop.permute.xlu1 %1309  ;;  %2734 = vmatpush.msrb.mxu3 %v371_v28  ;;  %v1964_v63 = vmin.f32 %v1948_v15, 0.0  ;;  %vm1956_vm5 = vcmp.gt.f32.partialorder %v1948_v15, 0.0 }
 0x218   : > { %v1272_v37 = vadd.f32 %v1271_v52, %v1266_v53  ;;  %3064 = vset.pattern.permute.xlu0 %v3121_v49 }
 0x219   : > { %2735 = vmatpush.msrb.mxu3 %v370_v13  ;;  %3062 = vset.pattern.permute.xlu1 %v3120_v38  ;;  %v1973_v45 = vmul.f32 1.442695, %v1964_v63 }
 0x21a   : > { %v1282_v60 = vadd.f32 %v1280_v32, %v1272_v37  ;;  %2126 = vperm.xlu1 %3062, %v4174_v34   ;;  %2222 = vperm.xlu0 %3064, %v4110_v61  }
 0x21b   : > { %2736 = vmatpush.msrb.mxu3 %v369_v14  ;;  %3066 = vset.pattern.permute.xlu2 %v3121_v49 }
 0x21c   : > { %v1292_v0 = vadd.f32 %v1290_v55, %v1282_v60  ;;  %v1920_v24 = vpop.permute.xlu2 %1919  ;;  %2206 = vperm.xlu2 %3066, %v4174_v34  }
 0x21d   : > { %v1300_v36 = vpop.permute.xlu0 %1299 }
 0x21e   : > { %v1302_v10 = vadd.f32 %v1300_v36, %v1292_v0 }
 0x21f   : > { %v1935_v59 = vpop.permute.xlu1 %1934 }
 0x220   : > { %v1312_v4 = vadd.f32 %v1310_v2, %v1302_v10 }
 0x222   : > { %v1322_v40 = vadd.f32 %v1320_v41, %v1312_v4  ;;  %3065 = vset.pattern.permute.xlu1 %v3122_v20  ;;  %2210 = vperm.xlu0 %3064, %v4183_v56  }
 0x223   : > { %2298 = vperm.xlu1 %3065, %v4144_v54  }
 0x224   : > { %v1323_v22 = vpack.c.bf16 %v1322_v40, %v1322_v40  ;;  %3067 = vset.pattern.permute.xlu2 %v3122_v20 }
 0x225   : > { %v1910_v31 = vpop.permute.xlu0 %1909  ;;  %2290 = vperm.xlu2 %3067, %v4183_v56  }
 0x226   : > { %v1328_v26 = vsel %vm574_vm0, %v1323_v22, 0 }
 0x227   : > { %1337 = vmatpush.bf16.msrb.mxu0 %v1328_v26  ;;  %v4185_v21 = vpop.permute.xlu1 %1939 }
 0x22a   : > { %2669 = vmatmul.msk.bf16.vlgmr.msrb.gmra.mxu0 %vm570_vm1, %v357_v6  ;;  %3070 = vset.pattern.permute.xlu0 %v3119_v19 }
 0x22b   : > { %2039 = vmatpush.msra.mxu0 %v373_v16  ;;  %2286 = vperm.xlu1 %3065, %v4174_v34  }
 0x22c   : > { %2096 = vperm.xlu0 %3070, %v4130_v27  }
 0x22d   : > { %2040 = vmatpush.msra.mxu0 %v372_v12  ;;  %3069 = vset.pattern.permute.xlu2 %v3119_v19  ;;  %v1945_v27 = vpop.permute.xlu0 %1944  ;;  %v1930_v12 = vpop.permute.xlu2 %1929 }
 0x22e   : > { %2106 = vperm.xlu2 %3069, %v4085_v33  }
 0x22f   : > { %2041 = vmatpush.msra.mxu0 %v371_v28  ;;  %v1925_v47 = vpop.permute.xlu1 %1924 }
 0x230   : > { %v1950_v50 = vadd.f32 %v1925_v47, %v4125_v62 }
 0x231   : > { %2042 = vmatpush.msra.mxu0 %v370_v13 }
 0x232   : > { %v1966_v55 = vmin.f32 %v1950_v50, 0.0  ;;  %vm1958_vm7 = vcmp.gt.f32.partialorder %v1950_v50, 0.0 }
 0x233   : > { %v963_v18 = vpop.f32.mrf.mxu2  ;;  %2043 = vmatpush.msra.mxu0 %v369_v14  ;;  %3068 = vset.pattern.permute.xlu1 %v3119_v19 }
 0x234   : > { %v1949_v43 = vadd.f32 %v1920_v24, %v963_v18  ;;  %2101 = vperm.xlu1 %3068, %v4092_v39   ;;  %2086 = vperm.xlu0 %3070, %v4144_v54   ;;  %v1977_v60 = vmul.f32 1.442695, %v1966_v55 }
 0x236   : > { %v1965_v48 = vmin.f32 %v1949_v43, 0.0  ;;  %vm1957_vm6 = vcmp.gt.f32.partialorder %v1949_v43, 0.0  ;;  %2091 = vperm.xlu2 %3069, %v4110_v61  }
 0x238   : > { %v1975_v23 = vmul.f32 1.442695, %v1965_v48 }
 0x23b   : > { %v965_v11 = vpop.f32.mrf.mxu2 }
 0x23c   : > { %2071 = vperm.xlu1 %3068, %v4174_v34  }
 0x23e   : > { %2081 = vperm.xlu2 %3069, %v4137_v25  }
 0x243   : > { %v2151_v48 = vpop.permute.xlu0 %2150 }
 0x246   : > { %2076 = vperm.xlu2 %3069, %v4183_v56  }
 0x249   : > { %v4216_v61 = vpop.permute.xlu1 %2154 }
 0x252   : > { %v4218_v16 = vpop.permute.xlu1 %2234 }
 0x255   : > { %v1527_v29 = vpop.f32.mrf.mxu3 }
 0x256   : > { %v1952_v5 = vadd.f32 %v1935_v59, %v1527_v29 }
 0x258   : > { %v1968_v42 = vmin.f32 %v1952_v5, 0.0  ;;  %vm1960_vm4 = vcmp.gt.f32.partialorder %v1952_v5, 0.0 }
 0x25a   : > { %v1981_v44 = vmul.f32 1.442695, %v1968_v42 }
 0x25b   : > { %v587_v1 = vpop.f32.mrf.mxu0  ;;  %v2311_v13 = vpop.permute.xlu1 %2310 }
 0x25c   : > { %v1947_v17 = vadd.f32 %v1910_v31, %v587_v1  ;;  %v4221_v1 = vpop.permute.xlu2 %2230 }
 0x25d   : > { %v1529_v58 = vpop.f32.mrf.mxu3 }
 0x25e   : > { %v1963_v30 = vmin.f32 %v1947_v17, 0.0  ;;  %vm1955_vm2 = vcmp.gt.f32.partialorder %v1947_v17, 0.0 }
 0x260   : > { %v1971_v57 = vmul.f32 1.442695, %v1963_v30 }
 0x262   : > { %3071 = vpow2.f32 %v1971_v57 }
 0x263   : > { %3073 = vpow2.f32 %v1973_v45  ;;  %v589_v38 = vpop.f32.mrf.mxu0 }
 0x264   : > { %3075 = vpow2.f32 %v1981_v44  ;;  %v2143_v29 = vpop.permute.xlu2 %2142 }
 0x265   : > { %3077 = vpow2.f32 %v1975_v23 }
 0x266   : > { %3079 = vpow2.f32 %v1977_v60 }
 0x268   : > { %v3072_v35 = vpop.eup %3071 }
 0x269   : > { %v3074_v46 = vpop.eup %3073  ;;  %v2673_v51 = vadd.f32 -1.0, %v3072_v35 }
 0x26a   : > { %v3076_v52 = vpop.eup %3075  ;;  %v2674_v37 = vadd.f32 -1.0, %v3074_v46 }
 0x26b   : > { %v1995_v49 = vsel %vm1955_vm2, %v1947_v17, %v2673_v51  ;;  %v2678_v53 = vadd.f32 -1.0, %v3076_v52  ;;  %v3078_v36 = vpop.eup %3077 }
 0x26c   : > { %2681 = vmatmul.msk.f32.vlgmr.msra.gmra.mxu0 %vm2003_vm3, %v1995_v49  ;;  %v1996_v0 = vsel %vm1956_vm5, %v1948_v15, %v2674_v37  ;;  %v2675_v10 = vadd.f32 -1.0, %v3078_v36  ;;  %v3080_v2 = vpop.eup %3079 }
 0x26d   : > { %v2000_v32 = vsel %vm1960_vm4, %v1952_v5, %v2678_v53  ;;  %v2676_v39 = vadd.f32 -1.0, %v3080_v2  ;;  %v4224_v5 = vpop.permute.xlu2 %2314 }
 0x26e   : > { %2686 = vmatmul.msk.f32.vlgmr.msrb.gmra.mxu3 %vm2003_vm3, %v2000_v32  ;;  %v1997_v20 = vsel %vm1957_vm6, %v1949_v43, %v2675_v10 }
 0x26f   : > { %v1998_v4 = vsel %vm1958_vm7, %v1950_v50, %v2676_v39 }
 0x271   : > { %v2227_v56 = vpop.permute.xlu1 %2226  ;;  %v2147_v46 = vpop.permute.xlu0 %2146 }
 0x274   : > { %2682 = vmatmul.msk.f32.gmra.mxu0 %vm2003_vm3, %v1996_v0 }
 0x275   : > { %v2135_v57 = vpop.permute.xlu2 %2134 }
 0x27a   : > { %v2139_v17 = vpop.permute.xlu1 %2138  ;;  %v2307_v10 = vpop.permute.xlu0 %2306 }
 0x27c   : > { %2683 = vmatmul.msk.f32.gmra.mxu0 %vm2003_vm3, %v1997_v20 }
 0x27d   : > { %v2303_v43 = vpop.permute.xlu2 %2302 }
 0x283   : > { %v1715_v41 = vpop.f32.mrf.mxu2  ;;  %v2215_v24 = vpop.permute.xlu1 %2214 }
 0x284   : > { %v1953_v40 = vadd.f32 %v4185_v21, %v1715_v41  ;;  %2684 = vmatmul.msk.f32.gmra.mxu0 %vm2003_vm3, %v1998_v4 }
 0x285   : > { %v2219_v38 = vpop.permute.xlu2 %2218 }
 0x286   : > { %v1969_v22 = vmin.f32 %v1953_v40, 0.0  ;;  %vm1961_vm8 = vcmp.gt.f32.partialorder %v1953_v40, 0.0 }
 0x288   : > { %v1983_v19 = vmul.f32 1.442695, %v1969_v22 }
 0x28a   : > { %3081 = vpow2.f32 %v1983_v19 }
 0x28b   : > { %v1717_v33 = vpop.f32.mrf.mxu2 }
 0x28c   : > { %v2127_v30 = vpop.permute.xlu1 %2126 }
 0x28d   : > { %v2131_v50 = vpop.permute.xlu2 %2130 }
 0x290   : > { %v3082_v26 = vpop.eup %3081 }
 0x291   : > { %v2679_v6 = vadd.f32 -1.0, %v3082_v26  ;;  %v2295_v26 = vpop.permute.xlu0 %2294 }
 0x293   : > { %v2001_v62 = vsel %vm1961_vm8, %v1953_v40, %v2679_v6 }
 0x294   : > { %2687 = vmatmul.msk.f32.gmra.mxu3 %vm2003_vm3, %v2001_v62 }
 0x295   : > { %v1903_v8 = vpop.f32.mrf.mxu3  ;;  %v2299_v45 = vpop.permute.xlu1 %2298 }
 0x296   : > { %v1954_v54 = vadd.f32 %v1945_v27, %v1903_v8  ;;  %v2207_v40 = vpop.permute.xlu2 %2206  ;;  %v395_v8 = vld [vmem:[%s4529_s29 + $0x28] sm:$0xff] }
 0x298   : > { %v1970_v9 = vmin.f32 %v1954_v54, 0.0  ;;  %vm1962_vm9 = vcmp.gt.f32.partialorder %v1954_v54, 0.0 }
 0x29a   : > { %v1985_v25 = vmul.f32 1.442695, %v1970_v9  ;;  %v2223_v9 = vpop.permute.xlu0 %2222 }
 0x29c   : > { %3083 = vpow2.f32 %v1985_v25 }
 0x29d   : > { %v1905_v3 = vpop.f32.mrf.mxu3  ;;  %v4226_v42 = vpop.permute.xlu1 %2286 }
 0x29e   : > { %v2291_v19 = vpop.permute.xlu2 %2290 }
 0x2a2   : > { %v3084_v14 = vpop.eup %3083 }
 0x2a3   : > { %v2680_v34 = vadd.f32 -1.0, %v3084_v14 }
 0x2a5   : > { %v2002_v7 = vsel %vm1962_vm9, %v1954_v54, %v2680_v34 }
 0x2a6   : > { %2688 = vmatmul.msk.f32.gmra.mxu3 %vm2003_vm3, %v2002_v7  ;;  %v4228_v44 = vpop.permute.xlu1 %2101  ;;  %v2211_v7 = vpop.permute.xlu0 %2210 }
 0x2a7   : > { %v1339_v28 = vpop.f32.mrf.mxu0 }
 0x2a8   : > { %v1951_v18 = vadd.f32 %v1930_v12, %v1339_v28  ;;  %v392_v12 = vld [vmem:[%s4529_s29 + $0x10] sm:$0xff] }
 0x2aa   : > { %v1967_v59 = vmin.f32 %v1951_v18, 0.0  ;;  %vm1959_vm10 = vcmp.gt.f32.partialorder %v1951_v18, 0.0 }
 0x2ac   : > { %v1979_v15 = vmul.f32 1.442695, %v1967_v59  ;;  %v393_v59 = vld [vmem:[%s4529_s29 + $0x18] sm:$0xff] }
 0x2ae   : > { %3085 = vpow2.f32 %v1979_v15  ;;  %v2072_v58 = vpop.permute.xlu1 %2071  ;;  %v390_v15 = vld [vmem:[%s4529_s29] sm:$0xff] }
 0x2af   : > { %v1341_v31 = vpop.f32.mrf.mxu0 }
 0x2b4   : > { %v3086_v11 = vpop.eup %3085 }
 0x2b5   : > { %v2677_v63 = vadd.f32 -1.0, %v3086_v11  ;;  %v2107_v11 = vpop.permute.xlu2 %2106 }
 0x2b7   : > { %v1999_v21 = vsel %vm1959_vm10, %v1951_v18, %v2677_v63  ;;  %v396_v18 = vld [vmem:[%s4529_s29 + $0x30] sm:$0xff] }
 0x2b8   : > { %2685 = vmatmul.msk.f32.gmra.mxu0 %vm2003_vm3, %v1999_v21  ;;  %v391_v21 = vld [vmem:[%s4529_s29 + $0x8] sm:$0xff] }
 0x2bd   : > { %v2092_v63 = vpop.permute.xlu2 %2091 }
 0x2e9   : > { %v2045_v47 = vpop.f32.mrf.mxu0 }
 0x2ea   : > { %v2157_v35 = vmul.f32 %v2127_v30, %v2045_v47  ;;  %v4230_v23 = vmul.f32 %v2072_v58, %v2045_v47  ;;  %v2237_v22 = vmul.f32 %v2207_v40, %v2045_v47 }
 0x2ec   : > { %2173 = vrot.lane.b32.xlu2 %v2157_v35, %s4423_s18 }
 0x2f1   : > { %v4233_v51 = vpop.f32.mrf.mxu0  ;;  %v4235_v52 = vpop.f32.mrf.mxu3 }
 0x2f2   : > { %v2158_v49 = vmul.f32 %v2131_v50, %v4233_v51  ;;  %v2162_v53 = vmul.f32 %v2147_v46, %v4235_v52  ;;  %v2242_v55 = vmul.f32 %v2227_v56, %v4235_v52  ;;  %v2322_v20 = vmul.f32 %v2307_v10, %v4235_v52  ;;  %v397_v56 = vld [vmem:[%s4529_s29 + $0x38] sm:$0xff] }
 0x2f3   : > { %v2318_v33 = vmul.f32 %v2291_v19, %v4233_v51  ;;  %v2238_v31 = vmul.f32 %v2211_v7, %v4233_v51 }
 0x2f4   : > { %2183 = vrot.lane.b32.xlu2 %v2162_v53, %s4423_s18  ;;  %2175 = vrot.lane.b32.xlu0 %v2158_v49, %s4423_s18 }
 0x2f9   : > { %v4242_v32 = vpop.f32.mrf.mxu0 }
 0x2fa   : > { %v2159_v37 = vmul.f32 %v2135_v57, %v4242_v32  ;;  %v2239_v60 = vmul.f32 %v2215_v24, %v4242_v32 }
 0x2fc   : > { %2263 = vrot.lane.b32.xlu2 %v2242_v55, %s4435_s25  ;;  %2177 = vrot.lane.b32.xlu0 %v2159_v37, %s4423_s18 }
 0x301   : > { %v4248_v0 = vpop.f32.mrf.mxu0 }
 0x302   : > { %v2160_v36 = vmul.f32 %v2139_v17, %v4248_v0  ;;  %v2240_v2 = vmul.f32 %v2219_v38, %v4248_v0  ;;  %v2320_v28 = vmul.f32 %v2299_v45, %v4248_v0  ;;  %v2097_v17 = vpop.permute.xlu0 %2096 }
 0x303   : > { %v2114_v35 = vmul.f32 %v2097_v17, %v4235_v52 }
 0x304   : > { %2257 = vrot.lane.b32.xlu0 %v2239_v60, %s4435_s25  ;;  %2179 = vrot.lane.b32.xlu1 %v2160_v36, %s4423_s18 }
 0x30a   : > { %v2087_v24 = vpop.permute.xlu0 %2086 }
 0x30c   : > { %2343 = vrot.lane.b32.xlu0 %v2322_v20, %s4437_s22  ;;  %2259 = vrot.lane.b32.xlu1 %v2240_v2, %s4435_s25 }
 0x317   : > { %v4257_v39 = vpop.f32.mrf.mxu3 }
 0x318   : > { %v2163_v4 = vmul.f32 %v2151_v48, %v4257_v39  ;;  %v2323_v41 = vmul.f32 %v2311_v13, %v4257_v39  ;;  %v2243_v13 = vmul.f32 %v4221_v1, %v4257_v39  ;;  %v394_v1 = vld [vmem:[%s4529_s29 + $0x20] sm:$0xff] }
 0x31a   : > { %2185 = vrot.lane.b32.xlu0 %v2163_v4, %s4423_s18 }
 0x322   : > { %2345 = vrot.lane.b32.xlu0 %v2323_v41, %s4437_s22 }
 0x329   : > { %v4271_v54 = vpop.f32.mrf.mxu3 }
 0x32a   : > { %2253 = vrot.lane.b32.xlu0 %v2237_v22, %s4435_s25  ;;  %v2244_v25 = vmul.f32 %v4218_v16, %v4271_v54  ;;  %v2317_v16 = vmul.f32 %v4226_v42, %v2045_v47  ;;  %v2164_v14 = vmul.f32 %v4216_v61, %v4271_v54  ;;  %v2324_v34 = vmul.f32 %v4224_v5, %v4271_v54 }
 0x32b   : > { %v2319_v61 = vmul.f32 %v2295_v26, %v4242_v32  ;;  %v2115_v22 = vmul.f32 %v4228_v44, %v4257_v39  ;;  %v2116_v19 = vmul.f32 %v2107_v11, %v4271_v54 }
 0x332   : > { %2335 = vrot.lane.b32.xlu0 %v2318_v33, %s4437_s22 }
 0x335   : > { %v2057_v6 = vpop.f32.mrf.mxu0 }
 0x336   : > { %v2161_v62 = vmul.f32 %v2143_v29, %v2057_v6  ;;  %v2321_v27 = vmul.f32 %v2303_v43, %v2057_v6  ;;  %v2241_v3 = vmul.f32 %v2223_v9, %v2057_v6  ;;  %v2082_v29 = vpop.permute.xlu2 %2081  ;;  %v2113_v50 = vmul.f32 %v2092_v63, %v2057_v6 }
 0x338   : > { %2341 = vrot.lane.b32.xlu2 %v2321_v27, %s4437_s22  ;;  %2181 = vrot.lane.b32.xlu1 %v2161_v62, %s4423_s18 }
 0x33a   : > { %2396 = vperm.xlu0 %3070, %v395_v8  }
 0x33e   : > { %v2077_v30 = vpop.permute.xlu2 %2076 }
 0x33f   : > { %v2110_v7 = vmul.f32 %v2077_v30, %v4233_v51  ;;  %v398_v51 = vld [vmem:[%s4531_s2] sm:$0xff]  ;;  %v2730_v30 = vld [vmem:[%s4530_s27 + $0x10] sm:$0xff] }
 0x340   : > { %2267 = vrot.lane.b32.xlu2 %v2244_v25, %s4435_s25  ;;  %2261 = vrot.lane.b32.xlu1 %v2241_v3, %s4435_s25  ;;  %v2111_v3 = vmul.f32 %v2082_v29, %v4242_v32  ;;  %v2728_v29 = vld [vmem:[%s4530_s27] sm:$0xff] }
 0x342   : > { %2381 = vperm.xlu0 %3070, %v392_v12   ;;  %v2112_v12 = vmul.f32 %v2087_v24, %v4248_v0  ;;  %v399_v24 = vld [vmem:[%s4531_s2 + $0x8] sm:$0xff] }
 0x346   : > { %v2174_v45 = vpop.permute.xlu2 %2173 }
 0x347   : > { %v2197_v32 = vadd.f32 %v2174_v45, %v4230_v23  ;;  %v2729_v23 = vld [vmem:[%s4530_s27 + $0x8] sm:$0xff]  ;;  %v2731_v45 = vld [vmem:[%s4530_s27 + $0x18] sm:$0xff] }
 0x348   : > { %2339 = vrot.lane.b32.xlu2 %v2320_v28, %s4437_s22  ;;  %2265 = vrot.lane.b32.xlu1 %v2243_v13, %s4435_s25 }
 0x34e   : > { %v2184_v43 = vpop.permute.xlu2 %2183 }
 0x34f   : > { %v2202_v46 = vadd.f32 %v2184_v43, %v2114_v35 }
 0x350   : > { %2333 = vrot.lane.b32.xlu2 %v2317_v16, %s4437_s22  ;;  %2187 = vrot.lane.b32.xlu1 %v2164_v14, %s4423_s18  ;;  %s3123_s18 = smov 64  }
 0x356   : > { %v2264_v58 = vpop.permute.xlu2 %2263 }
 0x357   : > { %v2282_v37 = vadd.f32 %v2264_v58, %v2202_v46 }
 0x358   : > { %2401 = vperm.xlu2 %3069, %v396_v18   ;;  %2347 = vrot.lane.b32.xlu1 %v2324_v34, %s4437_s22 }
 0x360   : > { %2386 = vperm.xlu2 %3069, %v393_v59   ;;  %2337 = vrot.lane.b32.xlu1 %v2319_v61, %s4437_s22 }
 0x364   : > { %2519 = vxpose.xlu0.b32.start [1/3] (short) (narrow) %v398_v51, 8 }
 0x366   : > { %v2176_v5 = vpop.permute.xlu0 %2175 }
 0x368   : > { %2371 = vperm.xlu2 %3069, %v390_v15   ;;  %2255 = vrot.lane.b32.xlu1 %v2238_v31, %s4435_s25  ;;  %v2198_v15 = vadd.f32 %v2176_v5, %v2110_v7  ;;  %v400_v5 = vld [vmem:[%s4531_s2 + $0x10] sm:$0xf] }
 0x36c   : > { %2520 = vxpose.xlu0.b32.cont [2/3] (short) (narrow) %v399_v24, 8 }
 0x36e   : > { %v2178_v42 = vpop.permute.xlu0 %2177 }
 0x36f   : > { %v2199_v13 = vadd.f32 %v2178_v42, %v2111_v3 }
 0x370   : > { %2406 = vperm.xlu1 %3068, %v397_v56  }
 0x374   : > { %2521 = vxpose.xlu0.b32.end [3/3] (short) (narrow) %v400_v5, 8 }
 0x376   : > { %v2180_v57 = vpop.permute.xlu1 %2179  ;;  %v2258_v48 = vpop.permute.xlu0 %2257 }
 0x377   : > { %v2200_v16 = vadd.f32 %v2180_v57, %v2112_v12  ;;  %v2279_v39 = vadd.f32 %v2258_v48, %v2199_v13 }
 0x378   : > { %2391 = vperm.xlu1 %3068, %v394_v1  }
 0x37e   : > { %v2260_v38 = vpop.permute.xlu1 %2259  ;;  %v2344_v53 = vpop.permute.xlu0 %2343 }
 0x37f   : > { %v2362_v10 = vadd.f32 %v2344_v53, %v2282_v37  ;;  %v2280_v54 = vadd.f32 %v2260_v38, %v2200_v16 }
 0x380   : > { %2376 = vperm.xlu1 %3068, %v391_v21  }
 0x38c   : > { %v2186_v41 = vpop.permute.xlu0 %2185 }
 0x38d   : > { %v2203_v52 = vadd.f32 %v2186_v41, %v2115_v22 }
 0x392   : > { %v2342_v36 = vpop.permute.xlu2 %2341 }
 0x394   : > { %v2346_v62 = vpop.permute.xlu0 %2345 }
 0x39a   : > { %v2268_v26 = vpop.permute.xlu2 %2267 }
 0x39c   : > { %v2254_v14 = vpop.permute.xlu0 %2253 }
 0x39d   : > { %v2277_v56 = vadd.f32 %v2254_v14, %v2197_v32 }
 0x3a2   : > { %v2340_v44 = vpop.permute.xlu2 %2339 }
 0x3a3   : > { %v2360_v34 = vadd.f32 %v2340_v44, %v2280_v54 }
 0x3a4   : > { %v2336_v1 = vpop.permute.xlu0 %2335 }
 0x3aa   : > { %v2182_v47 = vpop.permute.xlu1 %2181  ;;  %v2334_v0 = vpop.permute.xlu2 %2333 }
 0x3ab   : > { %v2201_v49 = vadd.f32 %v2182_v47, %v2113_v50  ;;  %v2357_v63 = vadd.f32 %v2334_v0, %v2277_v56 }
 0x3b2   : > { %v2262_v55 = vpop.permute.xlu1 %2261  ;;  %v2402_v50 = vpop.permute.xlu2 %2401 }
 0x3b3   : > { %v2281_v60 = vadd.f32 %v2262_v55, %v2201_v49  ;;  %v2397_v49 = vpop.permute.xlu0 %2396 }
 0x3b5   : > { %v2361_v20 = vadd.f32 %v2342_v36, %v2281_v60 }
 0x3b7   : > { %v2367_v2 = vpack.c.bf16 %v2362_v10, %v2361_v20 }
 0x3ba   : > { %v2266_v4 = vpop.permute.xlu1 %2265 }
 0x3bb   : > { %v2283_v6 = vadd.f32 %v2266_v4, %v2203_v52 }
 0x3bd   : > { %v2363_v25 = vadd.f32 %v2346_v62, %v2283_v6 }
 0x3c2   : > { %v2188_v40 = vpop.permute.xlu1 %2187 }
 0x3c3   : > { %v2204_v33 = vadd.f32 %v2188_v40, %v2116_v19  ;;  %v2387_v40 = vpop.permute.xlu2 %2386 }
 0x3c5   : > { %v2284_v27 = vadd.f32 %v2268_v26, %v2204_v33  ;;  %v2382_v33 = vpop.permute.xlu0 %2381 }
 0x3ca   : > { %v2348_v8 = vpop.permute.xlu1 %2347 }
 0x3cb   : > { %v2364_v9 = vadd.f32 %v2348_v8, %v2284_v27 }
 0x3cd   : > { %v2368_v28 = vpack.c.bf16 %v2364_v9, %v2363_v25 }
 0x3cf   : > { %2446 = vmatpush.bf16.msra.mxu1 %v2368_v28 }
 0x3d2   : > { %v2338_v18 = vpop.permute.xlu1 %2337 }
 0x3d3   : > { %v2359_v59 = vadd.f32 %v2338_v18, %v2279_v39  ;;  %2447 = vmatpush.bf16.msra.mxu1 %v2367_v2  ;;  %v2372_v39 = vpop.permute.xlu2 %2371 }
 0x3d5   : > { %v2366_v61 = vpack.c.bf16 %v2360_v34, %v2359_v59 }
 0x3d7   : > { %2448 = vmatpush.bf16.msra.mxu1 %v2366_v61 }
 0x3da   : > { %v2256_v31 = vpop.permute.xlu1 %2255 }
 0x3db   : > { %v2278_v11 = vadd.f32 %v2256_v31, %v2198_v15 }
 0x3dd   : > { %v2358_v21 = vadd.f32 %v2336_v1, %v2278_v11 }
 0x3df   : > { %v2365_v17 = vpack.c.bf16 %v2358_v21, %v2357_v63 }
 0x3e1   : > { %2449 = vmatpush.bf16.msra.mxu1 %v2365_v17 }
 0x3e2   : > { %v2407_v58 = vpop.permute.xlu1 %2406 }
 0x3e4   : > { %2705 = vmatmul.msk.bf16.vlgmr.msra.gmra.mxu1 %vm2429_vm11, %v2728_v29 }
 0x3ea   : > { %v2392_v36 = vpop.permute.xlu1 %2391 }
 0x3f2   : > { %v2377_v9 = vpop.permute.xlu1 %2376 }
 0x3f4   : > { %2706 = vmatmul.msk.bf16.gmra.mxu1 %vm2429_vm11, %v2729_v23 }
 0x404   : > { %2707 = vmatmul.msk.bf16.gmra.mxu1 %vm2429_vm11, %v2730_v30 }
 0x414   : > { %2708 = vmatmul.msk.bf16.gmra.mxu1 %vm2429_vm11, %v2731_v45 }
 0x461   : > { %v2451_v57 = vpop.f32.mrf.mxu1 }
 0x462   : > { %v2452_v54 = vadd.f32 %v2451_v57, %v2372_v39  ;;  %v2535_v57 = vpop.trf.xlu0 }
 0x464   : > { %v2479_v7 = vmin.f32 %v2452_v54, 0.0  ;;  %vm2471_vm4 = vcmp.gt.f32.partialorder %v2452_v54, 0.0 }
 0x466   : > { %v2487_v56 = vmul.f32 1.442695, %v2479_v7 }
 0x469   : > { %v2453_v42 = vpop.f32.mrf.mxu1 }
 0x46a   : > { %v2454_v25 = vadd.f32 %v2453_v42, %v2377_v9 }
 0x46c   : > { %v2480_v14 = vmin.f32 %v2454_v25, 0.0  ;;  %vm2472_vm3 = vcmp.gt.f32.partialorder %v2454_v25, 0.0 }
 0x46e   : > { %v2489_v32 = vmul.f32 1.442695, %v2480_v14 }
 0x471   : > { %v2456_v43 = vpop.f32.mrf.mxu1 }
 0x472   : > { %v2457_v26 = vadd.f32 %v2456_v43, %v2382_v33 }
 0x474   : > { %v2481_v12 = vmin.f32 %v2457_v26, 0.0  ;;  %vm2473_vm2 = vcmp.gt.f32.partialorder %v2457_v26, 0.0 }
 0x476   : > { %v2491_v18 = vmul.f32 1.442695, %v2481_v12 }
 0x479   : > { %v2458_v38 = vpop.f32.mrf.mxu1 }
 0x47a   : > { %v2459_v22 = vadd.f32 %v2458_v38, %v2387_v40 }
 0x47c   : > { %v2482_v6 = vmin.f32 %v2459_v22, 0.0  ;;  %vm2474_vm1 = vcmp.gt.f32.partialorder %v2459_v22, 0.0 }
 0x47e   : > { %v2493_v28 = vmul.f32 1.442695, %v2482_v6 }
 0x481   : > { %v2461_v48 = vpop.f32.mrf.mxu1 }
 0x482   : > { %v2462_v20 = vadd.f32 %v2461_v48, %v2392_v36 }
 0x484   : > { %v2483_v19 = vmin.f32 %v2462_v20, 0.0  ;;  %vm2475_vm0 = vcmp.gt.f32.partialorder %v2462_v20, 0.0 }
 0x486   : > { %v2495_v62 = vmul.f32 1.442695, %v2483_v19 }
 0x489   : > { %v2463_v47 = vpop.f32.mrf.mxu1 }
 0x48a   : > { %v2464_v55 = vadd.f32 %v2463_v47, %v2397_v49 }
 0x48c   : > { %v2484_v2 = vmin.f32 %v2464_v55, 0.0  ;;  %vm2476_vm15 = vcmp.gt.f32.partialorder %v2464_v55, 0.0 }
 0x48e   : > { %v2497_v52 = vmul.f32 1.442695, %v2484_v2 }
 0x491   : > { %v2466_v35 = vpop.f32.mrf.mxu1 }
 0x492   : > { %v2467_v46 = vadd.f32 %v2466_v35, %v2402_v50 }
 0x494   : > { %v2485_v53 = vmin.f32 %v2467_v46, 0.0  ;;  %vm2477_vm14 = vcmp.gt.f32.partialorder %v2467_v46, 0.0 }
 0x496   : > { %v2499_v10 = vmul.f32 1.442695, %v2485_v53 }
 0x498   : > { %3087 = vpow2.f32 %v2499_v10 }
 0x499   : > { %v2468_v37 = vpop.f32.mrf.mxu1 }
 0x49a   : > { %v2469_v60 = vadd.f32 %v2468_v37, %v2407_v58 }
 0x49c   : > { %v2486_v4 = vmin.f32 %v2469_v60, 0.0  ;;  %vm2478_vm13 = vcmp.gt.f32.partialorder %v2469_v60, 0.0 }
 0x49e   : > { %v2501_v41 = vmul.f32 1.442695, %v2486_v4  ;;  %v3088_v27 = vpop.eup %3087 }
 0x49f   : > { %v2715_v13 = vadd.f32 -1.0, %v3088_v27 }
 0x4a0   : > { %3089 = vpow2.f32 %v2501_v41 }
 0x4a1   : > { %3091 = vpow2.f32 %v2497_v52  ;;  %v2517_v59 = vsel %vm2477_vm14, %v2467_v46, %v2715_v13 }
 0x4a2   : > { %3093 = vpow2.f32 %v2495_v62 }
 0x4a3   : > { %3095 = vpow2.f32 %v2493_v28 }
 0x4a4   : > { %3097 = vpow2.f32 %v2491_v18 }
 0x4a5   : > { %3099 = vpow2.f32 %v2489_v32 }
 0x4a6   : > { %v3090_v8 = vpop.eup %3089  ;;  %3101 = vpow2.f32 %v2487_v56 }
 0x4a7   : > { %v2716_v3 = vadd.f32 -1.0, %v3090_v8  ;;  %v3092_v44 = vpop.eup %3091 }
 0x4a8   : > { %v2714_v34 = vadd.f32 -1.0, %v3092_v44  ;;  %v3094_v61 = vpop.eup %3093 }
 0x4a9   : > { %v2518_v16 = vsel %vm2478_vm13, %v2469_v60, %v2716_v3  ;;  %v2713_v15 = vadd.f32 -1.0, %v3094_v61  ;;  %v3096_v31 = vpop.eup %3095 }
 0x4aa   : > { %2717 = vmatpush.xpose.msk.msrb.mxu2 %vm2551_vm12, %v2518_v16  ;;  %v2516_v0 = vsel %vm2476_vm15, %v2464_v55, %v2714_v34  ;;  %v2712_v11 = vadd.f32 -1.0, %v3096_v31  ;;  %v3098_v63 = vpop.eup %3097 }
 0x4ab   : > { %v2515_v1 = vsel %vm2475_vm0, %v2462_v20, %v2713_v15  ;;  %v2711_v21 = vadd.f32 -1.0, %v3098_v63  ;;  %v3100_v29 = vpop.eup %3099 }
 0x4ac   : > { %v2514_v17 = vsel %vm2474_vm1, %v2459_v22, %v2712_v11  ;;  %v2710_v23 = vadd.f32 -1.0, %v3100_v29  ;;  %v3102_v24 = vpop.eup %3101 }
 0x4ad   : > { %v2513_v51 = vsel %vm2473_vm2, %v2457_v26, %v2711_v21  ;;  %v2709_v30 = vadd.f32 -1.0, %v3102_v24 }
 0x4ae   : > { %2718 = vmatpush.xpose.msk.msrb.mxu2 %vm2551_vm12, %v2517_v59  ;;  %v2512_v5 = vsel %vm2472_vm3, %v2454_v25, %v2710_v23 }
 0x4af   : > { %v2511_v45 = vsel %vm2471_vm4, %v2452_v54, %v2709_v30 }
 0x4b2   : > { %2719 = vmatpush.xpose.msk.msrb.mxu2 %vm2551_vm12, %v2516_v0 }
 0x4b6   : > { %2720 = vmatpush.xpose.msk.msrb.mxu2 %vm2551_vm12, %v2515_v1 }
 0x4ba   : > { %2721 = vmatpush.xpose.msk.msrb.mxu2 %vm2551_vm12, %v2514_v17 }
 0x4be   : > { %2722 = vmatpush.xpose.msk.msrb.mxu2 %vm2551_vm12, %v2513_v51 }
 0x4c2   : > { %2723 = vmatpush.xpose.msk.msrb.mxu2 %vm2551_vm12, %v2512_v5 }
 0x4c6   : > { %2724 = vmatpush.xpose.msk.msrb.mxu2 %vm2551_vm12, %v2511_v45 }
 0x4c9   : > { %2725 = vmatmul.msk.f32.vlgmr.msrb.gmra.mxu2 %vm2551_vm12, %v2535_v57 }
 0x54c   : > { %v2596_v42 = vpop.f32.mrf.mxu2 }
 0x54d   : > { %2600 = vrot.lane.b32.xlu1 %v2596_v42, %s3123_s18 }
 0x5bf   : > { %v2601_v43 = vpop.permute.xlu1 %2600 }
 0x5c0   : > { %v2603_v38 = vsel %vm2429_vm11, 0.0, %v2601_v43 }
 0x5c1   : > { %2604 = vst [vmem:[%s330_s0] sm:$0xf] %v2603_v38 }
 0x5c2 PF: > { %s4534_s22 = sld [smem:[#allocation2_spill]] }
 0x5c8   : > { %s19_s30 = sadd.s32 1, %s4534_s22  }
 0x5c9   : > { %p16_p4 = scmp.ge.s32.totalorder %s19_s30, 4  }
 0x5cb   :  { %18 = sbr.rel (!%p16_p4) target bundleno = 10 (0xa), region = 86 }

// kernel: fused_eeg_forward.5
= control target key start
LH: loop header
LB: loop body
LE: loop exit
PB: predicated region body
PF: predicated region fallthrough
CT: control target
= control target key end

     0   :  { %s6081_s0 = inlined_call_operand.vmem [shape: f32[2,4,128], index: 0, kind: input, shape index: {}]   ;;  %s6082_s1 = inlined_call_operand.vmem [shape: f32[4,64], index: 1, kind: input, shape index: {}]   ;;  %s6083_s2 = inlined_call_operand.vmem [shape: f32[2,1,4], index: 2, kind: input, shape index: {}]   ;;  %s6084_s3 = inlined_call_operand.vmem [shape: f32[32,64], index: 3, kind: input, shape index: {}]   ;;  %s6085_s4 = inlined_call_operand.vmem [shape: bf16[4,64,192], index: 4, kind: input, shape index: {}]   ;;  %s6086_s5 = inlined_call_operand.vmem [shape: f32[4,1,192], index: 5, kind: input, shape index: {}]   ;;  %s6087_s6 = inlined_call_operand.vmem [shape: bf16[4,64,64], index: 6, kind: input, shape index: {}]   ;;  %s6088_s7 = inlined_call_operand.vmem [shape: f32[4,1,64], index: 7, kind: input, shape index: {}]   ;;  %s6089_s8 = inlined_call_operand.vmem [shape: f32[4,1,64], index: 8, kind: input, shape index: {}]   ;;  %s6090_s9 = inlined_call_operand.vmem [shape: f32[4,1,64], index: 9, kind: input, shape index: {}]   ;;  %s6091_s10 = inlined_call_operand.vmem [shape: bf16[4,64,256], index: 10, kind: input, shape index: {}]   ;;  %s6092_s11 = inlined_call_operand.vmem [shape: f32[4,1,256], index: 11, kind: input, shape index: {}]   ;;  %s6093_s12 = inlined_call_operand.vmem [shape: bf16[4,256,64], index: 12, kind: input, shape index: {}]   ;;  %s6094_s13 = inlined_call_operand.vmem [shape: f32[4,1,64], index: 13, kind: input, shape index: {}]   ;;  %s6095_s14 = inlined_call_operand.vmem [shape: f32[4,1,64], index: 14, kind: input, shape index: {}]   ;;  %s6096_s15 = inlined_call_operand.vmem [shape: f32[4,1,64], index: 15, kind: input, shape index: {}]   ;;  %s6097_s16 = inlined_call_operand.vmem [shape: bf16[128,128], index: 16, kind: input, shape index: {}]   ;;  %s6098_s17 = inlined_call_operand.vmem [shape: f32[1,128], index: 17, kind: input, shape index: {}]   ;;  %s6099_s18 = inlined_call_operand.vmem [shape: bf16[128,128], index: 18, kind: input, shape index: {}]   ;;  %s6100_s19 = inlined_call_operand.vmem [shape: f32[1,128], index: 19, kind: input, shape index: {}]   ;;  %s6101_s20 = inlined_call_operand.hbm [shape: f32[2,1,128], index: 20, kind: output, shape index: {}]  }
   0x1   :  { %6117 = sst [smem:[#allocation12_spill]] %s6081_s0 }
   0x2   :  { %6118 = sst [smem:[#allocation13_spill]] %s6082_s1 }
   0x3   :  { %6119 = sst [smem:[#allocation14_spill]] %s6083_s2 }
   0x4   :  { %6120 = sst [smem:[#allocation15_spill]] %s6084_s3 }
   0x5   :  { %6121 = sst [smem:[#allocation16_spill]] %s6085_s4 }
   0x6   :  { %6122 = sst [smem:[#allocation17_spill]] %s6086_s5 }
   0x7   :  { %6123 = sst [smem:[#allocation18_spill]] %s6087_s6 }
   0x8   :  { %6124 = sst [smem:[#allocation19_spill]] %s6100_s19 }
   0x9   :  { %6125 = sst [smem:[#allocation20_spill]] %s6101_s20 }
   0xa   :  { %25 = vsyncpa [#allocation3], 0 }
   0xb   :  { %27 = vsyncpa [#allocation3 + $0x1], 0  ;;  %s4865_s1 = smov 0   ;;  %s4867_s22 = smov 0  }
   0xc   :  { %s4869_s23 = smov 0   ;;  %s4871_s24 = smov 0  }
   0xd LB: > { %6126 = sst [smem:[#allocation5_spill]] %s4744_s1  ;;  %s4886_s2 = sadd.s32 4294967295, %s4756_s24   ;;  %s4756_s24 = sphi %s4871_s24, %s6149_s24   ;;  %s4752_s23 = sphi %s4869_s23, %s6151_s23   ;;  %s4748_s22 = sphi %s4867_s22, %s6153_s22   ;;  %s4744_s1 = sphi %s4865_s1, %s6152_s1  }
   0xe   : > { %6127 = sst [smem:[#allocation6_spill]] %s4752_s23  ;;  %s3498_s25 = sadd.s32 4294967294, %s4756_s24  }
   0xf   : > { %6128 = sst [smem:[#allocation7_spill]] %s4756_s24  ;;  %s4890_s3 = sadd.s32 1, %s4756_s24  }
  0x10   : > { %6129 = sst [smem:[#allocation8_spill]] %s4890_s3  ;;  %s470_s26 = sadd.s32 1, %s4752_s23 }
  0x11   : > { %s467_s27 = ssub.s32 %s4756_s24, %s4890_s3  ;;  %p480_p0 = scmp.ne.s32.totalorder %s4752_s23, %s4748_s22 }
  0x12   : > { %p468_p1 = scmp.eq.s32.totalorder %s467_s27, 0  ;;  %p481_p2 = scmp.eq.s32.totalorder %s4886_s2, 1 }
  0x13   : > { %p486_p3 = scmp.ne.s32.totalorder %s4748_s22, %s4744_s1  ;;  %p487_p4 = scmp.eq.s32.totalorder %s3498_s25, 1 }
  0x14   : > { %s4901_s28 = scalar_select %p468_p1, %s4752_s23, %s470_s26  }
  0x15   : > { %p4903_p5 = por %p481_p2, %p480_p0  ;;  %p4907_p6 = por %p487_p4, %p486_p3 }
  0x16   : > { %6130 = sst [smem:[#allocation9_spill]] %s4901_s28  ;;  %p3501_p7 = scmp.ge.s32.totalorder %s4756_s24, 1 }
  0x17   : > { %s6131_s4 = scalar_select %p4903_p5, 1, 0 }
  0x18   : > { %s6133_s29 = scalar_select %p4907_p6, 1, 0 }
  0x19   : > { %6132 = sst [smem:[#allocation10_spill]] %s6131_s4  ;;  %p572_p8 = scmp.lt.s32.totalorder %s4756_s24, 3 }
  0x1a   : > { %6134 = sst [smem:[#allocation11_spill]] %s6133_s29 }
  0x1b   : > { %p573_p9 = pnand %p3501_p7, %p572_p8 }
  0x1c   : > { %s6135_s21 = sld [smem:[#allocation16_spill]] (!%p573_p9)  ;;  %p631_p10 = scmp.lt.s32.totalorder (!%p573_p9), %s4886_s2, 1 }
  0x1d   : > { %576 = sbr.rel (%p573_p9) target bundleno = 9023 (0x233f), region = 100  ;;  %s6136_s24 = sld [smem:[#allocation12_spill]] (!%p573_p9) }
  0x1e   : > { %s6137_s4 = sld [smem:[#allocation13_spill]] (!%p573_p9)  ;;  %s6113_s26 = smov (!%p573_p9), 64  }
  0x1f   : > { %s6138_s5 = sld [smem:[#allocation17_spill]] (!%p573_p9) }
  0x20   : > { %s6139_s27 = sld [smem:[#allocation15_spill]] (!%p573_p9) }
  0x21   : > { %s6140_s30 = sld [smem:[#allocation14_spill]] (!%p573_p9) }
  0x22   : > { %v3529_v0 = vld [vmem:[%s6135_s21 + $0x30] sm:$0xf]  ;;  %v4384_v1 = vld [vmem:[%s6135_s21 + $0x34] sm:$0xf0]  ;;  %v3521_v2 = vld [vmem:[%s6135_s21 + $0x20] sm:$0xf] }
  0x23   : > { %v3530_v3 = vor.u32 %v4384_v1, %v3529_v0  ;;  %v4382_v4 = vld [vmem:[%s6135_s21 + $0x24] sm:$0xf0]  ;;  %v3513_v6 = vld [vmem:[%s6135_s21 + $0x10] sm:$0xf]  ;;  %v4380_v7 = vld [vmem:[%s6135_s21 + $0x14] sm:$0xf0] }
  0x24   : > { %v3522_v5 = vor.u32 %v4382_v4, %v3521_v2  ;;  %s4933_s25 = scalar_select %p631_p10, %s4886_s2, 1  ;;  %v3505_v8 = vld [vmem:[%s6135_s21] sm:$0xf]  ;;  %v3514_v9 = vor.u32 %v4380_v7, %v3513_v6  ;;  %v4378_v11 = vld [vmem:[%s6135_s21 + $0x4] sm:$0xf0]  ;;  %vm704_vm0 = vcmask 523264  }
  0x25   : > { %712 = vmatpush.bf16.msra.mxu0 %v3530_v3  ;;  %v642_v10 = vld [vmem:[%s6137_s4] sm:$0xf]  ;;  %v3506_v14 = vor.u32 %v4378_v11, %v3505_v8  ;;  %vm737_vm1 = vcmask 1043456   ;;  %v4383_v39 = vld [vmem:[%s6135_s21 + $0x34] sm:$0xf]  ;;  %vm788_vm2 = vcmask 31744  }
  0x26   : > { %s3502_s23 = sshll.u32 %s4933_s25, 2  ;;  %v4962_v16 = vld [vmem:[%s6138_s5] sm:$0x3]  ;;  %v4975_v26 = vld [vmem:[%s6139_s27 + $0x8] sm:$0xff]  ;;  %v4984_v31 = vld [vmem:[%s6139_s27 + $0x10] sm:$0xff]  ;;  %vm842_vm3 = vcmask 1041408  }
  0x27   : > { %s4942_s19 = scalar_lea.vmem %s6136_s24, %s3502_s23  ;;  %v660_v17 = vperm.slane %v4962_v16, 0  ;;  %v4970_v25 = vld [vmem:[%s6139_s27] sm:$0xff]  ;;  %v4989_v32 = vld [vmem:[%s6139_s27 + $0x18] sm:$0xff]  ;;  %s4998_s0 = scalar_lea.vmem %s6140_s30, %s4933_s25  ;;  %v3523_v44 = vld [vmem:[%s6135_s21 + $0x28] sm:$0xf0]  ;;  %vm957_vm4 = vcmask 519168  }
  0x28   : > { %v647_v12 = vld [vmem:[%s4942_s19] sm:$0xf]  ;;  %v3531_v40 = vld [vmem:[%s6135_s21 + $0x38] sm:$0xf0]  ;;  %v4381_v41 = vld [vmem:[%s6135_s21 + $0x24] sm:$0xf] }
  0x29   : > { %713 = vmatpush.bf16.msra.mxu0 %v3522_v5  ;;  %v4951_v13 = vadd.f32 %v647_v12, %v642_v10  ;;  %v639_v36 = vld [vmem:[%s4998_s0] sm:$0x1]  ;;  %v3534_v43 = vor.u32 %v4383_v39, %v3531_v40  ;;  %v3526_v47 = vor.u32 %v4381_v41, %v3523_v44  ;;  %v4379_v48 = vld [vmem:[%s6135_s21 + $0x14] sm:$0xf]  ;;  %v3515_v49 = vld [vmem:[%s6135_s21 + $0x18] sm:$0xf0] }
  0x2a   : > { %v640_v37 = vsub.f32 1.0, %v639_v36  ;;  %v3518_v52 = vor.u32 %v4379_v48, %v3515_v49  ;;  %v4377_v1 = vld [vmem:[%s6135_s21 + $0x4] sm:$0xf]  ;;  %v3507_v2 = vld [vmem:[%s6135_s21 + $0x8] sm:$0xf0]  ;;  %s6141_s6 = sld [smem:[#allocation18_spill]] }
  0x2b   : > { %v4955_v15 = vpack.c.bf16 %v4951_v13, %v4951_v13  ;;  %725 = vmatpush.bf16.msra.mxu1 %v3534_v43  ;;  %v3510_v3 = vor.u32 %v4377_v1, %v3507_v2  ;;  %v5074_v2 = vperm.slane %v4984_v31, 0  ;;  %s6142_s25 = smov 64   ;;  %s6145_s24 = sld [smem:[#allocation19_spill]] }
  0x2c   : > { %v641_v38 = vmul.f32 -1e+09, %v640_v37 }
  0x2d   : > { %714 = vmatpush.bf16.msra.mxu0 %v3514_v9 }
  0x2e   : > { %v5010_v42 = vperm.slane %v641_v38, 0 }
  0x2f   : > { %726 = vmatpush.bf16.msra.mxu1 %v3526_v47 }
  0x31   : > { %715 = vmatpush.bf16.msra.mxu0 %v3506_v14 }
  0x33   : > { %727 = vmatpush.bf16.msra.mxu1 %v3518_v52  ;;  %v4386_v52 = vld [vmem:[%s6141_s6 + $0x8] sm:$0xff] }
  0x34   : > { %3535 = vmatmul.msk.bf16.vlgmr.msra.gmra.mxu0 %vm704_vm0, %v4955_v15 }
  0x37   : > { %728 = vmatpush.bf16.msra.mxu1 %v3510_v3  ;;  %v5077_v3 = vperm.slane %v4984_v31, 4 }
  0x3a   : > { %3536 = vmatmul.msk.bf16.vlgmr.msra.gmra.mxu1 %vm704_vm0, %v4955_v15 }
  0xb1   : > { %v717_v18 = vpop.f32.mrf.mxu0 }
  0xb2   : > { %v718_v19 = vadd.f32 %v717_v18, %v660_v17 }
  0xb4   : > { %v745_v20 = vpack.c.bf16 %v718_v19, %v718_v19  ;;  %v735_v22 = vrot.slane %v718_v19, 4 }
  0xb6   : > { %747 = vrot.lane.b32.xlu0 %v745_v20, %s6113_s26  ;;  %v738_v23 = vsel %vm737_vm1, %v718_v19, %v735_v22 }
  0xb7   : > { %v739_v28 = vmul.f32 %v738_v23, %v4970_v25  ;;  %v740_v29 = vmul.f32 %v738_v23, %v4975_v26  ;;  %v741_v33 = vmul.f32 %v738_v23, %v4984_v31  ;;  %v742_v34 = vmul.f32 %v738_v23, %v4989_v32 }
  0xb9   : > { %v719_v21 = vpop.f32.mrf.mxu0  ;;  %v743_v30 = vpack.c.bf16 %v740_v29, %v739_v28  ;;  %v744_v35 = vpack.c.bf16 %v742_v34, %v741_v33  ;;  %v730_v28 = vpop.f32.mrf.mxu1  ;;  %v661_v29 = vperm.slane %v4962_v16, 1 }
  0xc1   : > { %v732_v33 = vpop.f32.mrf.mxu1 }
 0x128   : > { %v748_v24 = vpop.permute.xlu0 %747 }
 0x129   : > { %v756_v27 = vsel %vm704_vm0, %v748_v24, 0 }
 0x12a   : > { %765 = vmatpush.bf16.xpose.msra.mxu2 %v756_v27 }
 0x131   : > { %3537 = vmatmul.msk.bf16.vlgmr.msra.gmra.mxu2 %vm704_vm0, %v743_v30  ;;  %v731_v30 = vadd.f32 %v730_v28, %v661_v29 }
 0x133   : > { %v835_v34 = vpack.c.bf16 %v731_v30, %v731_v30 }
 0x141   : > { %3538 = vmatmul.msk.bf16.gmra.mxu2 %vm704_vm0, %v744_v35  ;;  %v844_v35 = vsel %vm842_vm3, %v835_v34, 0  ;;  %v4759_v34 = vmov 64.0  }
 0x142   : > { %853 = vmatpush.bf16.msra.mxu3 %v844_v35 }
 0x1b4   : > { %v767_v45 = vpop.f32.mrf.mxu2 }
 0x1b5   : > { %v777_v46 = vmul.f32 0.35355338, %v767_v45 }
 0x1b7   : > { %v784_v50 = vadd.f32 %v5010_v42, %v777_v46 }
 0x1b9   : > { %v789_v51 = vsel %vm788_vm2, %v784_v50, -inf }
 0x1ba   : > { %790 = vmax.xlane.f32.xlu0 %v789_v51  ;;  %v4387_v51 = vld [vmem:[%s6141_s6 + $0x10] sm:$0xff] }
 0x1bc   : > { %v769_v53 = vpop.f32.mrf.mxu2 }
 0x1bd   : > { %v778_v54 = vmul.f32 0.35355338, %v769_v53  ;;  %v4385_v53 = vld [vmem:[%s6141_s6] sm:$0xff] }
 0x1bf   : > { %v785_v55 = vadd.f32 %v5010_v42, %v778_v54 }
 0x1c1   : > { %v792_v56 = vsel %vm788_vm2, %v785_v55, -inf }
 0x1c2   : > { %793 = vmax.xlane.f32.xlu1 %v792_v56 }
 0x1c4   : > { %v772_v57 = vpop.f32.mrf.mxu2 }
 0x1c5   : > { %v779_v58 = vmul.f32 0.35355338, %v772_v57  ;;  %v5062_v57 = vperm.slane %v4970_v25, 0 }
 0x1c7   : > { %v786_v59 = vadd.f32 %v5010_v42, %v779_v58  ;;  %v5065_v58 = vperm.slane %v4975_v26, 0 }
 0x1c9   : > { %v795_v60 = vsel %vm788_vm2, %v786_v59, -inf }
 0x1ca   : > { %796 = vmax.xlane.f32.xlu1 %v795_v60 }
 0x1cc   : > { %v774_v61 = vpop.f32.mrf.mxu2 }
 0x1cd   : > { %v780_v62 = vmul.f32 0.35355338, %v774_v61 }
 0x1cf   : > { %v787_v63 = vadd.f32 %v5010_v42, %v780_v62 }
 0x1d1   : > { %v798_v0 = vsel %vm788_vm2, %v787_v63, -inf }
 0x1d2   : > { %799 = vmax.xlane.f32.xlu2 %v798_v0 }
 0x22d   : > { %v791_v4 = vpop.xlane.xlu0 %790 }
 0x22e   : > { %v801_v5 = vsub.f32 %v784_v50, %v791_v4  ;;  %v4388_v50 = vld [vmem:[%s6141_s6 + $0x18] sm:$0xff] }
 0x22f   : > { %945 = vmatpush.bf16.msrb.mxu0 %v4388_v50 }
 0x230   : > { %v805_v6 = vmul.f32 1.442695, %v801_v5 }
 0x232   : > { %4602 = vpow2.f32 %v805_v6 }
 0x233   : > { %946 = vmatpush.bf16.msrb.mxu0 %v4387_v51  ;;  %v3576_v51 = vld [vmem:[%s6091_s10 + $0x20] sm:$0xf] }
 0x235   : > { %v794_v7 = vpop.xlane.xlu1 %793 }
 0x236   : > { %v802_v8 = vsub.f32 %v785_v55, %v794_v7  ;;  %v5058_v55 = vperm.slane %v4970_v25, 4 }
 0x237   : > { %947 = vmatpush.bf16.msrb.mxu0 %v4386_v52  ;;  %v4394_v52 = vld [vmem:[%s6091_s10 + $0x24] sm:$0xf0] }
 0x238   : > { %v4603_v9 = vpop.eup %4602  ;;  %v807_v10 = vmul.f32 1.442695, %v802_v8 }
 0x239   : > { %v813_v11 = vsel %vm788_vm2, %v4603_v9, 0.0 }
 0x23a   : > { %4604 = vpow2.f32 %v807_v10  ;;  %814 = vadd.xlane.f32.xlu2 %v813_v11 }
 0x23b   : > { %948 = vmatpush.bf16.msrb.mxu0 %v4385_v53  ;;  %v4393_v53 = vld [vmem:[%s6091_s10 + $0x24] sm:$0xf] }
 0x23d   : > { %v797_v12 = vpop.xlane.xlu1 %796 }
 0x23e   : > { %v803_v14 = vsub.f32 %v786_v59, %v797_v12  ;;  %v5068_v59 = vperm.slane %v4975_v26, 4  ;;  %v5082_v12 = vperm.slane %v4989_v32, 0 }
 0x240   : > { %v4605_v17 = vpop.eup %4604  ;;  %v809_v18 = vmul.f32 1.442695, %v803_v14  ;;  %v5085_v14 = vperm.slane %v4989_v32, 4 }
 0x241   : > { %v816_v19 = vsel %vm788_vm2, %v4605_v17, 0.0 }
 0x242   : > { %4606 = vpow2.f32 %v809_v18  ;;  %817 = vadd.xlane.f32.xlu1 %v816_v19 }
 0x245   : > { %v800_v15 = vpop.xlane.xlu2 %799 }
 0x246   : > { %v804_v20 = vsub.f32 %v787_v63, %v800_v15 }
 0x248   : > { %v4607_v21 = vpop.eup %4606  ;;  %v811_v22 = vmul.f32 1.442695, %v804_v20 }
 0x249   : > { %v819_v23 = vsel %vm788_vm2, %v4607_v21, 0.0 }
 0x24a   : > { %4608 = vpow2.f32 %v811_v22  ;;  %820 = vadd.xlane.f32.xlu2 %v819_v23 }
 0x250   : > { %v4609_v24 = vpop.eup %4608 }
 0x251   : > { %v822_v27 = vsel %vm788_vm2, %v4609_v24, 0.0 }
 0x252   : > { %823 = vadd.xlane.f32.xlu1 %v822_v27 }
 0x2ad   : > { %v815_v36 = vpop.xlane.xlu2 %814 }
 0x2ae   : > { %4610 = vrcp.f32 %v815_v36 }
 0x2b4   : > { %v4611_v38 = vpop.eup %4610 }
 0x2b5   : > { %v818_v37 = vpop.xlane.xlu1 %817  ;;  %v829_v40 = vmul.f32 %v4611_v38, %v4603_v9 }
 0x2b6   : > { %4612 = vrcp.f32 %v818_v37 }
 0x2bc   : > { %v4613_v39 = vpop.eup %4612 }
 0x2bd   : > { %v830_v41 = vmul.f32 %v4613_v39, %v4605_v17  ;;  %v821_v44 = vpop.xlane.xlu2 %820 }
 0x2be   : > { %4614 = vrcp.f32 %v821_v44 }
 0x2bf   : > { %v833_v43 = vpack.c.bf16 %v830_v41, %v829_v40 }
 0x2c1   : > { %3539 = vmatmul.msk.bf16.vlgmr.msra.gmra.mxu3 %vm788_vm2, %v833_v43 }
 0x2c4   : > { %v4615_v45 = vpop.eup %4614 }
 0x2c5   : > { %v824_v16 = vpop.xlane.xlu1 %823  ;;  %v831_v47 = vmul.f32 %v4615_v45, %v4607_v21  ;;  %v3584_v45 = vld [vmem:[%s6091_s10 + $0x30] sm:$0xf] }
 0x2c6   : > { %4616 = vrcp.f32 %v824_v16 }
 0x2c7   : > { %4618 = vrcp.f32 %v4759_v34 }
 0x2cc   : > { %v4617_v46 = vpop.eup %4616 }
 0x2cd   : > { %v832_v48 = vmul.f32 %v4617_v46, %v4609_v24  ;;  %v4578_v24 = vld [vmem:[%s6088_s7] ss:$0 sm:$0xff]  ;;  %v4619_v35 = vpop.eup %4618  ;;  %v4396_v46 = vld [vmem:[%s6091_s10 + $0x34] sm:$0xf0] }
 0x2ce   : > { %v962_v36 = vmul.f32 64.0, %v4619_v35  ;;  %vm966_vm5 = vweird.f32 %v4619_v35 }
 0x2cf   : > { %v834_v49 = vpack.c.bf16 %v832_v48, %v831_v47  ;;  %v4395_v47 = vld [vmem:[%s6091_s10 + $0x34] sm:$0xf]  ;;  %v3585_v48 = vor.u32 %v4396_v46, %v3584_v45 }
 0x2d0   : > { %v963_v37 = vsub.f32 1.0, %v962_v36  ;;  %v4399_v36 = vld [vmem:[%s6093_s12 + $0x10] sm:$0xff] }
 0x2d1   : > { %3540 = vmatmul.msk.bf16.gmra.mxu3 %vm788_vm2, %v834_v49  ;;  %v3586_v49 = vld [vmem:[%s6091_s10 + $0x38] sm:$0xf0]  ;;  %1057 = vmatpush.bf16.msrb.mxu1 %v3585_v48  ;;  %v4397_v48 = vld [vmem:[%s6093_s12] sm:$0xff] }
 0x2d2   : > { %v964_v38 = vmul.f32 %v4619_v35, %v963_v37  ;;  %v3589_v50 = vor.u32 %v4395_v47, %v3586_v49  ;;  %v4398_v47 = vld [vmem:[%s6093_s12 + $0x8] sm:$0xff] }
 0x2d3   : > { %v4406_v49 = vld [vmem:[%s6093_s12 + $0x48] sm:$0xff] }
 0x2d4   : > { %v965_v39 = vadd.f32 %v4619_v35, %v964_v38  ;;  %1070 = vmatpush.bf16.msrb.mxu3 %v3589_v50  ;;  %v4405_v50 = vld [vmem:[%s6093_s12 + $0x40] sm:$0xff] }
 0x2d6   : > { %v5095_v40 = vsel %vm966_vm5, %v4619_v35, %v965_v39  ;;  %v4579_v39 = vld [vmem:[%s6089_s8] ss:$0 sm:$0xff] }
 0x344   : > { %v855_v54 = vpop.f32.mrf.mxu3 }
 0x345   : > { %v869_v56 = vmul.f32 %v5058_v55, %v855_v54  ;;  %v866_v62 = vmul.f32 %v5062_v57, %v855_v54  ;;  %v3577_v54 = vor.u32 %v4394_v52, %v3576_v51  ;;  %v1004_v51 = vld [vmem:[%s6092_s11] sm:$0x3] }
 0x346   : > { %v1006_v52 = vperm.slane %v1004_v51, 0 }
 0x347   : > { %v871_v61 = vrot.slane %v869_v56, 4  ;;  %v3578_v56 = vld [vmem:[%s6091_s10 + $0x28] sm:$0xf0]  ;;  %1058 = vmatpush.bf16.msrb.mxu1 %v3577_v54 }
 0x349   : > { %v873_v1 = vadd.f32 %v871_v61, %v866_v62  ;;  %v3568_v61 = vld [vmem:[%s6091_s10 + $0x10] sm:$0xf]  ;;  %v4392_v62 = vld [vmem:[%s6091_s10 + $0x14] sm:$0xf0] }
 0x34c   : > { %v857_v60 = vpop.f32.mrf.mxu3 }
 0x34d   : > { %v875_v63 = vmul.f32 %v5065_v58, %v857_v60  ;;  %v878_v0 = vmul.f32 %v5068_v59, %v857_v60  ;;  %v3581_v60 = vor.u32 %v4393_v53, %v3578_v56 }
 0x34f   : > { %v876_v4 = vadd.f32 %v875_v63, %v873_v1  ;;  %v880_v5 = vrot.slane %v878_v0, 4  ;;  %1071 = vmatpush.bf16.msrb.mxu3 %v3581_v60  ;;  %v4391_v63 = vld [vmem:[%s6091_s10 + $0x14] sm:$0xf]  ;;  %v3569_v0 = vor.u32 %v4392_v62, %v3568_v61  ;;  %v3570_v1 = vld [vmem:[%s6091_s10 + $0x18] sm:$0xf0]  ;;  %v1007_v60 = vperm.slane %v1004_v51, 1 }
 0x351   : > { %v882_v9 = vadd.f32 %v880_v5, %v876_v4  ;;  %v3573_v4 = vor.u32 %v4391_v63, %v3570_v1  ;;  %v3560_v5 = vld [vmem:[%s6091_s10] sm:$0xf]  ;;  %1059 = vmatpush.bf16.msrb.mxu1 %v3569_v0 }
 0x353   : > { %1072 = vmatpush.bf16.msrb.mxu3 %v3573_v4 }
 0x354   : > { %v860_v6 = vpop.f32.mrf.mxu3 }
 0x355   : > { %v884_v7 = vmul.f32 %v5074_v2, %v860_v6  ;;  %v887_v8 = vmul.f32 %v5077_v3, %v860_v6  ;;  %v4390_v6 = vld [vmem:[%s6091_s10 + $0x4] sm:$0xf0] }
 0x357   : > { %v885_v10 = vadd.f32 %v884_v7, %v882_v9  ;;  %v889_v11 = vrot.slane %v887_v8, 4  ;;  %v4389_v7 = vld [vmem:[%s6091_s10 + $0x4] sm:$0xf]  ;;  %v3561_v8 = vor.u32 %v4390_v6, %v3560_v5  ;;  %v3562_v9 = vld [vmem:[%s6091_s10 + $0x8] sm:$0xf0] }
 0x358   : > { %v4581_v6 = vld [vmem:[%s6094_s13] ss:$0 sm:$0xff] }
 0x359   : > { %v891_v18 = vadd.f32 %v889_v11, %v885_v10  ;;  %v3565_v10 = vor.u32 %v4389_v7, %v3562_v9  ;;  %1060 = vmatpush.bf16.msrb.mxu1 %v3561_v8  ;;  %v4404_v11 = vld [vmem:[%s6093_s12 + $0x38] sm:$0xff] }
 0x35a   : > { %1215 = vmatpush.bf16.msrb.mxu2 %v4404_v11 }
 0x35b   : > { %1073 = vmatpush.bf16.msrb.mxu3 %v3565_v10 }
 0x35c   : > { %v862_v17 = vpop.f32.mrf.mxu3 }
 0x35d   : > { %v893_v19 = vmul.f32 %v5082_v12, %v862_v17  ;;  %v896_v15 = vmul.f32 %v5085_v14, %v862_v17  ;;  %v4412_v17 = vld [vmem:[%s6093_s12 + $0x78] sm:$0xff] }
 0x35e   : > { %1228 = vmatpush.bf16.msra.mxu0 %v4412_v17 }
 0x35f   : > { %v894_v20 = vadd.f32 %v893_v19, %v891_v18  ;;  %v898_v21 = vrot.slane %v896_v15, 4  ;;  %v4403_v15 = vld [vmem:[%s6093_s12 + $0x30] sm:$0xff] }
 0x360   : > { %1216 = vmatpush.bf16.msrb.mxu2 %v4403_v15 }
 0x361   : > { %v900_v22 = vadd.f32 %v898_v21, %v894_v20  ;;  %v4411_v20 = vld [vmem:[%s6093_s12 + $0x70] sm:$0xff] }
 0x362   : > { %1229 = vmatpush.bf16.msra.mxu0 %v4411_v20 }
 0x363   : > { %v901_v23 = vpack.c.bf16 %v900_v22, %v900_v22  ;;  %v4402_v22 = vld [vmem:[%s6093_s12 + $0x28] sm:$0xff] }
 0x364   : > { %1217 = vmatpush.bf16.msrb.mxu2 %v4402_v22 }
 0x365   : > { %3557 = vmatmul.msk.bf16.vlgmr.msrb.gmra.mxu0 %vm704_vm0, %v901_v23  ;;  %v4410_v23 = vld [vmem:[%s6093_s12 + $0x68] sm:$0xff] }
 0x366   : > { %1230 = vmatpush.bf16.msra.mxu0 %v4410_v23 }
 0x3e2   : > { %v950_v27 = vpop.f32.mrf.mxu0 }
 0x3e3   : > { %v951_v28 = vadd.f32 %v4578_v24, %v950_v27  ;;  %v4401_v24 = vld [vmem:[%s6093_s12 + $0x20] sm:$0xff] }
 0x3e4   : > { %v4409_v27 = vld [vmem:[%s6093_s12 + $0x60] sm:$0xff]  ;;  %1218 = vmatpush.bf16.msrb.mxu2 %v4401_v24  ;;  %v3691_v24 = vld [vmem:[%s6135_s21 + $0x70] sm:$0xf] }
 0x3e5   : > { %v954_v29 = vadd.f32 %v951_v28, %v4951_v13  ;;  %1231 = vmatpush.bf16.msra.mxu0 %v4409_v27  ;;  %v4420_v27 = vld [vmem:[%s6135_s21 + $0x74] sm:$0xf0] }
 0x3e7   : > { %v958_v30 = vsel %vm957_vm4, %v954_v29, 0.0 }
 0x3e8   : > { %959 = vadd.xlane.f32.xlu2 %v958_v30  ;;  %v4400_v30 = vld [vmem:[%s6093_s12 + $0x18] sm:$0xff] }
 0x3e9   : > { %1219 = vmatpush.bf16.msrb.mxu2 %v4400_v30  ;;  %v3693_v30 = vld [vmem:[%s6135_s21 + $0x78] sm:$0xf0] }
 0x3ea   : > { %v952_v33 = vpop.f32.mrf.mxu0 }
 0x3eb   : > { %v4408_v33 = vld [vmem:[%s6093_s12 + $0x58] sm:$0xff] }
 0x3ec   : > { %1232 = vmatpush.bf16.msra.mxu0 %v4408_v33 }
 0x3ed   : > { %1220 = vmatpush.bf16.msrb.mxu2 %v4399_v36  ;;  %v4417_v36 = vld [vmem:[%s6135_s21 + $0x64] sm:$0xf] }
 0x3f1   : > { %1221 = vmatpush.bf16.msrb.mxu2 %v4398_v47  ;;  %v3667_v47 = vld [vmem:[%s6135_s21 + $0x40] sm:$0xf] }
 0x3f5   : > { %1222 = vmatpush.bf16.msrb.mxu2 %v4397_v48  ;;  %v4413_v48 = vld [vmem:[%s6135_s21 + $0x44] sm:$0xf] }
 0x45b   : > { %v960_v41 = vpop.xlane.xlu2 %959 }
 0x45c   : > { %v968_v43 = vmul.f32 %v5095_v40, %v960_v41 }
 0x45e   : > { %v5098_v44 = vsub.f32 %v954_v29, %v968_v43 }
 0x460   : > { %v970_v13 = vmul.f32 %v5098_v44, %v5098_v44 }
 0x462   : > { %v971_v16 = vsel %vm957_vm4, %v970_v13, 0.0  ;;  %v4580_v13 = vld [vmem:[%s6090_s9] ss:$0 sm:$0xff] }
 0x463   : > { %972 = vadd.xlane.f32.xlu1 %v971_v16 }
 0x4d6   : > { %v973_v18 = vpop.xlane.xlu1 %972 }
 0x4d7   : > { %v974_v19 = vmul.f32 %v973_v18, %v5095_v40 }
 0x4d9   : > { %v975_v21 = vadd.f32 1e-05, %v974_v19 }
 0x4db   : > { %4620 = vrsqrt.f32 %v975_v21  ;;  %vm982_vm7 = vweird.f32 %v975_v21 }
 0x4e1   : > { %v4621_v28 = vpop.eup %4620 }
 0x4e2   : > { %v977_v29 = vmul.f32 %v4621_v28, %v975_v21  ;;  %vm983_vm6 = vweird.f32 %v4621_v28 }
 0x4e3   : > { %vm984_vm8 = vmor %vm982_vm7, %vm983_vm6 }
 0x4e4   : > { %v978_v34 = vmul.f32 %v4621_v28, %v977_v29  ;;  %v3692_v29 = vor.u32 %v4420_v27, %v3691_v24 }
 0x4e6   : > { %v979_v35 = vmul.f32 0.5, %v978_v34  ;;  %1338 = vmatpush.bf16.msra.mxu2 %v3692_v29  ;;  %v3683_v34 = vld [vmem:[%s6135_s21 + $0x60] sm:$0xf] }
 0x4e8   : > { %v980_v37 = vsub.f32 1.5, %v979_v35  ;;  %v4418_v35 = vld [vmem:[%s6135_s21 + $0x64] sm:$0xf0] }
 0x4ea   : > { %v981_v38 = vmul.f32 %v4621_v28, %v980_v37  ;;  %v3684_v37 = vor.u32 %v4418_v35, %v3683_v34 }
 0x4ec   : > { %v985_v41 = vsel %vm984_vm8, %v4621_v28, %v981_v38  ;;  %v4419_v28 = vld [vmem:[%s6135_s21 + $0x74] sm:$0xf]  ;;  %v3685_v38 = vld [vmem:[%s6135_s21 + $0x68] sm:$0xf0]  ;;  %1339 = vmatpush.bf16.msra.mxu2 %v3684_v37 }
 0x4ed   : > { %v986_v43 = vmul.f32 %v985_v41, %v5098_v44  ;;  %v4407_v44 = vld [vmem:[%s6093_s12 + $0x50] sm:$0xff]  ;;  %v3696_v33 = vor.u32 %v4419_v28, %v3693_v30 }
 0x4ee   : > { %1233 = vmatpush.bf16.msra.mxu0 %v4407_v44  ;;  %v3675_v41 = vld [vmem:[%s6135_s21 + $0x50] sm:$0xf]  ;;  %v4414_v44 = vld [vmem:[%s6135_s21 + $0x44] sm:$0xf0] }
 0x4ef   : > { %v990_v16 = vmul.f32 %v4579_v39, %v986_v43  ;;  %1351 = vmatpush.bf16.msra.mxu3 %v3696_v33  ;;  %v3688_v39 = vor.u32 %v4417_v36, %v3685_v38  ;;  %v4416_v43 = vld [vmem:[%s6135_s21 + $0x54] sm:$0xf0] }
 0x4f1   : > { %v994_v45 = vadd.f32 %v4580_v13, %v990_v16  ;;  %v4415_v13 = vld [vmem:[%s6135_s21 + $0x54] sm:$0xf]  ;;  %v3676_v16 = vor.u32 %v4416_v43, %v3675_v41 }
 0x4f2   : > { %1234 = vmatpush.bf16.msra.mxu0 %v4406_v49  ;;  %v3668_v49 = vor.u32 %v4414_v44, %v3667_v47 }
 0x4f3   : > { %v995_v46 = vpack.c.bf16 %v994_v45, %v994_v45  ;;  %1352 = vmatpush.bf16.msra.mxu3 %v3688_v39  ;;  %1340 = vmatpush.bf16.msra.mxu2 %v3676_v16 }
 0x4f5   : > { %3590 = vmatmul.msk.bf16.vlgmr.msrb.gmra.mxu1 %vm704_vm0, %v995_v46  ;;  %3591 = vmatmul.msk.bf16.vlgmr.msrb.gmra.mxu3 %vm704_vm0, %v995_v46 }
 0x4f6   : > { %1235 = vmatpush.bf16.msra.mxu0 %v4405_v50  ;;  %v3669_v50 = vld [vmem:[%s6135_s21 + $0x48] sm:$0xf0] }
 0x4f7   : > { %v3672_v51 = vor.u32 %v4413_v48, %v3669_v50  ;;  %1341 = vmatpush.bf16.msra.mxu2 %v3668_v49 }
 0x572   : > { %v1062_v53 = vpop.f32.mrf.mxu1 }
 0x573   : > { %v1063_v54 = vadd.f32 %v1062_v53, %v1006_v52 }
 0x575   : > { %v1079_v56 = vmax.f32 %v1063_v54, 0.0 }
 0x577   : > { %v1081_v61 = vpack.c.bf16 %v1079_v56, %v1079_v56 }
 0x578   : > { %v1075_v62 = vpop.f32.mrf.mxu3 }
 0x579   : > { %v1076_v63 = vadd.f32 %v1075_v62, %v1007_v60  ;;  %1223 = vmatmul.bf16.vlgmr.msrb.gmra.mxu2 %v1081_v61 }
 0x57a   : > { %v1064_v0 = vpop.f32.mrf.mxu1 }
 0x57b   : > { %v1080_v1 = vmax.f32 %v1076_v63, 0.0 }
 0x57d   : > { %v1082_v4 = vpack.c.bf16 %v1080_v1, %v1080_v1  ;;  %v4582_v1 = vld [vmem:[%s6095_s14] ss:$0 sm:$0xff] }
 0x57f   : > { %1236 = vmatmul.bf16.vlgmr.msra.gmra.mxu0 %v1082_v4 }
 0x580   : > { %v1077_v5 = vpop.f32.mrf.mxu3 }
 0x581   : > { %v4583_v5 = vld [vmem:[%s6096_s15] ss:$0 sm:$0xff] }
 0x5fc   : > { %v1224_v7 = vpop.f32.mrf.mxu2  ;;  %v1237_v8 = vpop.f32.mrf.mxu0 }
 0x5fd   : > { %v1225_v9 = vadd.f32 %v4581_v6, %v1224_v7 }
 0x5ff   : > { %v1238_v10 = vadd.f32 %v1237_v8, %v1225_v9 }
 0x601   : > { %v1241_v11 = vadd.f32 %v1238_v10, %v994_v45  ;;  %v3677_v45 = vld [vmem:[%s6135_s21 + $0x58] sm:$0xf0]  ;;  %v3664_v10 = vld [vmem:[%s6138_s5 + $0x2] sm:$0x3] }
 0x602   : > { %v3680_v46 = vor.u32 %v4415_v13, %v3677_v45 }
 0x603   : > { %v1244_v17 = vsel %vm957_vm4, %v1241_v11, 0.0 }
 0x604   : > { %v1226_v18 = vpop.f32.mrf.mxu2  ;;  %v1239_v19 = vpop.f32.mrf.mxu0  ;;  %1245 = vadd.xlane.f32.xlu2 %v1244_v17  ;;  %1353 = vmatpush.bf16.msra.mxu3 %v3680_v46  ;;  %v1288_v17 = vperm.slane %v3664_v10, 1 }
 0x608   : > { %1354 = vmatpush.bf16.msra.mxu3 %v3672_v51 }
 0x677   : > { %v1246_v15 = vpop.xlane.xlu2 %1245 }
 0x678   : > { %v1247_v20 = vmul.f32 %v1246_v15, %v5095_v40 }
 0x67a   : > { %v1248_v21 = vsub.f32 %v1241_v11, %v1247_v20  ;;  %v1287_v11 = vperm.slane %v3664_v10, 0 }
 0x67c   : > { %v1249_v22 = vmul.f32 %v1248_v21, %v1248_v21 }
 0x67e   : > { %v1250_v23 = vsel %vm957_vm4, %v1249_v22, 0.0 }
 0x67f   : > { %1251 = vadd.xlane.f32.xlu1 %v1250_v23 }
 0x6f2   : > { %v1252_v52 = vpop.xlane.xlu1 %1251 }
 0x6f3   : > { %v1253_v53 = vmul.f32 %v1252_v52, %v5095_v40 }
 0x6f5   : > { %v1254_v54 = vadd.f32 1e-05, %v1253_v53 }
 0x6f7   : > { %4622 = vrsqrt.f32 %v1254_v54  ;;  %vm1261_vm10 = vweird.f32 %v1254_v54 }
 0x6fd   : > { %v4623_v56 = vpop.eup %4622 }
 0x6fe   : > { %v1256_v60 = vmul.f32 %v4623_v56, %v1254_v54  ;;  %vm1262_vm9 = vweird.f32 %v4623_v56 }
 0x6ff   : > { %vm1263_vm11 = vmor %vm1261_vm10, %vm1262_vm9 }
 0x700   : > { %v1257_v61 = vmul.f32 %v4623_v56, %v1256_v60 }
 0x702   : > { %v1258_v62 = vmul.f32 0.5, %v1257_v61 }
 0x704   : > { %v1259_v63 = vsub.f32 1.5, %v1258_v62 }
 0x706   : > { %v1260_v0 = vmul.f32 %v4623_v56, %v1259_v63 }
 0x708   : > { %v1264_v4 = vsel %vm1263_vm11, %v4623_v56, %v1260_v0 }
 0x709   : > { %v1265_v6 = vmul.f32 %v1264_v4, %v1248_v21 }
 0x70b   : > { %v1269_v7 = vmul.f32 %v4582_v1, %v1265_v6 }
 0x70d   : > { %v5273_v8 = vadd.f32 %v4583_v5, %v1269_v7 }
 0x70f   : > { %v1274_v9 = vpack.c.bf16 %v5273_v8, %v5273_v8 }
 0x711   : > { %3697 = vmatmul.msk.bf16.vlgmr.msra.gmra.mxu2 %vm704_vm0, %v1274_v9  ;;  %3698 = vmatmul.msk.bf16.vlgmr.msra.gmra.mxu3 %vm704_vm0, %v1274_v9 }
 0x794   : > { %v1343_v18 = vpop.f32.mrf.mxu2  ;;  %v1356_v19 = vpop.f32.mrf.mxu3 }
 0x795   : > { %v1344_v15 = vadd.f32 %v1343_v18, %v1287_v11  ;;  %v1357_v20 = vadd.f32 %v1356_v19, %v1288_v17 }
 0x797   : > { %v1456_v21 = vpack.c.bf16 %v1357_v20, %v1357_v20  ;;  %v1370_v22 = vpack.c.bf16 %v1344_v15, %v1344_v15  ;;  %v1361_v28 = vrot.slane %v1344_v15, 4 }
 0x799   : > { %v1464_v23 = vsel %vm842_vm3, %v1456_v21, 0  ;;  %1372 = vrot.lane.b32.xlu2 %v1370_v22, %s6142_s25  ;;  %v1363_v29 = vsel %vm737_vm1, %v1344_v15, %v1361_v28 }
 0x79a   : > { %1473 = vmatpush.bf16.msra.mxu1 %v1464_v23  ;;  %v1364_v34 = vmul.f32 %v1363_v29, %v4970_v25  ;;  %v1365_v35 = vmul.f32 %v1363_v29, %v4975_v26  ;;  %v1366_v37 = vmul.f32 %v1363_v29, %v4984_v31  ;;  %v1367_v38 = vmul.f32 %v1363_v29, %v4989_v32 }
 0x79c   : > { %v1345_v24 = vpop.f32.mrf.mxu2  ;;  %v1358_v27 = vpop.f32.mrf.mxu3  ;;  %v1368_v36 = vpack.c.bf16 %v1365_v35, %v1364_v34  ;;  %v1369_v39 = vpack.c.bf16 %v1367_v38, %v1366_v37  ;;  %v4424_v37 = vld [vmem:[%s6141_s6 + $0x38] sm:$0xff]  ;;  %v4423_v38 = vld [vmem:[%s6141_s6 + $0x30] sm:$0xff] }
 0x79d   : > { %1559 = vmatpush.bf16.msrb.mxu3 %v4424_v37  ;;  %v4427_v37 = vld [vmem:[%s6091_s10 + $0x54] sm:$0xf] }
 0x7a1   : > { %1560 = vmatpush.bf16.msrb.mxu3 %v4423_v38 }
 0x7f3   : > { %v1373_v30 = vpop.permute.xlu2 %1372 }
 0x7f4   : > { %v1381_v33 = vsel %vm704_vm0, %v1373_v30, 0 }
 0x7f5   : > { %1390 = vmatpush.bf16.xpose.msrb.mxu2 %v1381_v33 }
 0x7fc   : > { %3699 = vmatmul.msk.bf16.vlgmr.msrb.gmra.mxu2 %vm704_vm0, %v1368_v36 }
 0x80c   : > { %3700 = vmatmul.msk.bf16.gmra.mxu2 %vm704_vm0, %v1369_v39  ;;  %v4422_v39 = vld [vmem:[%s6141_s6 + $0x28] sm:$0xff] }
 0x80d   : > { %1561 = vmatpush.bf16.msrb.mxu3 %v4422_v39  ;;  %v3752_v39 = vld [vmem:[%s6091_s10 + $0x58] sm:$0xf0] }
 0x87f   : > { %v1392_v41 = vpop.f32.mrf.mxu2 }
 0x880   : > { %v1402_v43 = vmul.f32 0.35355338, %v1392_v41  ;;  %v4421_v41 = vld [vmem:[%s6141_s6 + $0x20] sm:$0xff] }
 0x881   : > { %1562 = vmatpush.bf16.msrb.mxu3 %v4421_v41  ;;  %v3755_v41 = vor.u32 %v4427_v37, %v3752_v39 }
 0x882   : > { %v1406_v13 = vadd.f32 %v1402_v43, %v5010_v42 }
 0x884   : > { %v1410_v16 = vsel %vm788_vm2, %v1406_v13, -inf }
 0x885   : > { %1411 = vmax.xlane.f32.xlu1 %v1410_v16 }
 0x887   : > { %v1394_v25 = vpop.f32.mrf.mxu2 }
 0x888   : > { %v1403_v45 = vmul.f32 0.35355338, %v1394_v25 }
 0x88a   : > { %v1407_v26 = vadd.f32 %v1403_v45, %v5010_v42 }
 0x88c   : > { %v1413_v46 = vsel %vm788_vm2, %v1407_v26, -inf }
 0x88d   : > { %1414 = vmax.xlane.f32.xlu0 %v1413_v46 }
 0x88f   : > { %v1397_v31 = vpop.f32.mrf.mxu2 }
 0x890   : > { %v1404_v47 = vmul.f32 0.35355338, %v1397_v31 }
 0x892   : > { %v1408_v32 = vadd.f32 %v1404_v47, %v5010_v42 }
 0x894   : > { %v1416_v44 = vsel %vm788_vm2, %v1408_v32, -inf }
 0x895   : > { %1417 = vmax.xlane.f32.xlu1 %v1416_v44 }
 0x897   : > { %v1399_v48 = vpop.f32.mrf.mxu2 }
 0x898   : > { %v1405_v49 = vmul.f32 0.35355338, %v1399_v48 }
 0x89a   : > { %v1409_v50 = vadd.f32 %v1405_v49, %v5010_v42 }
 0x89c   : > { %v1419_v51 = vsel %vm788_vm2, %v1409_v50, -inf }
 0x89d   : > { %1420 = vmax.xlane.f32.xlu0 %v1419_v51 }
 0x8f8   : > { %v1412_v52 = vpop.xlane.xlu1 %1411 }
 0x8f9   : > { %v1422_v53 = vsub.f32 %v1406_v13, %v1412_v52 }
 0x8fb   : > { %v1426_v54 = vmul.f32 1.442695, %v1422_v53 }
 0x8fd   : > { %4624 = vpow2.f32 %v1426_v54 }
 0x900   : > { %v1415_v56 = vpop.xlane.xlu0 %1414 }
 0x901   : > { %v1423_v60 = vsub.f32 %v1407_v26, %v1415_v56 }
 0x903   : > { %v4625_v61 = vpop.eup %4624  ;;  %v1428_v62 = vmul.f32 1.442695, %v1423_v60 }
 0x904   : > { %v1434_v63 = vsel %vm788_vm2, %v4625_v61, 0.0 }
 0x905   : > { %4626 = vpow2.f32 %v1428_v62  ;;  %1435 = vadd.xlane.f32.xlu1 %v1434_v63 }
 0x908   : > { %v1418_v0 = vpop.xlane.xlu1 %1417 }
 0x909   : > { %v1424_v1 = vsub.f32 %v1408_v32, %v1418_v0 }
 0x90b   : > { %v4627_v4 = vpop.eup %4626  ;;  %v1430_v5 = vmul.f32 1.442695, %v1424_v1  ;;  %v4584_v1 = vld [vmem:[%s6088_s7 + $0x1] ss:$0 sm:$0xff] }
 0x90c   : > { %v1437_v6 = vsel %vm788_vm2, %v4627_v4, 0.0 }
 0x90d   : > { %4628 = vpow2.f32 %v1430_v5  ;;  %1438 = vadd.xlane.f32.xlu2 %v1437_v6 }
 0x910   : > { %v1421_v7 = vpop.xlane.xlu0 %1420 }
 0x911   : > { %v1425_v9 = vsub.f32 %v1409_v50, %v1421_v7 }
 0x913   : > { %v4629_v10 = vpop.eup %4628  ;;  %v1432_v11 = vmul.f32 1.442695, %v1425_v9 }
 0x914   : > { %v1440_v17 = vsel %vm788_vm2, %v4629_v10, 0.0 }
 0x915   : > { %4630 = vpow2.f32 %v1432_v11  ;;  %1441 = vadd.xlane.f32.xlu0 %v1440_v17 }
 0x91b   : > { %v4631_v18 = vpop.eup %4630 }
 0x91c   : > { %v1443_v19 = vsel %vm788_vm2, %v4631_v18, 0.0 }
 0x91d   : > { %1444 = vadd.xlane.f32.xlu1 %v1443_v19 }
 0x978   : > { %v1436_v15 = vpop.xlane.xlu1 %1435 }
 0x979   : > { %4632 = vrcp.f32 %v1436_v15  ;;  %v3766_v15 = vld [vmem:[%s6091_s10 + $0x70] sm:$0xf] }
 0x97f   : > { %v4633_v21 = vpop.eup %4632 }
 0x980   : > { %v1439_v20 = vpop.xlane.xlu2 %1438  ;;  %v1450_v23 = vmul.f32 %v4633_v21, %v4625_v61  ;;  %v4431_v21 = vld [vmem:[%s6091_s10 + $0x74] sm:$0xf] }
 0x981   : > { %4634 = vrcp.f32 %v1439_v20  ;;  %v4432_v20 = vld [vmem:[%s6091_s10 + $0x74] sm:$0xf0] }
 0x987   : > { %v4635_v22 = vpop.eup %4634 }
 0x988   : > { %v1451_v24 = vmul.f32 %v4635_v22, %v4627_v4  ;;  %v1442_v28 = vpop.xlane.xlu0 %1441  ;;  %v3767_v22 = vor.u32 %v4432_v20, %v3766_v15  ;;  %v4442_v15 = vld [vmem:[%s6093_s12 + $0xc8] sm:$0xff]  ;;  %v4441_v20 = vld [vmem:[%s6093_s12 + $0xc0] sm:$0xff] }
 0x989   : > { %4636 = vrcp.f32 %v1442_v28  ;;  %v4430_v28 = vld [vmem:[%s6091_s10 + $0x64] sm:$0xf0] }
 0x98a   : > { %v1454_v27 = vpack.c.bf16 %v1451_v24, %v1450_v23  ;;  %v3768_v23 = vld [vmem:[%s6091_s10 + $0x78] sm:$0xf0]  ;;  %1667 = vmatpush.bf16.msrb.mxu0 %v3767_v22  ;;  %v4687_v22 = vld [vmem:[%s4942_s19] sm:$0xf]  ;;  %s6143_s19 = sld [smem:[#allocation20_spill]] }
 0x98b   : > { %v3771_v24 = vor.u32 %v4431_v21, %v3768_v23 }
 0x98c   : > { %3701 = vmatmul.msk.bf16.vlgmr.msra.gmra.mxu1 %vm788_vm2, %v1454_v27  ;;  %v3758_v27 = vld [vmem:[%s6091_s10 + $0x60] sm:$0xf] }
 0x98d   : > { %1680 = vmatpush.bf16.msra.mxu3 %v3771_v24 }
 0x98f   : > { %v4637_v30 = vpop.eup %4636 }
 0x990   : > { %v1445_v29 = vpop.xlane.xlu1 %1444  ;;  %v1452_v34 = vmul.f32 %v4637_v30, %v4629_v10  ;;  %v4686_v10 = vld [vmem:[%s6137_s4] sm:$0xf]  ;;  %v3759_v30 = vor.u32 %v4430_v28, %v3758_v27  ;;  %s629_s4 = sand.u32 1, %s4748_s22   ;;  %s3430_s29 = scalar_lea.hbm %s6143_s19, %s4886_s2 }
 0x991   : > { %4638 = vrcp.f32 %v1445_v29  ;;  %v4429_v29 = vld [vmem:[%s6091_s10 + $0x64] sm:$0xf]  ;;  %v3739_v27 = vld [vmem:[%s6092_s11 + $0x2] sm:$0x3]  ;;  %s630_s28 = scalar_lea.vmem [#allocation2], %s629_s4  ;;  %s3434_s3 = sshll.u32 %s3430_s29, 4  ;;  %s3435_s3 = int_to_ptr.hbm [resolvable:$true] %s3434_s3 }
 0x992   : > { %1668 = vmatpush.bf16.msrb.mxu0 %v3759_v30  ;;  %v1616_v28 = vperm.slane %v3739_v27, 0  ;;  %s3432_s23 = sshll.u32 %s630_s28, 4  ;;  %s4714_s30 = scalar_lea.hbm %s6143_s19, 2  ;;  %s3433_s23 = int_to_ptr.vmem [resolvable:$true] %s3432_s23 }
 0x997   : > { %v4639_v33 = vpop.eup %4638 }
 0x998   : > { %v1453_v35 = vmul.f32 %v4639_v33, %v4631_v18  ;;  %v3760_v33 = vld [vmem:[%s6091_s10 + $0x68] sm:$0xf0] }
 0x99a   : > { %v1455_v36 = vpack.c.bf16 %v1453_v35, %v1452_v34  ;;  %v3763_v34 = vor.u32 %v4429_v29, %v3760_v33  ;;  %v3750_v35 = vld [vmem:[%s6091_s10 + $0x50] sm:$0xf] }
 0x99c   : > { %3702 = vmatmul.msk.bf16.gmra.mxu1 %vm788_vm2, %v1455_v36  ;;  %1681 = vmatpush.bf16.msra.mxu3 %v3763_v34  ;;  %v4428_v36 = vld [vmem:[%s6091_s10 + $0x54] sm:$0xf0]  ;;  %v1617_v34 = vperm.slane %v3739_v27, 1 }
 0x99d   : > { %v3751_v38 = vor.u32 %v4428_v36, %v3750_v35 }
 0x99f   : > { %1669 = vmatpush.bf16.msrb.mxu0 %v3751_v38 }
 0x9a0   : > { %1682 = vmatpush.bf16.msra.mxu3 %v3755_v41 }
 0xa09   : > { %v1475_v43 = vpop.f32.mrf.mxu1 }
 0xa0a   : > { %v1487_v13 = vmul.f32 %v1475_v43, %v5058_v55  ;;  %v1485_v45 = vmul.f32 %v1475_v43, %v5062_v57  ;;  %v3742_v43 = vld [vmem:[%s6091_s10 + $0x40] sm:$0xf] }
 0xa0c   : > { %v1489_v25 = vrot.slane %v1487_v13, 4  ;;  %v4426_v13 = vld [vmem:[%s6091_s10 + $0x44] sm:$0xf0] }
 0xa0e   : > { %v1491_v31 = vadd.f32 %v1489_v25, %v1485_v45  ;;  %v3743_v25 = vor.u32 %v4426_v13, %v3742_v43  ;;  %v3744_v45 = vld [vmem:[%s6091_s10 + $0x48] sm:$0xf0]  ;;  %v3910_v13 = vld [vmem:[%s6135_s21 + $0xb0] sm:$0xf] }
 0xa10   : > { %1670 = vmatpush.bf16.msrb.mxu0 %v3743_v25  ;;  %v4455_v25 = vld [vmem:[%s6135_s21 + $0xb4] sm:$0xf] }
 0xa11   : > { %v1477_v16 = vpop.f32.mrf.mxu1 }
 0xa12   : > { %v1492_v26 = vmul.f32 %v1477_v16, %v5065_v58  ;;  %v1494_v46 = vmul.f32 %v1477_v16, %v5068_v59  ;;  %v4425_v16 = vld [vmem:[%s6091_s10 + $0x44] sm:$0xf] }
 0xa14   : > { %v1493_v47 = vadd.f32 %v1492_v26, %v1491_v31  ;;  %v1496_v32 = vrot.slane %v1494_v46, 4  ;;  %v3747_v26 = vor.u32 %v4425_v16, %v3744_v45  ;;  %v4440_v46 = vld [vmem:[%s6093_s12 + $0xb8] sm:$0xff] }
 0xa15   : > { %v4448_v31 = vld [vmem:[%s6093_s12 + $0xf8] sm:$0xff]  ;;  %1827 = vmatpush.bf16.msra.mxu2 %v4440_v46 }
 0xa16   : > { %v1498_v50 = vadd.f32 %v1496_v32, %v1493_v47  ;;  %1683 = vmatpush.bf16.msra.mxu3 %v3747_v26  ;;  %1840 = vmatpush.bf16.msrb.mxu1 %v4448_v31  ;;  %v4456_v16 = vld [vmem:[%s6135_s21 + $0xb4] sm:$0xf0]  ;;  %v3912_v26 = vld [vmem:[%s6135_s21 + $0xb8] sm:$0xf0]  ;;  %v3902_v31 = vld [vmem:[%s6135_s21 + $0xa0] sm:$0xf] }
 0xa17   : > { %v3911_v45 = vor.u32 %v4456_v16, %v3910_v13  ;;  %v3915_v46 = vor.u32 %v4455_v25, %v3912_v26 }
 0xa19   : > { %v1480_v44 = vpop.f32.mrf.mxu1 }
 0xa1a   : > { %v1499_v48 = vmul.f32 %v1480_v44, %v5074_v2  ;;  %v1501_v49 = vmul.f32 %v1480_v44, %v5077_v3  ;;  %v4439_v44 = vld [vmem:[%s6093_s12 + $0xb0] sm:$0xff] }
 0xa1b   : > { %1828 = vmatpush.bf16.msra.mxu2 %v4439_v44 }
 0xa1c   : > { %v1500_v51 = vadd.f32 %v1499_v48, %v1498_v50  ;;  %v1503_v52 = vrot.slane %v1501_v49, 4  ;;  %v4447_v48 = vld [vmem:[%s6093_s12 + $0xf0] sm:$0xff]  ;;  %v4438_v50 = vld [vmem:[%s6093_s12 + $0xa8] sm:$0xff] }
 0xa1d   : > { %1841 = vmatpush.bf16.msrb.mxu1 %v4447_v48  ;;  %v3904_v48 = vld [vmem:[%s6135_s21 + $0xa8] sm:$0xf0] }
 0xa1e   : > { %v1505_v54 = vadd.f32 %v1503_v52, %v1500_v51  ;;  %v4446_v51 = vld [vmem:[%s6093_s12 + $0xe8] sm:$0xff]  ;;  %v4437_v52 = vld [vmem:[%s6093_s12 + $0xa0] sm:$0xff] }
 0xa1f   : > { %1829 = vmatpush.bf16.msra.mxu2 %v4438_v50  ;;  %v3894_v50 = vld [vmem:[%s6135_s21 + $0x90] sm:$0xf] }
 0xa21   : > { %v1482_v53 = vpop.f32.mrf.mxu1  ;;  %1842 = vmatpush.bf16.msrb.mxu1 %v4446_v51  ;;  %v4452_v51 = vld [vmem:[%s6135_s21 + $0x94] sm:$0xf0] }
 0xa22   : > { %v1506_v56 = vmul.f32 %v1482_v53, %v5082_v12  ;;  %v1508_v60 = vmul.f32 %v1482_v53, %v5085_v14  ;;  %v4445_v53 = vld [vmem:[%s6093_s12 + $0xe0] sm:$0xff] }
 0xa23   : > { %1830 = vmatpush.bf16.msra.mxu2 %v4437_v52  ;;  %v4451_v52 = vld [vmem:[%s6135_s21 + $0x94] sm:$0xf] }
 0xa24   : > { %v1507_v61 = vadd.f32 %v1506_v56, %v1505_v54  ;;  %v1510_v62 = vrot.slane %v1508_v60, 4  ;;  %v4436_v60 = vld [vmem:[%s6093_s12 + $0x98] sm:$0xff] }
 0xa25   : > { %1843 = vmatpush.bf16.msrb.mxu1 %v4445_v53  ;;  %v3895_v53 = vor.u32 %v4452_v51, %v3894_v50 }
 0xa26   : > { %v1512_v63 = vadd.f32 %v1510_v62, %v1507_v61  ;;  %v4444_v61 = vld [vmem:[%s6093_s12 + $0xd8] sm:$0xff] }
 0xa27   : > { %1831 = vmatpush.bf16.msra.mxu2 %v4436_v60  ;;  %v4450_v60 = vld [vmem:[%s6135_s21 + $0x84] sm:$0xf0] }
 0xa28   : > { %v1513_v0 = vpack.c.bf16 %v1512_v63, %v1512_v63 }
 0xa29   : > { %1844 = vmatpush.bf16.msrb.mxu1 %v4444_v61 }
 0xa2a   : > { %3728 = vmatmul.msk.bf16.vlgmr.msrb.gmra.mxu3 %vm704_vm0, %v1513_v0  ;;  %v4435_v0 = vld [vmem:[%s6093_s12 + $0x90] sm:$0xff] }
 0xa2b   : > { %1832 = vmatpush.bf16.msra.mxu2 %v4435_v0  ;;  %1993 = vmatpush.bf16.msrb.mxu3 %v3911_v45 }
 0xaad   : > { %v1564_v4 = vpop.f32.mrf.mxu3 }
 0xaae   : > { %v1565_v5 = vadd.f32 %v4584_v1, %v1564_v4 }
 0xab0   : > { %v1568_v6 = vadd.f32 %v1565_v5, %v5273_v8  ;;  %v4585_v5 = vld [vmem:[%s6089_s8 + $0x1] ss:$0 sm:$0xff] }
 0xab2   : > { %v1573_v7 = vsel %vm957_vm4, %v1568_v6, 0.0 }
 0xab3   : > { %1574 = vadd.xlane.f32.xlu0 %v1573_v7  ;;  %v4586_v7 = vld [vmem:[%s6090_s9 + $0x1] ss:$0 sm:$0xff] }
 0xab5   : > { %v1566_v9 = vpop.f32.mrf.mxu3 }
 0xac7   : > { %1922 = vrot.lane.b32.xlu0 %v4686_v10, %s6142_s25 }
 0xb26   : > { %v1575_v11 = vpop.xlane.xlu0 %1574 }
 0xb27   : > { %v1576_v17 = vmul.f32 %v1575_v11, %v5095_v40 }
 0xb29   : > { %v5337_v18 = vsub.f32 %v1568_v6, %v1576_v17 }
 0xb2b   : > { %v1578_v19 = vmul.f32 %v5337_v18, %v5337_v18 }
 0xb2d   : > { %v1579_v8 = vsel %vm957_vm4, %v1578_v19, 0.0  ;;  %v4434_v19 = vld [vmem:[%s6093_s12 + $0x88] sm:$0xff] }
 0xb2e   : > { %1580 = vadd.xlane.f32.xlu1 %v1579_v8  ;;  %1833 = vmatpush.bf16.msra.mxu2 %v4434_v19  ;;  %v4433_v8 = vld [vmem:[%s6093_s12 + $0x80] sm:$0xff] }
 0xb32   : > { %1834 = vmatpush.bf16.msra.mxu2 %v4433_v8 }
 0xb36   : > { %2006 = vmatpush.bf16.msrb.mxu2 %v3915_v46 }
 0xb39   : > { %v1923_v21 = vpop.permute.xlu0 %1922 }
 0xb3a   : > { %v5453_v23 = vadd.f32 %v4687_v22, %v1923_v21 }
 0xb3c   : > { %v1926_v24 = vpack.c.bf16 %v5453_v23, %v5453_v23 }
 0xb47   : > { %1944 = vrot.lane.b32.xlu1 %v1926_v24, %s6142_s25 }
 0xba1   : > { %v1581_v47 = vpop.xlane.xlu1 %1580 }
 0xba2   : > { %v1582_v32 = vmul.f32 %v1581_v47, %v5095_v40  ;;  %v4454_v47 = vld [vmem:[%s6135_s21 + $0xa4] sm:$0xf0] }
 0xba3   : > { %v3903_v44 = vor.u32 %v4454_v47, %v3902_v31  ;;  %v4588_v47 = vld [vmem:[%s6095_s14 + $0x1] ss:$0 sm:$0xff] }
 0xba4   : > { %v1583_v49 = vadd.f32 1e-05, %v1582_v32  ;;  %v4453_v32 = vld [vmem:[%s6135_s21 + $0xa4] sm:$0xf] }
 0xba5   : > { %1994 = vmatpush.bf16.msrb.mxu3 %v3903_v44 }
 0xba6   : > { %4640 = vrsqrt.f32 %v1583_v49  ;;  %vm1590_vm13 = vweird.f32 %v1583_v49 }
 0xba9   : > { %1995 = vmatpush.bf16.msrb.mxu3 %v3895_v53 }
 0xbac   : > { %v4641_v54 = vpop.eup %4640 }
 0xbad   : > { %v1585_v56 = vmul.f32 %v4641_v54, %v1583_v49  ;;  %vm1591_vm12 = vweird.f32 %v4641_v54  ;;  %v3907_v49 = vor.u32 %v4453_v32, %v3904_v48  ;;  %v4589_v48 = vld [vmem:[%s6096_s15 + $0x1] ss:$0 sm:$0xff] }
 0xbae   : > { %vm1592_vm14 = vmor %vm1590_vm13, %vm1591_vm12 }
 0xbaf   : > { %v1586_v62 = vmul.f32 %v4641_v54, %v1585_v56  ;;  %2007 = vmatpush.bf16.msrb.mxu2 %v3907_v49  ;;  %v3886_v56 = vld [vmem:[%s6135_s21 + $0x80] sm:$0xf] }
 0xbb0   : > { %v3887_v0 = vor.u32 %v4450_v60, %v3886_v56  ;;  %v5534_v56 = vld [vmem:[%s4998_s0] sm:$0x1] }
 0xbb1   : > { %v1587_v63 = vmul.f32 0.5, %v1586_v62  ;;  %v4449_v62 = vld [vmem:[%s6135_s21 + $0x84] sm:$0xf] }
 0xbb2   : > { %1996 = vmatpush.bf16.msrb.mxu3 %v3887_v0  ;;  %v5541_v60 = vld [vmem:[%s6139_s27] sm:$0xff] }
 0xbb3   : > { %v1588_v1 = vsub.f32 1.5, %v1587_v63  ;;  %v3888_v63 = vld [vmem:[%s6135_s21 + $0x88] sm:$0xf0] }
 0xbb5   : > { %v1589_v4 = vmul.f32 %v4641_v54, %v1588_v1  ;;  %v3891_v1 = vor.u32 %v4449_v62, %v3888_v63  ;;  %v5547_v62 = vld [vmem:[%s6139_s27 + $0x8] sm:$0xff] }
 0xbb7   : > { %v1593_v6 = vsel %vm1592_vm14, %v4641_v54, %v1589_v4  ;;  %v3896_v54 = vld [vmem:[%s6135_s21 + $0x98] sm:$0xf0] }
 0xbb8   : > { %v1594_v9 = vmul.f32 %v1593_v6, %v5337_v18  ;;  %v4443_v18 = vld [vmem:[%s6093_s12 + $0xd0] sm:$0xff]  ;;  %v3899_v61 = vor.u32 %v4451_v52, %v3896_v54 }
 0xbb9   : > { %1845 = vmatpush.bf16.msrb.mxu1 %v4443_v18  ;;  %v1945_v4 = vpop.permute.xlu1 %1944 }
 0xbba   : > { %v1598_v10 = vmul.f32 %v4585_v5, %v1594_v9  ;;  %2008 = vmatpush.bf16.msrb.mxu2 %v3899_v61  ;;  %v4587_v5 = vld [vmem:[%s6094_s13 + $0x1] ss:$0 sm:$0xff] }
 0xbbc   : > { %v5431_v11 = vadd.f32 %v4586_v7, %v1598_v10 }
 0xbbd   : > { %1846 = vmatpush.bf16.msrb.mxu1 %v4442_v15  ;;  %v3883_v15 = vld [vmem:[%s6138_s5 + $0x4] sm:$0x3] }
 0xbbe   : > { %v1603_v17 = vpack.c.bf16 %v5431_v11, %v5431_v11  ;;  %2009 = vmatpush.bf16.msrb.mxu2 %v3891_v1  ;;  %v1940_v21 = vperm.slane %v3883_v15, 1  ;;  %v5554_v1 = vld [vmem:[%s6139_s27 + $0x10] sm:$0xff] }
 0xbc0   : > { %3772 = vmatmul.msk.bf16.vlgmr.msrb.gmra.mxu0 %vm704_vm0, %v1603_v17  ;;  %3773 = vmatmul.msk.bf16.vlgmr.msra.gmra.mxu3 %vm704_vm0, %v1603_v17 }
 0xbc1   : > { %1847 = vmatpush.bf16.msrb.mxu1 %v4441_v20  ;;  %v1939_v20 = vperm.slane %v3883_v15, 0 }
 0xbd0   : > { %3916 = vmatmul.msk.bf16.vlgmr.msrb.gmra.mxu3 %vm704_vm0, %v1945_v4 }
 0xc3d   : > { %v1672_v29 = vpop.f32.mrf.mxu0 }
 0xc3e   : > { %v1673_v30 = vadd.f32 %v1672_v29, %v1616_v28 }
 0xc40   : > { %v1689_v33 = vmax.f32 %v1673_v30, 0.0 }
 0xc42   : > { %v1691_v35 = vpack.c.bf16 %v1689_v33, %v1689_v33 }
 0xc43   : > { %v1685_v36 = vpop.f32.mrf.mxu3 }
 0xc44   : > { %v1686_v37 = vadd.f32 %v1685_v36, %v1617_v34  ;;  %1835 = vmatmul.bf16.vlgmr.msra.gmra.mxu2 %v1691_v35 }
 0xc45   : > { %v1674_v38 = vpop.f32.mrf.mxu0 }
 0xc46   : > { %v1690_v39 = vmax.f32 %v1686_v37, 0.0 }
 0xc48   : > { %v1692_v41 = vpack.c.bf16 %v1690_v39, %v1690_v39 }
 0xc4a   : > { %1848 = vmatmul.bf16.vlgmr.msrb.gmra.mxu1 %v1692_v41 }
 0xc4b   : > { %v1687_v43 = vpop.f32.mrf.mxu3 }
 0xc53   : > { %v1998_v22 = vpop.f32.mrf.mxu3 }
 0xc54   : > { %3917 = vmatmul.msk.bf16.vlgmr.msrb.gmra.mxu2 %vm704_vm0, %v1945_v4  ;;  %v1999_v24 = vadd.f32 %v1998_v22, %v1939_v20 }
 0xc56   : > { %v2025_v29 = vpack.c.bf16 %v1999_v24, %v1999_v24  ;;  %v2016_v49 = vrot.slane %v1999_v24, 4 }
 0xc58   : > { %2027 = vrot.lane.b32.xlu1 %v2025_v29, %s6142_s25  ;;  %v2018_v54 = vsel %vm737_vm1, %v1999_v24, %v2016_v49 }
 0xc59   : > { %v2019_v61 = vmul.f32 %v5541_v60, %v2018_v54  ;;  %v2020_v63 = vmul.f32 %v5547_v62, %v2018_v54  ;;  %v2021_v4 = vmul.f32 %v5554_v1, %v2018_v54 }
 0xc5b   : > { %v2000_v35 = vpop.f32.mrf.mxu3  ;;  %v2023_v0 = vpack.c.bf16 %v2020_v63, %v2019_v61 }
 0xcc7   : > { %v1836_v6 = vpop.f32.mrf.mxu2  ;;  %v1849_v7 = vpop.f32.mrf.mxu1 }
 0xcc8   : > { %v1837_v9 = vadd.f32 %v4587_v5, %v1836_v6  ;;  %v5560_v5 = vld [vmem:[%s6139_s27 + $0x18] sm:$0xff] }
 0xcc9   : > { %v2022_v6 = vmul.f32 %v5560_v5, %v2018_v54 }
 0xcca   : > { %v1850_v10 = vadd.f32 %v1849_v7, %v1837_v9  ;;  %v2028_v51 = vpop.permute.xlu1 %2027 }
 0xccb   : > { %v2036_v53 = vsel %vm704_vm0, %v2028_v51, 0  ;;  %v2024_v7 = vpack.c.bf16 %v2022_v6, %v2021_v4 }
 0xccc   : > { %v1853_v17 = vadd.f32 %v1850_v10, %v5431_v11 }
 0xcce   : > { %v1858_v19 = vsel %vm957_vm4, %v1853_v17, 0.0 }
 0xccf   : > { %v1838_v18 = vpop.f32.mrf.mxu2  ;;  %v1851_v8 = vpop.f32.mrf.mxu1  ;;  %1859 = vadd.xlane.f32.xlu0 %v1858_v19 }
 0xcd7   : > { %v2011_v27 = vpop.f32.mrf.mxu2 }
 0xcd8   : > { %v2012_v28 = vadd.f32 %v2011_v27, %v1940_v21 }
 0xcda   : > { %v2111_v30 = vpack.c.bf16 %v2012_v28, %v2012_v28 }
 0xcdc   : > { %v2119_v11 = vsel %vm842_vm3, %v2111_v30, 0 }
 0xcdd   : > { %2128 = vmatpush.bf16.msra.mxu1 %v2119_v11 }
 0xcdf   : > { %v2013_v36 = vpop.f32.mrf.mxu2 }
 0xd42   : > { %v1860_v33 = vpop.xlane.xlu0 %1859 }
 0xd43   : > { %v1861_v34 = vmul.f32 %v1860_v33, %v5095_v40 }
 0xd45   : > { %v1862_v37 = vsub.f32 %v1853_v17, %v1861_v34 }
 0xd47   : > { %v1863_v38 = vmul.f32 %v1862_v37, %v1862_v37 }
 0xd49   : > { %v1864_v39 = vsel %vm957_vm4, %v1863_v38, 0.0 }
 0xd4a   : > { %1865 = vadd.xlane.f32.xlu2 %v1864_v39 }
 0xdbd   : > { %v1866_v41 = vpop.xlane.xlu2 %1865 }
 0xdbe   : > { %v1867_v43 = vmul.f32 %v1866_v41, %v5095_v40 }
 0xdc0   : > { %v1868_v13 = vadd.f32 1e-05, %v1867_v43 }
 0xdc2   : > { %4642 = vrsqrt.f32 %v1868_v13  ;;  %vm1875_vm5 = vweird.f32 %v1868_v13 }
 0xdc8   : > { %v4643_v16 = vpop.eup %4642 }
 0xdc9   : > { %v1870_v25 = vmul.f32 %v4643_v16, %v1868_v13  ;;  %vm1876_vm15 = vweird.f32 %v4643_v16 }
 0xdca   : > { %vm1877_vm6 = vmor %vm1875_vm5, %vm1876_vm15 }
 0xdcb   : > { %v1871_v45 = vmul.f32 %v4643_v16, %v1870_v25 }
 0xdcd   : > { %v1872_v26 = vmul.f32 0.5, %v1871_v45 }
 0xdcf   : > { %v1873_v46 = vsub.f32 1.5, %v1872_v26 }
 0xdd1   : > { %v1874_v31 = vmul.f32 %v4643_v16, %v1873_v46 }
 0xdd3   : > { %v1878_v32 = vsel %vm1877_vm6, %v4643_v16, %v1874_v31 }
 0xdd4   : > { %v1879_v44 = vmul.f32 %v1878_v32, %v1862_v37 }
 0xdd6   : > { %v1883_v50 = vmul.f32 %v4588_v47, %v1879_v44 }
 0xdd8   : > { %v1887_v52 = vadd.f32 %v4589_v48, %v1883_v50 }
 0xdda   : > { %3873 = vmatpush.msk.msra.mxu0 %vm737_vm1, %v1887_v52 }
 0xddb   : > { %3874 = vmatmul.msk.f32.vlgmr.msra.gmra.mxu0 %vm788_vm2, %v5534_v56 }
 0xddc   : > { %2045 = vmatpush.bf16.xpose.msrb.mxu0 %v2036_v53 }
 0xde3   : > { %3918 = vmatmul.msk.bf16.vlgmr.msrb.gmra.mxu0 %vm704_vm0, %v2023_v0 }
 0xdf3   : > { %3919 = vmatmul.msk.bf16.gmra.mxu0 %vm704_vm0, %v2024_v7 }
 0xe58   : > { %v5564_v9 = vpop.f32.mrf.mxu0 }
 0xe60   : > { %v2047_v10 = vpop.f32.mrf.mxu0 }
 0xe61   : > { %v2057_v17 = vmul.f32 0.35355338, %v2047_v10 }
 0xe63   : > { %v2061_v19 = vadd.f32 %v2057_v17, %v5010_v42 }
 0xe65   : > { %v2065_v18 = vsel %vm788_vm2, %v2061_v19, -inf }
 0xe66   : > { %2066 = vmax.xlane.f32.xlu2 %v2065_v18  ;;  %v4460_v18 = vld [vmem:[%s6141_s6 + $0x58] sm:$0xff] }
 0xe67   : > { %2214 = vmatpush.bf16.msra.mxu3 %v4460_v18 }
 0xe68   : > { %v2049_v8 = vpop.f32.mrf.mxu0 }
 0xe69   : > { %v2058_v15 = vmul.f32 0.35355338, %v2049_v8  ;;  %v4459_v8 = vld [vmem:[%s6141_s6 + $0x50] sm:$0xff] }
 0xe6b   : > { %v2062_v20 = vadd.f32 %v2058_v15, %v5010_v42  ;;  %2215 = vmatpush.bf16.msra.mxu3 %v4459_v8  ;;  %v4458_v15 = vld [vmem:[%s6141_s6 + $0x48] sm:$0xff]  ;;  %v3987_v8 = vld [vmem:[%s6091_s10 + $0xb8] sm:$0xf0] }
 0xe6d   : > { %v2068_v21 = vsel %vm788_vm2, %v2062_v20, -inf }
 0xe6e   : > { %2069 = vmax.xlane.f32.xlu1 %v2068_v21 }
 0xe6f   : > { %2216 = vmatpush.bf16.msra.mxu3 %v4458_v15  ;;  %v3977_v15 = vld [vmem:[%s6091_s10 + $0xa0] sm:$0xf] }
 0xe70   : > { %v2052_v22 = vpop.f32.mrf.mxu0 }
 0xe71   : > { %v2059_v24 = vmul.f32 0.35355338, %v2052_v22 }
 0xe73   : > { %v2063_v27 = vadd.f32 %v2059_v24, %v5010_v42 }
 0xe75   : > { %v2071_v28 = vsel %vm788_vm2, %v2063_v27, -inf }
 0xe76   : > { %2072 = vmax.xlane.f32.xlu2 %v2071_v28 }
 0xe78   : > { %v2054_v29 = vpop.f32.mrf.mxu0 }
 0xe79   : > { %v2060_v30 = vmul.f32 0.35355338, %v2054_v29 }
 0xe7b   : > { %v2064_v11 = vadd.f32 %v2060_v30, %v5010_v42 }
 0xe7d   : > { %v2074_v33 = vsel %vm788_vm2, %v2064_v11, -inf }
 0xe7e   : > { %2075 = vmax.xlane.f32.xlu2 %v2074_v33 }
 0xed9   : > { %v2067_v34 = vpop.xlane.xlu2 %2066 }
 0xeda   : > { %v2077_v35 = vsub.f32 %v2061_v19, %v2067_v34 }
 0xedc   : > { %v2081_v36 = vmul.f32 1.442695, %v2077_v35 }
 0xede   : > { %4644 = vpow2.f32 %v2081_v36 }
 0xee1   : > { %v2070_v37 = vpop.xlane.xlu1 %2069 }
 0xee2   : > { %v2078_v38 = vsub.f32 %v2062_v20, %v2070_v37  ;;  %v4457_v20 = vld [vmem:[%s6141_s6 + $0x40] sm:$0xff] }
 0xee3   : > { %2217 = vmatpush.bf16.msra.mxu3 %v4457_v20  ;;  %v4466_v20 = vld [vmem:[%s6091_s10 + $0xa4] sm:$0xf0] }
 0xee4   : > { %v4645_v39 = vpop.eup %4644  ;;  %v2083_v41 = vmul.f32 1.442695, %v2078_v38 }
 0xee5   : > { %v2089_v43 = vsel %vm788_vm2, %v4645_v39, 0.0 }
 0xee6   : > { %4646 = vpow2.f32 %v2083_v41  ;;  %2090 = vadd.xlane.f32.xlu2 %v2089_v43 }
 0xee9   : > { %v2073_v13 = vpop.xlane.xlu2 %2072 }
 0xeea   : > { %v2079_v16 = vsub.f32 %v2063_v27, %v2073_v13 }
 0xeec   : > { %v4647_v25 = vpop.eup %4646  ;;  %v2085_v45 = vmul.f32 1.442695, %v2079_v16 }
 0xeed   : > { %v2092_v26 = vsel %vm788_vm2, %v4647_v25, 0.0 }
 0xeee   : > { %4648 = vpow2.f32 %v2085_v45  ;;  %2093 = vadd.xlane.f32.xlu0 %v2092_v26 }
 0xef1   : > { %v2076_v46 = vpop.xlane.xlu2 %2075 }
 0xef2   : > { %v2080_v31 = vsub.f32 %v2064_v11, %v2076_v46 }
 0xef4   : > { %v4649_v47 = vpop.eup %4648  ;;  %v2087_v32 = vmul.f32 1.442695, %v2080_v31 }
 0xef5   : > { %v2095_v44 = vsel %vm788_vm2, %v4649_v47, 0.0 }
 0xef6   : > { %4650 = vpow2.f32 %v2087_v32  ;;  %2096 = vadd.xlane.f32.xlu2 %v2095_v44 }
 0xefc   : > { %v4651_v48 = vpop.eup %4650 }
 0xefd   : > { %v2098_v49 = vsel %vm788_vm2, %v4651_v48, 0.0 }
 0xefe   : > { %2099 = vadd.xlane.f32.xlu0 %v2098_v49 }
 0xf59   : > { %v2091_v50 = vpop.xlane.xlu2 %2090 }
 0xf5a   : > { %4652 = vrcp.f32 %v2091_v50 }
 0xf60   : > { %v4653_v52 = vpop.eup %4652 }
 0xf61   : > { %v2094_v51 = vpop.xlane.xlu0 %2093  ;;  %v2105_v54 = vmul.f32 %v4653_v52, %v4645_v39 }
 0xf62   : > { %4654 = vrcp.f32 %v2094_v51 }
 0xf68   : > { %v4655_v53 = vpop.eup %4654 }
 0xf69   : > { %v2106_v61 = vmul.f32 %v4655_v53, %v4647_v25  ;;  %v2097_v0 = vpop.xlane.xlu2 %2096 }
 0xf6a   : > { %4656 = vrcp.f32 %v2097_v0  ;;  %v4591_v0 = vld [vmem:[%s6089_s8 + $0x2] ss:$0 sm:$0xff] }
 0xf6b   : > { %v2109_v63 = vpack.c.bf16 %v2106_v61, %v2105_v54 }
 0xf6d   : > { %3920 = vmatmul.msk.bf16.vlgmr.msra.gmra.mxu1 %vm788_vm2, %v2109_v63 }
 0xf70   : > { %v4657_v6 = vpop.eup %4656 }
 0xf71   : > { %v2100_v4 = vpop.xlane.xlu0 %2099  ;;  %v2107_v10 = vmul.f32 %v4657_v6, %v4649_v47  ;;  %v4590_v47 = vld [vmem:[%s6088_s7 + $0x2] ss:$0 sm:$0xff] }
 0xf72   : > { %4658 = vrcp.f32 %v2100_v4 }
 0xf78   : > { %v4659_v7 = vpop.eup %4658 }
 0xf79   : > { %v2108_v17 = vmul.f32 %v4659_v7, %v4651_v48  ;;  %v3985_v7 = vld [vmem:[%s6091_s10 + $0xb0] sm:$0xf] }
 0xf7b   : > { %v2110_v19 = vpack.c.bf16 %v2108_v17, %v2107_v10  ;;  %v4468_v10 = vld [vmem:[%s6091_s10 + $0xb4] sm:$0xf0]  ;;  %v4467_v17 = vld [vmem:[%s6091_s10 + $0xb4] sm:$0xf] }
 0xf7c   : > { %v3986_v18 = vor.u32 %v4468_v10, %v3985_v7  ;;  %v4472_v7 = vld [vmem:[%s6093_s12 + $0x118] sm:$0xff] }
 0xf7d   : > { %3921 = vmatmul.msk.bf16.gmra.mxu1 %vm788_vm2, %v2110_v19  ;;  %v4480_v10 = vld [vmem:[%s6093_s12 + $0x158] sm:$0xff] }
 0xf7e   : > { %2341 = vmatpush.bf16.msra.mxu2 %v3986_v18 }
 0xfea   : > { %v2130_v21 = vpop.f32.mrf.mxu1 }
 0xfeb   : > { %v2142_v22 = vmul.f32 %v2130_v21, %v5058_v55  ;;  %v2140_v28 = vmul.f32 %v2130_v21, %v5062_v57 }
 0xfed   : > { %v2144_v27 = vrot.slane %v2142_v22, 4  ;;  %v3990_v22 = vor.u32 %v4467_v17, %v3987_v8  ;;  %v4471_v17 = vld [vmem:[%s6093_s12 + $0x110] sm:$0xff]  ;;  %v4470_v8 = vld [vmem:[%s6093_s12 + $0x108] sm:$0xff] }
 0xfef   : > { %v2146_v11 = vadd.f32 %v2144_v27, %v2140_v28  ;;  %v3979_v27 = vld [vmem:[%s6091_s10 + $0xa8] sm:$0xf0]  ;;  %v3978_v28 = vor.u32 %v4466_v20, %v3977_v15  ;;  %2354 = vmatpush.bf16.msrb.mxu3 %v3990_v22  ;;  %v4469_v20 = vld [vmem:[%s6093_s12 + $0x100] sm:$0xff] }
 0xff0   : > { %v4478_v15 = vld [vmem:[%s6093_s12 + $0x148] sm:$0xff]  ;;  %v3958_v22 = vld [vmem:[%s6092_s11 + $0x4] sm:$0x3] }
 0xff1   : > { %2342 = vmatpush.bf16.msra.mxu2 %v3978_v28 }
 0xff2   : > { %v2132_v24 = vpop.f32.mrf.mxu1 }
 0xff3   : > { %v2147_v29 = vmul.f32 %v2132_v24, %v5065_v58  ;;  %v2149_v30 = vmul.f32 %v2132_v24, %v5068_v59  ;;  %v4465_v24 = vld [vmem:[%s6091_s10 + $0xa4] sm:$0xf] }
 0xff5   : > { %v2148_v33 = vadd.f32 %v2147_v29, %v2146_v11  ;;  %v2151_v34 = vrot.slane %v2149_v30, 4  ;;  %v3982_v30 = vor.u32 %v4465_v24, %v3979_v27  ;;  %v3969_v11 = vld [vmem:[%s6091_s10 + $0x90] sm:$0xf]  ;;  %v2287_v24 = vperm.slane %v3958_v22, 0 }
 0xff6   : > { %v2288_v27 = vperm.slane %v3958_v22, 1  ;;  %v4488_v22 = vld [vmem:[%s6135_s21 + $0xd4] sm:$0xf0] }
 0xff7   : > { %v2153_v38 = vadd.f32 %v2151_v34, %v2148_v33  ;;  %v4464_v33 = vld [vmem:[%s6091_s10 + $0x94] sm:$0xf0]  ;;  %v4463_v34 = vld [vmem:[%s6091_s10 + $0x94] sm:$0xf]  ;;  %2355 = vmatpush.bf16.msrb.mxu3 %v3982_v30 }
 0xffa   : > { %v2135_v35 = vpop.f32.mrf.mxu1 }
 0xffb   : > { %v2154_v36 = vmul.f32 %v2135_v35, %v5074_v2  ;;  %v2156_v37 = vmul.f32 %v2135_v35, %v5077_v3  ;;  %v3971_v35 = vld [vmem:[%s6091_s10 + $0x98] sm:$0xf0] }
 0xffd   : > { %v2155_v39 = vadd.f32 %v2154_v36, %v2153_v38  ;;  %v2158_v41 = vrot.slane %v2156_v37, 4  ;;  %v3970_v36 = vor.u32 %v4464_v33, %v3969_v11  ;;  %v3974_v37 = vor.u32 %v4463_v34, %v3971_v35  ;;  %v3961_v38 = vld [vmem:[%s6091_s10 + $0x80] sm:$0xf] }
 0xfff   : > { %v2160_v13 = vadd.f32 %v2158_v41, %v2155_v39  ;;  %v4462_v39 = vld [vmem:[%s6091_s10 + $0x84] sm:$0xf0]  ;;  %v4461_v41 = vld [vmem:[%s6091_s10 + $0x84] sm:$0xf]  ;;  %2343 = vmatpush.bf16.msra.mxu2 %v3970_v36  ;;  %2356 = vmatpush.bf16.msrb.mxu3 %v3974_v37 }
0x1002   : > { %v2137_v43 = vpop.f32.mrf.mxu1 }
0x1003   : > { %v2161_v16 = vmul.f32 %v2137_v43, %v5082_v12  ;;  %v2163_v25 = vmul.f32 %v2137_v43, %v5085_v14  ;;  %v3963_v43 = vld [vmem:[%s6091_s10 + $0x88] sm:$0xf0] }
0x1005   : > { %v2162_v45 = vadd.f32 %v2161_v16, %v2160_v13  ;;  %v2165_v26 = vrot.slane %v2163_v25, 4  ;;  %v3962_v13 = vor.u32 %v4462_v39, %v3961_v38  ;;  %v3966_v25 = vor.u32 %v4461_v41, %v3963_v43  ;;  %v4593_v39 = vld [vmem:[%s6094_s13 + $0x2] ss:$0 sm:$0xff] }
0x1007   : > { %v2167_v46 = vadd.f32 %v2165_v26, %v2162_v45  ;;  %2344 = vmatpush.bf16.msra.mxu2 %v3962_v13  ;;  %2357 = vmatpush.bf16.msrb.mxu3 %v3966_v25 }
0x1009   : > { %v2168_v31 = vpack.c.bf16 %v2167_v46, %v2167_v46 }
0x100b   : > { %3947 = vmatmul.msk.bf16.vlgmr.msra.gmra.mxu3 %vm704_vm0, %v2168_v31 }
0x108e   : > { %v2219_v32 = vpop.f32.mrf.mxu3 }
0x108f   : > { %v2220_v44 = vadd.f32 %v4590_v47, %v2219_v32 }
0x1091   : > { %2224 = vrot.lane.b32.xlu2 %v2220_v44, %s6142_s25 }
0x1096   : > { %v2221_v48 = vpop.f32.mrf.mxu3 }
0x10eb   : > { %v2225_v49 = vpop.permute.xlu2 %2224 }
0x10ec   : > { %v2227_v50 = vadd.f32 %v2225_v49, %v5453_v23  ;;  %v4592_v23 = vld [vmem:[%s6090_s9 + $0x2] ss:$0 sm:$0xff] }
0x10ee   : > { %2233 = vrot.lane.b32.xlu0 %v2227_v50, %s6142_s25 }
0x10f6   : > { %2264 = vrot.lane.b32.xlu0 %v4591_v0, %s6142_s25  ;;  %v4474_v0 = vld [vmem:[%s6093_s12 + $0x128] sm:$0xff] }
0x10fe   : > { %2270 = vrot.lane.b32.xlu0 %v4592_v23, %s6142_s25  ;;  %v4482_v23 = vld [vmem:[%s6093_s12 + $0x168] sm:$0xff] }
0x1160   : > { %v2234_v51 = vpop.permute.xlu0 %2233 }
0x1161   : > { %v2236_v52 = vsel %vm957_vm4, %v2234_v51, 0.0 }
0x1162   : > { %2237 = vadd.xlane.f32.xlu1 %v2236_v52 }
0x1168   : > { %v2265_v46 = vpop.permute.xlu0 %2264 }
0x1170   : > { %v2271_v49 = vpop.permute.xlu0 %2270 }
0x11d5   : > { %v2238_v53 = vpop.xlane.xlu1 %2237 }
0x11d6   : > { %v2239_v54 = vmul.f32 %v2238_v53, %v5095_v40  ;;  %v4476_v53 = vld [vmem:[%s6093_s12 + $0x138] sm:$0xff] }
0x11d7   : > { %2501 = vmatpush.bf16.msra.mxu0 %v4476_v53  ;;  %v4595_v53 = vld [vmem:[%s6096_s15 + $0x2] ss:$0 sm:$0xff] }
0x11d8   : > { %v2240_v61 = vsub.f32 %v2227_v50, %v2239_v54  ;;  %v4484_v54 = vld [vmem:[%s6093_s12 + $0x178] sm:$0xff] }
0x11d9   : > { %2514 = vmatpush.bf16.msrb.mxu1 %v4484_v54  ;;  %v4127_v54 = vld [vmem:[%s6135_s21 + $0xf0] sm:$0xf] }
0x11da   : > { %v2241_v63 = vmul.f32 %v2240_v61, %v2240_v61 }
0x11dc   : > { %2243 = vrot.lane.b32.xlu1 %v2241_v63, %s6142_s25  ;;  %v4483_v63 = vld [vmem:[%s6093_s12 + $0x170] sm:$0xff] }
0x11dd   : > { %2515 = vmatpush.bf16.msrb.mxu1 %v4483_v63  ;;  %v4491_v63 = vld [vmem:[%s6135_s21 + $0xf4] sm:$0xf] }
0x11e1   : > { %2516 = vmatpush.bf16.msrb.mxu1 %v4482_v23 }
0x124e   : > { %v2244_v4 = vpop.permute.xlu1 %2243 }
0x124f   : > { %v2246_v6 = vsel %vm957_vm4, %v2244_v4, 0.0  ;;  %v4473_v4 = vld [vmem:[%s6093_s12 + $0x120] sm:$0xff] }
0x1250   : > { %2247 = vadd.xlane.f32.xlu2 %v2246_v6  ;;  %v4481_v6 = vld [vmem:[%s6093_s12 + $0x160] sm:$0xff] }
0x1251   : > { %2517 = vmatpush.bf16.msrb.mxu1 %v4481_v6  ;;  %v4119_v6 = vld [vmem:[%s6135_s21 + $0xe0] sm:$0xf] }
0x1255   : > { %2518 = vmatpush.bf16.msrb.mxu1 %v4480_v10 }
0x12c3   : > { %v2248_v19 = vpop.xlane.xlu2 %2247 }
0x12c4   : > { %v2249_v21 = vmul.f32 %v2248_v19, %v5095_v40  ;;  %v4479_v19 = vld [vmem:[%s6093_s12 + $0x150] sm:$0xff] }
0x12c5   : > { %2519 = vmatpush.bf16.msrb.mxu1 %v4479_v19  ;;  %v4489_v19 = vld [vmem:[%s6135_s21 + $0xe4] sm:$0xf] }
0x12c6   : > { %v2250_v29 = vadd.f32 1e-05, %v2249_v21  ;;  %v4477_v21 = vld [vmem:[%s6093_s12 + $0x140] sm:$0xff] }
0x12c8   : > { %4660 = vrsqrt.f32 %v2250_v29  ;;  %vm2257_vm8 = vweird.f32 %v2250_v29 }
0x12c9   : > { %2520 = vmatpush.bf16.msrb.mxu1 %v4478_v15 }
0x12cd   : > { %2521 = vmatpush.bf16.msrb.mxu1 %v4477_v21  ;;  %v4111_v21 = vld [vmem:[%s6135_s21 + $0xd0] sm:$0xf] }
0x12ce   : > { %v4661_v16 = vpop.eup %4660 }
0x12cf   : > { %v2252_v45 = vmul.f32 %v4661_v16, %v2250_v29  ;;  %vm2258_vm7 = vweird.f32 %v4661_v16 }
0x12d0   : > { %vm2259_vm9 = vmor %vm2257_vm8, %vm2258_vm7 }
0x12d1   : > { %v2253_v26 = vmul.f32 %v4661_v16, %v2252_v45 }
0x12d3   : > { %v2254_v31 = vmul.f32 0.5, %v2253_v26 }
0x12d5   : > { %v2255_v47 = vsub.f32 1.5, %v2254_v31 }
0x12d7   : > { %v2256_v32 = vmul.f32 %v4661_v16, %v2255_v47 }
0x12d9   : > { %v2260_v44 = vsel %vm2259_vm9, %v4661_v16, %v2256_v32 }
0x12da   : > { %v2261_v48 = vmul.f32 %v2260_v44, %v2240_v61  ;;  %v4475_v61 = vld [vmem:[%s6093_s12 + $0x130] sm:$0xff] }
0x12db   : > { %2502 = vmatpush.bf16.msra.mxu0 %v4475_v61  ;;  %v4492_v61 = vld [vmem:[%s6135_s21 + $0xf4] sm:$0xf0] }
0x12dc   : > { %v2267_v50 = vmul.f32 %v2265_v46, %v2261_v48  ;;  %v4128_v23 = vor.u32 %v4492_v61, %v4127_v54 }
0x12de   : > { %v2273_v51 = vadd.f32 %v2271_v49, %v2267_v50  ;;  %v4594_v50 = vld [vmem:[%s6095_s14 + $0x2] ss:$0 sm:$0xff]  ;;  %2645 = vmatpush.bf16.msrb.mxu2 %v4128_v23 }
0x12df   : > { %2503 = vmatpush.bf16.msra.mxu0 %v4474_v0 }
0x12e0   : > { %v2274_v52 = vpack.c.bf16 %v2273_v51, %v2273_v51 }
0x12e2   : > { %2292 = vrot.lane.b32.xlu0 %v2274_v52, %s6142_s25 }
0x12e3   : > { %2504 = vmatpush.bf16.msra.mxu0 %v4473_v4  ;;  %v4129_v4 = vld [vmem:[%s6135_s21 + $0xf8] sm:$0xf0] }
0x12e7   : > { %2505 = vmatpush.bf16.msra.mxu0 %v4472_v7  ;;  %v4490_v7 = vld [vmem:[%s6135_s21 + $0xe4] sm:$0xf0] }
0x12eb   : > { %2506 = vmatpush.bf16.msra.mxu0 %v4471_v17  ;;  %v4132_v17 = vor.u32 %v4491_v63, %v4129_v4 }
0x12ed   : > { %2658 = vmatpush.bf16.msra.mxu3 %v4132_v17 }
0x12ef   : > { %2507 = vmatpush.bf16.msra.mxu0 %v4470_v8  ;;  %v4120_v8 = vor.u32 %v4490_v7, %v4119_v6 }
0x12f1   : > { %2646 = vmatpush.bf16.msrb.mxu2 %v4120_v8 }
0x12f3   : > { %2508 = vmatpush.bf16.msra.mxu0 %v4469_v20 }
0x1354   : > { %v2293_v18 = vpop.permute.xlu0 %2292 }
0x1355   : > { %3991 = vmatmul.msk.bf16.vlgmr.msra.gmra.mxu2 %vm704_vm0, %v2293_v18  ;;  %3992 = vmatmul.msk.bf16.vlgmr.msrb.gmra.mxu3 %vm704_vm0, %v2293_v18  ;;  %v4121_v18 = vld [vmem:[%s6135_s21 + $0xe8] sm:$0xf0] }
0x1356   : > { %v4124_v20 = vor.u32 %v4489_v19, %v4121_v18 }
0x1358   : > { %2659 = vmatpush.bf16.msra.mxu3 %v4124_v20 }
0x13d8   : > { %v2346_v28 = vpop.f32.mrf.mxu2  ;;  %v2359_v29 = vpop.f32.mrf.mxu3 }
0x13d9   : > { %v2347_v30 = vadd.f32 %v2346_v28, %v2287_v24  ;;  %v2360_v11 = vadd.f32 %v2359_v29, %v2288_v27  ;;  %v4487_v24 = vld [vmem:[%s6135_s21 + $0xd4] sm:$0xf]  ;;  %v4113_v27 = vld [vmem:[%s6135_s21 + $0xd8] sm:$0xf0]  ;;  %v4112_v28 = vor.u32 %v4488_v22, %v4111_v21 }
0x13da   : > { %v4116_v29 = vor.u32 %v4487_v24, %v4113_v27 }
0x13db   : > { %v2363_v33 = vmax.f32 %v2347_v30, 0.0  ;;  %v2364_v34 = vmax.f32 %v2360_v11, 0.0  ;;  %v4103_v30 = vld [vmem:[%s6135_s21 + $0xc0] sm:$0xf]  ;;  %v4486_v11 = vld [vmem:[%s6135_s21 + $0xc4] sm:$0xf0]  ;;  %2647 = vmatpush.bf16.msrb.mxu2 %v4112_v28 }
0x13dc   : > { %2660 = vmatpush.bf16.msra.mxu3 %v4116_v29 }
0x13dd   : > { %v2365_v35 = vpack.c.bf16 %v2363_v33, %v2363_v33  ;;  %v2366_v36 = vpack.c.bf16 %v2364_v34, %v2364_v34  ;;  %v4485_v33 = vld [vmem:[%s6135_s21 + $0xc4] sm:$0xf]  ;;  %v4105_v34 = vld [vmem:[%s6135_s21 + $0xc8] sm:$0xf0] }
0x13df   : > { %2509 = vmatmul.bf16.vlgmr.msra.gmra.mxu0 %v2365_v35  ;;  %2522 = vmatmul.bf16.vlgmr.msrb.gmra.mxu1 %v2366_v36  ;;  %v4104_v35 = vor.u32 %v4486_v11, %v4103_v30 }
0x13e0   : > { %v2348_v37 = vpop.f32.mrf.mxu2  ;;  %v2361_v38 = vpop.f32.mrf.mxu3 }
0x13e1   : > { %v4108_v37 = vor.u32 %v4485_v33, %v4105_v34  ;;  %2648 = vmatpush.bf16.msrb.mxu2 %v4104_v35 }
0x13e3   : > { %2661 = vmatpush.bf16.msra.mxu3 %v4108_v37 }
0x145c   : > { %v2510_v41 = vpop.f32.mrf.mxu0  ;;  %v2523_v43 = vpop.f32.mrf.mxu1 }
0x145d   : > { %v2511_v13 = vadd.f32 %v4593_v39, %v2510_v41 }
0x145f   : > { %v2524_v16 = vadd.f32 %v2523_v43, %v2511_v13 }
0x1461   : > { %2528 = vrot.lane.b32.xlu1 %v2524_v16, %s6142_s25 }
0x1464   : > { %v2512_v25 = vpop.f32.mrf.mxu0  ;;  %v2525_v45 = vpop.f32.mrf.mxu1 }
0x14d3   : > { %v2529_v26 = vpop.permute.xlu1 %2528 }
0x14d4   : > { %v2531_v46 = vadd.f32 %v2529_v26, %v2273_v51 }
0x14d6   : > { %2537 = vrot.lane.b32.xlu0 %v2531_v46, %s6142_s25 }
0x1548   : > { %v2538_v31 = vpop.permute.xlu0 %2537 }
0x1549   : > { %v2540_v47 = vsel %vm957_vm4, %v2538_v31, 0.0 }
0x154a   : > { %2541 = vadd.xlane.f32.xlu1 %v2540_v47 }
0x15bd   : > { %v2542_v32 = vpop.xlane.xlu1 %2541 }
0x15be   : > { %v2543_v44 = vmul.f32 %v2542_v32, %v5095_v40 }
0x15c0   : > { %v2544_v48 = vsub.f32 %v2531_v46, %v2543_v44  ;;  %v4100_v44 = vld [vmem:[%s6138_s5 + $0x6] sm:$0x3]  ;;  %s4708_s5 = sshra.s32 %s3435_s3, 4  ;;  %s4709_s5 = int_to_ptr.hbm [resolvable:$true] %s4708_s5 }
0x15c1   : > { %p4715_p0 = scmp.lt.s32.totalorder %s4709_s5, %s6143_s19 }
0x15c2   : > { %v2545_v49 = vmul.f32 %v2544_v48, %v2544_v48 }
0x15c4   : > { %2547 = vrot.lane.b32.xlu0 %v2545_v49, %s6142_s25  ;;  %v2591_v49 = vperm.slane %v4100_v44, 0 }
0x15cc   : > { %2568 = vrot.lane.b32.xlu0 %v4594_v50, %s6142_s25 }
0x1636   : > { %v2548_v51 = vpop.permute.xlu0 %2547 }
0x1637   : > { %v2550_v52 = vsel %vm957_vm4, %v2548_v51, 0.0 }
0x1638   : > { %2551 = vadd.xlane.f32.xlu2 %v2550_v52 }
0x163e   : > { %v2569_v25 = vpop.permute.xlu0 %2568 }
0x1650   : > { %2574 = vrot.lane.b32.xlu2 %v4595_v53, %s6142_s25 }
0x16ab   : > { %v2552_v0 = vpop.xlane.xlu2 %2551 }
0x16ac   : > { %v2553_v10 = vmul.f32 %v2552_v0, %v5095_v40 }
0x16ae   : > { %v2554_v15 = vadd.f32 1e-05, %v2553_v10 }
0x16b0   : > { %4662 = vrsqrt.f32 %v2554_v15  ;;  %vm2561_vm11 = vweird.f32 %v2554_v15 }
0x16b3   : > { %v2575_v26 = vpop.permute.xlu2 %2574 }
0x16b6   : > { %v4663_v36 = vpop.eup %4662 }
0x16b7   : > { %v2556_v38 = vmul.f32 %v4663_v36, %v2554_v15  ;;  %vm2562_vm10 = vweird.f32 %v4663_v36 }
0x16b8   : > { %vm2563_vm12 = vmor %vm2561_vm11, %vm2562_vm10 }
0x16b9   : > { %v2557_v39 = vmul.f32 %v4663_v36, %v2556_v38 }
0x16bb   : > { %v2558_v41 = vmul.f32 0.5, %v2557_v39 }
0x16bd   : > { %v2559_v43 = vsub.f32 1.5, %v2558_v41 }
0x16bf   : > { %v2560_v13 = vmul.f32 %v4663_v36, %v2559_v43 }
0x16c1   : > { %v2564_v16 = vsel %vm2563_vm12, %v4663_v36, %v2560_v13 }
0x16c2   : > { %v2565_v45 = vmul.f32 %v2564_v16, %v2544_v48  ;;  %v2592_v48 = vperm.slane %v4100_v44, 1 }
0x16c4   : > { %v2571_v46 = vmul.f32 %v2569_v25, %v2565_v45 }
0x16c6   : > { %v5788_v31 = vadd.f32 %v2575_v26, %v2571_v46 }
0x16c8   : > { %v2578_v47 = vpack.c.bf16 %v5788_v31, %v5788_v31 }
0x16ca   : > { %2596 = vrot.lane.b32.xlu0 %v2578_v47, %s6142_s25 }
0x173c   : > { %v2597_v32 = vpop.permute.xlu0 %2596 }
0x173d   : > { %4133 = vmatmul.msk.bf16.vlgmr.msrb.gmra.mxu2 %vm704_vm0, %v2597_v32  ;;  %4134 = vmatmul.msk.bf16.vlgmr.msra.gmra.mxu3 %vm704_vm0, %v2597_v32 }
0x17c0   : > { %v2650_v50 = vpop.f32.mrf.mxu2  ;;  %v2663_v51 = vpop.f32.mrf.mxu3 }
0x17c1   : > { %v2651_v52 = vadd.f32 %v2650_v50, %v2591_v49  ;;  %v2664_v53 = vadd.f32 %v2663_v51, %v2592_v48 }
0x17c3   : > { %v2763_v54 = vpack.c.bf16 %v2664_v53, %v2664_v53  ;;  %v2677_v61 = vpack.c.bf16 %v2651_v52, %v2651_v52  ;;  %v2668_v4 = vrot.slane %v2651_v52, 4 }
0x17c5   : > { %v2771_v63 = vsel %vm842_vm3, %v2763_v54, 0  ;;  %2679 = vrot.lane.b32.xlu0 %v2677_v61, %s6142_s25  ;;  %v2670_v6 = vsel %vm737_vm1, %v2651_v52, %v2668_v4  ;;  %vm1914_vm3 = vcmask 24576  }
0x17c6   : > { %2780 = vmatpush.bf16.msra.mxu2 %v2771_v63  ;;  %v2671_v17 = vmul.f32 %v5541_v60, %v2670_v6  ;;  %v2672_v19 = vmul.f32 %v5547_v62, %v2670_v6  ;;  %v2673_v8 = vmul.f32 %v5554_v1, %v2670_v6  ;;  %v2674_v15 = vmul.f32 %v5560_v5, %v2670_v6 }
0x17c8   : > { %v2652_v0 = vpop.f32.mrf.mxu2  ;;  %v2665_v23 = vpop.f32.mrf.mxu3  ;;  %v2675_v18 = vpack.c.bf16 %v2672_v19, %v2671_v17  ;;  %v2676_v20 = vpack.c.bf16 %v2674_v15, %v2673_v8  ;;  %v4496_v15 = vld [vmem:[%s6141_s6 + $0x78] sm:$0xff] }
0x17c9   : > { %2866 = vmatpush.bf16.msra.mxu1 %v4496_v15 }
0x1837   : > { %v2680_v7 = vpop.permute.xlu0 %2679 }
0x1838   : > { %v2688_v10 = vsel %vm704_vm0, %v2680_v7, 0 }
0x1839   : > { %2697 = vmatpush.bf16.xpose.msrb.mxu0 %v2688_v10 }
0x1840   : > { %4135 = vmatmul.msk.bf16.vlgmr.msrb.gmra.mxu0 %vm704_vm0, %v2675_v18 }
0x1850   : > { %4136 = vmatmul.msk.bf16.gmra.mxu0 %vm704_vm0, %v2676_v20  ;;  %v4495_v20 = vld [vmem:[%s6141_s6 + $0x70] sm:$0xff] }
0x1851   : > { %2867 = vmatpush.bf16.msra.mxu1 %v4495_v20  ;;  %v4202_v20 = vld [vmem:[%s6091_s10 + $0xf0] sm:$0xf] }
0x18bd   : > { %v2699_v21 = vpop.f32.mrf.mxu0 }
0x18be   : > { %v2709_v22 = vmul.f32 0.35355338, %v2699_v21  ;;  %v4494_v21 = vld [vmem:[%s6141_s6 + $0x68] sm:$0xff] }
0x18bf   : > { %2868 = vmatpush.bf16.msra.mxu1 %v4494_v21  ;;  %v4504_v21 = vld [vmem:[%s6091_s10 + $0xf4] sm:$0xf0] }
0x18c0   : > { %v2713_v24 = vadd.f32 %v2709_v22, %v5010_v42  ;;  %v4493_v22 = vld [vmem:[%s6141_s6 + $0x60] sm:$0xff]  ;;  %s4710_s6 = scalar_lea.hbm %s4709_s5, 1 }
0x18c1   : > { %p4711_p11 = scmp.ne.s32.totalorder %s4709_s5, %s4710_s6  ;;  %p4716_p1 = scmp.lt.s32.totalorder %s4714_s30, %s4710_s6 }
0x18c2   : > { %v2717_v27 = vsel %vm788_vm2, %v2713_v24, -inf }
0x18c3   : > { %2718 = vmax.xlane.f32.xlu0 %v2717_v27  ;;  %2869 = vmatpush.bf16.msra.mxu1 %v4493_v22  ;;  %v4503_v22 = vld [vmem:[%s6091_s10 + $0xf4] sm:$0xf]  ;;  %p4712_p12 = pnand %p4711_p11, %p4903_p5  ;;  %p4717_p2 = por %p4716_p1, %p4715_p0 }
0x18c5   : > { %v2701_v60 = vpop.f32.mrf.mxu0  ;;  %p4713_p13 = pneg %p4712_p12 }
0x18c6   : > { %v2710_v28 = vmul.f32 0.35355338, %v2701_v60 }
0x18c7   : > { %p4718_p3 = pnand %p4717_p2, %p4713_p13 }
0x18c8   : > { %v2714_v62 = vadd.f32 %v2710_v28, %v5010_v42 }
0x18ca   : > { %v2720_v29 = vsel %vm788_vm2, %v2714_v62, -inf }
0x18cb   : > { %2721 = vmax.xlane.f32.xlu1 %v2720_v29 }
0x18cd   : > { %v2704_v1 = vpop.f32.mrf.mxu0 }
0x18ce   : > { %v2711_v30 = vmul.f32 0.35355338, %v2704_v1 }
0x18d0   : > { %v2715_v5 = vadd.f32 %v2711_v30, %v5010_v42 }
0x18d2   : > { %v2723_v11 = vsel %vm788_vm2, %v2715_v5, -inf }
0x18d3   : > { %2724 = vmax.xlane.f32.xlu2 %v2723_v11 }
0x18d5   : > { %v2706_v33 = vpop.f32.mrf.mxu0 }
0x18d6   : > { %v2712_v34 = vmul.f32 0.35355338, %v2706_v33 }
0x18d8   : > { %v2716_v35 = vadd.f32 %v2712_v34, %v5010_v42 }
0x18da   : > { %v2726_v36 = vsel %vm788_vm2, %v2716_v35, -inf }
0x18db   : > { %2727 = vmax.xlane.f32.xlu1 %v2726_v36 }
0x1936   : > { %v2719_v37 = vpop.xlane.xlu0 %2718 }
0x1937   : > { %v2729_v38 = vsub.f32 %v2713_v24, %v2719_v37 }
0x1939   : > { %v2733_v39 = vmul.f32 1.442695, %v2729_v38 }
0x193b   : > { %4664 = vpow2.f32 %v2733_v39 }
0x193e   : > { %v2722_v41 = vpop.xlane.xlu1 %2721 }
0x193f   : > { %v2730_v43 = vsub.f32 %v2714_v62, %v2722_v41 }
0x1941   : > { %v4665_v13 = vpop.eup %4664  ;;  %v2735_v16 = vmul.f32 1.442695, %v2730_v43 }
0x1942   : > { %v2741_v25 = vsel %vm788_vm2, %v4665_v13, 0.0 }
0x1943   : > { %4666 = vpow2.f32 %v2735_v16  ;;  %2742 = vadd.xlane.f32.xlu1 %v2741_v25 }
0x1946   : > { %v2725_v45 = vpop.xlane.xlu2 %2724 }
0x1947   : > { %v2731_v26 = vsub.f32 %v2715_v5, %v2725_v45 }
0x1949   : > { %v4667_v46 = vpop.eup %4666  ;;  %v2737_v47 = vmul.f32 1.442695, %v2731_v26 }
0x194a   : > { %v2744_v42 = vsel %vm788_vm2, %v4667_v46, 0.0 }
0x194b   : > { %4668 = vpow2.f32 %v2737_v47  ;;  %2745 = vadd.xlane.f32.xlu1 %v2744_v42 }
0x194e   : > { %v2728_v32 = vpop.xlane.xlu1 %2727 }
0x194f   : > { %v2732_v44 = vsub.f32 %v2716_v35, %v2728_v32 }
0x1951   : > { %v4669_v49 = vpop.eup %4668  ;;  %v2739_v48 = vmul.f32 1.442695, %v2732_v44  ;;  %v4598_v44 = vld [vmem:[%s6090_s9 + $0x3] ss:$0 sm:$0xff] }
0x1952   : > { %v2747_v50 = vsel %vm788_vm2, %v4669_v49, 0.0 }
0x1953   : > { %4670 = vpow2.f32 %v2739_v48  ;;  %2748 = vadd.xlane.f32.xlu1 %v2747_v50  ;;  %v4600_v48 = vld [vmem:[%s6089_s8 + $0x3] ss:$0 sm:$0xff] }
0x1954   : > { %v4597_v50 = vld [vmem:[%s6095_s14 + $0x3] ss:$0 sm:$0xff] }
0x1959   : > { %v4671_v51 = vpop.eup %4670 }
0x195a   : > { %v2750_v52 = vsel %vm788_vm2, %v4671_v51, 0.0 }
0x195b   : > { %2751 = vadd.xlane.f32.xlu0 %v2750_v52  ;;  %v1915_v52 = vsel %vm1914_vm3, %v5534_v56, 0.0 }
0x19b6   : > { %v2743_v53 = vpop.xlane.xlu1 %2742 }
0x19b7   : > { %4672 = vrcp.f32 %v2743_v53 }
0x19bd   : > { %v4673_v61 = vpop.eup %4672 }
0x19be   : > { %v2746_v54 = vpop.xlane.xlu1 %2745  ;;  %v2757_v0 = vmul.f32 %v4673_v61, %v4665_v13 }
0x19bf   : > { %4674 = vrcp.f32 %v2746_v54 }
0x19c5   : > { %v4675_v63 = vpop.eup %4674 }
0x19c6   : > { %v2758_v23 = vmul.f32 %v4675_v63, %v4667_v46  ;;  %v2749_v6 = vpop.xlane.xlu1 %2748 }
0x19c7   : > { %4676 = vrcp.f32 %v2749_v6 }
0x19c8   : > { %v2761_v4 = vpack.c.bf16 %v2758_v23, %v2757_v0 }
0x19ca   : > { %4137 = vmatmul.msk.bf16.vlgmr.msra.gmra.mxu2 %vm788_vm2, %v2761_v4 }
0x19cd   : > { %v4677_v10 = vpop.eup %4676 }
0x19ce   : > { %v2752_v7 = vpop.xlane.xlu0 %2751  ;;  %v2759_v19 = vmul.f32 %v4677_v10, %v4669_v49 }
0x19cf   : > { %4678 = vrcp.f32 %v2752_v7 }
0x19d5   : > { %v4679_v17 = vpop.eup %4678 }
0x19d6   : > { %v2760_v18 = vmul.f32 %v4679_v17, %v4671_v51  ;;  %v4599_v51 = vld [vmem:[%s6096_s15 + $0x3] ss:$0 sm:$0xff] }
0x19d8   : > { %v2762_v8 = vpack.c.bf16 %v2760_v18, %v2759_v19 }
0x19da   : > { %4138 = vmatmul.msk.bf16.gmra.mxu2 %vm788_vm2, %v2762_v8 }
0x1a4d   : > { %v2782_v24 = vpop.f32.mrf.mxu2 }
0x1a4e   : > { %v2794_v27 = vmul.f32 %v2782_v24, %v5058_v55  ;;  %v2792_v62 = vmul.f32 %v2782_v24, %v5062_v57  ;;  %v4203_v24 = vor.u32 %v4504_v21, %v4202_v20 }
0x1a50   : > { %v2796_v28 = vrot.slane %v2794_v27, 4  ;;  %v4204_v27 = vld [vmem:[%s6091_s10 + $0xf8] sm:$0xf0]  ;;  %2993 = vmatpush.bf16.msrb.mxu3 %v4203_v24 }
0x1a52   : > { %v2798_v30 = vadd.f32 %v2796_v28, %v2792_v62  ;;  %v4502_v28 = vld [vmem:[%s6091_s10 + $0xe4] sm:$0xf0]  ;;  %v4207_v62 = vor.u32 %v4503_v22, %v4204_v27 }
0x1a54   : > { %3006 = vmatpush.bf16.msrb.mxu1 %v4207_v62 }
0x1a55   : > { %v2784_v60 = vpop.f32.mrf.mxu2 }
0x1a56   : > { %v2799_v29 = vmul.f32 %v2784_v60, %v5065_v58  ;;  %v2801_v1 = vmul.f32 %v2784_v60, %v5068_v59  ;;  %v4194_v60 = vld [vmem:[%s6091_s10 + $0xe0] sm:$0xf] }
0x1a58   : > { %v2800_v5 = vadd.f32 %v2799_v29, %v2798_v30  ;;  %v2803_v11 = vrot.slane %v2801_v1, 4  ;;  %v4501_v29 = vld [vmem:[%s6091_s10 + $0xe4] sm:$0xf]  ;;  %v4196_v1 = vld [vmem:[%s6091_s10 + $0xe8] sm:$0xf0]  ;;  %v4195_v30 = vor.u32 %v4502_v28, %v4194_v60 }
0x1a5a   : > { %v2805_v36 = vadd.f32 %v2803_v11, %v2800_v5  ;;  %v4199_v5 = vor.u32 %v4501_v29, %v4196_v1  ;;  %v4186_v11 = vld [vmem:[%s6091_s10 + $0xd0] sm:$0xf]  ;;  %2994 = vmatpush.bf16.msrb.mxu3 %v4195_v30 }
0x1a5c   : > { %3007 = vmatpush.bf16.msrb.mxu1 %v4199_v5 }
0x1a5d   : > { %v2787_v33 = vpop.f32.mrf.mxu2 }
0x1a5e   : > { %v2806_v34 = vmul.f32 %v2787_v33, %v5074_v2  ;;  %v2808_v35 = vmul.f32 %v2787_v33, %v5077_v3  ;;  %v4596_v2 = vld [vmem:[%s6088_s7 + $0x3] ss:$0 sm:$0xff]  ;;  %v4500_v33 = vld [vmem:[%s6091_s10 + $0xd4] sm:$0xf0] }
0x1a60   : > { %v2807_v37 = vadd.f32 %v2806_v34, %v2805_v36  ;;  %v2810_v38 = vrot.slane %v2808_v35, 4  ;;  %v4499_v34 = vld [vmem:[%s6091_s10 + $0xd4] sm:$0xf]  ;;  %v4188_v35 = vld [vmem:[%s6091_s10 + $0xd8] sm:$0xf0]  ;;  %v4187_v36 = vor.u32 %v4500_v33, %v4186_v11 }
0x1a62   : > { %v2812_v39 = vadd.f32 %v2810_v38, %v2807_v37  ;;  %v4191_v37 = vor.u32 %v4499_v34, %v4188_v35  ;;  %v4178_v38 = vld [vmem:[%s6091_s10 + $0xc0] sm:$0xf]  ;;  %2995 = vmatpush.bf16.msrb.mxu3 %v4187_v36 }
0x1a64   : > { %3008 = vmatpush.bf16.msrb.mxu1 %v4191_v37 }
0x1a65   : > { %v2789_v55 = vpop.f32.mrf.mxu2 }
0x1a66   : > { %v2813_v41 = vmul.f32 %v2789_v55, %v5082_v12  ;;  %v2815_v57 = vmul.f32 %v2789_v55, %v5085_v14  ;;  %v4498_v55 = vld [vmem:[%s6091_s10 + $0xc4] sm:$0xf0] }
0x1a68   : > { %v2814_v58 = vadd.f32 %v2813_v41, %v2812_v39  ;;  %v2817_v43 = vrot.slane %v2815_v57, 4  ;;  %v4497_v39 = vld [vmem:[%s6091_s10 + $0xc4] sm:$0xf]  ;;  %v4180_v41 = vld [vmem:[%s6091_s10 + $0xc8] sm:$0xf0]  ;;  %v4179_v57 = vor.u32 %v4498_v55, %v4178_v38 }
0x1a6a   : > { %v2819_v59 = vadd.f32 %v2817_v43, %v2814_v58  ;;  %v4183_v58 = vor.u32 %v4497_v39, %v4180_v41  ;;  %2996 = vmatpush.bf16.msrb.mxu3 %v4179_v57  ;;  %v4520_v43 = vld [vmem:[%s6093_s12 + $0x1f8] sm:$0xff] }
0x1a6b   : > { %3166 = vmatpush.bf16.msrb.mxu2 %v4520_v43  ;;  %v4693_v43 = vld [vmem:[%s4998_s0] sm:$0x1]  ;;  %s3422_s0 = scalar_lea.sflag [#allocation3], %s629_s4 }
0x1a6c   : > { %v2820_v13 = vpack.c.bf16 %v2819_v59, %v2819_v59  ;;  %3009 = vmatpush.bf16.msrb.mxu1 %v4183_v58  ;;  %v4512_v59 = vld [vmem:[%s6093_s12 + $0x1b8] sm:$0xff] }
0x1a6d   : > { %3153 = vmatpush.bf16.msra.mxu0 %v4512_v59  ;;  %v4528_v59 = vld [vmem:[%s6097_s16 + $0x38] sm:$0xff] }
0x1a6e   : > { %4164 = vmatmul.msk.bf16.vlgmr.msra.gmra.mxu1 %vm704_vm0, %v2820_v13  ;;  %v4519_v13 = vld [vmem:[%s6093_s12 + $0x1f0] sm:$0xff] }
0x1a6f   : > { %3167 = vmatpush.bf16.msrb.mxu2 %v4519_v13  ;;  %v4527_v13 = vld [vmem:[%s6097_s16 + $0x30] sm:$0xff] }
0x1a70   : > { %3327 = vmatpush.bf16.msra.mxu1 %v4528_v59 }
0x1a74   : > { %3328 = vmatpush.bf16.msra.mxu1 %v4527_v13 }
0x1aeb   : > { %v2871_v3 = vpop.f32.mrf.mxu1 }
0x1aec   : > { %v2872_v16 = vadd.f32 %v4596_v2, %v2871_v3  ;;  %v4511_v2 = vld [vmem:[%s6093_s12 + $0x1b0] sm:$0xff]  ;;  %v4518_v3 = vld [vmem:[%s6093_s12 + $0x1e8] sm:$0xff] }
0x1aed   : > { %3154 = vmatpush.bf16.msra.mxu0 %v4511_v2  ;;  %3168 = vmatpush.bf16.msrb.mxu2 %v4518_v3  ;;  %v4526_v2 = vld [vmem:[%s6097_s16 + $0x28] sm:$0xff]  ;;  %v4525_v3 = vld [vmem:[%s6097_s16 + $0x20] sm:$0xff] }
0x1aee   : > { %2876 = vrot.lane.b32.xlu1 %v2872_v16, %s6142_s25  ;;  %v4510_v16 = vld [vmem:[%s6093_s12 + $0x1a8] sm:$0xff]  ;;  %3329 = vmatpush.bf16.msra.mxu1 %v4526_v2 }
0x1af1   : > { %3155 = vmatpush.bf16.msra.mxu0 %v4510_v16  ;;  %v4524_v16 = vld [vmem:[%s6097_s16 + $0x18] sm:$0xff] }
0x1af2   : > { %3330 = vmatpush.bf16.msra.mxu1 %v4525_v3 }
0x1af3   : > { %v2873_v25 = vpop.f32.mrf.mxu1 }
0x1af4   : > { %v4517_v25 = vld [vmem:[%s6093_s12 + $0x1e0] sm:$0xff] }
0x1af5   : > { %3169 = vmatpush.bf16.msrb.mxu2 %v4517_v25 }
0x1af6   : > { %3331 = vmatpush.bf16.msra.mxu1 %v4524_v16 }
0x1b60   : > { %v2877_v45 = vpop.permute.xlu1 %2876 }
0x1b61   : > { %v2879_v12 = vadd.f32 %v2877_v45, %v5788_v31  ;;  %v4509_v45 = vld [vmem:[%s6093_s12 + $0x1a0] sm:$0xff] }
0x1b62   : > { %3156 = vmatpush.bf16.msra.mxu0 %v4509_v45  ;;  %v4523_v45 = vld [vmem:[%s6097_s16 + $0x10] sm:$0xff] }
0x1b63   : > { %2885 = vrot.lane.b32.xlu2 %v2879_v12, %s6142_s25  ;;  %3332 = vmatpush.bf16.msra.mxu1 %v4523_v45 }
0x1b6b   : > { %2916 = vrot.lane.b32.xlu2 %v4600_v48, %s6142_s25 }
0x1bbd   : > { %v2886_v14 = vpop.permute.xlu2 %2885 }
0x1bbe   : > { %v2888_v26 = vsel %vm957_vm4, %v2886_v14, 0.0  ;;  %v4508_v14 = vld [vmem:[%s6093_s12 + $0x198] sm:$0xff] }
0x1bbf   : > { %2889 = vadd.xlane.f32.xlu0 %v2888_v26  ;;  %v4515_v26 = vld [vmem:[%s6093_s12 + $0x1d0] sm:$0xff]  ;;  %3157 = vmatpush.bf16.msra.mxu0 %v4508_v14  ;;  %v4522_v14 = vld [vmem:[%s6097_s16 + $0x8] sm:$0xff] }
0x1bc0   : > { %3333 = vmatpush.bf16.msra.mxu1 %v4522_v14 }
0x1bc5   : > { %v2917_v17 = vpop.permute.xlu2 %2916 }
0x1c32   : > { %v2890_v46 = vpop.xlane.xlu0 %2889 }
0x1c33   : > { %v2891_v47 = vmul.f32 %v2890_v46, %v5095_v40 }
0x1c35   : > { %v2892_v42 = vsub.f32 %v2879_v12, %v2891_v47  ;;  %v4516_v12 = vld [vmem:[%s6093_s12 + $0x1d8] sm:$0xff]  ;;  %v4514_v47 = vld [vmem:[%s6093_s12 + $0x1c8] sm:$0xff] }
0x1c36   : > { %3170 = vmatpush.bf16.msrb.mxu2 %v4516_v12 }
0x1c37   : > { %v2893_v32 = vmul.f32 %v2892_v42, %v2892_v42 }
0x1c39   : > { %2895 = vrot.lane.b32.xlu0 %v2893_v32, %s6142_s25  ;;  %v4513_v32 = vld [vmem:[%s6093_s12 + $0x1c0] sm:$0xff] }
0x1c3a   : > { %3171 = vmatpush.bf16.msrb.mxu2 %v4515_v26 }
0x1c3e   : > { %3172 = vmatpush.bf16.msrb.mxu2 %v4514_v47 }
0x1c41   : > { %2922 = vrot.lane.b32.xlu0 %v4598_v44, %s6142_s25  ;;  %v4506_v44 = vld [vmem:[%s6093_s12 + $0x188] sm:$0xff] }
0x1c42   : > { %3173 = vmatpush.bf16.msrb.mxu2 %v4513_v32  ;;  %v4536_v32 = vld [vmem:[%s6099_s18 + $0x38] sm:$0xff] }
0x1c43   : > { %3407 = vmatpush.bf16.msra.mxu3 %v4536_v32 }
0x1cab   : > { %v2896_v31 = vpop.permute.xlu0 %2895 }
0x1cac   : > { %v2898_v49 = vsel %vm957_vm4, %v2896_v31, 0.0  ;;  %v4505_v31 = vld [vmem:[%s6093_s12 + $0x180] sm:$0xff] }
0x1cad   : > { %2899 = vadd.xlane.f32.xlu1 %v2898_v49  ;;  %v4175_v49 = vld [vmem:[%s6092_s11 + $0x6] sm:$0x3] }
0x1cae   : > { %v2940_v48 = vperm.slane %v4175_v49, 1 }
0x1cb3   : > { %v2923_v18 = vpop.permute.xlu0 %2922 }
0x1cc6   : > { %3220 = vrot.lane.b32.xlu1 %v4597_v50, %s6142_s25 }
0x1cce   : > { %3226 = vrot.lane.b32.xlu1 %v4599_v51, %s6142_s25 }
0x1cf8   : > { %1916 = vadd.xlane.f32.xlu1 %v1915_v52 }
0x1d20   : > { %v2900_v53 = vpop.xlane.xlu1 %2899 }
0x1d21   : > { %v2901_v54 = vmul.f32 %v2900_v53, %v5095_v40  ;;  %v2939_v53 = vperm.slane %v4175_v49, 0  ;;  %v4533_v49 = vld [vmem:[%s6099_s18 + $0x20] sm:$0xff] }
0x1d23   : > { %v2902_v61 = vadd.f32 1e-05, %v2901_v54 }
0x1d25   : > { %4680 = vrsqrt.f32 %v2902_v61  ;;  %vm2909_vm14 = vweird.f32 %v2902_v61 }
0x1d2b   : > { %v4681_v63 = vpop.eup %4680 }
0x1d2c   : > { %v2904_v0 = vmul.f32 %v4681_v63, %v2902_v61  ;;  %vm2910_vm13 = vweird.f32 %v4681_v63 }
0x1d2d   : > { %vm2911_vm15 = vmor %vm2909_vm14, %vm2910_vm13 }
0x1d2e   : > { %v2905_v23 = vmul.f32 %v4681_v63, %v2904_v0 }
0x1d30   : > { %v2906_v4 = vmul.f32 0.5, %v2905_v23 }
0x1d32   : > { %v2907_v6 = vsub.f32 1.5, %v2906_v4 }
0x1d34   : > { %v2908_v7 = vmul.f32 %v4681_v63, %v2907_v6 }
0x1d36   : > { %v2912_v10 = vsel %vm2911_vm15, %v4681_v63, %v2908_v7  ;;  %v4601_v7 = vld [vmem:[%s6094_s13 + $0x3] ss:$0 sm:$0xff] }
0x1d37   : > { %v2913_v19 = vmul.f32 %v2912_v10, %v2892_v42  ;;  %v4507_v42 = vld [vmem:[%s6093_s12 + $0x190] sm:$0xff] }
0x1d38   : > { %3158 = vmatpush.bf16.msra.mxu0 %v4507_v42  ;;  %v3221_v35 = vpop.permute.xlu1 %3220  ;;  %v4521_v42 = vld [vmem:[%s6097_s16] sm:$0xff] }
0x1d39   : > { %v2919_v56 = vmul.f32 %v2917_v17, %v2913_v19  ;;  %3334 = vmatpush.bf16.msra.mxu1 %v4521_v42 }
0x1d3b   : > { %v5871_v8 = vadd.f32 %v2923_v18, %v2919_v56 }
0x1d3c   : > { %3159 = vmatpush.bf16.msra.mxu0 %v4506_v44  ;;  %v4535_v44 = vld [vmem:[%s6099_s18 + $0x30] sm:$0xff] }
0x1d3d   : > { %v2926_v15 = vpack.c.bf16 %v5871_v8, %v5871_v8  ;;  %3408 = vmatpush.bf16.msra.mxu3 %v4535_v44 }
0x1d3f   : > { %2944 = vrot.lane.b32.xlu2 %v2926_v15, %s6142_s25 }
0x1d40   : > { %3160 = vmatpush.bf16.msra.mxu0 %v4505_v31  ;;  %v3227_v57 = vpop.permute.xlu1 %3226  ;;  %v4534_v31 = vld [vmem:[%s6099_s18 + $0x28] sm:$0xff] }
0x1d41   : > { %3409 = vmatpush.bf16.msra.mxu3 %v4534_v31 }
0x1d45   : > { %3410 = vmatpush.bf16.msra.mxu3 %v4533_v49 }
0x1d6b   : > { %v1917_v25 = vpop.xlane.xlu1 %1916 }
0x1d6c   : > { %v1918_v12 = vmax.f32 %v1917_v25, 1e-06 }
0x1d99   : > { %v2945_v46 = vpop.permute.xlu2 %2944 }
0x1d9a   : > { %4208 = vmatmul.msk.bf16.vlgmr.msrb.gmra.mxu3 %vm704_vm0, %v2945_v46  ;;  %4209 = vmatmul.msk.bf16.vlgmr.msrb.gmra.mxu1 %vm704_vm0, %v2945_v46 }
0x1e17   : > { %v3011_v50 = vpop.f32.mrf.mxu1 }
0x1e18   : > { %v3012_v51 = vadd.f32 %v3011_v50, %v2940_v48  ;;  %v4532_v48 = vld [vmem:[%s6099_s18 + $0x18] sm:$0xff]  ;;  %v4531_v50 = vld [vmem:[%s6099_s18 + $0x10] sm:$0xff] }
0x1e19   : > { %3411 = vmatpush.bf16.msra.mxu3 %v4532_v48 }
0x1e1a   : > { %v3016_v52 = vmax.f32 %v3012_v51, 0.0 }
0x1e1c   : > { %v3018_v54 = vpack.c.bf16 %v3016_v52, %v3016_v52 }
0x1e1d   : > { %v2998_v61 = vpop.f32.mrf.mxu3  ;;  %3412 = vmatpush.bf16.msra.mxu3 %v4531_v50 }
0x1e1e   : > { %v2999_v63 = vadd.f32 %v2998_v61, %v2939_v53  ;;  %3174 = vmatmul.bf16.vlgmr.msrb.gmra.mxu2 %v3018_v54  ;;  %v4530_v61 = vld [vmem:[%s6099_s18 + $0x8] sm:$0xff] }
0x1e1f   : > { %v3013_v0 = vpop.f32.mrf.mxu1 }
0x1e20   : > { %v3015_v23 = vmax.f32 %v2999_v63, 0.0  ;;  %v4529_v63 = vld [vmem:[%s6099_s18] sm:$0xff] }
0x1e21   : > { %3413 = vmatpush.bf16.msra.mxu3 %v4530_v61 }
0x1e22   : > { %v3017_v4 = vpack.c.bf16 %v3015_v23, %v3015_v23 }
0x1e24   : > { %3161 = vmatmul.bf16.vlgmr.msra.gmra.mxu0 %v3017_v4 }
0x1e25   : > { %v3000_v6 = vpop.f32.mrf.mxu3  ;;  %3414 = vmatpush.bf16.msra.mxu3 %v4529_v63 }
0x1ea1   : > { %v3162_v10 = vpop.f32.mrf.mxu0  ;;  %v3175_v17 = vpop.f32.mrf.mxu2 }
0x1ea2   : > { %v3163_v19 = vadd.f32 %v4601_v7, %v3162_v10  ;;  %v3358_v10 = vld [vmem:[%s6145_s24] sm:$0x1] }
0x1ea4   : > { %v3176_v18 = vadd.f32 %v3175_v17, %v3163_v19 }
0x1ea6   : > { %3180 = vrot.lane.b32.xlu0 %v3176_v18, %s6142_s25 }
0x1ea9   : > { %v3164_v56 = vpop.f32.mrf.mxu0  ;;  %v3177_v15 = vpop.f32.mrf.mxu2 }
0x1f18   : > { %v3181_v20 = vpop.permute.xlu0 %3180 }
0x1f19   : > { %v3183_v21 = vadd.f32 %v3181_v20, %v5871_v8 }
0x1f1b   : > { %3189 = vrot.lane.b32.xlu2 %v3183_v21, %s6142_s25 }
0x1f75   : > { %v3190_v22 = vpop.permute.xlu2 %3189 }
0x1f76   : > { %v3192_v24 = vsel %vm957_vm4, %v3190_v22, 0.0 }
0x1f77   : > { %3193 = vadd.xlane.f32.xlu0 %v3192_v24 }
0x1fea   : > { %v3194_v27 = vpop.xlane.xlu0 %3193 }
0x1feb   : > { %v3195_v60 = vmul.f32 %v3194_v27, %v5095_v40 }
0x1fed   : > { %v3196_v28 = vsub.f32 %v3183_v21, %v3195_v60 }
0x1fef   : > { %v3197_v62 = vmul.f32 %v3196_v28, %v3196_v28 }
0x1ff1   : > { %3199 = vrot.lane.b32.xlu2 %v3197_v62, %s6142_s25 }
0x204b   : > { %v3200_v29 = vpop.permute.xlu2 %3199 }
0x204c   : > { %v3202_v1 = vsel %vm957_vm4, %v3200_v29, 0.0 }
0x204d   : > { %3203 = vadd.xlane.f32.xlu2 %v3202_v1 }
0x20c0   : > { %v3204_v30 = vpop.xlane.xlu2 %3203 }
0x20c1   : > { %v3205_v8 = vmul.f32 %v3204_v30, %v5095_v40 }
0x20c3   : > { %v3206_v5 = vadd.f32 1e-05, %v3205_v8 }
0x20c5   : > { %4682 = vrsqrt.f32 %v3206_v5  ;;  %vm3213_vm6 = vweird.f32 %v3206_v5 }
0x20c6   : > { %4684 = vrcp.f32 %v1918_v12 }
0x20cb   : > { %v4683_v11 = vpop.eup %4682 }
0x20cc   : > { %v3208_v33 = vmul.f32 %v4683_v11, %v3206_v5  ;;  %vm3214_vm5 = vweird.f32 %v4683_v11  ;;  %v4685_v26 = vpop.eup %4684 }
0x20cd   : > { %vm3215_vm7 = vmor %vm3213_vm6, %vm3214_vm5  ;;  %v1920_v51 = vmul.f32 %v4685_v26, %v5564_v9  ;;  %v3278_v9 = vld [vmem:[%s6098_s17] sm:$0x1] }
0x20ce   : > { %v3209_v34 = vmul.f32 %v4683_v11, %v3208_v33 }
0x20d0   : > { %v3210_v36 = vmul.f32 0.5, %v3209_v34 }
0x20d2   : > { %v3211_v37 = vsub.f32 1.5, %v3210_v36 }
0x20d4   : > { %v3212_v38 = vmul.f32 %v4683_v11, %v3211_v37 }
0x20d6   : > { %v3216_v55 = vsel %vm3215_vm7, %v4683_v11, %v3212_v38 }
0x20d7   : > { %v3217_v39 = vmul.f32 %v3216_v55, %v3196_v28 }
0x20d9   : > { %v3223_v41 = vmul.f32 %v3221_v35, %v3217_v39 }
0x20db   : > { %v3229_v58 = vadd.f32 %v3227_v57, %v3223_v41 }
0x20dd   : > { %3231 = vrot.lane.b32.xlu0 %v3229_v58, %s6142_s25 }
0x214f   : > { %v3232_v40 = vpop.permute.xlu0 %3231 }
0x2150   : > { %4309 = vmatpush.msk.msrb.mxu0 %vm737_vm1, %v3232_v40 }
0x2151   : > { %4310 = vmatmul.msk.f32.vlgmr.msrb.gmra.mxu0 %vm788_vm2, %v4693_v43 }
0x21ce   : > { %v3252_v46 = vpop.f32.mrf.mxu0 }
0x21cf   : > { %v3255_v47 = vmul.f32 %v4685_v26, %v3252_v46 }
0x21d1   : > { %3257 = vrot.lane.b32.xlu2 %v3255_v47, %s6142_s25 }
0x222b   : > { %v3258_v52 = vpop.permute.xlu2 %3257 }
0x222c   : > { %v3260_v53 = vsel %vm704_vm0, %v1920_v51, %v3258_v52 }
0x222d   : > { %v3261_v54 = vpack.c.bf16 %v3260_v53, %v3260_v53 }
0x222f   : > { %3335 = vmatmul.bf16.vlgmr.msra.gmra.mxu1 %v3261_v54 }
0x22ac   : > { %v3336_v0 = vpop.f32.mrf.mxu1 }
0x22ad   : > { %v3337_v23 = vadd.f32 %v3336_v0, %v3278_v9 }
0x22af   : > { %v3340_v4 = vmax.f32 %v3337_v23, 0.0 }
0x22b1   : > { %v3341_v6 = vpack.c.bf16 %v3340_v4, %v3340_v4 }
0x22b3   : > { %3415 = vmatmul.bf16.vlgmr.msra.gmra.mxu3 %v3341_v6 }
0x22b4   : > { %v3338_v7 = vpop.f32.mrf.mxu1 }
0x2336   : > { %v3416_v17 = vpop.f32.mrf.mxu3 }
0x2337   : > { %v3417_v19 = vadd.f32 %v3416_v17, %v3358_v10 }
0x2339   : > { %3420 = vst [vmem:[%s630_s28] sm:$0x1] %v3417_v19 }
0x233a   : > { %4721 = shalt.err (!%p4718_p3)
}
0x233b   : > { %4537 = dma.vmem_to_hbm [thread:$0]  (%p4903_p5), %s3433_s23, 16, %s3435_s3, %s3422_s0  }
0x233e   : > { %v3418_v18 = vpop.f32.mrf.mxu3 }
0x233f PF: > { %s6146_s4 = sld [smem:[#allocation7_spill]] }
0x2340   : > { %s6147_s29 = sld [smem:[#allocation5_spill]] }
0x2345   : > { %p4543_p4 = scmp.ge.s32.totalorder %s6146_s4, 2 }
0x2346   : > { %s3446_s28 = sand.u32 1, %s6147_s29  }
0x2347   : > { %p4540_p7 = pnand %p4543_p4, %p4907_p6  ;;  %s3447_s2 = scalar_lea.sflag [#allocation3], %s3446_s28 }
0x2349   : > { %p4541_p8 = pneg %p4540_p7 }
0x234b   : > { %4739 = dma.done.wait (%p4541_p8), %s3447_s2, 16  }
0x234c   : > { %4741 = vsyncadd (%p4541_p8), %s3447_s2, 4294967280  ;;  %s6149_s24 = sld [smem:[#allocation8_spill]]  ;;  %s6152_s1 = smov %s4748_s22 }
0x234d   : > { %s6150_s5 = sld [smem:[#allocation6_spill]] }
0x234e   : > { %s6151_s23 = sld [smem:[#allocation9_spill]] }
0x2352   : > { %p30_p9 = scmp.ge.s32.totalorder %s6149_s24, 4  }
0x2353   : > { %s6153_s22 = smov %s6150_s5 }
0x2354   :  { %32 = sbr.rel (!%p30_p9) target bundleno = 13 (0xd), region = 174 }
0x2359   :  { %3452 = vsyncpa [#allocation3], 1 }
0x235a   :  { %3454 = vsyncpa [#allocation3 + $0x1], 1 }

</bundles_post_ra>
